<compile_context>
chip_gen: v7x
topology: tpu7x:2x2x1
jax: 0.10.0
libtpu: 0.0.40
codegen_flags: <defaults>
</compile_context>

<pallas_src>
import functools
import math

import numpy as np
import jax
import jax.numpy as jnp
from jax import lax
from jax.experimental import pallas as pl
from jax.experimental.pallas import tpu as pltpu

EPS_LN = 1e-5
EPS_BN = 1e-5
NEG_INF = -1e30


def _gelu_exact(x):
    # PyTorch nn.GELU() default = exact erf-based GELU (kept for parity).
    return 0.5 * x * (1.0 + jax.scipy.special.erf(x * (1.0 / math.sqrt(2.0))))


def _round_up(v, m):
    return ((v + m - 1) // m) * m


def _conv_out(h, w, k, s, p):
    return (h + 2 * p - k) // s + 1, (w + 2 * p - k) // s + 1


def _pick_batch_block(batch):
    """Full batch fold on 1-TC chips (v5e/v6e); 2-way grid split on v7x (2 TCs)."""
    try:
        kind = jax.devices()[0].device_kind.lower()
    except Exception:
        kind = ""
    if ("v7" in kind or "7x" in kind) and batch % 2 == 0 and batch >= 2:
        return batch // 2
    return batch


# ----------------------------------------------------------------------------
# Host-side constants: stacked gather matrix, row masks, attention bias, masks
# ----------------------------------------------------------------------------
def _build_constants(h, w, kq, sq, pq, kkv, skv, pkv, cls_off, bb, nheads, c):
    n = cls_off + h * w
    hoq, woq = _conv_out(h, w, kq, sq, pq)
    hok, wok = _conv_out(h, w, kkv, skv, pkv)
    nq = cls_off + hoq * woq
    nkv = cls_off + hok * wok
    rq, rkv = _round_up(nq, 8), _round_up(nkv, 8)       # pad per-batch blocks to 8 rows
    rq_tot, rkv_tot = bb * rq, bb * rkv
    tq, tkv = kq * kq, kkv * kkv

    # One stacked 0/1 matrix: [q taps | kv taps | q cls selector | kv cls selector].
    g_rows = tq * rq_tot + tkv * rkv_tot + rq_tot + rkv_tot
    G = np.zeros((g_rows, rq_tot), np.float32)

    def fill_taps(row0, k, s, p, ho, wo, r_out, r_blk):
        for kh in range(k):
            for kw in range(k):
                t = kh * k + kw
                for b in range(bb):
                    for oi in range(ho):
                        for oj in range(wo):
                            ii = oi * s + kh - p
                            jj = oj * s + kw - p
                            if 0 <= ii < h and 0 <= jj < w:
                                r = row0 + t * r_blk + b * r_out + cls_off + oi * wo + oj
                                col = b * rq + cls_off + ii * w + jj
                                G[r, col] = 1.0

    fill_taps(0, kq, sq, pq, hoq, woq, rq, rq_tot)
    off_b = tq * rq_tot
    fill_taps(off_b, kkv, skv, pkv, hok, wok, rkv, rkv_tot)
    off_c = off_b + tkv * rkv_tot
    off_d = off_c + rq_tot
    if cls_off:
        for b in range(bb):
            G[off_c + b * rq, b * rq] = 1.0     # selq : cls token -> q row 0
            G[off_d + b * rkv, b * rq] = 1.0    # selkv: cls token -> kv row 0

    # Row masks: 1 on real conv-output rows, 0 on cls rows and pad rows.
    mq = np.zeros((rq_tot, 1), np.float32)
    mkv = np.zeros((rkv_tot, 1), np.float32)
    for b in range(bb):
        mq[b * rq + cls_off: b * rq + nq, 0] = 1.0
        mkv[b * rkv + cls_off: b * rkv + nkv, 0] = 1.0

    # Additive attention-score bias: 0 for valid same-batch keys, -1e30 otherwise
    # (excludes padded kv rows and cross-batch keys when the batch is folded).
    abias = np.full((rq_tot, nheads * rkv_tot), NEG_INF, np.float32)
    for i in range(rq_tot):
        bi = i // rq
        for hh in range(nheads):
            lo = hh * rkv_tot + bi * rkv
            abias[i, lo:lo + nkv] = 0.0

    # Per-head column masks (softmax segments) and per-head channel masks.
    hcol = np.zeros((nheads, 1, nheads * rkv_tot), np.float32)
    for hh in range(nheads):
        hcol[hh, 0, hh * rkv_tot:(hh + 1) * rkv_tot] = 1.0
    hd = c // nheads
    hmask = np.zeros((nheads, 1, c), np.float32)
    for hh in range(nheads):
        hmask[hh, 0, hh * hd:(hh + 1) * hd] = 1.0

    return dict(G=G, mq=mq, mkv=mkv, abias=abias, hcol=hcol, hmask=hmask,
                n=n, nq=nq, nkv=nkv, rq=rq, rkv=rkv, tq=tq, tkv=tkv)


# ----------------------------------------------------------------------------
# The single fused kernel (one grid step = `batch_block` batch elements)
# ----------------------------------------------------------------------------
def _cvt_block_kernel(
    x_ref,                                   # (Rq_tot, C)  padded, batch-row-stacked tokens
    ln1_g_ref, ln1_b_ref,                    # (1, C)
    g_ref,                                   # (G_rows, Rq_tot)  stacked 0/1 gather matrix
    cwq_ref, cwk_ref, cwv_ref,               # (Tq,1,C), (Tkv,1,C), (Tkv,1,C)
    cbias_ref, bnscale_ref, bnshift_ref,     # (3,1,C) each, order [q, k, v]
    mq_ref, mkv_ref,                         # (Rq_tot,1), (Rkv_tot,1)
    wqkvT_ref, bqkv_ref,                     # (3,C,C), (3,1,C)   (q pre-scaled)
    hmask_ref,                               # (NH, 1, C)   head channel masks
    abias_ref,                               # (Rq_tot, NH*Rkv_tot) additive score bias
    hcol_ref,                                # (NH, 1, NH*Rkv_tot) head column masks
    woT_ref, bo_ref,                         # (C, C), (1, C)
    ln2_g_ref, ln2_b_ref,                    # (1, C)
    w1T_ref, b1_ref, w2T_ref, b2_ref,        # (C,H), (1,H), (H,C), (1,C)
    o_ref,                                   # (Rq_tot, C)
    *, mxu_dtype,
):
    f32 = jnp.float32
    x = x_ref[...].astype(f32)
    rq_tot, C = x.shape
    rkv_tot = mkv_ref.shape[0]
    taps_q = cwq_ref.shape[0]
    taps_kv = cwk_ref.shape[0]
    num_heads = hmask_ref.shape[0]

    # ---- LayerNorm 1 (this IS the residual base, per the reference) ----------
    mu = jnp.mean(x, axis=-1, keepdims=True)
    var = jnp.mean((x - mu) ** 2, axis=-1, keepdims=True)
    y = (x - mu) * lax.rsqrt(var + EPS_LN)
    y = y * ln1_g_ref[...] + ln1_b_ref[...]

    # ---- all conv taps + cls selectors in ONE bf16 MXU push -------------------
    gath = jnp.dot(g_ref[...], y.astype(mxu_dtype), preferred_element_type=f32)

    q_rows = taps_q * rq_tot
    kv_rows = taps_kv * rkv_tot
    # Load depthwise weights / biases / masks to locals once (no re-reads in loops).
    cwq = cwq_ref[...]
    cwk = cwk_ref[...]
    cwv = cwv_ref[...]
    cbias = cbias_ref[...]
    bnsc = bnscale_ref[...]
    bnsh = bnshift_ref[...]
    mq = mq_ref[...]
    mkv = mkv_ref[...]

    # Depthwise weighting + reduction over the (8-row-aligned) tap blocks: pure VPU.
    q_acc = gath[0:rq_tot] * cwq[0]
    for t in range(1, taps_q):
        q_acc = q_acc + gath[t * rq_tot:(t + 1) * rq_tot] * cwq[t]

    kv0 = gath[q_rows:q_rows + rkv_tot]
    k_acc = kv0 * cwk[0]
    v_acc = kv0 * cwv[0]
    for t in range(1, taps_kv):                       # k and v share the gathered taps
        blk = gath[q_rows + t * rkv_tot:q_rows + (t + 1) * rkv_tot]
        k_acc = k_acc + blk * cwk[t]
        v_acc = v_acc + blk * cwv[t]

    cls_q = gath[q_rows + kv_rows:q_rows + kv_rows + rq_tot]
    cls_kv = gath[q_rows + kv_rows + rq_tot:q_rows + kv_rows + rq_tot + rkv_tot]

    def finish(acc, idx, rmask, cls_part):
        a = _gelu_exact(acc + cbias[idx])             # Conv(+bias) -> GELU
        a = a * bnsc[idx] + bnsh[idx]                 # eval BatchNorm (folded)
        return a * rmask + cls_part                   # cls bypass + pad-row zeroing

    q_tok = finish(q_acc, 0, mq, cls_q)
    k_tok = finish(k_acc, 1, mkv, cls_kv)
    v_tok = finish(v_acc, 2, mkv, cls_kv)

    # ---- qkv projections (1/sqrt(head_dim) folded into Wq/bq on the host) ----
    wqkvT = wqkvT_ref[...]
    bqkv = bqkv_ref[...]
    qp = jnp.dot(q_tok.astype(mxu_dtype), wqkvT[0], preferred_element_type=f32) + bqkv[0]
    kp = jnp.dot(k_tok.astype(mxu_dtype), wqkvT[1], preferred_element_type=f32) + bqkv[1]
    vp = jnp.dot(v_tok.astype(mxu_dtype), wqkvT[2], preferred_element_type=f32) + bqkv[2]

    # ---- all heads (and folded batches) in 2 MXU pushes -----------------------
    hmask = hmask_ref[...]
    kp_cat = jnp.concatenate([kp * hmask[hh] for hh in range(num_heads)], axis=0)
    vp_cat = jnp.concatenate([vp * hmask[hh] for hh in range(num_heads)], axis=0)

    s = lax.dot_general(qp.astype(mxu_dtype), kp_cat.astype(mxu_dtype),
                        (((1,), (1,)), ((), ())), preferred_element_type=f32)
    s = s + abias_ref[...]                            # -1e30 at pad / cross-batch keys

    hcol = hcol_ref[...]
    # Segment (per-head) softmax: masked max / sum on VPU+XLU, reciprocal on EUP.
    m_cols = jnp.zeros_like(s)
    for hh in range(num_heads):
        ch = hcol[hh]                                 # (1, NH*Rkv_tot), 0/1
        mh = jnp.max(s * ch + (1.0 - ch) * NEG_INF, axis=-1, keepdims=True)
        m_cols = m_cols + mh * ch
    p = jnp.exp(s - m_cols)
    linv_cols = jnp.zeros_like(s)
    for hh in range(num_heads):
        ch = hcol[hh]
        lh = jnp.sum(p * ch, axis=-1, keepdims=True)
        linv_cols = linv_cols + pl.reciprocal(lh, approx=True) * ch
    p = p * linv_cols

    ctx = jnp.dot(p.astype(mxu_dtype), vp_cat.astype(mxu_dtype),
                  preferred_element_type=f32)
    attn = jnp.dot(ctx.astype(mxu_dtype), woT_ref[...],
                   preferred_element_type=f32) + bo_ref[...]
    x1 = y + attn                                     # residual add #1

    # ---- LayerNorm 2 + MLP + residual -----------------------------------------
    mu2 = jnp.mean(x1, axis=-1, keepdims=True)
    var2 = jnp.mean((x1 - mu2) ** 2, axis=-1, keepdims=True)
    z = (x1 - mu2) * lax.rsqrt(var2 + EPS_LN)
    z = z * ln2_g_ref[...] + ln2_b_ref[...]
    h1 = _gelu_exact(jnp.dot(z.astype(mxu_dtype), w1T_ref[...],
                             preferred_element_type=f32) + b1_ref[...])
    mlp = jnp.dot(h1.astype(mxu_dtype), w2T_ref[...],
                  preferred_element_type=f32) + b2_ref[...]
    o_ref[...] = (x1 + mlp).astype(o_ref.dtype)       # residual add #2


# ----------------------------------------------------------------------------
# Wrapper: host-side folding / constant building + one pallas_call
# ----------------------------------------------------------------------------
def conv_transformer_block(x, h, w, params, *, num_heads,
                           k_q, s_q, p_q, k_kv, s_kv, p_kv,
                           class_token=True, batch_block=None,
                           mxu_dtype=jnp.bfloat16):
    B, N, C = x.shape
    cls_off = 1 if class_token else 0
    assert N == cls_off + h * w, "token count must be cls + h*w"
    assert C % num_heads == 0
    hd = C // num_heads
    f32 = jnp.float32

    if batch_block is None:
        batch_block = _pick_batch_block(B)
    assert B % batch_block == 0
    bb = batch_block
    nblk = B // bb

    cst = _build_constants(h, w, k_q, s_q, p_q, k_kv, s_kv, p_kv,
                           cls_off, bb, num_heads, C)
    nq, nkv = cst["nq"], cst["nkv"]
    rq, rkv, tq, tkv = cst["rq"], cst["rkv"], cst["tq"], cst["tkv"]
    assert nq == N, "query length must equal token length for the residual add"
    rq_tot, rkv_tot = bb * rq, bb * rkv

    # depthwise conv weights (K, K, C) -> (K*K, 1, C); biases stacked [q, k, v]
    cwq = params["convq_w"].reshape(tq, 1, C).astype(f32)
    cwk = params["convk_w"].reshape(tkv, 1, C).astype(f32)
    cwv = params["convv_w"].reshape(tkv, 1, C).astype(f32)
    cbias = jnp.stack([params["convq_b"], params["convk_b"], params["convv_b"]]).astype(f32)

    # fold eval-mode BatchNorm to scale/shift, stacked [q, k, v]
    def bn_fold(g, b_, rm, rv):
        sc = g * lax.rsqrt(rv + EPS_BN)
        return sc, b_ - rm * sc
    bnsq, bnoq = bn_fold(params["bnq_g"], params["bnq_b"], params["bnq_rm"], params["bnq_rv"])
    bnsk, bnok = bn_fold(params["bnk_g"], params["bnk_b"], params["bnk_rm"], params["bnk_rv"])
    bnsv, bnov = bn_fold(params["bnv_g"], params["bnv_b"], params["bnv_rm"], params["bnv_rv"])
    bnscale = jnp.stack([bnsq, bnsk, bnsv]).astype(f32)
    bnshift = jnp.stack([bnoq, bnok, bnov]).astype(f32)

    # attention: fold 1/sqrt(head_dim) into Wq and bq; stack projections [q, k, v]
    scale = 1.0 / math.sqrt(hd)
    wqkvT = jnp.stack([params["wqT"] * scale, params["wkT"], params["wvT"]]).astype(mxu_dtype)
    bqkv = jnp.stack([params["bq"] * scale, params["bk"], params["bv"]]).astype(f32)

    # tokens: zero-pad each batch element to rq rows and row-stack over the batch
    x_pad = jnp.pad(x.astype(f32), ((0, 0), (0, rq - N), (0, 0))).reshape(B * rq, C)

    args = (
        x_pad,
        params["ln1_g"].astype(f32), params["ln1_b"].astype(f32),
        jnp.asarray(cst["G"], dtype=mxu_dtype),          # 0/1 -> exact in bf16
        cwq, cwk, cwv,
        cbias, bnscale, bnshift,
        jnp.asarray(cst["mq"]), jnp.asarray(cst["mkv"]),
        wqkvT, bqkv,
        jnp.asarray(cst["hmask"]),
        jnp.asarray(cst["abias"]),
        jnp.asarray(cst["hcol"]),
        params["woT"].astype(mxu_dtype), params["bo"].astype(f32),
        params["ln2_g"].astype(f32), params["ln2_b"].astype(f32),
        params["w1T"].astype(mxu_dtype), params["b1"].astype(f32),
        params["w2T"].astype(mxu_dtype), params["b2"].astype(f32),
    )

    def full_spec(shape):
        zeros = (0,) * len(shape)
        return pl.BlockSpec(tuple(shape), lambda g, _z=zeros: _z)

    x_spec = pl.BlockSpec((rq_tot, C), lambda g: (g, 0))
    in_specs = [x_spec] + [full_spec(a.shape) for a in args[1:]]
    out_spec = pl.BlockSpec((rq_tot, C), lambda g: (g, 0))

    # Honest advisory cost estimate (counts real conv work, not the 0/1 matmul).
    hid = params["w1T"].shape[1]
    flops = 2 * B * (
        tq * (nq - cls_off) * C + 2 * tkv * (nkv - cls_off) * C   # depthwise convs
        + (nq + 2 * nkv) * C * C                                  # qkv projections
        + 2 * nq * nkv * C                                        # scores + context
        + nq * C * C                                              # output projection
        + 2 * nq * C * hid                                        # MLP
    )
    transcendentals = B * (num_heads * nq * nkv + (nq + 2 * nkv) * C + nq * hid)
    arg_bytes = sum(int(a.size) * a.dtype.itemsize for a in args)
    out_bytes = B * rq * C * x.dtype.itemsize
    vmem_limit = int(min(100 * 2 ** 20, max(8 * 2 ** 20, 6 * arg_bytes + 4 * 2 ** 20)))

    kernel = functools.partial(_cvt_block_kernel, mxu_dtype=mxu_dtype)

    out = pl.pallas_call(
        kernel,
        out_shape=jax.ShapeDtypeStruct((B * rq, C), x.dtype),
        grid=(nblk,),
        in_specs=in_specs,
        out_specs=out_spec,
        compiler_params=pltpu.CompilerParams(
            dimension_semantics=("parallel",),
            vmem_limit_bytes=vmem_limit),
        cost_estimate=pl.CostEstimate(flops=int(flops),
                                      transcendentals=int(transcendentals),
                                      bytes_accessed=int(arg_bytes + out_bytes)),
    )(*args)

    # drop the per-batch pad rows
    return out.reshape(B, rq, C)[:, :N, :]


# ----------------------------------------------------------------------------
# Main
# ----------------------------------------------------------------------------
if __name__ == "__main__":
    B = 2
    C = 32          # embed_dim
    HID = 64        # hidden_dim
    NH = 4          # num_heads
    h = w = 8
    N = 1 + h * w   # class token + patches
    k_q, s_q, p_q = 3, 1, 1
    k_kv, s_kv, p_kv = 3, 2, 1

    keys = list(jax.random.split(jax.random.PRNGKey(0), 64))
    _ki = iter(keys)

    def rnd(shape, scale=0.02):
        return (scale * jax.random.normal(next(_ki), shape)).astype(jnp.float32)

    params = {
        "ln1_g": 1.0 + rnd((1, C), 0.1), "ln1_b": rnd((1, C), 0.1),
        "ln2_g": 1.0 + rnd((1, C), 0.1), "ln2_b": rnd((1, C), 0.1),
        "wqT": rnd((C, C)), "bq": rnd((1, C), 0.1),
        "wkT": rnd((C, C)), "bk": rnd((1, C), 0.1),
        "wvT": rnd((C, C)), "bv": rnd((1, C), 0.1),
        "woT": rnd((C, C)), "bo": rnd((1, C), 0.1),
        "w1T": rnd((C, HID)), "b1": rnd((1, HID), 0.1),
        "w2T": rnd((HID, C)), "b2": rnd((1, C), 0.1),
    }
    for name, ks in (("q", k_q), ("k", k_kv), ("v", k_kv)):
        params[f"conv{name}_w"] = rnd((ks, ks, C), 0.2)
        params[f"conv{name}_b"] = rnd((1, C), 0.1)
        params[f"bn{name}_g"] = 1.0 + rnd((1, C), 0.1)
        params[f"bn{name}_b"] = rnd((1, C), 0.1)
        params[f"bn{name}_rm"] = rnd((1, C), 0.1)
        params[f"bn{name}_rv"] = 1.0 + jnp.abs(rnd((1, C), 0.1))

    x = jax.random.normal(next(_ki), (B, N, C), dtype=jnp.float32)

    out = conv_transformer_block(
        x, h, w, params, num_heads=NH,
        k_q=k_q, s_q=s_q, p_q=p_q, k_kv=k_kv, s_kv=s_kv, p_kv=p_kv,
        class_token=True,
    )
    out = jax.block_until_ready(out)
    assert out.shape == (B, N, C) and out.dtype == jnp.float32
    assert bool(jnp.all(jnp.isfinite(out)))
    print("KERNEL_OK")
</pallas_src>

<mosaic_0001>
module attributes {stable_mosaic.version = 11 : i64} {
  func.func @_cvt_block_kernel(%arg0: i32, %arg1: memref<144x32xf32, #tpu.memory_space<vmem>>, %arg2: memref<1x32xf32, #tpu.memory_space<vmem>>, %arg3: memref<1x32xf32, #tpu.memory_space<vmem>>, %arg4: memref<1920x144xbf16, #tpu.memory_space<vmem>>, %arg5: memref<9x1x32xf32, #tpu.memory_space<vmem>>, %arg6: memref<9x1x32xf32, #tpu.memory_space<vmem>>, %arg7: memref<9x1x32xf32, #tpu.memory_space<vmem>>, %arg8: memref<3x1x32xf32, #tpu.memory_space<vmem>>, %arg9: memref<3x1x32xf32, #tpu.memory_space<vmem>>, %arg10: memref<3x1x32xf32, #tpu.memory_space<vmem>>, %arg11: memref<144x1xf32, #tpu.memory_space<vmem>>, %arg12: memref<48x1xf32, #tpu.memory_space<vmem>>, %arg13: memref<3x32x32xbf16, #tpu.memory_space<vmem>>, %arg14: memref<3x1x32xf32, #tpu.memory_space<vmem>>, %arg15: memref<4x1x32xf32, #tpu.memory_space<vmem>>, %arg16: memref<144x192xf32, #tpu.memory_space<vmem>>, %arg17: memref<4x1x192xf32, #tpu.memory_space<vmem>>, %arg18: memref<32x32xbf16, #tpu.memory_space<vmem>>, %arg19: memref<1x32xf32, #tpu.memory_space<vmem>>, %arg20: memref<1x32xf32, #tpu.memory_space<vmem>>, %arg21: memref<1x32xf32, #tpu.memory_space<vmem>>, %arg22: memref<32x64xbf16, #tpu.memory_space<vmem>>, %arg23: memref<1x64xf32, #tpu.memory_space<vmem>>, %arg24: memref<64x32xbf16, #tpu.memory_space<vmem>>, %arg25: memref<1x32xf32, #tpu.memory_space<vmem>>, %arg26: memref<144x32xf32, #tpu.memory_space<vmem>>) attributes {dimension_semantics = [#tpu.dimension_semantics<parallel>], iteration_bounds = array<i64: 1>, scalar_prefetch = 0 : i64, scratch_operands = 0 : i64, tpu.core_type = #tpu.core_type<tc>, window_params = [{transform_indices = @transform_0, window_bounds = array<i64: 144, 32>}, {pipeline_mode = #tpu.pipeline_mode<synchronous>, transform_indices = @transform_1, window_bounds = array<i64: 1, 32>}, {pipeline_mode = #tpu.pipeline_mode<synchronous>, transform_indices = @transform_2, window_bounds = array<i64: 1, 32>}, {pipeline_mode = #tpu.pipeline_mode<synchronous>, transform_indices = @transform_3, window_bounds = array<i64: 1920, 144>}, {pipeline_mode = #tpu.pipeline_mode<synchronous>, transform_indices = @transform_4, window_bounds = array<i64: 9, 1, 32>}, {pipeline_mode = #tpu.pipeline_mode<synchronous>, transform_indices = @transform_5, window_bounds = array<i64: 9, 1, 32>}, {pipeline_mode = #tpu.pipeline_mode<synchronous>, transform_indices = @transform_6, window_bounds = array<i64: 9, 1, 32>}, {pipeline_mode = #tpu.pipeline_mode<synchronous>, transform_indices = @transform_7, window_bounds = array<i64: 3, 1, 32>}, {pipeline_mode = #tpu.pipeline_mode<synchronous>, transform_indices = @transform_8, window_bounds = array<i64: 3, 1, 32>}, {pipeline_mode = #tpu.pipeline_mode<synchronous>, transform_indices = @transform_9, window_bounds = array<i64: 3, 1, 32>}, {pipeline_mode = #tpu.pipeline_mode<synchronous>, transform_indices = @transform_10, window_bounds = array<i64: 144, 1>}, {pipeline_mode = #tpu.pipeline_mode<synchronous>, transform_indices = @transform_11, window_bounds = array<i64: 48, 1>}, {pipeline_mode = #tpu.pipeline_mode<synchronous>, transform_indices = @transform_12, window_bounds = array<i64: 3, 32, 32>}, {pipeline_mode = #tpu.pipeline_mode<synchronous>, transform_indices = @transform_13, window_bounds = array<i64: 3, 1, 32>}, {pipeline_mode = #tpu.pipeline_mode<synchronous>, transform_indices = @transform_14, window_bounds = array<i64: 4, 1, 32>}, {pipeline_mode = #tpu.pipeline_mode<synchronous>, transform_indices = @transform_15, window_bounds = array<i64: 144, 192>}, {pipeline_mode = #tpu.pipeline_mode<synchronous>, transform_indices = @transform_16, window_bounds = array<i64: 4, 1, 192>}, {pipeline_mode = #tpu.pipeline_mode<synchronous>, transform_indices = @transform_17, window_bounds = array<i64: 32, 32>}, {pipeline_mode = #tpu.pipeline_mode<synchronous>, transform_indices = @transform_18, window_bounds = array<i64: 1, 32>}, {pipeline_mode = #tpu.pipeline_mode<synchronous>, transform_indices = @transform_19, window_bounds = array<i64: 1, 32>}, {pipeline_mode = #tpu.pipeline_mode<synchronous>, transform_indices = @transform_20, window_bounds = array<i64: 1, 32>}, {pipeline_mode = #tpu.pipeline_mode<synchronous>, transform_indices = @transform_21, window_bounds = array<i64: 32, 64>}, {pipeline_mode = #tpu.pipeline_mode<synchronous>, transform_indices = @transform_22, window_bounds = array<i64: 1, 64>}, {pipeline_mode = #tpu.pipeline_mode<synchronous>, transform_indices = @transform_23, window_bounds = array<i64: 64, 32>}, {pipeline_mode = #tpu.pipeline_mode<synchronous>, transform_indices = @transform_24, window_bounds = array<i64: 1, 32>}, {transform_indices = @transform_25, window_bounds = array<i64: 144, 32>}]} {
    %c0 = arith.constant 0 : index
    %c0_0 = arith.constant 0 : index
    %0 = vector.load %arg1[%c0, %c0_0] : memref<144x32xf32, #tpu.memory_space<vmem>>, vector<144x32xf32>
    %cst = arith.constant dense<0.000000e+00> : vector<144xf32>
    %1 = vector.multi_reduction <add>, %0, %cst [1] : vector<144x32xf32> to vector<144xf32>
    %2 = vector.shape_cast %1 : vector<144xf32> to vector<144x1xf32>
    %cst_1 = arith.constant 3.200000e+01 : f32
    %3 = vector.broadcast %cst_1 : f32 to vector<144x1xf32>
    %4 = arith.divf %2, %3 : vector<144x1xf32>
    %5 = vector.broadcast %4 : vector<144x1xf32> to vector<144x32xf32>
    %6 = arith.subf %0, %5 : vector<144x32xf32>
    %7 = arith.mulf %6, %6 : vector<144x32xf32>
    %cst_2 = arith.constant dense<0.000000e+00> : vector<144xf32>
    %8 = vector.multi_reduction <add>, %7, %cst_2 [1] : vector<144x32xf32> to vector<144xf32>
    %9 = vector.shape_cast %8 : vector<144xf32> to vector<144x1xf32>
    %cst_3 = arith.constant 3.200000e+01 : f32
    %10 = vector.broadcast %cst_3 : f32 to vector<144x1xf32>
    %11 = arith.divf %9, %10 : vector<144x1xf32>
    %12 = vector.broadcast %4 : vector<144x1xf32> to vector<144x32xf32>
    %13 = arith.subf %0, %12 : vector<144x32xf32>
    %cst_4 = arith.constant 9.99999974E-6 : f32
    %14 = vector.broadcast %cst_4 : f32 to vector<144x1xf32>
    %15 = arith.addf %11, %14 : vector<144x1xf32>
    %16 = math.rsqrt %15 : vector<144x1xf32>
    %17 = vector.broadcast %16 : vector<144x1xf32> to vector<144x32xf32>
    %18 = arith.mulf %13, %17 : vector<144x32xf32>
    %c0_5 = arith.constant 0 : index
    %c0_6 = arith.constant 0 : index
    %19 = vector.load %arg2[%c0_5, %c0_6] : memref<1x32xf32, #tpu.memory_space<vmem>>, vector<1x32xf32>
    %20 = vector.broadcast %19 : vector<1x32xf32> to vector<144x32xf32>
    %21 = arith.mulf %18, %20 : vector<144x32xf32>
    %c0_7 = arith.constant 0 : index
    %c0_8 = arith.constant 0 : index
    %22 = vector.load %arg3[%c0_7, %c0_8] : memref<1x32xf32, #tpu.memory_space<vmem>>, vector<1x32xf32>
    %23 = vector.broadcast %22 : vector<1x32xf32> to vector<144x32xf32>
    %24 = arith.addf %21, %23 : vector<144x32xf32>
    %c0_9 = arith.constant 0 : index
    %c0_10 = arith.constant 0 : index
    %25 = vector.load %arg4[%c0_9, %c0_10] : memref<1920x144xbf16, #tpu.memory_space<vmem>>, vector<1920x144xbf16>
    %26 = arith.truncf %24 : vector<144x32xf32> to vector<144x32xbf16>
    %cst_11 = arith.constant dense<0.000000e+00> : vector<1920x32xf32>
    %27 = tpu.matmul %25, %26, %cst_11 {dimension_numbers = #tpu.dot_dimension_numbers<[1], [0], [0], [1], [0, 0, 1, 1], [], []>} : vector<1920x144xbf16>, vector<144x32xbf16>, vector<1920x32xf32> -> vector<1920x32xf32>
    %c0_12 = arith.constant 0 : index
    %c0_13 = arith.constant 0 : index
    %c0_14 = arith.constant 0 : index
    %28 = vector.load %arg5[%c0_12, %c0_13, %c0_14] : memref<9x1x32xf32, #tpu.memory_space<vmem>>, vector<9x1x32xf32>
    %c0_15 = arith.constant 0 : index
    %c0_16 = arith.constant 0 : index
    %c0_17 = arith.constant 0 : index
    %29 = vector.load %arg6[%c0_15, %c0_16, %c0_17] : memref<9x1x32xf32, #tpu.memory_space<vmem>>, vector<9x1x32xf32>
    %c0_18 = arith.constant 0 : index
    %c0_19 = arith.constant 0 : index
    %c0_20 = arith.constant 0 : index
    %30 = vector.load %arg7[%c0_18, %c0_19, %c0_20] : memref<9x1x32xf32, #tpu.memory_space<vmem>>, vector<9x1x32xf32>
    %c0_21 = arith.constant 0 : index
    %c0_22 = arith.constant 0 : index
    %c0_23 = arith.constant 0 : index
    %31 = vector.load %arg8[%c0_21, %c0_22, %c0_23] : memref<3x1x32xf32, #tpu.memory_space<vmem>>, vector<3x1x32xf32>
    %c0_24 = arith.constant 0 : index
    %c0_25 = arith.constant 0 : index
    %c0_26 = arith.constant 0 : index
    %32 = vector.load %arg9[%c0_24, %c0_25, %c0_26] : memref<3x1x32xf32, #tpu.memory_space<vmem>>, vector<3x1x32xf32>
    %c0_27 = arith.constant 0 : index
    %c0_28 = arith.constant 0 : index
    %c0_29 = arith.constant 0 : index
    %33 = vector.load %arg10[%c0_27, %c0_28, %c0_29] : memref<3x1x32xf32, #tpu.memory_space<vmem>>, vector<3x1x32xf32>
    %c0_30 = arith.constant 0 : index
    %c0_31 = arith.constant 0 : index
    %34 = vector.load %arg11[%c0_30, %c0_31] : memref<144x1xf32, #tpu.memory_space<vmem>>, vector<144x1xf32>
    %c0_32 = arith.constant 0 : index
    %c0_33 = arith.constant 0 : index
    %35 = vector.load %arg12[%c0_32, %c0_33] : memref<48x1xf32, #tpu.memory_space<vmem>>, vector<48x1xf32>
    %36 = vector.extract_strided_slice %27 {offsets = [0, 0], sizes = [144, 32], strides = [1, 1]} : vector<1920x32xf32> to vector<144x32xf32>
    %37 = vector.extract_strided_slice %28 {offsets = [0, 0, 0], sizes = [1, 1, 32], strides = [1, 1, 1]} : vector<9x1x32xf32> to vector<1x1x32xf32>
    %38 = vector.shape_cast %37 : vector<1x1x32xf32> to vector<1x32xf32>
    %39 = vector.broadcast %38 : vector<1x32xf32> to vector<144x32xf32>
    %40 = arith.mulf %36, %39 : vector<144x32xf32>
    %41 = vector.extract_strided_slice %27 {offsets = [144, 0], sizes = [144, 32], strides = [1, 1]} : vector<1920x32xf32> to vector<144x32xf32>
    %42 = vector.extract_strided_slice %28 {offsets = [1, 0, 0], sizes = [1, 1, 32], strides = [1, 1, 1]} : vector<9x1x32xf32> to vector<1x1x32xf32>
    %43 = vector.shape_cast %42 : vector<1x1x32xf32> to vector<1x32xf32>
    %44 = vector.broadcast %43 : vector<1x32xf32> to vector<144x32xf32>
    %45 = arith.mulf %41, %44 : vector<144x32xf32>
    %46 = arith.addf %40, %45 : vector<144x32xf32>
    %47 = vector.extract_strided_slice %27 {offsets = [288, 0], sizes = [144, 32], strides = [1, 1]} : vector<1920x32xf32> to vector<144x32xf32>
    %48 = vector.extract_strided_slice %28 {offsets = [2, 0, 0], sizes = [1, 1, 32], strides = [1, 1, 1]} : vector<9x1x32xf32> to vector<1x1x32xf32>
    %49 = vector.shape_cast %48 : vector<1x1x32xf32> to vector<1x32xf32>
    %50 = vector.broadcast %49 : vector<1x32xf32> to vector<144x32xf32>
    %51 = arith.mulf %47, %50 : vector<144x32xf32>
    %52 = arith.addf %46, %51 : vector<144x32xf32>
    %53 = vector.extract_strided_slice %27 {offsets = [432, 0], sizes = [144, 32], strides = [1, 1]} : vector<1920x32xf32> to vector<144x32xf32>
    %54 = vector.extract_strided_slice %28 {offsets = [3, 0, 0], sizes = [1, 1, 32], strides = [1, 1, 1]} : vector<9x1x32xf32> to vector<1x1x32xf32>
    %55 = vector.shape_cast %54 : vector<1x1x32xf32> to vector<1x32xf32>
    %56 = vector.broadcast %55 : vector<1x32xf32> to vector<144x32xf32>
    %57 = arith.mulf %53, %56 : vector<144x32xf32>
    %58 = arith.addf %52, %57 : vector<144x32xf32>
    %59 = vector.extract_strided_slice %27 {offsets = [576, 0], sizes = [144, 32], strides = [1, 1]} : vector<1920x32xf32> to vector<144x32xf32>
    %60 = vector.extract_strided_slice %28 {offsets = [4, 0, 0], sizes = [1, 1, 32], strides = [1, 1, 1]} : vector<9x1x32xf32> to vector<1x1x32xf32>
    %61 = vector.shape_cast %60 : vector<1x1x32xf32> to vector<1x32xf32>
    %62 = vector.broadcast %61 : vector<1x32xf32> to vector<144x32xf32>
    %63 = arith.mulf %59, %62 : vector<144x32xf32>
    %64 = arith.addf %58, %63 : vector<144x32xf32>
    %65 = vector.extract_strided_slice %27 {offsets = [720, 0], sizes = [144, 32], strides = [1, 1]} : vector<1920x32xf32> to vector<144x32xf32>
    %66 = vector.extract_strided_slice %28 {offsets = [5, 0, 0], sizes = [1, 1, 32], strides = [1, 1, 1]} : vector<9x1x32xf32> to vector<1x1x32xf32>
    %67 = vector.shape_cast %66 : vector<1x1x32xf32> to vector<1x32xf32>
    %68 = vector.broadcast %67 : vector<1x32xf32> to vector<144x32xf32>
    %69 = arith.mulf %65, %68 : vector<144x32xf32>
    %70 = arith.addf %64, %69 : vector<144x32xf32>
    %71 = vector.extract_strided_slice %27 {offsets = [864, 0], sizes = [144, 32], strides = [1, 1]} : vector<1920x32xf32> to vector<144x32xf32>
    %72 = vector.extract_strided_slice %28 {offsets = [6, 0, 0], sizes = [1, 1, 32], strides = [1, 1, 1]} : vector<9x1x32xf32> to vector<1x1x32xf32>
    %73 = vector.shape_cast %72 : vector<1x1x32xf32> to vector<1x32xf32>
    %74 = vector.broadcast %73 : vector<1x32xf32> to vector<144x32xf32>
    %75 = arith.mulf %71, %74 : vector<144x32xf32>
    %76 = arith.addf %70, %75 : vector<144x32xf32>
    %77 = vector.extract_strided_slice %27 {offsets = [1008, 0], sizes = [144, 32], strides = [1, 1]} : vector<1920x32xf32> to vector<144x32xf32>
    %78 = vector.extract_strided_slice %28 {offsets = [7, 0, 0], sizes = [1, 1, 32], strides = [1, 1, 1]} : vector<9x1x32xf32> to vector<1x1x32xf32>
    %79 = vector.shape_cast %78 : vector<1x1x32xf32> to vector<1x32xf32>
    %80 = vector.broadcast %79 : vector<1x32xf32> to vector<144x32xf32>
    %81 = arith.mulf %77, %80 : vector<144x32xf32>
    %82 = arith.addf %76, %81 : vector<144x32xf32>
    %83 = vector.extract_strided_slice %27 {offsets = [1152, 0], sizes = [144, 32], strides = [1, 1]} : vector<1920x32xf32> to vector<144x32xf32>
    %84 = vector.extract_strided_slice %28 {offsets = [8, 0, 0], sizes = [1, 1, 32], strides = [1, 1, 1]} : vector<9x1x32xf32> to vector<1x1x32xf32>
    %85 = vector.shape_cast %84 : vector<1x1x32xf32> to vector<1x32xf32>
    %86 = vector.broadcast %85 : vector<1x32xf32> to vector<144x32xf32>
    %87 = arith.mulf %83, %86 : vector<144x32xf32>
    %88 = arith.addf %82, %87 : vector<144x32xf32>
    %89 = vector.extract_strided_slice %27 {offsets = [1296, 0], sizes = [48, 32], strides = [1, 1]} : vector<1920x32xf32> to vector<48x32xf32>
    %90 = vector.extract_strided_slice %29 {offsets = [0, 0, 0], sizes = [1, 1, 32], strides = [1, 1, 1]} : vector<9x1x32xf32> to vector<1x1x32xf32>
    %91 = vector.shape_cast %90 : vector<1x1x32xf32> to vector<1x32xf32>
    %92 = vector.broadcast %91 : vector<1x32xf32> to vector<48x32xf32>
    %93 = arith.mulf %89, %92 : vector<48x32xf32>
    %94 = vector.extract_strided_slice %30 {offsets = [0, 0, 0], sizes = [1, 1, 32], strides = [1, 1, 1]} : vector<9x1x32xf32> to vector<1x1x32xf32>
    %95 = vector.shape_cast %94 : vector<1x1x32xf32> to vector<1x32xf32>
    %96 = vector.broadcast %95 : vector<1x32xf32> to vector<48x32xf32>
    %97 = arith.mulf %89, %96 : vector<48x32xf32>
    %98 = vector.extract_strided_slice %27 {offsets = [1344, 0], sizes = [48, 32], strides = [1, 1]} : vector<1920x32xf32> to vector<48x32xf32>
    %99 = vector.extract_strided_slice %29 {offsets = [1, 0, 0], sizes = [1, 1, 32], strides = [1, 1, 1]} : vector<9x1x32xf32> to vector<1x1x32xf32>
    %100 = vector.shape_cast %99 : vector<1x1x32xf32> to vector<1x32xf32>
    %101 = vector.broadcast %100 : vector<1x32xf32> to vector<48x32xf32>
    %102 = arith.mulf %98, %101 : vector<48x32xf32>
    %103 = arith.addf %93, %102 : vector<48x32xf32>
    %104 = vector.extract_strided_slice %30 {offsets = [1, 0, 0], sizes = [1, 1, 32], strides = [1, 1, 1]} : vector<9x1x32xf32> to vector<1x1x32xf32>
    %105 = vector.shape_cast %104 : vector<1x1x32xf32> to vector<1x32xf32>
    %106 = vector.broadcast %105 : vector<1x32xf32> to vector<48x32xf32>
    %107 = arith.mulf %98, %106 : vector<48x32xf32>
    %108 = arith.addf %97, %107 : vector<48x32xf32>
    %109 = vector.extract_strided_slice %27 {offsets = [1392, 0], sizes = [48, 32], strides = [1, 1]} : vector<1920x32xf32> to vector<48x32xf32>
    %110 = vector.extract_strided_slice %29 {offsets = [2, 0, 0], sizes = [1, 1, 32], strides = [1, 1, 1]} : vector<9x1x32xf32> to vector<1x1x32xf32>
    %111 = vector.shape_cast %110 : vector<1x1x32xf32> to vector<1x32xf32>
    %112 = vector.broadcast %111 : vector<1x32xf32> to vector<48x32xf32>
    %113 = arith.mulf %109, %112 : vector<48x32xf32>
    %114 = arith.addf %103, %113 : vector<48x32xf32>
    %115 = vector.extract_strided_slice %30 {offsets = [2, 0, 0], sizes = [1, 1, 32], strides = [1, 1, 1]} : vector<9x1x32xf32> to vector<1x1x32xf32>
    %116 = vector.shape_cast %115 : vector<1x1x32xf32> to vector<1x32xf32>
    %117 = vector.broadcast %116 : vector<1x32xf32> to vector<48x32xf32>
    %118 = arith.mulf %109, %117 : vector<48x32xf32>
    %119 = arith.addf %108, %118 : vector<48x32xf32>
    %120 = vector.extract_strided_slice %27 {offsets = [1440, 0], sizes = [48, 32], strides = [1, 1]} : vector<1920x32xf32> to vector<48x32xf32>
    %121 = vector.extract_strided_slice %29 {offsets = [3, 0, 0], sizes = [1, 1, 32], strides = [1, 1, 1]} : vector<9x1x32xf32> to vector<1x1x32xf32>
    %122 = vector.shape_cast %121 : vector<1x1x32xf32> to vector<1x32xf32>
    %123 = vector.broadcast %122 : vector<1x32xf32> to vector<48x32xf32>
    %124 = arith.mulf %120, %123 : vector<48x32xf32>
    %125 = arith.addf %114, %124 : vector<48x32xf32>
    %126 = vector.extract_strided_slice %30 {offsets = [3, 0, 0], sizes = [1, 1, 32], strides = [1, 1, 1]} : vector<9x1x32xf32> to vector<1x1x32xf32>
    %127 = vector.shape_cast %126 : vector<1x1x32xf32> to vector<1x32xf32>
    %128 = vector.broadcast %127 : vector<1x32xf32> to vector<48x32xf32>
    %129 = arith.mulf %120, %128 : vector<48x32xf32>
    %130 = arith.addf %119, %129 : vector<48x32xf32>
    %131 = vector.extract_strided_slice %27 {offsets = [1488, 0], sizes = [48, 32], strides = [1, 1]} : vector<1920x32xf32> to vector<48x32xf32>
    %132 = vector.extract_strided_slice %29 {offsets = [4, 0, 0], sizes = [1, 1, 32], strides = [1, 1, 1]} : vector<9x1x32xf32> to vector<1x1x32xf32>
    %133 = vector.shape_cast %132 : vector<1x1x32xf32> to vector<1x32xf32>
    %134 = vector.broadcast %133 : vector<1x32xf32> to vector<48x32xf32>
    %135 = arith.mulf %131, %134 : vector<48x32xf32>
    %136 = arith.addf %125, %135 : vector<48x32xf32>
    %137 = vector.extract_strided_slice %30 {offsets = [4, 0, 0], sizes = [1, 1, 32], strides = [1, 1, 1]} : vector<9x1x32xf32> to vector<1x1x32xf32>
    %138 = vector.shape_cast %137 : vector<1x1x32xf32> to vector<1x32xf32>
    %139 = vector.broadcast %138 : vector<1x32xf32> to vector<48x32xf32>
    %140 = arith.mulf %131, %139 : vector<48x32xf32>
    %141 = arith.addf %130, %140 : vector<48x32xf32>
    %142 = vector.extract_strided_slice %27 {offsets = [1536, 0], sizes = [48, 32], strides = [1, 1]} : vector<1920x32xf32> to vector<48x32xf32>
    %143 = vector.extract_strided_slice %29 {offsets = [5, 0, 0], sizes = [1, 1, 32], strides = [1, 1, 1]} : vector<9x1x32xf32> to vector<1x1x32xf32>
    %144 = vector.shape_cast %143 : vector<1x1x32xf32> to vector<1x32xf32>
    %145 = vector.broadcast %144 : vector<1x32xf32> to vector<48x32xf32>
    %146 = arith.mulf %142, %145 : vector<48x32xf32>
    %147 = arith.addf %136, %146 : vector<48x32xf32>
    %148 = vector.extract_strided_slice %30 {offsets = [5, 0, 0], sizes = [1, 1, 32], strides = [1, 1, 1]} : vector<9x1x32xf32> to vector<1x1x32xf32>
    %149 = vector.shape_cast %148 : vector<1x1x32xf32> to vector<1x32xf32>
    %150 = vector.broadcast %149 : vector<1x32xf32> to vector<48x32xf32>
    %151 = arith.mulf %142, %150 : vector<48x32xf32>
    %152 = arith.addf %141, %151 : vector<48x32xf32>
    %153 = vector.extract_strided_slice %27 {offsets = [1584, 0], sizes = [48, 32], strides = [1, 1]} : vector<1920x32xf32> to vector<48x32xf32>
    %154 = vector.extract_strided_slice %29 {offsets = [6, 0, 0], sizes = [1, 1, 32], strides = [1, 1, 1]} : vector<9x1x32xf32> to vector<1x1x32xf32>
    %155 = vector.shape_cast %154 : vector<1x1x32xf32> to vector<1x32xf32>
    %156 = vector.broadcast %155 : vector<1x32xf32> to vector<48x32xf32>
    %157 = arith.mulf %153, %156 : vector<48x32xf32>
    %158 = arith.addf %147, %157 : vector<48x32xf32>
    %159 = vector.extract_strided_slice %30 {offsets = [6, 0, 0], sizes = [1, 1, 32], strides = [1, 1, 1]} : vector<9x1x32xf32> to vector<1x1x32xf32>
    %160 = vector.shape_cast %159 : vector<1x1x32xf32> to vector<1x32xf32>
    %161 = vector.broadcast %160 : vector<1x32xf32> to vector<48x32xf32>
    %162 = arith.mulf %153, %161 : vector<48x32xf32>
    %163 = arith.addf %152, %162 : vector<48x32xf32>
    %164 = vector.extract_strided_slice %27 {offsets = [1632, 0], sizes = [48, 32], strides = [1, 1]} : vector<1920x32xf32> to vector<48x32xf32>
    %165 = vector.extract_strided_slice %29 {offsets = [7, 0, 0], sizes = [1, 1, 32], strides = [1, 1, 1]} : vector<9x1x32xf32> to vector<1x1x32xf32>
    %166 = vector.shape_cast %165 : vector<1x1x32xf32> to vector<1x32xf32>
    %167 = vector.broadcast %166 : vector<1x32xf32> to vector<48x32xf32>
    %168 = arith.mulf %164, %167 : vector<48x32xf32>
    %169 = arith.addf %158, %168 : vector<48x32xf32>
    %170 = vector.extract_strided_slice %30 {offsets = [7, 0, 0], sizes = [1, 1, 32], strides = [1, 1, 1]} : vector<9x1x32xf32> to vector<1x1x32xf32>
    %171 = vector.shape_cast %170 : vector<1x1x32xf32> to vector<1x32xf32>
    %172 = vector.broadcast %171 : vector<1x32xf32> to vector<48x32xf32>
    %173 = arith.mulf %164, %172 : vector<48x32xf32>
    %174 = arith.addf %163, %173 : vector<48x32xf32>
    %175 = vector.extract_strided_slice %27 {offsets = [1680, 0], sizes = [48, 32], strides = [1, 1]} : vector<1920x32xf32> to vector<48x32xf32>
    %176 = vector.extract_strided_slice %29 {offsets = [8, 0, 0], sizes = [1, 1, 32], strides = [1, 1, 1]} : vector<9x1x32xf32> to vector<1x1x32xf32>
    %177 = vector.shape_cast %176 : vector<1x1x32xf32> to vector<1x32xf32>
    %178 = vector.broadcast %177 : vector<1x32xf32> to vector<48x32xf32>
    %179 = arith.mulf %175, %178 : vector<48x32xf32>
    %180 = arith.addf %169, %179 : vector<48x32xf32>
    %181 = vector.extract_strided_slice %30 {offsets = [8, 0, 0], sizes = [1, 1, 32], strides = [1, 1, 1]} : vector<9x1x32xf32> to vector<1x1x32xf32>
    %182 = vector.shape_cast %181 : vector<1x1x32xf32> to vector<1x32xf32>
    %183 = vector.broadcast %182 : vector<1x32xf32> to vector<48x32xf32>
    %184 = arith.mulf %175, %183 : vector<48x32xf32>
    %185 = arith.addf %174, %184 : vector<48x32xf32>
    %186 = vector.extract_strided_slice %27 {offsets = [1728, 0], sizes = [144, 32], strides = [1, 1]} : vector<1920x32xf32> to vector<144x32xf32>
    %187 = vector.extract_strided_slice %27 {offsets = [1872, 0], sizes = [48, 32], strides = [1, 1]} : vector<1920x32xf32> to vector<48x32xf32>
    %188 = vector.extract_strided_slice %31 {offsets = [0, 0, 0], sizes = [1, 1, 32], strides = [1, 1, 1]} : vector<3x1x32xf32> to vector<1x1x32xf32>
    %189 = vector.shape_cast %188 : vector<1x1x32xf32> to vector<1x32xf32>
    %190 = vector.broadcast %189 : vector<1x32xf32> to vector<144x32xf32>
    %191 = arith.addf %88, %190 : vector<144x32xf32>
    %cst_34 = arith.constant 5.000000e-01 : f32
    %192 = vector.broadcast %cst_34 : f32 to vector<144x32xf32>
    %193 = arith.mulf %192, %191 : vector<144x32xf32>
    %cst_35 = arith.constant 0.707106769 : f32
    %194 = vector.broadcast %cst_35 : f32 to vector<144x32xf32>
    %195 = arith.mulf %191, %194 : vector<144x32xf32>
    %196 = math.erf %195 : vector<144x32xf32>
    %cst_36 = arith.constant 1.000000e+00 : f32
    %197 = vector.broadcast %cst_36 : f32 to vector<144x32xf32>
    %198 = arith.addf %197, %196 : vector<144x32xf32>
    %199 = arith.mulf %193, %198 : vector<144x32xf32>
    %200 = vector.extract_strided_slice %32 {offsets = [0, 0, 0], sizes = [1, 1, 32], strides = [1, 1, 1]} : vector<3x1x32xf32> to vector<1x1x32xf32>
    %201 = vector.shape_cast %200 : vector<1x1x32xf32> to vector<1x32xf32>
    %202 = vector.broadcast %201 : vector<1x32xf32> to vector<144x32xf32>
    %203 = arith.mulf %199, %202 : vector<144x32xf32>
    %204 = vector.extract_strided_slice %33 {offsets = [0, 0, 0], sizes = [1, 1, 32], strides = [1, 1, 1]} : vector<3x1x32xf32> to vector<1x1x32xf32>
    %205 = vector.shape_cast %204 : vector<1x1x32xf32> to vector<1x32xf32>
    %206 = vector.broadcast %205 : vector<1x32xf32> to vector<144x32xf32>
    %207 = arith.addf %203, %206 : vector<144x32xf32>
    %208 = vector.broadcast %34 : vector<144x1xf32> to vector<144x32xf32>
    %209 = arith.mulf %207, %208 : vector<144x32xf32>
    %210 = arith.addf %209, %186 : vector<144x32xf32>
    %211 = vector.extract_strided_slice %31 {offsets = [1, 0, 0], sizes = [1, 1, 32], strides = [1, 1, 1]} : vector<3x1x32xf32> to vector<1x1x32xf32>
    %212 = vector.shape_cast %211 : vector<1x1x32xf32> to vector<1x32xf32>
    %213 = vector.broadcast %212 : vector<1x32xf32> to vector<48x32xf32>
    %214 = arith.addf %180, %213 : vector<48x32xf32>
    %cst_37 = arith.constant 5.000000e-01 : f32
    %215 = vector.broadcast %cst_37 : f32 to vector<48x32xf32>
    %216 = arith.mulf %215, %214 : vector<48x32xf32>
    %cst_38 = arith.constant 0.707106769 : f32
    %217 = vector.broadcast %cst_38 : f32 to vector<48x32xf32>
    %218 = arith.mulf %214, %217 : vector<48x32xf32>
    %219 = math.erf %218 : vector<48x32xf32>
    %cst_39 = arith.constant 1.000000e+00 : f32
    %220 = vector.broadcast %cst_39 : f32 to vector<48x32xf32>
    %221 = arith.addf %220, %219 : vector<48x32xf32>
    %222 = arith.mulf %216, %221 : vector<48x32xf32>
    %223 = vector.extract_strided_slice %32 {offsets = [1, 0, 0], sizes = [1, 1, 32], strides = [1, 1, 1]} : vector<3x1x32xf32> to vector<1x1x32xf32>
    %224 = vector.shape_cast %223 : vector<1x1x32xf32> to vector<1x32xf32>
    %225 = vector.broadcast %224 : vector<1x32xf32> to vector<48x32xf32>
    %226 = arith.mulf %222, %225 : vector<48x32xf32>
    %227 = vector.extract_strided_slice %33 {offsets = [1, 0, 0], sizes = [1, 1, 32], strides = [1, 1, 1]} : vector<3x1x32xf32> to vector<1x1x32xf32>
    %228 = vector.shape_cast %227 : vector<1x1x32xf32> to vector<1x32xf32>
    %229 = vector.broadcast %228 : vector<1x32xf32> to vector<48x32xf32>
    %230 = arith.addf %226, %229 : vector<48x32xf32>
    %231 = vector.broadcast %35 : vector<48x1xf32> to vector<48x32xf32>
    %232 = arith.mulf %230, %231 : vector<48x32xf32>
    %233 = arith.addf %232, %187 : vector<48x32xf32>
    %234 = vector.extract_strided_slice %31 {offsets = [2, 0, 0], sizes = [1, 1, 32], strides = [1, 1, 1]} : vector<3x1x32xf32> to vector<1x1x32xf32>
    %235 = vector.shape_cast %234 : vector<1x1x32xf32> to vector<1x32xf32>
    %236 = vector.broadcast %235 : vector<1x32xf32> to vector<48x32xf32>
    %237 = arith.addf %185, %236 : vector<48x32xf32>
    %cst_40 = arith.constant 5.000000e-01 : f32
    %238 = vector.broadcast %cst_40 : f32 to vector<48x32xf32>
    %239 = arith.mulf %238, %237 : vector<48x32xf32>
    %cst_41 = arith.constant 0.707106769 : f32
    %240 = vector.broadcast %cst_41 : f32 to vector<48x32xf32>
    %241 = arith.mulf %237, %240 : vector<48x32xf32>
    %242 = math.erf %241 : vector<48x32xf32>
    %cst_42 = arith.constant 1.000000e+00 : f32
    %243 = vector.broadcast %cst_42 : f32 to vector<48x32xf32>
    %244 = arith.addf %243, %242 : vector<48x32xf32>
    %245 = arith.mulf %239, %244 : vector<48x32xf32>
    %246 = vector.extract_strided_slice %32 {offsets = [2, 0, 0], sizes = [1, 1, 32], strides = [1, 1, 1]} : vector<3x1x32xf32> to vector<1x1x32xf32>
    %247 = vector.shape_cast %246 : vector<1x1x32xf32> to vector<1x32xf32>
    %248 = vector.broadcast %247 : vector<1x32xf32> to vector<48x32xf32>
    %249 = arith.mulf %245, %248 : vector<48x32xf32>
    %250 = vector.extract_strided_slice %33 {offsets = [2, 0, 0], sizes = [1, 1, 32], strides = [1, 1, 1]} : vector<3x1x32xf32> to vector<1x1x32xf32>
    %251 = vector.shape_cast %250 : vector<1x1x32xf32> to vector<1x32xf32>
    %252 = vector.broadcast %251 : vector<1x32xf32> to vector<48x32xf32>
    %253 = arith.addf %249, %252 : vector<48x32xf32>
    %254 = vector.broadcast %35 : vector<48x1xf32> to vector<48x32xf32>
    %255 = arith.mulf %253, %254 : vector<48x32xf32>
    %256 = arith.addf %255, %187 : vector<48x32xf32>
    %c0_43 = arith.constant 0 : index
    %c0_44 = arith.constant 0 : index
    %c0_45 = arith.constant 0 : index
    %257 = vector.load %arg13[%c0_43, %c0_44, %c0_45] : memref<3x32x32xbf16, #tpu.memory_space<vmem>>, vector<3x32x32xbf16>
    %c0_46 = arith.constant 0 : index
    %c0_47 = arith.constant 0 : index
    %c0_48 = arith.constant 0 : index
    %258 = vector.load %arg14[%c0_46, %c0_47, %c0_48] : memref<3x1x32xf32, #tpu.memory_space<vmem>>, vector<3x1x32xf32>
    %259 = arith.truncf %210 : vector<144x32xf32> to vector<144x32xbf16>
    %260 = vector.extract_strided_slice %257 {offsets = [0, 0, 0], sizes = [1, 32, 32], strides = [1, 1, 1]} : vector<3x32x32xbf16> to vector<1x32x32xbf16>
    %261 = vector.shape_cast %260 : vector<1x32x32xbf16> to vector<32x32xbf16>
    %cst_49 = arith.constant dense<0.000000e+00> : vector<144x32xf32>
    %262 = tpu.matmul %259, %261, %cst_49 {dimension_numbers = #tpu.dot_dimension_numbers<[1], [0], [0], [1], [0, 0, 1, 1], [], []>} : vector<144x32xbf16>, vector<32x32xbf16>, vector<144x32xf32> -> vector<144x32xf32>
    %263 = vector.extract_strided_slice %258 {offsets = [0, 0, 0], sizes = [1, 1, 32], strides = [1, 1, 1]} : vector<3x1x32xf32> to vector<1x1x32xf32>
    %264 = vector.shape_cast %263 : vector<1x1x32xf32> to vector<1x32xf32>
    %265 = vector.broadcast %264 : vector<1x32xf32> to vector<144x32xf32>
    %266 = arith.addf %262, %265 : vector<144x32xf32>
    %267 = arith.truncf %233 : vector<48x32xf32> to vector<48x32xbf16>
    %268 = vector.extract_strided_slice %257 {offsets = [1, 0, 0], sizes = [1, 32, 32], strides = [1, 1, 1]} : vector<3x32x32xbf16> to vector<1x32x32xbf16>
    %269 = vector.shape_cast %268 : vector<1x32x32xbf16> to vector<32x32xbf16>
    %cst_50 = arith.constant dense<0.000000e+00> : vector<48x32xf32>
    %270 = tpu.matmul %267, %269, %cst_50 {dimension_numbers = #tpu.dot_dimension_numbers<[1], [0], [0], [1], [0, 0, 1, 1], [], []>} : vector<48x32xbf16>, vector<32x32xbf16>, vector<48x32xf32> -> vector<48x32xf32>
    %271 = vector.extract_strided_slice %258 {offsets = [1, 0, 0], sizes = [1, 1, 32], strides = [1, 1, 1]} : vector<3x1x32xf32> to vector<1x1x32xf32>
    %272 = vector.shape_cast %271 : vector<1x1x32xf32> to vector<1x32xf32>
    %273 = vector.broadcast %272 : vector<1x32xf32> to vector<48x32xf32>
    %274 = arith.addf %270, %273 : vector<48x32xf32>
    %275 = arith.truncf %256 : vector<48x32xf32> to vector<48x32xbf16>
    %276 = vector.extract_strided_slice %257 {offsets = [2, 0, 0], sizes = [1, 32, 32], strides = [1, 1, 1]} : vector<3x32x32xbf16> to vector<1x32x32xbf16>
    %277 = vector.shape_cast %276 : vector<1x32x32xbf16> to vector<32x32xbf16>
    %cst_51 = arith.constant dense<0.000000e+00> : vector<48x32xf32>
    %278 = tpu.matmul %275, %277, %cst_51 {dimension_numbers = #tpu.dot_dimension_numbers<[1], [0], [0], [1], [0, 0, 1, 1], [], []>} : vector<48x32xbf16>, vector<32x32xbf16>, vector<48x32xf32> -> vector<48x32xf32>
    %279 = vector.extract_strided_slice %258 {offsets = [2, 0, 0], sizes = [1, 1, 32], strides = [1, 1, 1]} : vector<3x1x32xf32> to vector<1x1x32xf32>
    %280 = vector.shape_cast %279 : vector<1x1x32xf32> to vector<1x32xf32>
    %281 = vector.broadcast %280 : vector<1x32xf32> to vector<48x32xf32>
    %282 = arith.addf %278, %281 : vector<48x32xf32>
    %c0_52 = arith.constant 0 : index
    %c0_53 = arith.constant 0 : index
    %c0_54 = arith.constant 0 : index
    %283 = vector.load %arg15[%c0_52, %c0_53, %c0_54] : memref<4x1x32xf32, #tpu.memory_space<vmem>>, vector<4x1x32xf32>
    %284 = vector.extract_strided_slice %283 {offsets = [0, 0, 0], sizes = [1, 1, 32], strides = [1, 1, 1]} : vector<4x1x32xf32> to vector<1x1x32xf32>
    %285 = vector.shape_cast %284 : vector<1x1x32xf32> to vector<1x32xf32>
    %286 = vector.broadcast %285 : vector<1x32xf32> to vector<48x32xf32>
    %287 = arith.mulf %274, %286 : vector<48x32xf32>
    %288 = vector.extract_strided_slice %283 {offsets = [1, 0, 0], sizes = [1, 1, 32], strides = [1, 1, 1]} : vector<4x1x32xf32> to vector<1x1x32xf32>
    %289 = vector.shape_cast %288 : vector<1x1x32xf32> to vector<1x32xf32>
    %290 = vector.broadcast %289 : vector<1x32xf32> to vector<48x32xf32>
    %291 = arith.mulf %274, %290 : vector<48x32xf32>
    %292 = vector.extract_strided_slice %283 {offsets = [2, 0, 0], sizes = [1, 1, 32], strides = [1, 1, 1]} : vector<4x1x32xf32> to vector<1x1x32xf32>
    %293 = vector.shape_cast %292 : vector<1x1x32xf32> to vector<1x32xf32>
    %294 = vector.broadcast %293 : vector<1x32xf32> to vector<48x32xf32>
    %295 = arith.mulf %274, %294 : vector<48x32xf32>
    %296 = vector.extract_strided_slice %283 {offsets = [3, 0, 0], sizes = [1, 1, 32], strides = [1, 1, 1]} : vector<4x1x32xf32> to vector<1x1x32xf32>
    %297 = vector.shape_cast %296 : vector<1x1x32xf32> to vector<1x32xf32>
    %298 = vector.broadcast %297 : vector<1x32xf32> to vector<48x32xf32>
    %299 = arith.mulf %274, %298 : vector<48x32xf32>
    %300 = tpu.concatenate %287, %291, %295, %299 in 0 : vector<48x32xf32>, vector<48x32xf32>, vector<48x32xf32>, vector<48x32xf32> -> vector<192x32xf32>
    %301 = vector.extract_strided_slice %283 {offsets = [0, 0, 0], sizes = [1, 1, 32], strides = [1, 1, 1]} : vector<4x1x32xf32> to vector<1x1x32xf32>
    %302 = vector.shape_cast %301 : vector<1x1x32xf32> to vector<1x32xf32>
    %303 = vector.broadcast %302 : vector<1x32xf32> to vector<48x32xf32>
    %304 = arith.mulf %282, %303 : vector<48x32xf32>
    %305 = vector.extract_strided_slice %283 {offsets = [1, 0, 0], sizes = [1, 1, 32], strides = [1, 1, 1]} : vector<4x1x32xf32> to vector<1x1x32xf32>
    %306 = vector.shape_cast %305 : vector<1x1x32xf32> to vector<1x32xf32>
    %307 = vector.broadcast %306 : vector<1x32xf32> to vector<48x32xf32>
    %308 = arith.mulf %282, %307 : vector<48x32xf32>
    %309 = vector.extract_strided_slice %283 {offsets = [2, 0, 0], sizes = [1, 1, 32], strides = [1, 1, 1]} : vector<4x1x32xf32> to vector<1x1x32xf32>
    %310 = vector.shape_cast %309 : vector<1x1x32xf32> to vector<1x32xf32>
    %311 = vector.broadcast %310 : vector<1x32xf32> to vector<48x32xf32>
    %312 = arith.mulf %282, %311 : vector<48x32xf32>
    %313 = vector.extract_strided_slice %283 {offsets = [3, 0, 0], sizes = [1, 1, 32], strides = [1, 1, 1]} : vector<4x1x32xf32> to vector<1x1x32xf32>
    %314 = vector.shape_cast %313 : vector<1x1x32xf32> to vector<1x32xf32>
    %315 = vector.broadcast %314 : vector<1x32xf32> to vector<48x32xf32>
    %316 = arith.mulf %282, %315 : vector<48x32xf32>
    %317 = tpu.concatenate %304, %308, %312, %316 in 0 : vector<48x32xf32>, vector<48x32xf32>, vector<48x32xf32>, vector<48x32xf32> -> vector<192x32xf32>
    %318 = arith.truncf %266 : vector<144x32xf32> to vector<144x32xbf16>
    %319 = arith.truncf %300 : vector<192x32xf32> to vector<192x32xbf16>
    %cst_55 = arith.constant dense<0.000000e+00> : vector<144x192xf32>
    %320 = tpu.matmul %318, %319, %cst_55 {dimension_numbers = #tpu.dot_dimension_numbers<[1], [1], [0], [0], [0, 0, 1, 0], [], []>} : vector<144x32xbf16>, vector<192x32xbf16>, vector<144x192xf32> -> vector<144x192xf32>
    %c0_56 = arith.constant 0 : index
    %c0_57 = arith.constant 0 : index
    %321 = vector.load %arg16[%c0_56, %c0_57] : memref<144x192xf32, #tpu.memory_space<vmem>>, vector<144x192xf32>
    %322 = arith.addf %320, %321 : vector<144x192xf32>
    %c0_58 = arith.constant 0 : index
    %c0_59 = arith.constant 0 : index
    %c0_60 = arith.constant 0 : index
    %323 = vector.load %arg17[%c0_58, %c0_59, %c0_60] : memref<4x1x192xf32, #tpu.memory_space<vmem>>, vector<4x1x192xf32>
    %cst_61 = arith.constant 0.000000e+00 : f32
    %324 = vector.broadcast %cst_61 : f32 to vector<144x192xf32>
    %325 = vector.extract_strided_slice %323 {offsets = [0, 0, 0], sizes = [1, 1, 192], strides = [1, 1, 1]} : vector<4x1x192xf32> to vector<1x1x192xf32>
    %326 = vector.shape_cast %325 : vector<1x1x192xf32> to vector<1x192xf32>
    %327 = vector.broadcast %326 : vector<1x192xf32> to vector<144x192xf32>
    %328 = arith.mulf %322, %327 : vector<144x192xf32>
    %cst_62 = arith.constant 1.000000e+00 : f32
    %329 = vector.broadcast %cst_62 : f32 to vector<1x192xf32>
    %330 = arith.subf %329, %326 : vector<1x192xf32>
    %cst_63 = arith.constant -1.000000e+30 : f32
    %331 = vector.broadcast %cst_63 : f32 to vector<1x192xf32>
    %332 = arith.mulf %330, %331 : vector<1x192xf32>
    %333 = vector.broadcast %332 : vector<1x192xf32> to vector<144x192xf32>
    %334 = arith.addf %328, %333 : vector<144x192xf32>
    %cst_64 = arith.constant dense<0xFF800000> : vector<144xf32>
    %335 = vector.multi_reduction <maximumf>, %334, %cst_64 [1] : vector<144x192xf32> to vector<144xf32>
    %336 = vector.shape_cast %335 : vector<144xf32> to vector<144x1xf32>
    %337 = vector.broadcast %336 : vector<144x1xf32> to vector<144x192xf32>
    %338 = vector.broadcast %326 : vector<1x192xf32> to vector<144x192xf32>
    %339 = arith.mulf %337, %338 : vector<144x192xf32>
    %340 = arith.addf %324, %339 : vector<144x192xf32>
    %341 = vector.extract_strided_slice %323 {offsets = [1, 0, 0], sizes = [1, 1, 192], strides = [1, 1, 1]} : vector<4x1x192xf32> to vector<1x1x192xf32>
    %342 = vector.shape_cast %341 : vector<1x1x192xf32> to vector<1x192xf32>
    %343 = vector.broadcast %342 : vector<1x192xf32> to vector<144x192xf32>
    %344 = arith.mulf %322, %343 : vector<144x192xf32>
    %cst_65 = arith.constant 1.000000e+00 : f32
    %345 = vector.broadcast %cst_65 : f32 to vector<1x192xf32>
    %346 = arith.subf %345, %342 : vector<1x192xf32>
    %cst_66 = arith.constant -1.000000e+30 : f32
    %347 = vector.broadcast %cst_66 : f32 to vector<1x192xf32>
    %348 = arith.mulf %346, %347 : vector<1x192xf32>
    %349 = vector.broadcast %348 : vector<1x192xf32> to vector<144x192xf32>
    %350 = arith.addf %344, %349 : vector<144x192xf32>
    %cst_67 = arith.constant dense<0xFF800000> : vector<144xf32>
    %351 = vector.multi_reduction <maximumf>, %350, %cst_67 [1] : vector<144x192xf32> to vector<144xf32>
    %352 = vector.shape_cast %351 : vector<144xf32> to vector<144x1xf32>
    %353 = vector.broadcast %352 : vector<144x1xf32> to vector<144x192xf32>
    %354 = vector.broadcast %342 : vector<1x192xf32> to vector<144x192xf32>
    %355 = arith.mulf %353, %354 : vector<144x192xf32>
    %356 = arith.addf %340, %355 : vector<144x192xf32>
    %357 = vector.extract_strided_slice %323 {offsets = [2, 0, 0], sizes = [1, 1, 192], strides = [1, 1, 1]} : vector<4x1x192xf32> to vector<1x1x192xf32>
    %358 = vector.shape_cast %357 : vector<1x1x192xf32> to vector<1x192xf32>
    %359 = vector.broadcast %358 : vector<1x192xf32> to vector<144x192xf32>
    %360 = arith.mulf %322, %359 : vector<144x192xf32>
    %cst_68 = arith.constant 1.000000e+00 : f32
    %361 = vector.broadcast %cst_68 : f32 to vector<1x192xf32>
    %362 = arith.subf %361, %358 : vector<1x192xf32>
    %cst_69 = arith.constant -1.000000e+30 : f32
    %363 = vector.broadcast %cst_69 : f32 to vector<1x192xf32>
    %364 = arith.mulf %362, %363 : vector<1x192xf32>
    %365 = vector.broadcast %364 : vector<1x192xf32> to vector<144x192xf32>
    %366 = arith.addf %360, %365 : vector<144x192xf32>
    %cst_70 = arith.constant dense<0xFF800000> : vector<144xf32>
    %367 = vector.multi_reduction <maximumf>, %366, %cst_70 [1] : vector<144x192xf32> to vector<144xf32>
    %368 = vector.shape_cast %367 : vector<144xf32> to vector<144x1xf32>
    %369 = vector.broadcast %368 : vector<144x1xf32> to vector<144x192xf32>
    %370 = vector.broadcast %358 : vector<1x192xf32> to vector<144x192xf32>
    %371 = arith.mulf %369, %370 : vector<144x192xf32>
    %372 = arith.addf %356, %371 : vector<144x192xf32>
    %373 = vector.extract_strided_slice %323 {offsets = [3, 0, 0], sizes = [1, 1, 192], strides = [1, 1, 1]} : vector<4x1x192xf32> to vector<1x1x192xf32>
    %374 = vector.shape_cast %373 : vector<1x1x192xf32> to vector<1x192xf32>
    %375 = vector.broadcast %374 : vector<1x192xf32> to vector<144x192xf32>
    %376 = arith.mulf %322, %375 : vector<144x192xf32>
    %cst_71 = arith.constant 1.000000e+00 : f32
    %377 = vector.broadcast %cst_71 : f32 to vector<1x192xf32>
    %378 = arith.subf %377, %374 : vector<1x192xf32>
    %cst_72 = arith.constant -1.000000e+30 : f32
    %379 = vector.broadcast %cst_72 : f32 to vector<1x192xf32>
    %380 = arith.mulf %378, %379 : vector<1x192xf32>
    %381 = vector.broadcast %380 : vector<1x192xf32> to vector<144x192xf32>
    %382 = arith.addf %376, %381 : vector<144x192xf32>
    %cst_73 = arith.constant dense<0xFF800000> : vector<144xf32>
    %383 = vector.multi_reduction <maximumf>, %382, %cst_73 [1] : vector<144x192xf32> to vector<144xf32>
    %384 = vector.shape_cast %383 : vector<144xf32> to vector<144x1xf32>
    %385 = vector.broadcast %384 : vector<144x1xf32> to vector<144x192xf32>
    %386 = vector.broadcast %374 : vector<1x192xf32> to vector<144x192xf32>
    %387 = arith.mulf %385, %386 : vector<144x192xf32>
    %388 = arith.addf %372, %387 : vector<144x192xf32>
    %389 = arith.subf %322, %388 : vector<144x192xf32>
    %390 = math.exp %389 : vector<144x192xf32>
    %cst_74 = arith.constant 0.000000e+00 : f32
    %391 = vector.broadcast %cst_74 : f32 to vector<144x192xf32>
    %392 = vector.extract_strided_slice %323 {offsets = [0, 0, 0], sizes = [1, 1, 192], strides = [1, 1, 1]} : vector<4x1x192xf32> to vector<1x1x192xf32>
    %393 = vector.shape_cast %392 : vector<1x1x192xf32> to vector<1x192xf32>
    %394 = vector.broadcast %393 : vector<1x192xf32> to vector<144x192xf32>
    %395 = arith.mulf %390, %394 : vector<144x192xf32>
    %cst_75 = arith.constant dense<0.000000e+00> : vector<144xf32>
    %396 = vector.multi_reduction <add>, %395, %cst_75 [1] : vector<144x192xf32> to vector<144xf32>
    %397 = vector.shape_cast %396 : vector<144xf32> to vector<144x1xf32>
    %398 = tpu.reciprocal %397 {approx = true} : vector<144x1xf32> -> vector<144x1xf32>
    %399 = vector.broadcast %398 : vector<144x1xf32> to vector<144x192xf32>
    %400 = vector.broadcast %393 : vector<1x192xf32> to vector<144x192xf32>
    %401 = arith.mulf %399, %400 : vector<144x192xf32>
    %402 = arith.addf %391, %401 : vector<144x192xf32>
    %403 = vector.extract_strided_slice %323 {offsets = [1, 0, 0], sizes = [1, 1, 192], strides = [1, 1, 1]} : vector<4x1x192xf32> to vector<1x1x192xf32>
    %404 = vector.shape_cast %403 : vector<1x1x192xf32> to vector<1x192xf32>
    %405 = vector.broadcast %404 : vector<1x192xf32> to vector<144x192xf32>
    %406 = arith.mulf %390, %405 : vector<144x192xf32>
    %cst_76 = arith.constant dense<0.000000e+00> : vector<144xf32>
    %407 = vector.multi_reduction <add>, %406, %cst_76 [1] : vector<144x192xf32> to vector<144xf32>
    %408 = vector.shape_cast %407 : vector<144xf32> to vector<144x1xf32>
    %409 = tpu.reciprocal %408 {approx = true} : vector<144x1xf32> -> vector<144x1xf32>
    %410 = vector.broadcast %409 : vector<144x1xf32> to vector<144x192xf32>
    %411 = vector.broadcast %404 : vector<1x192xf32> to vector<144x192xf32>
    %412 = arith.mulf %410, %411 : vector<144x192xf32>
    %413 = arith.addf %402, %412 : vector<144x192xf32>
    %414 = vector.extract_strided_slice %323 {offsets = [2, 0, 0], sizes = [1, 1, 192], strides = [1, 1, 1]} : vector<4x1x192xf32> to vector<1x1x192xf32>
    %415 = vector.shape_cast %414 : vector<1x1x192xf32> to vector<1x192xf32>
    %416 = vector.broadcast %415 : vector<1x192xf32> to vector<144x192xf32>
    %417 = arith.mulf %390, %416 : vector<144x192xf32>
    %cst_77 = arith.constant dense<0.000000e+00> : vector<144xf32>
    %418 = vector.multi_reduction <add>, %417, %cst_77 [1] : vector<144x192xf32> to vector<144xf32>
    %419 = vector.shape_cast %418 : vector<144xf32> to vector<144x1xf32>
    %420 = tpu.reciprocal %419 {approx = true} : vector<144x1xf32> -> vector<144x1xf32>
    %421 = vector.broadcast %420 : vector<144x1xf32> to vector<144x192xf32>
    %422 = vector.broadcast %415 : vector<1x192xf32> to vector<144x192xf32>
    %423 = arith.mulf %421, %422 : vector<144x192xf32>
    %424 = arith.addf %413, %423 : vector<144x192xf32>
    %425 = vector.extract_strided_slice %323 {offsets = [3, 0, 0], sizes = [1, 1, 192], strides = [1, 1, 1]} : vector<4x1x192xf32> to vector<1x1x192xf32>
    %426 = vector.shape_cast %425 : vector<1x1x192xf32> to vector<1x192xf32>
    %427 = vector.broadcast %426 : vector<1x192xf32> to vector<144x192xf32>
    %428 = arith.mulf %390, %427 : vector<144x192xf32>
    %cst_78 = arith.constant dense<0.000000e+00> : vector<144xf32>
    %429 = vector.multi_reduction <add>, %428, %cst_78 [1] : vector<144x192xf32> to vector<144xf32>
    %430 = vector.shape_cast %429 : vector<144xf32> to vector<144x1xf32>
    %431 = tpu.reciprocal %430 {approx = true} : vector<144x1xf32> -> vector<144x1xf32>
    %432 = vector.broadcast %431 : vector<144x1xf32> to vector<144x192xf32>
    %433 = vector.broadcast %426 : vector<1x192xf32> to vector<144x192xf32>
    %434 = arith.mulf %432, %433 : vector<144x192xf32>
    %435 = arith.addf %424, %434 : vector<144x192xf32>
    %436 = arith.mulf %390, %435 : vector<144x192xf32>
    %437 = arith.truncf %436 : vector<144x192xf32> to vector<144x192xbf16>
    %438 = arith.truncf %317 : vector<192x32xf32> to vector<192x32xbf16>
    %cst_79 = arith.constant dense<0.000000e+00> : vector<144x32xf32>
    %439 = tpu.matmul %437, %438, %cst_79 {dimension_numbers = #tpu.dot_dimension_numbers<[1], [0], [0], [1], [0, 0, 1, 1], [], []>} : vector<144x192xbf16>, vector<192x32xbf16>, vector<144x32xf32> -> vector<144x32xf32>
    %440 = arith.truncf %439 : vector<144x32xf32> to vector<144x32xbf16>
    %c0_80 = arith.constant 0 : index
    %c0_81 = arith.constant 0 : index
    %441 = vector.load %arg18[%c0_80, %c0_81] : memref<32x32xbf16, #tpu.memory_space<vmem>>, vector<32x32xbf16>
    %cst_82 = arith.constant dense<0.000000e+00> : vector<144x32xf32>
    %442 = tpu.matmul %440, %441, %cst_82 {dimension_numbers = #tpu.dot_dimension_numbers<[1], [0], [0], [1], [0, 0, 1, 1], [], []>} : vector<144x32xbf16>, vector<32x32xbf16>, vector<144x32xf32> -> vector<144x32xf32>
    %c0_83 = arith.constant 0 : index
    %c0_84 = arith.constant 0 : index
    %443 = vector.load %arg19[%c0_83, %c0_84] : memref<1x32xf32, #tpu.memory_space<vmem>>, vector<1x32xf32>
    %444 = vector.broadcast %443 : vector<1x32xf32> to vector<144x32xf32>
    %445 = arith.addf %442, %444 : vector<144x32xf32>
    %446 = arith.addf %24, %445 : vector<144x32xf32>
    %cst_85 = arith.constant dense<0.000000e+00> : vector<144xf32>
    %447 = vector.multi_reduction <add>, %446, %cst_85 [1] : vector<144x32xf32> to vector<144xf32>
    %448 = vector.shape_cast %447 : vector<144xf32> to vector<144x1xf32>
    %cst_86 = arith.constant 3.200000e+01 : f32
    %449 = vector.broadcast %cst_86 : f32 to vector<144x1xf32>
    %450 = arith.divf %448, %449 : vector<144x1xf32>
    %451 = vector.broadcast %450 : vector<144x1xf32> to vector<144x32xf32>
    %452 = arith.subf %446, %451 : vector<144x32xf32>
    %453 = arith.mulf %452, %452 : vector<144x32xf32>
    %cst_87 = arith.constant dense<0.000000e+00> : vector<144xf32>
    %454 = vector.multi_reduction <add>, %453, %cst_87 [1] : vector<144x32xf32> to vector<144xf32>
    %455 = vector.shape_cast %454 : vector<144xf32> to vector<144x1xf32>
    %cst_88 = arith.constant 3.200000e+01 : f32
    %456 = vector.broadcast %cst_88 : f32 to vector<144x1xf32>
    %457 = arith.divf %455, %456 : vector<144x1xf32>
    %458 = vector.broadcast %450 : vector<144x1xf32> to vector<144x32xf32>
    %459 = arith.subf %446, %458 : vector<144x32xf32>
    %cst_89 = arith.constant 9.99999974E-6 : f32
    %460 = vector.broadcast %cst_89 : f32 to vector<144x1xf32>
    %461 = arith.addf %457, %460 : vector<144x1xf32>
    %462 = math.rsqrt %461 : vector<144x1xf32>
    %463 = vector.broadcast %462 : vector<144x1xf32> to vector<144x32xf32>
    %464 = arith.mulf %459, %463 : vector<144x32xf32>
    %c0_90 = arith.constant 0 : index
    %c0_91 = arith.constant 0 : index
    %465 = vector.load %arg20[%c0_90, %c0_91] : memref<1x32xf32, #tpu.memory_space<vmem>>, vector<1x32xf32>
    %466 = vector.broadcast %465 : vector<1x32xf32> to vector<144x32xf32>
    %467 = arith.mulf %464, %466 : vector<144x32xf32>
    %c0_92 = arith.constant 0 : index
    %c0_93 = arith.constant 0 : index
    %468 = vector.load %arg21[%c0_92, %c0_93] : memref<1x32xf32, #tpu.memory_space<vmem>>, vector<1x32xf32>
    %469 = vector.broadcast %468 : vector<1x32xf32> to vector<144x32xf32>
    %470 = arith.addf %467, %469 : vector<144x32xf32>
    %471 = arith.truncf %470 : vector<144x32xf32> to vector<144x32xbf16>
    %c0_94 = arith.constant 0 : index
    %c0_95 = arith.constant 0 : index
    %472 = vector.load %arg22[%c0_94, %c0_95] : memref<32x64xbf16, #tpu.memory_space<vmem>>, vector<32x64xbf16>
    %cst_96 = arith.constant dense<0.000000e+00> : vector<144x64xf32>
    %473 = tpu.matmul %471, %472, %cst_96 {dimension_numbers = #tpu.dot_dimension_numbers<[1], [0], [0], [1], [0, 0, 1, 1], [], []>} : vector<144x32xbf16>, vector<32x64xbf16>, vector<144x64xf32> -> vector<144x64xf32>
    %c0_97 = arith.constant 0 : index
    %c0_98 = arith.constant 0 : index
    %474 = vector.load %arg23[%c0_97, %c0_98] : memref<1x64xf32, #tpu.memory_space<vmem>>, vector<1x64xf32>
    %475 = vector.broadcast %474 : vector<1x64xf32> to vector<144x64xf32>
    %476 = arith.addf %473, %475 : vector<144x64xf32>
    %cst_99 = arith.constant 5.000000e-01 : f32
    %477 = vector.broadcast %cst_99 : f32 to vector<144x64xf32>
    %478 = arith.mulf %477, %476 : vector<144x64xf32>
    %cst_100 = arith.constant 0.707106769 : f32
    %479 = vector.broadcast %cst_100 : f32 to vector<144x64xf32>
    %480 = arith.mulf %476, %479 : vector<144x64xf32>
    %481 = math.erf %480 : vector<144x64xf32>
    %cst_101 = arith.constant 1.000000e+00 : f32
    %482 = vector.broadcast %cst_101 : f32 to vector<144x64xf32>
    %483 = arith.addf %482, %481 : vector<144x64xf32>
    %484 = arith.mulf %478, %483 : vector<144x64xf32>
    %485 = arith.truncf %484 : vector<144x64xf32> to vector<144x64xbf16>
    %c0_102 = arith.constant 0 : index
    %c0_103 = arith.constant 0 : index
    %486 = vector.load %arg24[%c0_102, %c0_103] : memref<64x32xbf16, #tpu.memory_space<vmem>>, vector<64x32xbf16>
    %cst_104 = arith.constant dense<0.000000e+00> : vector<144x32xf32>
    %487 = tpu.matmul %485, %486, %cst_104 {dimension_numbers = #tpu.dot_dimension_numbers<[1], [0], [0], [1], [0, 0, 1, 1], [], []>} : vector<144x64xbf16>, vector<64x32xbf16>, vector<144x32xf32> -> vector<144x32xf32>
    %c0_105 = arith.constant 0 : index
    %c0_106 = arith.constant 0 : index
    %488 = vector.load %arg25[%c0_105, %c0_106] : memref<1x32xf32, #tpu.memory_space<vmem>>, vector<1x32xf32>
    %489 = vector.broadcast %488 : vector<1x32xf32> to vector<144x32xf32>
    %490 = arith.addf %487, %489 : vector<144x32xf32>
    %491 = arith.addf %446, %490 : vector<144x32xf32>
    %c0_107 = arith.constant 0 : index
    %c0_108 = arith.constant 0 : index
    %492 = vector.load %arg26[%c0_107, %c0_108] : memref<144x32xf32, #tpu.memory_space<vmem>>, vector<144x32xf32>
    tpu.vector_store %arg26[%c0_107, %c0_108], %491 {strides = array<i32>} : memref<144x32xf32, #tpu.memory_space<vmem>>, vector<144x32xf32>,
    return
  }
  func.func @transform_0(%arg0: i32) -> (i32, i32) {
    %c0_i32 = arith.constant 0 : i32
    %c0_i32_0 = arith.constant 0 : i32
    return %arg0, %c0_i32 : i32, i32
  }
  func.func @transform_1(%arg0: i32) -> (i32, i32) {
    %c0_i32 = arith.constant 0 : i32
    %c0_i32_0 = arith.constant 0 : i32
    %c0_i32_1 = arith.constant 0 : i32
    return %c0_i32, %c0_i32_0 : i32, i32
  }
  func.func @transform_2(%arg0: i32) -> (i32, i32) {
    %c0_i32 = arith.constant 0 : i32
    %c0_i32_0 = arith.constant 0 : i32
    %c0_i32_1 = arith.constant 0 : i32
    return %c0_i32, %c0_i32_0 : i32, i32
  }
  func.func @transform_3(%arg0: i32) -> (i32, i32) {
    %c0_i32 = arith.constant 0 : i32
    %c0_i32_0 = arith.constant 0 : i32
    %c0_i32_1 = arith.constant 0 : i32
    return %c0_i32, %c0_i32_0 : i32, i32
  }
  func.func @transform_4(%arg0: i32) -> (i32, i32, i32) {
    %c0_i32 = arith.constant 0 : i32
    %c0_i32_0 = arith.constant 0 : i32
    %c0_i32_1 = arith.constant 0 : i32
    %c0_i32_2 = arith.constant 0 : i32
    return %c0_i32, %c0_i32_0, %c0_i32_1 : i32, i32, i32
  }
  func.func @transform_5(%arg0: i32) -> (i32, i32, i32) {
    %c0_i32 = arith.constant 0 : i32
    %c0_i32_0 = arith.constant 0 : i32
    %c0_i32_1 = arith.constant 0 : i32
    %c0_i32_2 = arith.constant 0 : i32
    return %c0_i32, %c0_i32_0, %c0_i32_1 : i32, i32, i32
  }
  func.func @transform_6(%arg0: i32) -> (i32, i32, i32) {
    %c0_i32 = arith.constant 0 : i32
    %c0_i32_0 = arith.constant 0 : i32
    %c0_i32_1 = arith.constant 0 : i32
    %c0_i32_2 = arith.constant 0 : i32
    return %c0_i32, %c0_i32_0, %c0_i32_1 : i32, i32, i32
  }
  func.func @transform_7(%arg0: i32) -> (i32, i32, i32) {
    %c0_i32 = arith.constant 0 : i32
    %c0_i32_0 = arith.constant 0 : i32
    %c0_i32_1 = arith.constant 0 : i32
    %c0_i32_2 = arith.constant 0 : i32
    return %c0_i32, %c0_i32_0, %c0_i32_1 : i32, i32, i32
  }
  func.func @transform_8(%arg0: i32) -> (i32, i32, i32) {
    %c0_i32 = arith.constant 0 : i32
    %c0_i32_0 = arith.constant 0 : i32
    %c0_i32_1 = arith.constant 0 : i32
    %c0_i32_2 = arith.constant 0 : i32
    return %c0_i32, %c0_i32_0, %c0_i32_1 : i32, i32, i32
  }
  func.func @transform_9(%arg0: i32) -> (i32, i32, i32) {
    %c0_i32 = arith.constant 0 : i32
    %c0_i32_0 = arith.constant 0 : i32
    %c0_i32_1 = arith.constant 0 : i32
    %c0_i32_2 = arith.constant 0 : i32
    return %c0_i32, %c0_i32_0, %c0_i32_1 : i32, i32, i32
  }
  func.func @transform_10(%arg0: i32) -> (i32, i32) {
    %c0_i32 = arith.constant 0 : i32
    %c0_i32_0 = arith.constant 0 : i32
    %c0_i32_1 = arith.constant 0 : i32
    return %c0_i32, %c0_i32_0 : i32, i32
  }
  func.func @transform_11(%arg0: i32) -> (i32, i32) {
    %c0_i32 = arith.constant 0 : i32
    %c0_i32_0 = arith.constant 0 : i32
    %c0_i32_1 = arith.constant 0 : i32
    return %c0_i32, %c0_i32_0 : i32, i32
  }
  func.func @transform_12(%arg0: i32) -> (i32, i32, i32) {
    %c0_i32 = arith.constant 0 : i32
    %c0_i32_0 = arith.constant 0 : i32
    %c0_i32_1 = arith.constant 0 : i32
    %c0_i32_2 = arith.constant 0 : i32
    return %c0_i32, %c0_i32_0, %c0_i32_1 : i32, i32, i32
  }
  func.func @transform_13(%arg0: i32) -> (i32, i32, i32) {
    %c0_i32 = arith.constant 0 : i32
    %c0_i32_0 = arith.constant 0 : i32
    %c0_i32_1 = arith.constant 0 : i32
    %c0_i32_2 = arith.constant 0 : i32
    return %c0_i32, %c0_i32_0, %c0_i32_1 : i32, i32, i32
  }
  func.func @transform_14(%arg0: i32) -> (i32, i32, i32) {
    %c0_i32 = arith.constant 0 : i32
    %c0_i32_0 = arith.constant 0 : i32
    %c0_i32_1 = arith.constant 0 : i32
    %c0_i32_2 = arith.constant 0 : i32
    return %c0_i32, %c0_i32_0, %c0_i32_1 : i32, i32, i32
  }
  func.func @transform_15(%arg0: i32) -> (i32, i32) {
    %c0_i32 = arith.constant 0 : i32
    %c0_i32_0 = arith.constant 0 : i32
    %c0_i32_1 = arith.constant 0 : i32
    return %c0_i32, %c0_i32_0 : i32, i32
  }
  func.func @transform_16(%arg0: i32) -> (i32, i32, i32) {
    %c0_i32 = arith.constant 0 : i32
    %c0_i32_0 = arith.constant 0 : i32
    %c0_i32_1 = arith.constant 0 : i32
    %c0_i32_2 = arith.constant 0 : i32
    return %c0_i32, %c0_i32_0, %c0_i32_1 : i32, i32, i32
  }
  func.func @transform_17(%arg0: i32) -> (i32, i32) {
    %c0_i32 = arith.constant 0 : i32
    %c0_i32_0 = arith.constant 0 : i32
    %c0_i32_1 = arith.constant 0 : i32
    return %c0_i32, %c0_i32_0 : i32, i32
  }
  func.func @transform_18(%arg0: i32) -> (i32, i32) {
    %c0_i32 = arith.constant 0 : i32
    %c0_i32_0 = arith.constant 0 : i32
    %c0_i32_1 = arith.constant 0 : i32
    return %c0_i32, %c0_i32_0 : i32, i32
  }
  func.func @transform_19(%arg0: i32) -> (i32, i32) {
    %c0_i32 = arith.constant 0 : i32
    %c0_i32_0 = arith.constant 0 : i32
    %c0_i32_1 = arith.constant 0 : i32
    return %c0_i32, %c0_i32_0 : i32, i32
  }
  func.func @transform_20(%arg0: i32) -> (i32, i32) {
    %c0_i32 = arith.constant 0 : i32
    %c0_i32_0 = arith.constant 0 : i32
    %c0_i32_1 = arith.constant 0 : i32
    return %c0_i32, %c0_i32_0 : i32, i32
  }
  func.func @transform_21(%arg0: i32) -> (i32, i32) {
    %c0_i32 = arith.constant 0 : i32
    %c0_i32_0 = arith.constant 0 : i32
    %c0_i32_1 = arith.constant 0 : i32
    return %c0_i32, %c0_i32_0 : i32, i32
  }
  func.func @transform_22(%arg0: i32) -> (i32, i32) {
    %c0_i32 = arith.constant 0 : i32
    %c0_i32_0 = arith.constant 0 : i32
    %c0_i32_1 = arith.constant 0 : i32
    return %c0_i32, %c0_i32_0 : i32, i32
  }
  func.func @transform_23(%arg0: i32) -> (i32, i32) {
    %c0_i32 = arith.constant 0 : i32
    %c0_i32_0 = arith.constant 0 : i32
    %c0_i32_1 = arith.constant 0 : i32
    return %c0_i32, %c0_i32_0 : i32, i32
  }
  func.func @transform_24(%arg0: i32) -> (i32, i32) {
    %c0_i32 = arith.constant 0 : i32
    %c0_i32_0 = arith.constant 0 : i32
    %c0_i32_1 = arith.constant 0 : i32
    return %c0_i32, %c0_i32_0 : i32, i32
  }
  func.func @transform_25(%arg0: i32) -> (i32, i32) {
    %c0_i32 = arith.constant 0 : i32
    %c0_i32_0 = arith.constant 0 : i32
    return %arg0, %c0_i32 : i32, i32
  }
}

</mosaic_0001>

<bundles_post_ra>
// kernel: tpu_custom_call.1
= control target key start
LH: loop header
LB: loop body
LE: loop exit
PB: predicated region body
PF: predicated region fallthrough
CT: control target
= control target key end

     0   :  { %vm99_vm0 = vcmask 261120   ;;  %vm1714_vm1 = vcmask 130048   ;;  %vm9463_vm2 = vmmov 0   ;;  %vm5041_vm3 = vcmask 523264   ;;  %s14686_s0 = inlined_call_operand.vmem [shape: f32[144,32], index: 0, kind: input, shape index: {}]   ;;  %s14687_s3 = inlined_call_operand.vmem [shape: bf16[1920,144], index: 3, kind: input, shape index: {}]   ;;  %s14688_s1 = inlined_call_operand.vmem [shape: f32[1,32], index: 1, kind: input, shape index: {}]   ;;  %s14689_s2 = inlined_call_operand.vmem [shape: f32[1,32], index: 2, kind: input, shape index: {}]   ;;  %s14690_s4 = inlined_call_operand.vmem [shape: f32[9,1,32], index: 4, kind: input, shape index: {}]   ;;  %s14691_s10 = inlined_call_operand.vmem [shape: f32[144,1], index: 10, kind: input, shape index: {}]   ;;  %s14692_s12 = inlined_call_operand.vmem [shape: bf16[3,32,32], index: 12, kind: input, shape index: {}]   ;;  %s14693_s11 = inlined_call_operand.vmem [shape: f32[48,1], index: 11, kind: input, shape index: {}]   ;;  %s14694_s7 = inlined_call_operand.vmem [shape: f32[3,1,32], index: 7, kind: input, shape index: {}]   ;;  %s14695_s8 = inlined_call_operand.vmem [shape: f32[3,1,32], index: 8, kind: input, shape index: {}]   ;;  %s14696_s9 = inlined_call_operand.vmem [shape: f32[3,1,32], index: 9, kind: input, shape index: {}]   ;;  %s14697_s5 = inlined_call_operand.vmem [shape: f32[9,1,32], index: 5, kind: input, shape index: {}]   ;;  %s14698_s6 = inlined_call_operand.vmem [shape: f32[9,1,32], index: 6, kind: input, shape index: {}]   ;;  %s14699_s13 = inlined_call_operand.vmem [shape: f32[3,1,32], index: 13, kind: input, shape index: {}]   ;;  %s14700_s14 = inlined_call_operand.vmem [shape: f32[4,1,32], index: 14, kind: input, shape index: {}]   ;;  %s14701_s16 = inlined_call_operand.vmem [shape: f32[4,1,192], index: 16, kind: input, shape index: {}]   ;;  %s14702_s15 = inlined_call_operand.vmem [shape: f32[144,192], index: 15, kind: input, shape index: {}]   ;;  %s14703_s17 = inlined_call_operand.vmem [shape: bf16[32,32], index: 17, kind: input, shape index: {}]   ;;  %s14704_s18 = inlined_call_operand.vmem [shape: f32[1,32], index: 18, kind: input, shape index: {}]   ;;  %s14705_s21 = inlined_call_operand.vmem [shape: bf16[32,64], index: 21, kind: input, shape index: {}]   ;;  %s14706_s19 = inlined_call_operand.vmem [shape: f32[1,32], index: 19, kind: input, shape index: {}]   ;;  %s14707_s20 = inlined_call_operand.vmem [shape: f32[1,32], index: 20, kind: input, shape index: {}]   ;;  %s14708_s23 = inlined_call_operand.vmem [shape: bf16[64,32], index: 23, kind: input, shape index: {}]   ;;  %s14709_s22 = inlined_call_operand.vmem [shape: f32[1,64], index: 22, kind: input, shape index: {}]   ;;  %s14710_s24 = inlined_call_operand.vmem [shape: f32[1,32], index: 24, kind: input, shape index: {}]   ;;  %s14711_s25 = inlined_call_operand.vmem [shape: f32[144,32], index: 25, kind: output, shape index: {}]  }
   0x1   :  { %14799 = sst [smem:[#allocation50_spill]] %s14686_s0 }
   0x2   :  { %14800 = sst [smem:[#allocation51_spill]] %s14687_s3 }
   0x3   :  { %14801 = sst [smem:[#allocation52_spill]] %s14688_s1 }
   0x4   :  { %14802 = sst [smem:[#allocation53_spill]] %s14689_s2 }
   0x5   :  { %14803 = sst [smem:[#allocation54_spill]] %s14690_s4  ;;  %s14810_s4 = sld [smem:[#allocation51_spill]] }
   0x6   :  { %14804 = sst [smem:[#allocation55_spill]] %s14691_s10  ;;  %s14811_s10 = sld [smem:[#allocation52_spill]] }
   0x7   :  { %14805 = sst [smem:[#allocation56_spill]] %s14692_s12  ;;  %s14809_s12 = sld [smem:[#allocation50_spill]] }
   0x8   :  { %14806 = sst [smem:[#allocation57_spill]] %s14693_s11  ;;  %s14812_s1 = sld [smem:[#allocation53_spill]] }
   0x9   :  { %14807 = sst [smem:[#allocation58_spill]] %s14694_s7  ;;  %s14831_s2 = sld [smem:[#allocation54_spill]] }
   0xa   :  { %14808 = sst [smem:[#allocation59_spill]] %s14695_s8  ;;  %s14832_s0 = sld [smem:[#allocation55_spill]] }
   0xb   :  { %s14833_s8 = sld [smem:[#allocation56_spill]]  ;;  %s14842_s27 = sld [smem:[#allocation57_spill]] }
   0xc   :  { %s14860_s30 = sld [smem:[#allocation58_spill]]  ;;  %s14861_s26 = sld [smem:[#allocation59_spill]] }
   0xd   :  { %v81_v0 = vld [vmem:[%s14809_s12] sm:$0xff]  ;;  %v83_v1 = vld [vmem:[%s14809_s12 + $0x10] sm:$0xff]  ;;  %v9603_v2 = vld [vmem:[%s14809_s12 + $0x8] sm:$0xff] }
   0xe   :  { %v100_v3 = vsel %vm99_vm0, %v81_v0, 0.0  ;;  %v106_v4 = vsel %vm99_vm0, %v83_v1, 0.0  ;;  %v84_v5 = vld [vmem:[%s14809_s12 + $0x18] sm:$0xff]  ;;  %v103_v6 = vsel %vm99_vm0, %v9603_v2, 0.0  ;;  %v9616_v8 = vld [vmem:[%s14809_s12 + $0x20] sm:$0xff]  ;;  %v9621_v9 = vld [vmem:[%s14809_s12 + $0x28] sm:$0xff] }
   0xf   :  { %101 = vadd.xlane.f32.xlu0 %v100_v3  ;;  %107 = vadd.xlane.f32.xlu1 %v106_v4  ;;  %v109_v7 = vsel %vm99_vm0, %v84_v5, 0.0  ;;  %v112_v10 = vsel %vm99_vm0, %v9616_v8, 0.0  ;;  %v115_v11 = vsel %vm99_vm0, %v9621_v9, 0.0  ;;  %v9630_v12 = vld [vmem:[%s14809_s12 + $0x30] sm:$0xff]  ;;  %v9635_v13 = vld [vmem:[%s14809_s12 + $0x38] sm:$0xff]  ;;  %v9644_v16 = vld [vmem:[%s14809_s12 + $0x40] sm:$0xff] }
  0x10   :  { %v118_v14 = vsel %vm99_vm0, %v9630_v12, 0.0  ;;  %v121_v15 = vsel %vm99_vm0, %v9635_v13, 0.0  ;;  %v9649_v17 = vld [vmem:[%s14809_s12 + $0x48] sm:$0xff]  ;;  %v124_v18 = vsel %vm99_vm0, %v9644_v16, 0.0  ;;  %v9658_v20 = vld [vmem:[%s14809_s12 + $0x50] sm:$0xff]  ;;  %v9663_v21 = vld [vmem:[%s14809_s12 + $0x58] sm:$0xff] }
  0x11   :  { %v127_v19 = vsel %vm99_vm0, %v9649_v17, 0.0  ;;  %v130_v22 = vsel %vm99_vm0, %v9658_v20, 0.0  ;;  %v133_v23 = vsel %vm99_vm0, %v9663_v21, 0.0  ;;  %v9672_v24 = vld [vmem:[%s14809_s12 + $0x60] sm:$0xff]  ;;  %v9677_v25 = vld [vmem:[%s14809_s12 + $0x68] sm:$0xff]  ;;  %v9686_v28 = vld [vmem:[%s14809_s12 + $0x70] sm:$0xff] }
  0x12   :  { %v136_v26 = vsel %vm99_vm0, %v9672_v24, 0.0  ;;  %v139_v27 = vsel %vm99_vm0, %v9677_v25, 0.0  ;;  %v9691_v29 = vld [vmem:[%s14809_s12 + $0x78] sm:$0xff]  ;;  %v142_v30 = vsel %vm99_vm0, %v9686_v28, 0.0  ;;  %v9700_v32 = vld [vmem:[%s14809_s12 + $0x80] sm:$0xff]  ;;  %v9705_v33 = vld [vmem:[%s14809_s12 + $0x88] sm:$0xff] }
  0x13   :  { %104 = vadd.xlane.f32.xlu0 %v103_v6  ;;  %110 = vadd.xlane.f32.xlu1 %v109_v7  ;;  %v145_v31 = vsel %vm99_vm0, %v9691_v29, 0.0  ;;  %v148_v34 = vsel %vm99_vm0, %v9700_v32, 0.0  ;;  %v151_v35 = vsel %vm99_vm0, %v9705_v33, 0.0 }
  0x17   :  { %113 = vadd.xlane.f32.xlu0 %v112_v10  ;;  %116 = vadd.xlane.f32.xlu1 %v115_v11 }
  0x1b   :  { %119 = vadd.xlane.f32.xlu0 %v118_v14  ;;  %122 = vadd.xlane.f32.xlu1 %v121_v15 }
  0x1f   :  { %125 = vadd.xlane.f32.xlu0 %v124_v18  ;;  %128 = vadd.xlane.f32.xlu1 %v127_v19 }
  0x23   :  { %131 = vadd.xlane.f32.xlu0 %v130_v22  ;;  %134 = vadd.xlane.f32.xlu1 %v133_v23 }
  0x27   :  { %137 = vadd.xlane.f32.xlu0 %v136_v26  ;;  %140 = vadd.xlane.f32.xlu1 %v139_v27 }
  0x2b   :  { %143 = vadd.xlane.f32.xlu0 %v142_v30  ;;  %146 = vadd.xlane.f32.xlu1 %v145_v31 }
  0x2f   :  { %149 = vadd.xlane.f32.xlu0 %v148_v34  ;;  %152 = vadd.xlane.f32.xlu1 %v151_v35 }
  0x9c   :  { %v102_v36 = vpop.xlane.xlu0 %101  ;;  %v108_v37 = vpop.xlane.xlu1 %107 }
  0x9d   :  { %v155_v38 = vmul.f32 0.03125, %v102_v36  ;;  %v157_v39 = vmul.f32 0.03125, %v108_v37 }
  0x9f   :  { %v9711_v40 = vsub.f32 %v81_v0, %v155_v38  ;;  %v9713_v41 = vsub.f32 %v83_v1, %v157_v39 }
  0xa0   :  { %v105_v42 = vpop.xlane.xlu0 %104  ;;  %v111_v43 = vpop.xlane.xlu1 %110 }
  0xa1   :  { %v156_v44 = vmul.f32 0.03125, %v105_v42  ;;  %v158_v45 = vmul.f32 0.03125, %v111_v43  ;;  %v191_v46 = vmul.f32 %v9711_v40, %v9711_v40  ;;  %v193_v47 = vmul.f32 %v9713_v41, %v9713_v41 }
  0xa3   :  { %v9720_v48 = vsub.f32 %v9603_v2, %v156_v44  ;;  %v9722_v49 = vsub.f32 %v84_v5, %v158_v45  ;;  %v209_v50 = vsel %vm99_vm0, %v191_v46, 0.0  ;;  %v215_v53 = vsel %vm99_vm0, %v193_v47, 0.0 }
  0xa4   :  { %210 = vadd.xlane.f32.xlu0 %v209_v50  ;;  %v114_v51 = vpop.xlane.xlu0 %113  ;;  %v117_v52 = vpop.xlane.xlu1 %116 }
  0xa5   :  { %v159_v54 = vmul.f32 0.03125, %v114_v51  ;;  %v160_v55 = vmul.f32 0.03125, %v117_v52  ;;  %v192_v56 = vmul.f32 %v9720_v48, %v9720_v48  ;;  %v194_v57 = vmul.f32 %v9722_v49, %v9722_v49 }
  0xa7   :  { %v9731_v58 = vsub.f32 %v9616_v8, %v159_v54  ;;  %v9734_v59 = vsub.f32 %v9621_v9, %v160_v55  ;;  %v212_v60 = vsel %vm99_vm0, %v192_v56, 0.0  ;;  %v218_v63 = vsel %vm99_vm0, %v194_v57, 0.0 }
  0xa8   :  { %216 = vadd.xlane.f32.xlu0 %v215_v53  ;;  %213 = vadd.xlane.f32.xlu1 %v212_v60  ;;  %v120_v61 = vpop.xlane.xlu0 %119  ;;  %v123_v62 = vpop.xlane.xlu1 %122 }
  0xa9   :  { %v161_v0 = vmul.f32 0.03125, %v120_v61  ;;  %v162_v1 = vmul.f32 0.03125, %v123_v62  ;;  %v195_v2 = vmul.f32 %v9731_v58, %v9731_v58  ;;  %v196_v3 = vmul.f32 %v9734_v59, %v9734_v59 }
  0xab   :  { %v9743_v4 = vsub.f32 %v9630_v12, %v161_v0  ;;  %v9746_v5 = vsub.f32 %v9635_v13, %v162_v1  ;;  %v221_v6 = vsel %vm99_vm0, %v195_v2, 0.0  ;;  %v224_v9 = vsel %vm99_vm0, %v196_v3, 0.0 }
  0xac   :  { %219 = vadd.xlane.f32.xlu1 %v218_v63  ;;  %222 = vadd.xlane.f32.xlu0 %v221_v6  ;;  %v126_v7 = vpop.xlane.xlu0 %125  ;;  %v129_v8 = vpop.xlane.xlu1 %128 }
  0xad   :  { %v163_v10 = vmul.f32 0.03125, %v126_v7  ;;  %v164_v11 = vmul.f32 0.03125, %v129_v8  ;;  %v197_v14 = vmul.f32 %v9743_v4, %v9743_v4  ;;  %v198_v12 = vmul.f32 %v9746_v5, %v9746_v5  ;;  %v8705_v7 = vld [vmem:[%s14810_s4 + $0x4] ss:$8 sps:$4 sm:$0xff]  }
  0xae   :  { %8186 = vmatprep.mubr.msk.bf16.mxu0 %vm1714_vm1, %v8705_v7 }
  0xaf   :  { %v9755_v15 = vsub.f32 %v9644_v16, %v163_v10  ;;  %v9758_v13 = vsub.f32 %v9649_v17, %v164_v11  ;;  %v227_v18 = vsel %vm99_vm0, %v197_v14, 0.0  ;;  %v230_v23 = vsel %vm99_vm0, %v198_v12, 0.0 }
  0xb0   :  { %225 = vadd.xlane.f32.xlu1 %v224_v9  ;;  %228 = vadd.xlane.f32.xlu0 %v227_v18  ;;  %v132_v19 = vpop.xlane.xlu0 %131  ;;  %v135_v22 = vpop.xlane.xlu1 %134 }
  0xb1   :  { %v165_v26 = vmul.f32 0.03125, %v132_v19  ;;  %v166_v27 = vmul.f32 0.03125, %v135_v22  ;;  %v199_v30 = vmul.f32 %v9755_v15, %v9755_v15  ;;  %v200_v16 = vmul.f32 %v9758_v13, %v9758_v13 }
  0xb3   :  { %v9767_v31 = vsub.f32 %v9658_v20, %v165_v26  ;;  %v9770_v17 = vsub.f32 %v9663_v21, %v166_v27  ;;  %v233_v34 = vsel %vm99_vm0, %v199_v30, 0.0  ;;  %v236_v37 = vsel %vm99_vm0, %v200_v16, 0.0 }
  0xb4   :  { %231 = vadd.xlane.f32.xlu1 %v230_v23  ;;  %234 = vadd.xlane.f32.xlu0 %v233_v34  ;;  %v138_v35 = vpop.xlane.xlu0 %137  ;;  %v141_v36 = vpop.xlane.xlu1 %140 }
  0xb5   :  { %v167_v38 = vmul.f32 0.03125, %v138_v35  ;;  %v168_v39 = vmul.f32 0.03125, %v141_v36  ;;  %v201_v42 = vmul.f32 %v9767_v31, %v9767_v31  ;;  %v202_v20 = vmul.f32 %v9770_v17, %v9770_v17 }
  0xb7   :  { %v9779_v43 = vsub.f32 %v9672_v24, %v167_v38  ;;  %v9782_v21 = vsub.f32 %v9677_v25, %v168_v39  ;;  %v239_v44 = vsel %vm99_vm0, %v201_v42, 0.0  ;;  %v242_v47 = vsel %vm99_vm0, %v202_v20, 0.0 }
  0xb8   :  { %237 = vadd.xlane.f32.xlu1 %v236_v37  ;;  %240 = vadd.xlane.f32.xlu0 %v239_v44  ;;  %v144_v45 = vpop.xlane.xlu0 %143  ;;  %v147_v46 = vpop.xlane.xlu1 %146 }
  0xb9   :  { %v169_v50 = vmul.f32 0.03125, %v144_v45  ;;  %v170_v51 = vmul.f32 0.03125, %v147_v46  ;;  %v203_v52 = vmul.f32 %v9779_v43, %v9779_v43  ;;  %v204_v24 = vmul.f32 %v9782_v21, %v9782_v21 }
  0xbb   :  { %v9791_v53 = vsub.f32 %v9686_v28, %v169_v50  ;;  %v9794_v25 = vsub.f32 %v9691_v29, %v170_v51  ;;  %v245_v54 = vsel %vm99_vm0, %v203_v52, 0.0  ;;  %v248_v57 = vsel %vm99_vm0, %v204_v24, 0.0 }
  0xbc   :  { %243 = vadd.xlane.f32.xlu1 %v242_v47  ;;  %246 = vadd.xlane.f32.xlu0 %v245_v54  ;;  %v150_v55 = vpop.xlane.xlu0 %149  ;;  %v153_v56 = vpop.xlane.xlu1 %152  ;;  %v9828_v47 = vld [vmem:[%s14811_s10] ss:$0 sm:$0xff] }
  0xbd   :  { %v171_v60 = vmul.f32 0.03125, %v150_v55  ;;  %v172_v61 = vmul.f32 0.03125, %v153_v56  ;;  %v205_v62 = vmul.f32 %v9791_v53, %v9791_v53  ;;  %v206_v28 = vmul.f32 %v9794_v25, %v9794_v25  ;;  %v9833_v55 = vld [vmem:[%s14812_s1] ss:$0 sm:$0xff] }
  0xbf   :  { %v9803_v63 = vsub.f32 %v9700_v32, %v171_v60  ;;  %v9806_v29 = vsub.f32 %v9705_v33, %v172_v61  ;;  %v251_v0 = vsel %vm99_vm0, %v205_v62, 0.0  ;;  %v254_v1 = vsel %vm99_vm0, %v206_v28, 0.0 }
  0xc0   :  { %249 = vadd.xlane.f32.xlu1 %v248_v57  ;;  %252 = vadd.xlane.f32.xlu0 %v251_v0  ;;  %v14720_v33 = vmov 0  }
  0xc1   :  { %v207_v2 = vmul.f32 %v9803_v63, %v9803_v63  ;;  %v208_v3 = vmul.f32 %v9806_v29, %v9806_v29  ;;  %2075 = vmatprep.subr.bf16.mxu0 %v14720_v33  ;;  %8680 = vmatprep.subr.bf16.mxu1 %v14720_v33 }
  0xc2   :  { %8701 = vset.pattern.permute.xlu0 %v14720_v33  ;;  %8702 = vset.pattern.permute.xlu1 %v14720_v33 }
  0xc3   :  { %v257_v6 = vsel %vm99_vm0, %v207_v2, 0.0  ;;  %v260_v32 = vsel %vm99_vm0, %v208_v3, 0.0 }
  0xc4   :  { %255 = vadd.xlane.f32.xlu1 %v254_v1  ;;  %258 = vadd.xlane.f32.xlu0 %v257_v6 }
  0xc8   :  { %261 = vadd.xlane.f32.xlu1 %v260_v32 }
 0x131   :  { %v211_v8 = vpop.xlane.xlu0 %210 }
 0x132   :  { %v263_v9 = vmul.f32 0.03125, %v211_v8 }
 0x134   :  { %v281_v10 = vadd.f32 1e-05, %v263_v9 }
 0x135   :  { %v214_v11 = vpop.xlane.xlu1 %213  ;;  %v217_v14 = vpop.xlane.xlu0 %216 }
 0x136   :  { %9077 = vrsqrt.f32 %v281_v10  ;;  %v264_v12 = vmul.f32 0.03125, %v214_v11  ;;  %v265_v18 = vmul.f32 0.03125, %v217_v14 }
 0x138   :  { %v282_v19 = vadd.f32 1e-05, %v264_v12  ;;  %v283_v22 = vadd.f32 1e-05, %v265_v18 }
 0x139   :  { %v220_v23 = vpop.xlane.xlu1 %219  ;;  %v223_v26 = vpop.xlane.xlu0 %222 }
 0x13a   :  { %9079 = vrsqrt.f32 %v282_v19  ;;  %v266_v27 = vmul.f32 0.03125, %v220_v23  ;;  %v267_v30 = vmul.f32 0.03125, %v223_v26 }
 0x13b   :  { %9081 = vrsqrt.f32 %v283_v22 }
 0x13c   :  { %v284_v16 = vadd.f32 1e-05, %v266_v27  ;;  %v285_v34 = vadd.f32 1e-05, %v267_v30 }
 0x13d   :  { %v226_v35 = vpop.xlane.xlu1 %225  ;;  %v229_v36 = vpop.xlane.xlu0 %228 }
 0x13e   :  { %9083 = vrsqrt.f32 %v284_v16  ;;  %v268_v37 = vmul.f32 0.03125, %v226_v35  ;;  %v269_v38 = vmul.f32 0.03125, %v229_v36 }
 0x13f   :  { %9085 = vrsqrt.f32 %v285_v34 }
 0x140   :  { %v9078_v39 = vpop.eup %9077  ;;  %v286_v42 = vadd.f32 1e-05, %v268_v37  ;;  %v287_v20 = vadd.f32 1e-05, %v269_v38 }
 0x141   :  { %v232_v44 = vpop.xlane.xlu1 %231  ;;  %v235_v45 = vpop.xlane.xlu0 %234  ;;  %v317_v46 = vmul.f32 %v9078_v39, %v9711_v40 }
 0x142   :  { %9087 = vrsqrt.f32 %v286_v42  ;;  %v270_v50 = vmul.f32 0.03125, %v232_v44  ;;  %v271_v51 = vmul.f32 0.03125, %v235_v45 }
 0x143   :  { %9089 = vrsqrt.f32 %v287_v20  ;;  %v342_v61 = vmul.f32 %v9828_v47, %v317_v46 }
 0x144   :  { %v9080_v52 = vpop.eup %9079  ;;  %v288_v24 = vadd.f32 1e-05, %v270_v50  ;;  %v289_v54 = vadd.f32 1e-05, %v271_v51 }
 0x145   :  { %v9082_v56 = vpop.eup %9081  ;;  %v238_v57 = vpop.xlane.xlu1 %237  ;;  %v318_v60 = vmul.f32 %v9080_v52, %v9720_v48  ;;  %v9841_v48 = vadd.f32 %v9833_v55, %v342_v61 }
 0x146   :  { %v241_v40 = vpop.xlane.xlu0 %240  ;;  %9091 = vrsqrt.f32 %v288_v24  ;;  %v272_v62 = vmul.f32 0.03125, %v238_v57  ;;  %v319_v0 = vmul.f32 %v9082_v56, %v9713_v41 }
 0x147   :  { %v273_v28 = vmul.f32 0.03125, %v241_v40  ;;  %9093 = vrsqrt.f32 %v289_v54  ;;  %v343_v1 = vmul.f32 %v9828_v47, %v318_v60  ;;  %14813 = vst [vmem:[#allocation2_spill] sm:$0xff] %v9841_v48 }
 0x148   :  { %v9084_v2 = vpop.eup %9083  ;;  %v290_v3 = vadd.f32 1e-05, %v272_v62  ;;  %v344_v32 = vmul.f32 %v9828_v47, %v319_v0 }
 0x149   :  { %v291_v6 = vadd.f32 1e-05, %v273_v28  ;;  %v9086_v7 = vpop.eup %9085  ;;  %v244_v8 = vpop.xlane.xlu1 %243  ;;  %v9844_v10 = vadd.f32 %v9833_v55, %v343_v1  ;;  %v320_v11 = vmul.f32 %v9084_v2, %v9722_v49 }
 0x14a   :  { %v247_v9 = vpop.xlane.xlu0 %246  ;;  %9095 = vrsqrt.f32 %v290_v3  ;;  %v274_v41 = vmul.f32 0.03125, %v244_v8  ;;  %v321_v19 = vmul.f32 %v9086_v7, %v9731_v58  ;;  %v9852_v27 = vadd.f32 %v9833_v55, %v344_v32 }
 0x14b   :  { %14814 = vst [vmem:[#allocation3_spill] sm:$0xff] %v9844_v10  ;;  %v275_v14 = vmul.f32 0.03125, %v247_v9  ;;  %9097 = vrsqrt.f32 %v291_v6  ;;  %v625_v12 = vpack.c.bf16 %v9844_v10, %v9841_v48  ;;  %v345_v18 = vmul.f32 %v9828_v47, %v320_v11 }
 0x14c   :  { %v9088_v22 = vpop.eup %9087  ;;  %v292_v23 = vadd.f32 1e-05, %v274_v41  ;;  %14815 = vst [vmem:[#allocation4_spill] sm:$0xff] %v9852_v27  ;;  %v346_v36 = vmul.f32 %v9828_v47, %v321_v19 }
 0x14d   :  { %v293_v26 = vadd.f32 1e-05, %v275_v14  ;;  %v9090_v30 = vpop.eup %9089  ;;  %v250_v16 = vpop.xlane.xlu1 %249  ;;  %2076 = vmatpush1.bf16.msra.mxu0 %v625_v12  ;;  %8689 = vmatpush1.bf16.msra.mxu1 %v625_v12  ;;  %v9855_v34 = vadd.f32 %v9833_v55, %v345_v18  ;;  %v322_v35 = vmul.f32 %v9088_v22, %v9734_v59 }
 0x14e   :  { %v253_v49 = vpop.xlane.xlu0 %252  ;;  %9099 = vrsqrt.f32 %v292_v23  ;;  %v276_v58 = vmul.f32 0.03125, %v250_v16  ;;  %2077 = vmatprep.subr.bf16.mxu0 %v14720_v33  ;;  %8681 = vmatprep.subr.bf16.mxu1 %v14720_v33  ;;  %v323_v38 = vmul.f32 %v9090_v30, %v9743_v4  ;;  %v9867_v52 = vadd.f32 %v9833_v55, %v346_v36 }
 0x14f   :  { %14816 = vst [vmem:[#allocation5_spill] sm:$0xff] %v9855_v34  ;;  %v277_v37 = vmul.f32 0.03125, %v253_v49  ;;  %9101 = vrsqrt.f32 %v293_v26  ;;  %v626_v39 = vpack.c.bf16 %v9855_v34, %v9852_v27  ;;  %v347_v42 = vmul.f32 %v9828_v47, %v322_v35 }
 0x150   :  { %v9092_v20 = vpop.eup %9091  ;;  %v294_v44 = vadd.f32 1e-05, %v276_v58  ;;  %v348_v45 = vmul.f32 %v9828_v47, %v323_v38  ;;  %14817 = vst [vmem:[#allocation6_spill] sm:$0xff] %v9867_v52 }
 0x151   :  { %v295_v59 = vadd.f32 1e-05, %v277_v37  ;;  %v9094_v46 = vpop.eup %9093  ;;  %v256_v50 = vpop.xlane.xlu1 %255  ;;  %2078 = vmatpush1.bf16.msra.mxu0 %v626_v39  ;;  %8690 = vmatpush1.bf16.msra.mxu1 %v626_v39  ;;  %v9870_v4 = vadd.f32 %v9833_v55, %v347_v42  ;;  %v324_v24 = vmul.f32 %v9092_v20, %v9746_v5 }
 0x152   :  { %v259_v51 = vpop.xlane.xlu0 %258  ;;  %9103 = vrsqrt.f32 %v294_v44  ;;  %v278_v54 = vmul.f32 0.03125, %v256_v50  ;;  %2079 = vmatprep.subr.bf16.mxu0 %v14720_v33  ;;  %8682 = vmatprep.subr.bf16.mxu1 %v14720_v33  ;;  %v325_v60 = vmul.f32 %v9094_v46, %v9755_v15  ;;  %v9880_v5 = vadd.f32 %v9833_v55, %v348_v45 }
 0x153   :  { %14818 = vst [vmem:[#allocation7_spill] sm:$0xff] %v9870_v4  ;;  %v279_v56 = vmul.f32 0.03125, %v259_v51  ;;  %9105 = vrsqrt.f32 %v295_v59  ;;  %v627_v57 = vpack.c.bf16 %v9870_v4, %v9867_v52  ;;  %v349_v40 = vmul.f32 %v9828_v47, %v324_v24 }
 0x154   :  { %v9096_v61 = vpop.eup %9095  ;;  %v296_v62 = vadd.f32 1e-05, %v278_v54  ;;  %14819 = vst [vmem:[#allocation8_spill] sm:$0xff] %v9880_v5  ;;  %v350_v6 = vmul.f32 %v9828_v47, %v325_v60  ;;  %v8712_v60 = vld [vmem:[%s14810_s4 + $0x34] ss:$8 sps:$4 sm:$0xff]  }
 0x155   :  { %v297_v28 = vadd.f32 1e-05, %v279_v56  ;;  %v9098_v0 = vpop.eup %9097  ;;  %v262_v1 = vpop.xlane.xlu1 %261  ;;  %2080 = vmatpush1.bf16.msra.mxu0 %v627_v57  ;;  %8691 = vmatpush1.bf16.msra.mxu1 %v627_v57  ;;  %v9883_v2 = vadd.f32 %v9833_v55, %v349_v40  ;;  %v326_v3 = vmul.f32 %v9096_v61, %v9758_v13  ;;  %v8703_v56 = vld [vmem:[%s14810_s4] ss:$8 sps:$4 sm:$0xff]   ;;  %v8709_v57 = vld [vmem:[%s14810_s4 + $0x24] ss:$8 sps:$4 sm:$0xff]  }
 0x156   :  { %9107 = vrsqrt.f32 %v296_v62  ;;  %v280_v32 = vmul.f32 0.03125, %v262_v1  ;;  %2081 = vmatprep.subr.bf16.mxu0 %v14720_v33  ;;  %8683 = vmatprep.subr.bf16.mxu1 %v14720_v33  ;;  %v327_v15 = vmul.f32 %v9098_v0, %v9767_v31  ;;  %v9895_v14 = vadd.f32 %v9833_v55, %v350_v6  ;;  %v8711_v40 = vld [vmem:[%s14810_s4 + $0x20] ss:$8 sps:$4 sm:$0xff]   ;;  %v8714_v61 = vld [vmem:[%s14810_s4 + $0x30] ss:$8 sps:$4 sm:$0xff]  }
 0x157   :  { %14820 = vst [vmem:[#allocation9_spill] sm:$0xff] %v9883_v2  ;;  %9109 = vrsqrt.f32 %v297_v28  ;;  %v628_v7 = vpack.c.bf16 %v9883_v2, %v9880_v5  ;;  %v351_v8 = vmul.f32 %v9828_v47, %v326_v3  ;;  %v8715_v62 = vld [vmem:[%s14810_s4 + $0x44] ss:$8 sps:$4 sm:$0xff]   ;;  %v8717_v28 = vld [vmem:[%s14810_s4 + $0x40] ss:$8 sps:$4 sm:$0xff]  }
 0x158   :  { %v9100_v9 = vpop.eup %9099  ;;  %v298_v11 = vadd.f32 1e-05, %v280_v32  ;;  %v352_v13 = vmul.f32 %v9828_v47, %v327_v15  ;;  %14821 = vst [vmem:[#allocation10_spill] sm:$0xff] %v9895_v14  ;;  %v8718_v0 = vld [vmem:[%s14810_s4 + $0x54] ss:$8 sps:$4 sm:$0xff]  }
 0x159   :  { %v9102_v41 = vpop.eup %9101  ;;  %2082 = vmatpush1.bf16.msra.mxu0 %v628_v7  ;;  %8692 = vmatpush1.bf16.msra.mxu1 %v628_v7  ;;  %v9898_v12 = vadd.f32 %v9833_v55, %v351_v8  ;;  %v328_v31 = vmul.f32 %v9100_v9, %v9770_v17  ;;  %v8720_v1 = vld [vmem:[%s14810_s4 + $0x50] ss:$8 sps:$4 sm:$0xff]   ;;  %v8721_v3 = vld [vmem:[%s14810_s4 + $0x64] ss:$8 sps:$4 sm:$0xff]   ;;  %v8723_v6 = vld [vmem:[%s14810_s4 + $0x60] ss:$8 sps:$4 sm:$0xff]  }
 0x15a   :  { %9111 = vrsqrt.f32 %v298_v11  ;;  %2083 = vmatprep.subr.bf16.mxu0 %v14720_v33  ;;  %8684 = vmatprep.subr.bf16.mxu1 %v14720_v33  ;;  %v329_v18 = vmul.f32 %v9102_v41, %v9779_v43  ;;  %v9908_v26 = vadd.f32 %v9833_v55, %v352_v13  ;;  %v8724_v32 = vld [vmem:[%s14810_s4 + $0x74] ss:$8 sps:$4 sm:$0xff]   ;;  %v8726_v15 = vld [vmem:[%s14810_s4 + $0x70] ss:$8 sps:$4 sm:$0xff]   ;;  %v8727_v7 = vld [vmem:[%s14810_s4 + $0x84] ss:$8 sps:$4 sm:$0xff]  }
 0x15b   :  { %14822 = vst [vmem:[#allocation11_spill] sm:$0xff] %v9898_v12  ;;  %v629_v19 = vpack.c.bf16 %v9898_v12, %v9895_v14  ;;  %v353_v22 = vmul.f32 %v9828_v47, %v328_v31  ;;  %v8729_v8 = vld [vmem:[%s14810_s4 + $0x80] ss:$8 sps:$4 sm:$0xff]   ;;  %v8730_v9 = vld [vmem:[%s14810_s4 + $0x94] ss:$8 sps:$4 sm:$0xff]  }
 0x15c   :  { %v9104_v23 = vpop.eup %9103  ;;  %14823 = vst [vmem:[#allocation12_spill] sm:$0xff] %v9908_v26  ;;  %v354_v49 = vmul.f32 %v9828_v47, %v329_v18  ;;  %v8732_v11 = vld [vmem:[%s14810_s4 + $0x90] ss:$8 sps:$4 sm:$0xff]   ;;  %v8733_v13 = vld [vmem:[%s14810_s4 + $0xa4] ss:$8 sps:$4 sm:$0xff]  }
 0x15d   :  { %v9106_v30 = vpop.eup %9105  ;;  %2084 = vmatpush1.bf16.msra.mxu0 %v629_v19  ;;  %8693 = vmatpush1.bf16.msra.mxu1 %v629_v19  ;;  %v9911_v17 = vadd.f32 %v9833_v55, %v353_v22  ;;  %v330_v16 = vmul.f32 %v9104_v23, %v9782_v21  ;;  %v8735_v41 = vld [vmem:[%s14810_s4 + $0xa0] ss:$8 sps:$4 sm:$0xff]   ;;  %v8736_v31 = vld [vmem:[%s14810_s4 + $0xb4] ss:$8 sps:$4 sm:$0xff]   ;;  %v8738_v18 = vld [vmem:[%s14810_s4 + $0xb0] ss:$8 sps:$4 sm:$0xff]  }
 0x15e   :  { %2085 = vmatprep.subr.bf16.mxu0 %v14720_v33  ;;  %8685 = vmatprep.subr.bf16.mxu1 %v14720_v33  ;;  %v331_v43 = vmul.f32 %v9106_v30, %v9791_v53  ;;  %v9923_v21 = vadd.f32 %v9833_v55, %v354_v49  ;;  %v8739_v19 = vld [vmem:[%s14810_s4 + $0xc4] ss:$8 sps:$4 sm:$0xff]   ;;  %v8741_v22 = vld [vmem:[%s14810_s4 + $0xc0] ss:$8 sps:$4 sm:$0xff]   ;;  %v8742_v23 = vld [vmem:[%s14810_s4 + $0xd4] ss:$8 sps:$4 sm:$0xff]  }
 0x15f   :  { %14824 = vst [vmem:[#allocation13_spill] sm:$0xff] %v9911_v17  ;;  %v630_v35 = vpack.c.bf16 %v9911_v17, %v9908_v26  ;;  %v355_v36 = vmul.f32 %v9828_v47, %v330_v16  ;;  %v8744_v30 = vld [vmem:[%s14810_s4 + $0xd0] ss:$8 sps:$4 sm:$0xff]   ;;  %v8745_v16 = vld [vmem:[%s14810_s4 + $0xe4] ss:$8 sps:$4 sm:$0xff]  }
 0x160   :  { %v9108_v58 = vpop.eup %9107  ;;  %v356_v37 = vmul.f32 %v9828_v47, %v331_v43  ;;  %14825 = vst [vmem:[#allocation14_spill] sm:$0xff] %v9923_v21  ;;  %v8747_v49 = vld [vmem:[%s14810_s4 + $0xe0] ss:$8 sps:$4 sm:$0xff]   ;;  %v8748_v43 = vld [vmem:[%s14810_s4 + $0xf4] ss:$8 sps:$4 sm:$0xff]  }
 0x161   :  { %v9110_v38 = vpop.eup %9109  ;;  %2086 = vmatpush1.bf16.msra.mxu0 %v630_v35  ;;  %8694 = vmatpush1.bf16.msra.mxu1 %v630_v35  ;;  %v9926_v39 = vadd.f32 %v9833_v55, %v355_v36  ;;  %v332_v42 = vmul.f32 %v9108_v58, %v9794_v25  ;;  %v8750_v35 = vld [vmem:[%s14810_s4 + $0xf0] ss:$8 sps:$4 sm:$0xff]   ;;  %v8751_v36 = vld [vmem:[%s14810_s4 + $0x104] ss:$8 sps:$4 sm:$0xff]   ;;  %v8753_v58 = vld [vmem:[%s14810_s4 + $0x100] ss:$8 sps:$4 sm:$0xff]  }
 0x162   :  { %2087 = vmatprep.subr.bf16.mxu0 %v14720_v33  ;;  %8686 = vmatprep.subr.bf16.mxu1 %v14720_v33  ;;  %v333_v53 = vmul.f32 %v9110_v38, %v9803_v63  ;;  %v9936_v45 = vadd.f32 %v9833_v55, %v356_v37  ;;  %v8754_v37 = vld [vmem:[%s14810_s4 + $0x114] ss:$8 sps:$4 sm:$0xff]   ;;  %v8756_v38 = vld [vmem:[%s14810_s4 + $0x110] ss:$8 sps:$4 sm:$0xff]  }
 0x163   :  { %14826 = vst [vmem:[#allocation15_spill] sm:$0xff] %v9926_v39  ;;  %v631_v20 = vpack.c.bf16 %v9926_v39, %v9923_v21  ;;  %v357_v44 = vmul.f32 %v9828_v47, %v332_v42  ;;  %v8757_v42 = vld [vmem:[%s14810_s4 + $0x124] ss:$8 sps:$4 sm:$0xff]  }
 0x164   :  { %v9112_v59 = vpop.eup %9111  ;;  %14827 = vst [vmem:[#allocation16_spill] sm:$0xff] %v9936_v45  ;;  %v358_v50 = vmul.f32 %v9828_v47, %v333_v53  ;;  %v8759_v53 = vld [vmem:[%s14810_s4 + $0x120] ss:$8 sps:$4 sm:$0xff]  }
 0x165   :  { %2088 = vmatpush1.bf16.msra.mxu0 %v631_v20  ;;  %8695 = vmatpush1.bf16.msra.mxu1 %v631_v20  ;;  %v9939_v46 = vadd.f32 %v9833_v55, %v357_v44  ;;  %v334_v25 = vmul.f32 %v9112_v59, %v9806_v29  ;;  %v8760_v20 = vld [vmem:[%s14810_s4 + $0x134] ss:$8 sps:$4 sm:$0xff]   ;;  %v8762_v44 = vld [vmem:[%s14810_s4 + $0x130] ss:$8 sps:$4 sm:$0xff]   ;;  %v8763_v59 = vld [vmem:[%s14810_s4 + $0x144] ss:$8 sps:$4 sm:$0xff]  }
 0x166   :  { %2089 = vmatprep.subr.bf16.mxu0 %v14720_v33  ;;  %8687 = vmatprep.subr.bf16.mxu1 %v14720_v33  ;;  %v9949_v24 = vadd.f32 %v9833_v55, %v358_v50  ;;  %v8766_v50 = vld [vmem:[%s14810_s4 + $0x154] ss:$8 sps:$4 sm:$0xff]  }
 0x167   :  { %14828 = vst [vmem:[#allocation17_spill] sm:$0xff] %v9939_v46  ;;  %v632_v63 = vpack.c.bf16 %v9939_v46, %v9936_v45  ;;  %v359_v51 = vmul.f32 %v9828_v47, %v334_v25  ;;  %v8706_v47 = vld [vmem:[%s14810_s4 + $0x14] ss:$8 sps:$4 sm:$0xff]   ;;  %v8765_v25 = vld [vmem:[%s14810_s4 + $0x140] ss:$8 sps:$4 sm:$0xff]  }
 0x168   :  { %14829 = vst [vmem:[#allocation18_spill] sm:$0xff] %v9949_v24 }
 0x169   :  { %2090 = vmatpush1.bf16.msra.mxu0 %v632_v63  ;;  %8696 = vmatpush1.bf16.msra.mxu1 %v632_v63  ;;  %v9952_v54 = vadd.f32 %v9833_v55, %v359_v51  ;;  %v8708_v55 = vld [vmem:[%s14810_s4 + $0x10] ss:$8 sps:$4 sm:$0xff]   ;;  %v8769_v51 = vld [vmem:[%s14810_s4 + $0x164] ss:$8 sps:$4 sm:$0xff]  }
 0x16a   :  { %2091 = vmatprep.subr.bf16.mxu0 %v14720_v33  ;;  %8688 = vmatprep.subr.bf16.mxu1 %v14720_v33  ;;  %v8768_v63 = vld [vmem:[%s14810_s4 + $0x150] ss:$8 sps:$4 sm:$0xff]  }
 0x16b   :  { %14830 = vst [vmem:[#allocation19_spill] sm:$0xff] %v9952_v54  ;;  %v633_v29 = vpack.c.bf16 %v9952_v54, %v9949_v24 }
 0x16d   :  { %2092 = vmatpush1.bf16.msra.mxu0 %v633_v29  ;;  %8697 = vmatpush1.bf16.msra.mxu1 %v633_v29  ;;  %v8771_v29 = vld [vmem:[%s14810_s4 + $0x160] ss:$8 sps:$4 sm:$0xff]  }
 0x170   :  { %2108 = vmatmul.mubr.bf16.vlgmr.msra.gmra.mrb[0].mxu0 %v8703_v56  ;;  %v8772_v56 = vld [vmem:[%s14810_s4 + $0x174] ss:$8 sps:$4 sm:$0xff]  }
 0x171   :  { %8187 = vmatprep.mubr.msk.bf16.mxu0 %vm1714_vm1, %v8706_v47  ;;  %v8774_v47 = vld [vmem:[%s14810_s4 + $0x170] ss:$8 sps:$4 sm:$0xff]  }
 0x178   :  { %2116 = vmatmul.mubr.bf16.gmra.mrb[4].mxu0 %v8708_v55  ;;  %v8775_v55 = vld [vmem:[%s14810_s4 + $0x184] ss:$8 sps:$4 sm:$0xff]  }
 0x179   :  { %8188 = vmatprep.mubr.msk.bf16.mxu0 %vm1714_vm1, %v8709_v57  ;;  %v8777_v57 = vld [vmem:[%s14810_s4 + $0x180] ss:$8 sps:$4 sm:$0xff]  }
 0x180   :  { %2124 = vmatmul.mubr.bf16.gmra.mrb[8].mxu0 %v8711_v40  ;;  %v8778_v40 = vld [vmem:[%s14810_s4 + $0x194] ss:$8 sps:$4 sm:$0xff]  }
 0x181   :  { %8189 = vmatprep.mubr.msk.bf16.mxu0 %vm1714_vm1, %v8712_v60  ;;  %v8780_v60 = vld [vmem:[%s14810_s4 + $0x190] ss:$8 sps:$4 sm:$0xff]  }
 0x188   :  { %2132 = vmatmul.mubr.bf16.gmra.mrb[12].mxu0 %v8714_v61  ;;  %v8781_v61 = vld [vmem:[%s14810_s4 + $0x1a4] ss:$8 sps:$4 sm:$0xff]  }
 0x189   :  { %8190 = vmatprep.mubr.msk.bf16.mxu0 %vm1714_vm1, %v8715_v62  ;;  %v8783_v62 = vld [vmem:[%s14810_s4 + $0x1a0] ss:$8 sps:$4 sm:$0xff]  }
 0x190   :  { %2140 = vmatmul.mubr.bf16.gmra.mrb[16].mxu0 %v8717_v28  ;;  %v8784_v28 = vld [vmem:[%s14810_s4 + $0x1b4] ss:$8 sps:$4 sm:$0xff]  }
 0x191   :  { %8191 = vmatprep.mubr.msk.bf16.mxu0 %vm1714_vm1, %v8718_v0 }
 0x198   :  { %2148 = vmatmul.mubr.bf16.gmra.mrb[20].mxu0 %v8720_v1 }
 0x199   :  { %8192 = vmatprep.mubr.msk.bf16.mxu0 %vm1714_vm1, %v8721_v3  ;;  %v8786_v3 = vld [vmem:[%s14810_s4 + $0x1b0] ss:$8 sps:$4 sm:$0xff]  }
 0x1a0   :  { %2156 = vmatmul.mubr.bf16.gmra.mrb[24].mxu0 %v8723_v6 }
 0x1a1   :  { %8193 = vmatprep.mubr.msk.bf16.mxu0 %vm1714_vm1, %v8724_v32  ;;  %v8787_v32 = vld [vmem:[%s14810_s4 + $0x1c4] ss:$8 sps:$4 sm:$0xff]  }
 0x1a8   :  { %2164 = vmatmul.mubr.bf16.gmra.mrb[28].mxu0 %v8726_v15 }
 0x1a9   :  { %8194 = vmatprep.mubr.msk.bf16.mxu0 %vm1714_vm1, %v8727_v7 }
 0x1b0   :  { %2172 = vmatmul.mubr.bf16.gmra.mrb[32].mxu0 %v8729_v8 }
 0x1b1   :  { %8195 = vmatprep.mubr.msk.bf16.mxu0 %vm1714_vm1, %v8730_v9  ;;  %v8789_v9 = vld [vmem:[%s14810_s4 + $0x1c0] ss:$8 sps:$4 sm:$0xff]  }
 0x1b8   :  { %2180 = vmatmul.mubr.bf16.gmra.mrb[36].mxu0 %v8732_v11 }
 0x1b9   :  { %8196 = vmatprep.mubr.msk.bf16.mxu0 %vm1714_vm1, %v8733_v13  ;;  %v8790_v13 = vld [vmem:[%s14810_s4 + $0x1d4] ss:$8 sps:$4 sm:$0xff]  }
 0x1c0   :  { %2188 = vmatmul.mubr.bf16.gmra.mrb[40].mxu0 %v8735_v41 }
 0x1c1   :  { %8197 = vmatprep.mubr.msk.bf16.mxu0 %vm1714_vm1, %v8736_v31 }
 0x1c8   :  { %2196 = vmatmul.mubr.bf16.gmra.mrb[44].mxu0 %v8738_v18 }
 0x1c9   :  { %8198 = vmatprep.mubr.msk.bf16.mxu0 %vm1714_vm1, %v8739_v19  ;;  %v8792_v19 = vld [vmem:[%s14810_s4 + $0x1d0] ss:$8 sps:$4 sm:$0xff]  }
 0x1d0   :  { %2204 = vmatmul.mubr.bf16.gmra.mrb[48].mxu0 %v8741_v22 }
 0x1d1   :  { %8199 = vmatprep.mubr.msk.bf16.mxu0 %vm1714_vm1, %v8742_v23  ;;  %v8793_v23 = vld [vmem:[%s14810_s4 + $0x1e4] ss:$8 sps:$4 sm:$0xff]  }
 0x1d8   :  { %2212 = vmatmul.mubr.bf16.gmra.mrb[52].mxu0 %v8744_v30 }
 0x1d9   :  { %8200 = vmatprep.mubr.msk.bf16.mxu0 %vm1714_vm1, %v8745_v16 }
 0x1e0   :  { %2220 = vmatmul.mubr.bf16.gmra.mrb[56].mxu0 %v8747_v49 }
 0x1e1   :  { %8201 = vmatprep.mubr.msk.bf16.mxu0 %vm1714_vm1, %v8748_v43  ;;  %v8795_v43 = vld [vmem:[%s14810_s4 + $0x1e0] ss:$8 sps:$4 sm:$0xff]  }
 0x1e8   :  { %2228 = vmatmul.mubr.bf16.gmra.mrb[60].mxu0 %v8750_v35 }
 0x1e9   :  { %8202 = vmatprep.mubr.msk.bf16.mxu0 %vm1714_vm1, %v8751_v36  ;;  %v8796_v36 = vld [vmem:[%s14810_s4 + $0x1f4] ss:$8 sps:$4 sm:$0xff]  }
 0x1f0   :  { %2236 = vmatmul.mubr.bf16.gmra.mrb[64].mxu0 %v8753_v58 }
 0x1f1   :  { %8203 = vmatprep.mubr.msk.bf16.mxu0 %vm1714_vm1, %v8754_v37 }
 0x1f8   :  { %2244 = vmatmul.mubr.bf16.gmra.mrb[68].mxu0 %v8756_v38 }
 0x1f9   :  { %8204 = vmatprep.mubr.msk.bf16.mxu0 %vm1714_vm1, %v8757_v42  ;;  %v8798_v42 = vld [vmem:[%s14810_s4 + $0x1f0] ss:$8 sps:$4 sm:$0xff]  }
 0x200   :  { %2252 = vmatmul.mubr.bf16.gmra.mrb[72].mxu0 %v8759_v53 }
 0x201   :  { %8205 = vmatprep.mubr.msk.bf16.mxu0 %vm1714_vm1, %v8760_v20  ;;  %v8799_v20 = vld [vmem:[%s14810_s4 + $0x204] ss:$8 sps:$4 sm:$0xff]  }
 0x208   :  { %2260 = vmatmul.mubr.bf16.gmra.mrb[76].mxu0 %v8762_v44 }
 0x209   :  { %8206 = vmatprep.mubr.msk.bf16.mxu0 %vm1714_vm1, %v8763_v59 }
 0x210   :  { %2268 = vmatmul.mubr.bf16.gmra.mrb[80].mxu0 %v8765_v25 }
 0x211   :  { %8207 = vmatprep.mubr.msk.bf16.mxu0 %vm1714_vm1, %v8766_v50  ;;  %v8801_v50 = vld [vmem:[%s14810_s4 + $0x200] ss:$8 sps:$4 sm:$0xff]  }
 0x218   :  { %2276 = vmatmul.mubr.bf16.gmra.mrb[84].mxu0 %v8768_v63 }
 0x219   :  { %8208 = vmatprep.mubr.msk.bf16.mxu0 %vm1714_vm1, %v8769_v51  ;;  %v8802_v51 = vld [vmem:[%s14810_s4 + $0x214] ss:$8 sps:$4 sm:$0xff]  }
 0x220   :  { %2284 = vmatmul.mubr.bf16.gmra.mrb[88].mxu0 %v8771_v29 }
 0x221   :  { %8209 = vmatprep.mubr.msk.bf16.mxu0 %vm1714_vm1, %v8772_v56 }
 0x228   :  { %2292 = vmatmul.mubr.bf16.gmra.mrb[92].mxu0 %v8774_v47 }
 0x229   :  { %8210 = vmatprep.mubr.msk.bf16.mxu0 %vm1714_vm1, %v8775_v55  ;;  %v8804_v55 = vld [vmem:[%s14810_s4 + $0x210] ss:$8 sps:$4 sm:$0xff]  }
 0x230   :  { %2300 = vmatmul.mubr.bf16.gmra.mrb[96].mxu0 %v8777_v57 }
 0x231   :  { %8211 = vmatprep.mubr.msk.bf16.mxu0 %vm1714_vm1, %v8778_v40  ;;  %v8805_v40 = vld [vmem:[%s14810_s4 + $0x224] ss:$8 sps:$4 sm:$0xff]  }
 0x238   :  { %2308 = vmatmul.mubr.bf16.gmra.mrb[100].mxu0 %v8780_v60 }
 0x239   :  { %8212 = vmatprep.mubr.msk.bf16.mxu0 %vm1714_vm1, %v8781_v61 }
 0x240   :  { %2316 = vmatmul.mubr.bf16.gmra.mrb[104].mxu0 %v8783_v62 }
 0x241   :  { %8213 = vmatprep.mubr.msk.bf16.mxu0 %vm1714_vm1, %v8784_v28  ;;  %v8807_v28 = vld [vmem:[%s14810_s4 + $0x220] ss:$8 sps:$4 sm:$0xff]  }
 0x243   :  { %v10147_v0 = vpop.f32.mrb[0].mxu0 }
 0x244   :  { %v2111_v1 = vpop.f32.mrb[1].mxu0 }
 0x245   :  { %v10152_v6 = vpop.f32.mrb[2].mxu0 }
 0x246   :  { %v2114_v15 = vpop.f32.mrb[3].mxu0 }
 0x247   :  { %v10238_v15 = vld [vmem:[%s14831_s2] ss:$0 sm:$0xff] }
 0x248   :  { %2324 = vmatmul.mubr.bf16.gmra.mrb[108].mxu0 %v8786_v3  ;;  %v8808_v3 = vld [vmem:[%s14810_s4 + $0x234] ss:$8 sps:$4 sm:$0xff]  }
 0x249   :  { %8214 = vmatprep.mubr.msk.bf16.mxu0 %vm1714_vm1, %v8787_v32 }
 0x24b   :  { %v10158_v7 = vpop.f32.mrb[4].mxu0 }
 0x24c   :  { %v2119_v8 = vpop.f32.mrb[5].mxu0 }
 0x24d   :  { %v10163_v11 = vpop.f32.mrb[6].mxu0 }
 0x24e   :  { %v2122_v41 = vpop.f32.mrb[7].mxu0 }
 0x24f   :  { %v8810_v41 = vld [vmem:[%s14810_s4 + $0x230] ss:$8 sps:$4 sm:$0xff]  }
 0x250   :  { %2332 = vmatmul.mubr.bf16.gmra.mrb[112].mxu0 %v8789_v9 }
 0x251   :  { %8215 = vmatprep.mubr.msk.bf16.mxu0 %vm1714_vm1, %v8790_v13 }
 0x253   :  { %v10169_v31 = vpop.f32.mrb[8].mxu0 }
 0x254   :  { %v2127_v18 = vpop.f32.mrb[9].mxu0 }
 0x255   :  { %v10174_v22 = vpop.f32.mrb[10].mxu0 }
 0x256   :  { %v2130_v30 = vpop.f32.mrb[11].mxu0 }
 0x258   :  { %2340 = vmatmul.mubr.bf16.gmra.mrb[116].mxu0 %v8792_v19  ;;  %v8811_v19 = vld [vmem:[%s14810_s4 + $0x244] ss:$8 sps:$4 sm:$0xff]  }
 0x259   :  { %8216 = vmatprep.mubr.msk.bf16.mxu0 %vm1714_vm1, %v8793_v23 }
 0x25b   :  { %v10180_v16 = vpop.f32.mrb[12].mxu0 }
 0x25c   :  { %v2135_v49 = vpop.f32.mrb[13].mxu0 }
 0x25d   :  { %v10185_v35 = vpop.f32.mrb[14].mxu0  ;;  %v10255_v49 = vld [vmem:[%s14831_s2 + $0x1] ss:$0 sm:$0xff] }
 0x25e   :  { %v2138_v58 = vpop.f32.mrb[15].mxu0 }
 0x260   :  { %2348 = vmatmul.mubr.bf16.gmra.mrb[120].mxu0 %v8795_v43 }
 0x261   :  { %8217 = vmatprep.mubr.msk.bf16.mxu0 %vm1714_vm1, %v8796_v36  ;;  %v3134_v36 = vmul.f32 %v10238_v15, %v10147_v0 }
 0x263   :  { %v10191_v37 = vpop.f32.mrb[16].mxu0 }
 0x264   :  { %v2143_v38 = vpop.f32.mrb[17].mxu0 }
 0x265   :  { %v10196_v53 = vpop.f32.mrb[18].mxu0 }
 0x266   :  { %v2146_v44 = vpop.f32.mrb[19].mxu0 }
 0x267   :  { %v8814_v44 = vld [vmem:[%s14810_s4 + $0x254] ss:$8 sps:$4 sm:$0xff]  }
 0x268   :  { %2356 = vmatmul.mubr.bf16.gmra.mrb[124].mxu0 %v8798_v42  ;;  %v8813_v42 = vld [vmem:[%s14810_s4 + $0x240] ss:$8 sps:$4 sm:$0xff]  }
 0x269   :  { %8218 = vmatprep.mubr.msk.bf16.mxu0 %vm1714_vm1, %v8799_v20 }
 0x26b   :  { %v10202_v59 = vpop.f32.mrb[20].mxu0 }
 0x26c   :  { %v2151_v25 = vpop.f32.mrb[21].mxu0 }
 0x26d   :  { %v10207_v63 = vpop.f32.mrb[22].mxu0  ;;  %v3135_v25 = vmul.f32 %v10238_v15, %v10152_v6  ;;  %v8816_v6 = vld [vmem:[%s14810_s4 + $0x250] ss:$8 sps:$4 sm:$0xff]  }
 0x26e   :  { %v2154_v29 = vpop.f32.mrb[23].mxu0 }
 0x270   :  { %2364 = vmatmul.mubr.bf16.gmra.mrb[128].mxu0 %v8801_v50 }
 0x271   :  { %8219 = vmatprep.mubr.msk.bf16.mxu0 %vm1714_vm1, %v8802_v51 }
 0x273   :  { %v10213_v56 = vpop.f32.mrb[24].mxu0 }
 0x274   :  { %v2159_v47 = vpop.f32.mrb[25].mxu0 }
 0x275   :  { %v10218_v57 = vpop.f32.mrb[26].mxu0 }
 0x276   :  { %v2162_v60 = vpop.f32.mrb[27].mxu0 }
 0x278   :  { %2372 = vmatmul.mubr.bf16.gmra.mrb[132].mxu0 %v8804_v55  ;;  %v3136_v55 = vmul.f32 %v10238_v15, %v10158_v7 }
 0x279   :  { %8220 = vmatprep.mubr.msk.bf16.mxu0 %vm1714_vm1, %v8805_v40 }
 0x27b   :  { %v10224_v61 = vpop.f32.mrb[28].mxu0 }
 0x27c   :  { %v2167_v62 = vpop.f32.mrb[29].mxu0 }
 0x27d   :  { %v10229_v1 = vpop.f32.mrb[30].mxu0 }
 0x27e   :  { %v2170_v32 = vpop.f32.mrb[31].mxu0 }
 0x280   :  { %2380 = vmatmul.mubr.bf16.gmra.mrb[136].mxu0 %v8807_v28  ;;  %v8817_v28 = vld [vmem:[%s14810_s4 + $0x264] ss:$8 sps:$4 sm:$0xff]  }
 0x281   :  { %8221 = vmatprep.mubr.msk.bf16.mxu0 %vm1714_vm1, %v8808_v3  ;;  %v3137_v3 = vmul.f32 %v10238_v15, %v10163_v11  ;;  %v8819_v11 = vld [vmem:[%s14810_s4 + $0x260] ss:$8 sps:$4 sm:$0xff]  }
 0x283   :  { %v2173_v8 = vpop.f32.mrb[32].mxu0 }
 0x284   :  { %v10241_v9 = vmul.f32 %v10238_v15, %v2173_v8  ;;  %v2175_v13 = vpop.f32.mrb[33].mxu0 }
 0x285   :  { %v2176_v18 = vpop.f32.mrb[34].mxu0 }
 0x286   :  { %v10250_v23 = vmul.f32 %v10238_v15, %v2176_v18  ;;  %v2178_v30 = vpop.f32.mrb[35].mxu0  ;;  %v3138_v18 = vmul.f32 %v10238_v15, %v10169_v31 }
 0x288   :  { %2388 = vmatmul.mubr.bf16.gmra.mrb[140].mxu0 %v8810_v41 }
 0x289   :  { %8222 = vmatprep.mubr.msk.bf16.mxu0 %vm1714_vm1, %v8811_v19 }
 0x28b   :  { %v2181_v43 = vpop.f32.mrb[36].mxu0 }
 0x28c   :  { %v3158_v58 = vmul.f32 %v10255_v49, %v2181_v43  ;;  %v2183_v38 = vpop.f32.mrb[37].mxu0 }
 0x28d   :  { %v2184_v20 = vpop.f32.mrb[38].mxu0 }
 0x28e   :  { %v10269_v50 = vadd.f32 %v3158_v58, %v3134_v36  ;;  %v3159_v51 = vmul.f32 %v10255_v49, %v2184_v20  ;;  %v2186_v0 = vpop.f32.mrb[39].mxu0  ;;  %v8820_v36 = vld [vmem:[%s14810_s4 + $0x274] ss:$8 sps:$4 sm:$0xff]   ;;  %v3139_v58 = vmul.f32 %v10238_v15, %v10174_v22  ;;  %v8822_v22 = vld [vmem:[%s14810_s4 + $0x270] ss:$8 sps:$4 sm:$0xff]  }
 0x290   :  { %v10272_v29 = vadd.f32 %v3159_v51, %v3135_v25  ;;  %2396 = vmatmul.mubr.bf16.gmra.mrb[144].mxu0 %v8813_v42  ;;  %v3140_v25 = vmul.f32 %v10238_v15, %v10180_v16 }
 0x291   :  { %8223 = vmatprep.mubr.msk.bf16.mxu0 %vm1714_vm1, %v8814_v44 }
 0x293   :  { %v2189_v47 = vpop.f32.mrb[40].mxu0 }
 0x294   :  { %v3160_v40 = vmul.f32 %v10255_v49, %v2189_v47  ;;  %v2191_v60 = vpop.f32.mrb[41].mxu0 }
 0x295   :  { %v2192_v62 = vpop.f32.mrb[42].mxu0 }
 0x296   :  { %v10286_v32 = vadd.f32 %v3160_v40, %v3136_v55  ;;  %v3161_v8 = vmul.f32 %v10255_v49, %v2192_v62  ;;  %v2194_v7 = vpop.f32.mrb[43].mxu0  ;;  %v8823_v55 = vld [vmem:[%s14810_s4 + $0x284] ss:$8 sps:$4 sm:$0xff]   ;;  %v3141_v40 = vmul.f32 %v10238_v15, %v10185_v35  ;;  %v8825_v35 = vld [vmem:[%s14810_s4 + $0x280] ss:$8 sps:$4 sm:$0xff]  }
 0x298   :  { %v10289_v13 = vadd.f32 %v3161_v8, %v3137_v3  ;;  %2404 = vmatmul.mubr.bf16.gmra.mrb[148].mxu0 %v8816_v6  ;;  %v3142_v3 = vmul.f32 %v10238_v15, %v10191_v37 }
 0x299   :  { %8224 = vmatprep.mubr.msk.bf16.mxu0 %vm1714_vm1, %v8817_v28 }
 0x29b   :  { %v2197_v41 = vpop.f32.mrb[44].mxu0 }
 0x29c   :  { %v3162_v19 = vmul.f32 %v10255_v49, %v2197_v41  ;;  %v2199_v30 = vpop.f32.mrb[45].mxu0 }
 0x29d   :  { %v2200_v43 = vpop.f32.mrb[46].mxu0 }
 0x29e   :  { %v10303_v38 = vadd.f32 %v3162_v19, %v3138_v18  ;;  %v3163_v42 = vmul.f32 %v10255_v49, %v2200_v43  ;;  %v2202_v31 = vpop.f32.mrb[47].mxu0  ;;  %v8826_v18 = vld [vmem:[%s14810_s4 + $0x294] ss:$8 sps:$4 sm:$0xff]   ;;  %v3143_v19 = vmul.f32 %v10238_v15, %v10196_v53  ;;  %v8828_v53 = vld [vmem:[%s14810_s4 + $0x290] ss:$8 sps:$4 sm:$0xff]  }
 0x2a0   :  { %v10306_v20 = vadd.f32 %v3163_v42, %v3139_v58  ;;  %2412 = vmatmul.mubr.bf16.gmra.mrb[152].mxu0 %v8819_v11  ;;  %v3144_v58 = vmul.f32 %v10238_v15, %v10202_v59 }
 0x2a1   :  { %8225 = vmatprep.mubr.msk.bf16.mxu0 %vm1714_vm1, %v8820_v36 }
 0x2a3   :  { %v2205_v44 = vpop.f32.mrb[48].mxu0 }
 0x2a4   :  { %v3164_v51 = vmul.f32 %v10255_v49, %v2205_v44  ;;  %v2207_v0 = vpop.f32.mrb[49].mxu0 }
 0x2a5   :  { %v2208_v47 = vpop.f32.mrb[50].mxu0 }
 0x2a6   :  { %v10320_v60 = vadd.f32 %v3164_v51, %v3140_v25  ;;  %v3165_v6 = vmul.f32 %v10255_v49, %v2208_v47  ;;  %v2210_v16 = vpop.f32.mrb[51].mxu0  ;;  %v8829_v25 = vld [vmem:[%s14810_s4 + $0x2a4] ss:$8 sps:$4 sm:$0xff]   ;;  %v3145_v51 = vmul.f32 %v10238_v15, %v10207_v63  ;;  %v8831_v63 = vld [vmem:[%s14810_s4 + $0x2a0] ss:$8 sps:$4 sm:$0xff]  }
 0x2a8   :  { %v10323_v62 = vadd.f32 %v3165_v6, %v3141_v40  ;;  %2420 = vmatmul.mubr.bf16.gmra.mrb[156].mxu0 %v8822_v22  ;;  %v3146_v40 = vmul.f32 %v10238_v15, %v10213_v56 }
 0x2a9   :  { %8226 = vmatprep.mubr.msk.bf16.mxu0 %vm1714_vm1, %v8823_v55 }
 0x2ab   :  { %v2213_v28 = vpop.f32.mrb[52].mxu0 }
 0x2ac   :  { %v3166_v8 = vmul.f32 %v10255_v49, %v2213_v28  ;;  %v2215_v7 = vpop.f32.mrb[53].mxu0 }
 0x2ad   :  { %v2216_v41 = vpop.f32.mrb[54].mxu0 }
 0x2ae   :  { %v10337_v30 = vadd.f32 %v3166_v8, %v3142_v3  ;;  %v3167_v11 = vmul.f32 %v10255_v49, %v2216_v41  ;;  %v2218_v37 = vpop.f32.mrb[55].mxu0  ;;  %v8832_v3 = vld [vmem:[%s14810_s4 + $0x2b4] ss:$8 sps:$4 sm:$0xff]   ;;  %v3147_v8 = vmul.f32 %v10238_v15, %v10218_v57  ;;  %v8834_v57 = vld [vmem:[%s14810_s4 + $0x2b0] ss:$8 sps:$4 sm:$0xff]  }
 0x2b0   :  { %v10340_v43 = vadd.f32 %v3167_v11, %v3143_v19  ;;  %2428 = vmatmul.mubr.bf16.gmra.mrb[160].mxu0 %v8825_v35  ;;  %v3148_v19 = vmul.f32 %v10238_v15, %v10224_v61 }
 0x2b1   :  { %8227 = vmatprep.mubr.msk.bf16.mxu0 %vm1714_vm1, %v8826_v18 }
 0x2b3   :  { %v2221_v36 = vpop.f32.mrb[56].mxu0 }
 0x2b4   :  { %v3168_v42 = vmul.f32 %v10255_v49, %v2221_v36  ;;  %v2223_v31 = vpop.f32.mrb[57].mxu0 }
 0x2b5   :  { %v2224_v44 = vpop.f32.mrb[58].mxu0 }
 0x2b6   :  { %v10354_v0 = vadd.f32 %v3168_v42, %v3144_v58  ;;  %v3169_v22 = vmul.f32 %v10255_v49, %v2224_v44  ;;  %v2226_v59 = vpop.f32.mrb[59].mxu0  ;;  %v8835_v58 = vld [vmem:[%s14810_s4 + $0x2c4] ss:$8 sps:$4 sm:$0xff]   ;;  %v3149_v42 = vmul.f32 %v10238_v15, %v10229_v1  ;;  %v8838_v1 = vld [vmem:[%s14810_s4 + $0x2d4] ss:$8 sps:$4 sm:$0xff]  }
 0x2b7   :  { %v8837_v59 = vld [vmem:[%s14810_s4 + $0x2c0] ss:$8 sps:$4 sm:$0xff]  }
 0x2b8   :  { %v10357_v47 = vadd.f32 %v3169_v22, %v3145_v51  ;;  %2436 = vmatmul.mubr.bf16.gmra.mrb[164].mxu0 %v8828_v53 }
 0x2b9   :  { %8228 = vmatprep.mubr.msk.bf16.mxu0 %vm1714_vm1, %v8829_v25 }
 0x2bb   :  { %v2229_v55 = vpop.f32.mrb[60].mxu0 }
 0x2bc   :  { %v3170_v6 = vmul.f32 %v10255_v49, %v2229_v55  ;;  %v2231_v16 = vpop.f32.mrb[61].mxu0 }
 0x2bd   :  { %v2232_v28 = vpop.f32.mrb[62].mxu0 }
 0x2be   :  { %v10371_v7 = vadd.f32 %v3170_v6, %v3146_v40  ;;  %v3171_v35 = vmul.f32 %v10255_v49, %v2232_v28  ;;  %v2234_v56 = vpop.f32.mrb[63].mxu0 }
 0x2c0   :  { %v10374_v41 = vadd.f32 %v3171_v35, %v3147_v8  ;;  %2444 = vmatmul.mubr.bf16.gmra.mrb[168].mxu0 %v8831_v63  ;;  %v10411_v63 = vld [vmem:[%s14831_s2 + $0x2] ss:$0 sm:$0xff] }
 0x2c1   :  { %8229 = vmatprep.mubr.msk.bf16.mxu0 %vm1714_vm1, %v8832_v3 }
 0x2c3   :  { %v2237_v18 = vpop.f32.mrb[64].mxu0 }
 0x2c4   :  { %v3172_v11 = vmul.f32 %v10255_v49, %v2237_v18  ;;  %v2239_v37 = vpop.f32.mrb[65].mxu0 }
 0x2c5   :  { %v2240_v36 = vpop.f32.mrb[66].mxu0 }
 0x2c6   :  { %v10388_v31 = vadd.f32 %v3172_v11, %v3148_v19  ;;  %v3173_v53 = vmul.f32 %v10255_v49, %v2240_v36  ;;  %v2242_v61 = vpop.f32.mrb[67].mxu0  ;;  %v8843_v36 = vld [vmem:[%s14810_s4 + $0x2e0] ss:$8 sps:$4 sm:$0xff]  }
 0x2c8   :  { %v10391_v44 = vadd.f32 %v3173_v53, %v3149_v42  ;;  %2452 = vmatmul.mubr.bf16.gmra.mrb[172].mxu0 %v8834_v57 }
 0x2c9   :  { %8230 = vmatprep.mubr.msk.bf16.mxu0 %vm1714_vm1, %v8835_v58 }
 0x2cb   :  { %v2245_v25 = vpop.f32.mrb[68].mxu0 }
 0x2cc   :  { %v3174_v51 = vmul.f32 %v10255_v49, %v2245_v25  ;;  %v2247_v22 = vpop.f32.mrb[69].mxu0 }
 0x2cd   :  { %v2248_v55 = vpop.f32.mrb[70].mxu0 }
 0x2ce   :  { %v10402_v15 = vadd.f32 %v3174_v51, %v10241_v9  ;;  %v3175_v40 = vmul.f32 %v10255_v49, %v2248_v55  ;;  %v2250_v6 = vpop.f32.mrb[71].mxu0  ;;  %v8840_v9 = vld [vmem:[%s14810_s4 + $0x2d0] ss:$8 sps:$4 sm:$0xff]  }
 0x2d0   :  { %v10406_v16 = vadd.f32 %v3175_v40, %v10250_v23  ;;  %2460 = vmatmul.mubr.bf16.gmra.mrb[176].mxu0 %v8837_v59  ;;  %v8841_v23 = vld [vmem:[%s14810_s4 + $0x2e4] ss:$8 sps:$4 sm:$0xff]   ;;  %v8846_v59 = vld [vmem:[%s14810_s4 + $0x2f0] ss:$8 sps:$4 sm:$0xff]  }
 0x2d1   :  { %8231 = vmatprep.mubr.msk.bf16.mxu0 %vm1714_vm1, %v8838_v1  ;;  %v8892_v1 = vld [vmem:[%s14810_s4 + $0x5f0] ss:$8 sps:$4 sm:$0xff]  }
 0x2d3   :  { %v2253_v28 = vpop.f32.mrb[72].mxu0 }
 0x2d4   :  { %v3200_v3 = vmul.f32 %v10411_v63, %v2253_v28  ;;  %v2255_v8 = vpop.f32.mrb[73].mxu0 }
 0x2d5   :  { %v2256_v49 = vpop.f32.mrb[74].mxu0 }
 0x2d6   :  { %v10422_v35 = vadd.f32 %v3200_v3, %v10269_v50  ;;  %v3201_v56 = vmul.f32 %v10411_v63, %v2256_v49  ;;  %v2258_v18 = vpop.f32.mrb[75].mxu0  ;;  %v8844_v50 = vld [vmem:[%s14810_s4 + $0x2f4] ss:$8 sps:$4 sm:$0xff]  }
 0x2d7   :  { %v8900_v18 = vld [vmem:[%s14810_s4 + $0x600] ss:$8 sps:$4 sm:$0xff]  }
 0x2d8   :  { %v10426_v19 = vadd.f32 %v3201_v56, %v10272_v29  ;;  %2468 = vmatmul.mubr.bf16.gmra.mrb[180].mxu0 %v8840_v9 }
 0x2d9   :  { %8232 = vmatprep.mubr.msk.bf16.mxu0 %vm1714_vm1, %v8841_v23  ;;  %v8898_v23 = vld [vmem:[%s14810_s4 + $0x604] ss:$8 sps:$4 sm:$0xff]  }
 0x2db   :  { %v2261_v11 = vpop.f32.mrb[76].mxu0 }
 0x2dc   :  { %v3202_v37 = vmul.f32 %v10411_v63, %v2261_v11  ;;  %v2263_v57 = vpop.f32.mrb[77].mxu0 }
 0x2dd   :  { %v2264_v58 = vpop.f32.mrb[78].mxu0 }
 0x2de   :  { %v10437_v42 = vadd.f32 %v3202_v37, %v10286_v32  ;;  %v3203_v29 = vmul.f32 %v10411_v63, %v2264_v58  ;;  %v2266_v53 = vpop.f32.mrb[79].mxu0  ;;  %v8894_v32 = vld [vmem:[%s14810_s4 + $0x5f4] ss:$8 sps:$4 sm:$0xff]  }
 0x2df   :  { %8281 = vmatprep.mubr.msk.bf16.mxu1 %vm1714_vm1, %v8894_v32  ;;  %v8904_v53 = vld [vmem:[%s14810_s4 + $0x614] ss:$8 sps:$4 sm:$0xff]  }
 0x2e0   :  { %v10441_v61 = vadd.f32 %v3203_v29, %v10289_v13  ;;  %2476 = vmatmul.mubr.bf16.gmra.mrb[184].mxu0 %v8843_v36  ;;  %v8847_v13 = vld [vmem:[%s14810_s4 + $0x304] ss:$8 sps:$4 sm:$0xff]   ;;  %2868 = vmatmul.mubr.bf16.vlgmr.msra.gmra.mrb[0].mxu1 %v8892_v1 }
 0x2e1   :  { %8233 = vmatprep.mubr.msk.bf16.mxu0 %vm1714_vm1, %v8844_v50  ;;  %8282 = vmatprep.mubr.msk.bf16.mxu1 %vm1714_vm1, %v8898_v23 }
 0x2e3   :  { %v2269_v25 = vpop.f32.mrb[80].mxu0 }
 0x2e4   :  { %v3204_v51 = vmul.f32 %v10411_v63, %v2269_v25  ;;  %v2271_v22 = vpop.f32.mrb[81].mxu0 }
 0x2e5   :  { %v2272_v55 = vpop.f32.mrb[82].mxu0 }
 0x2e6   :  { %v10458_v40 = vadd.f32 %v3204_v51, %v10303_v38  ;;  %v3205_v6 = vmul.f32 %v10411_v63, %v2272_v55  ;;  %v2274_v28 = vpop.f32.mrb[83].mxu0  ;;  %v8849_v38 = vld [vmem:[%s14810_s4 + $0x300] ss:$8 sps:$4 sm:$0xff]   ;;  %v8906_v51 = vld [vmem:[%s14810_s4 + $0x610] ss:$8 sps:$4 sm:$0xff]  }
 0x2e7   :  { %v8855_v28 = vld [vmem:[%s14810_s4 + $0x320] ss:$8 sps:$4 sm:$0xff]  }
 0x2e8   :  { %v10463_v3 = vadd.f32 %v3205_v6, %v10306_v20  ;;  %2484 = vmatmul.mubr.bf16.gmra.mrb[188].mxu0 %v8846_v59  ;;  %v8850_v20 = vld [vmem:[%s14810_s4 + $0x314] ss:$8 sps:$4 sm:$0xff]   ;;  %2876 = vmatmul.mubr.bf16.gmra.mrb[4].mxu1 %v8900_v18 }
 0x2e9   :  { %8234 = vmatprep.mubr.msk.bf16.mxu0 %vm1714_vm1, %v8847_v13  ;;  %8283 = vmatprep.mubr.msk.bf16.mxu1 %vm1714_vm1, %v8904_v53 }
 0x2eb   :  { %v2277_v8 = vpop.f32.mrb[84].mxu0 }
 0x2ec   :  { %v3206_v9 = vmul.f32 %v10411_v63, %v2277_v8  ;;  %v2279_v49 = vpop.f32.mrb[85].mxu0 }
 0x2ed   :  { %v2280_v56 = vpop.f32.mrb[86].mxu0 }
 0x2ee   :  { %v10480_v11 = vadd.f32 %v3206_v9, %v10320_v60  ;;  %v3207_v37 = vmul.f32 %v10411_v63, %v2280_v56  ;;  %v2282_v57 = vpop.f32.mrb[87].mxu0  ;;  %v8852_v60 = vld [vmem:[%s14810_s4 + $0x310] ss:$8 sps:$4 sm:$0xff]   ;;  %v8912_v9 = vld [vmem:[%s14810_s4 + $0x620] ss:$8 sps:$4 sm:$0xff]  }
 0x2ef   :  { %v8858_v57 = vld [vmem:[%s14810_s4 + $0x330] ss:$8 sps:$4 sm:$0xff]  }
 0x2f0   :  { %v10485_v36 = vadd.f32 %v3207_v37, %v10323_v62  ;;  %2492 = vmatmul.mubr.bf16.gmra.mrb[192].mxu0 %v8849_v38  ;;  %v8853_v62 = vld [vmem:[%s14810_s4 + $0x324] ss:$8 sps:$4 sm:$0xff]   ;;  %2884 = vmatmul.mubr.bf16.gmra.mrb[8].mxu1 %v8906_v51 }
 0x2f1   :  { %8235 = vmatprep.mubr.msk.bf16.mxu0 %vm1714_vm1, %v8850_v20 }
 0x2f3   :  { %v2285_v58 = vpop.f32.mrb[88].mxu0 }
 0x2f4   :  { %v3208_v50 = vmul.f32 %v10411_v63, %v2285_v58  ;;  %v2287_v29 = vpop.f32.mrb[89].mxu0 }
 0x2f5   :  { %v2288_v25 = vpop.f32.mrb[90].mxu0 }
 0x2f6   :  { %v3209_v22 = vmul.f32 %v10411_v63, %v2288_v25  ;;  %v2290_v59 = vpop.f32.mrb[91].mxu0  ;;  %v10503_v32 = vadd.f32 %v3208_v50, %v10337_v30  ;;  %v8910_v30 = vld [vmem:[%s14810_s4 + $0x624] ss:$8 sps:$4 sm:$0xff]   ;;  %v8918_v50 = vld [vmem:[%s14810_s4 + $0x630] ss:$8 sps:$4 sm:$0xff]  }
 0x2f7   :  { %8284 = vmatprep.mubr.msk.bf16.mxu1 %vm1714_vm1, %v8910_v30  ;;  %v8861_v59 = vld [vmem:[%s14810_s4 + $0x340] ss:$8 sps:$4 sm:$0xff]  }
 0x2f8   :  { %2500 = vmatmul.mubr.bf16.gmra.mrb[196].mxu0 %v8852_v60  ;;  %v10507_v55 = vadd.f32 %v3209_v22, %v10340_v43  ;;  %v8856_v43 = vld [vmem:[%s14810_s4 + $0x334] ss:$8 sps:$4 sm:$0xff]   ;;  %2892 = vmatmul.mubr.bf16.gmra.mrb[12].mxu1 %v8912_v9 }
 0x2f9   :  { %8236 = vmatprep.mubr.msk.bf16.mxu0 %vm1714_vm1, %v8853_v62 }
 0x2fb   :  { %v2293_v13 = vpop.f32.mrb[92].mxu0 }
 0x2fc   :  { %v3210_v1 = vmul.f32 %v10411_v63, %v2293_v13  ;;  %v2295_v6 = vpop.f32.mrb[93].mxu0 }
 0x2fd   :  { %v2296_v8 = vpop.f32.mrb[94].mxu0 }
 0x2fe   :  { %v3211_v49 = vmul.f32 %v10411_v63, %v2296_v8  ;;  %v2298_v38 = vpop.f32.mrb[95].mxu0  ;;  %v10525_v23 = vadd.f32 %v3210_v1, %v10354_v0  ;;  %v8916_v0 = vld [vmem:[%s14810_s4 + $0x634] ss:$8 sps:$4 sm:$0xff]   ;;  %v8924_v1 = vld [vmem:[%s14810_s4 + $0x640] ss:$8 sps:$4 sm:$0xff]  }
 0x2ff   :  { %8285 = vmatprep.mubr.msk.bf16.mxu1 %vm1714_vm1, %v8916_v0  ;;  %v8864_v38 = vld [vmem:[%s14810_s4 + $0x350] ss:$8 sps:$4 sm:$0xff]  }
 0x300   :  { %2508 = vmatmul.mubr.bf16.gmra.mrb[200].mxu0 %v8855_v28  ;;  %v10529_v56 = vadd.f32 %v3211_v49, %v10357_v47  ;;  %v8859_v47 = vld [vmem:[%s14810_s4 + $0x344] ss:$8 sps:$4 sm:$0xff]   ;;  %2900 = vmatmul.mubr.bf16.gmra.mrb[16].mxu1 %v8918_v50 }
 0x301   :  { %8237 = vmatprep.mubr.msk.bf16.mxu0 %vm1714_vm1, %v8856_v43 }
 0x303   :  { %v2301_v20 = vpop.f32.mrb[96].mxu0 }
 0x304   :  { %v3212_v18 = vmul.f32 %v10411_v63, %v2301_v20  ;;  %v2303_v37 = vpop.f32.mrb[97].mxu0 }
 0x305   :  { %v2304_v58 = vpop.f32.mrb[98].mxu0 }
 0x306   :  { %v3213_v29 = vmul.f32 %v10411_v63, %v2304_v58  ;;  %v2306_v60 = vpop.f32.mrb[99].mxu0  ;;  %v10547_v53 = vadd.f32 %v3212_v18, %v10371_v7  ;;  %v8922_v7 = vld [vmem:[%s14810_s4 + $0x644] ss:$8 sps:$4 sm:$0xff]   ;;  %v8930_v18 = vld [vmem:[%s14810_s4 + $0x650] ss:$8 sps:$4 sm:$0xff]  }
 0x307   :  { %8286 = vmatprep.mubr.msk.bf16.mxu1 %vm1714_vm1, %v8922_v7 }
 0x308   :  { %2516 = vmatmul.mubr.bf16.gmra.mrb[204].mxu0 %v8858_v57  ;;  %v10551_v25 = vadd.f32 %v3213_v29, %v10374_v41  ;;  %v8862_v41 = vld [vmem:[%s14810_s4 + $0x354] ss:$8 sps:$4 sm:$0xff]   ;;  %2908 = vmatmul.mubr.bf16.gmra.mrb[20].mxu1 %v8924_v1 }
 0x309   :  { %8238 = vmatprep.mubr.msk.bf16.mxu0 %vm1714_vm1, %v8859_v47  ;;  %v10600_v47 = vld [vmem:[%s14831_s2 + $0x3] ss:$0 sm:$0xff] }
 0x30b   :  { %v2309_v62 = vpop.f32.mrb[100].mxu0 }
 0x30c   :  { %v3214_v51 = vmul.f32 %v10411_v63, %v2309_v62  ;;  %v2311_v22 = vpop.f32.mrb[101].mxu0  ;;  %v8868_v62 = vld [vmem:[%s14810_s4 + $0x374] ss:$8 sps:$4 sm:$0xff]  }
 0x30d   :  { %v2312_v13 = vpop.f32.mrb[102].mxu0 }
 0x30e   :  { %v3215_v6 = vmul.f32 %v10411_v63, %v2312_v13  ;;  %v2314_v28 = vpop.f32.mrb[103].mxu0  ;;  %v10569_v30 = vadd.f32 %v3214_v51, %v10388_v31  ;;  %v8928_v31 = vld [vmem:[%s14810_s4 + $0x654] ss:$8 sps:$4 sm:$0xff]   ;;  %v8936_v51 = vld [vmem:[%s14810_s4 + $0x660] ss:$8 sps:$4 sm:$0xff]  }
 0x30f   :  { %8287 = vmatprep.mubr.msk.bf16.mxu1 %vm1714_vm1, %v8928_v31  ;;  %v8870_v28 = vld [vmem:[%s14810_s4 + $0x370] ss:$8 sps:$4 sm:$0xff]  }
 0x310   :  { %2524 = vmatmul.mubr.bf16.gmra.mrb[208].mxu0 %v8861_v59  ;;  %v10573_v8 = vadd.f32 %v3215_v6, %v10391_v44  ;;  %v8865_v44 = vld [vmem:[%s14810_s4 + $0x364] ss:$8 sps:$4 sm:$0xff]   ;;  %2916 = vmatmul.mubr.bf16.gmra.mrb[24].mxu1 %v8930_v18 }
 0x311   :  { %8239 = vmatprep.mubr.msk.bf16.mxu0 %vm1714_vm1, %v8862_v41 }
 0x313   :  { %v2317_v43 = vpop.f32.mrb[104].mxu0 }
 0x314   :  { %v3216_v9 = vmul.f32 %v10411_v63, %v2317_v43  ;;  %v2319_v49 = vpop.f32.mrb[105].mxu0 }
 0x315   :  { %v2320_v20 = vpop.f32.mrb[106].mxu0 }
 0x316   :  { %v3217_v37 = vmul.f32 %v10411_v63, %v2320_v20  ;;  %v2322_v57 = vpop.f32.mrb[107].mxu0  ;;  %v10591_v0 = vadd.f32 %v3216_v9, %v10402_v15  ;;  %v8867_v15 = vld [vmem:[%s14810_s4 + $0x360] ss:$8 sps:$4 sm:$0xff]   ;;  %v8942_v9 = vld [vmem:[%s14810_s4 + $0x670] ss:$8 sps:$4 sm:$0xff]  }
 0x317   :  { %v8873_v57 = vld [vmem:[%s14810_s4 + $0x380] ss:$8 sps:$4 sm:$0xff]  }
 0x318   :  { %2532 = vmatmul.mubr.bf16.gmra.mrb[212].mxu0 %v8864_v38  ;;  %v10595_v58 = vadd.f32 %v3217_v37, %v10406_v16  ;;  %v8934_v16 = vld [vmem:[%s14810_s4 + $0x664] ss:$8 sps:$4 sm:$0xff]  }
 0x319   :  { %8240 = vmatprep.mubr.msk.bf16.mxu0 %vm1714_vm1, %v8865_v44  ;;  %8288 = vmatprep.mubr.msk.bf16.mxu1 %vm1714_vm1, %v8934_v16 }
 0x31a   :  { %2924 = vmatmul.mubr.bf16.gmra.mrb[28].mxu1 %v8936_v51 }
 0x31b   :  { %v2325_v50 = vpop.f32.mrb[108].mxu0 }
 0x31c   :  { %v3242_v63 = vmul.f32 %v10600_v47, %v2325_v50  ;;  %v2327_v29 = vpop.f32.mrb[109].mxu0 }
 0x31d   :  { %v2328_v60 = vpop.f32.mrb[110].mxu0 }
 0x31e   :  { %v3243_v22 = vmul.f32 %v10600_v47, %v2328_v60  ;;  %v2330_v59 = vpop.f32.mrb[111].mxu0  ;;  %v10618_v7 = vadd.f32 %v3242_v63, %v10422_v35  ;;  %v8940_v35 = vld [vmem:[%s14810_s4 + $0x674] ss:$8 sps:$4 sm:$0xff]   ;;  %v8948_v63 = vld [vmem:[%s14810_s4 + $0x680] ss:$8 sps:$4 sm:$0xff]  }
 0x31f   :  { %8289 = vmatprep.mubr.msk.bf16.mxu1 %vm1714_vm1, %v8940_v35  ;;  %v8876_v59 = vld [vmem:[%s14810_s4 + $0x390] ss:$8 sps:$4 sm:$0xff]  }
 0x320   :  { %2540 = vmatmul.mubr.bf16.gmra.mrb[216].mxu0 %v8867_v15  ;;  %v10622_v13 = vadd.f32 %v3243_v22, %v10426_v19  ;;  %v8871_v19 = vld [vmem:[%s14810_s4 + $0x384] ss:$8 sps:$4 sm:$0xff]  }
 0x321   :  { %8241 = vmatprep.mubr.msk.bf16.mxu0 %vm1714_vm1, %v8868_v62 }
 0x322   :  { %2932 = vmatmul.mubr.bf16.gmra.mrb[32].mxu1 %v8942_v9 }
 0x323   :  { %v2333_v41 = vpop.f32.mrb[112].mxu0 }
 0x324   :  { %v3244_v1 = vmul.f32 %v10600_v47, %v2333_v41  ;;  %v2335_v6 = vpop.f32.mrb[113].mxu0 }
 0x325   :  { %v2336_v43 = vpop.f32.mrb[114].mxu0 }
 0x326   :  { %v3245_v49 = vmul.f32 %v10600_v47, %v2336_v43  ;;  %v2338_v38 = vpop.f32.mrb[115].mxu0  ;;  %v10640_v31 = vadd.f32 %v3244_v1, %v10437_v42  ;;  %v8946_v42 = vld [vmem:[%s14810_s4 + $0x684] ss:$8 sps:$4 sm:$0xff]   ;;  %v8954_v1 = vld [vmem:[%s14810_s4 + $0x690] ss:$8 sps:$4 sm:$0xff]  }
 0x327   :  { %8290 = vmatprep.mubr.msk.bf16.mxu1 %vm1714_vm1, %v8946_v42  ;;  %v8879_v38 = vld [vmem:[%s14810_s4 + $0x3a0] ss:$8 sps:$4 sm:$0xff]  }
 0x328   :  { %2548 = vmatmul.mubr.bf16.gmra.mrb[220].mxu0 %v8870_v28  ;;  %v10644_v20 = vadd.f32 %v3245_v49, %v10441_v61  ;;  %v8874_v61 = vld [vmem:[%s14810_s4 + $0x394] ss:$8 sps:$4 sm:$0xff]  }
 0x329   :  { %8242 = vmatprep.mubr.msk.bf16.mxu0 %vm1714_vm1, %v8871_v19 }
 0x32a   :  { %2940 = vmatmul.mubr.bf16.gmra.mrb[36].mxu1 %v8948_v63 }
 0x32b   :  { %v2341_v44 = vpop.f32.mrb[116].mxu0 }
 0x32c   :  { %v3246_v18 = vmul.f32 %v10600_v47, %v2341_v44  ;;  %v2343_v37 = vpop.f32.mrb[117].mxu0 }
 0x32d   :  { %v2344_v50 = vpop.f32.mrb[118].mxu0 }
 0x32e   :  { %v3247_v29 = vmul.f32 %v10600_v47, %v2344_v50  ;;  %v2346_v15 = vpop.f32.mrb[119].mxu0  ;;  %v10662_v16 = vadd.f32 %v3246_v18, %v10458_v40  ;;  %v8952_v40 = vld [vmem:[%s14810_s4 + $0x694] ss:$8 sps:$4 sm:$0xff]   ;;  %v8960_v18 = vld [vmem:[%s14810_s4 + $0x6a0] ss:$8 sps:$4 sm:$0xff]  }
 0x32f   :  { %8291 = vmatprep.mubr.msk.bf16.mxu1 %vm1714_vm1, %v8952_v40  ;;  %v8964_v15 = vld [vmem:[%s14810_s4 + $0x6b4] ss:$8 sps:$4 sm:$0xff]  }
 0x330   :  { %2556 = vmatmul.mubr.bf16.gmra.mrb[224].mxu0 %v8873_v57  ;;  %v10666_v60 = vadd.f32 %v3247_v29, %v10463_v3  ;;  %v8877_v3 = vld [vmem:[%s14810_s4 + $0x3a4] ss:$8 sps:$4 sm:$0xff]  }
 0x331   :  { %8243 = vmatprep.mubr.msk.bf16.mxu0 %vm1714_vm1, %v8874_v61 }
 0x332   :  { %2948 = vmatmul.mubr.bf16.gmra.mrb[40].mxu1 %v8954_v1 }
 0x333   :  { %v2349_v62 = vpop.f32.mrb[120].mxu0 }
 0x334   :  { %v3248_v51 = vmul.f32 %v10600_v47, %v2349_v62  ;;  %v2351_v22 = vpop.f32.mrb[121].mxu0 }
 0x335   :  { %v2352_v41 = vpop.f32.mrb[122].mxu0 }
 0x336   :  { %v3249_v6 = vmul.f32 %v10600_v47, %v2352_v41  ;;  %v2354_v28 = vpop.f32.mrb[123].mxu0  ;;  %v10684_v35 = vadd.f32 %v3248_v51, %v10480_v11  ;;  %v8958_v11 = vld [vmem:[%s14810_s4 + $0x6a4] ss:$8 sps:$4 sm:$0xff]   ;;  %v8966_v51 = vld [vmem:[%s14810_s4 + $0x6b0] ss:$8 sps:$4 sm:$0xff]  }
 0x337   :  { %8292 = vmatprep.mubr.msk.bf16.mxu1 %vm1714_vm1, %v8958_v11  ;;  %v8970_v28 = vld [vmem:[%s14810_s4 + $0x6c4] ss:$8 sps:$4 sm:$0xff]  }
 0x338   :  { %2564 = vmatmul.mubr.bf16.gmra.mrb[228].mxu0 %v8876_v59  ;;  %v10688_v43 = vadd.f32 %v3249_v6, %v10485_v36  ;;  %v8880_v36 = vld [vmem:[%s14810_s4 + $0x3b4] ss:$8 sps:$4 sm:$0xff]  }
 0x339   :  { %8244 = vmatprep.mubr.msk.bf16.mxu0 %vm1714_vm1, %v8877_v3 }
 0x33a   :  { %2956 = vmatmul.mubr.bf16.gmra.mrb[44].mxu1 %v8960_v18 }
 0x33b   :  { %v2357_v19 = vpop.f32.mrb[124].mxu0  ;;  %8293 = vmatprep.mubr.msk.bf16.mxu1 %vm1714_vm1, %v8964_v15 }
 0x33c   :  { %v3250_v9 = vmul.f32 %v10600_v47, %v2357_v19  ;;  %v2359_v49 = vpop.f32.mrb[125].mxu0 }
 0x33d   :  { %v2360_v44 = vpop.f32.mrb[126].mxu0 }
 0x33e   :  { %v10705_v37 = vadd.f32 %v3250_v9, %v10503_v32  ;;  %v3251_v57 = vmul.f32 %v10600_v47, %v2360_v44  ;;  %v2362_v42 = vpop.f32.mrb[127].mxu0  ;;  %v8882_v32 = vld [vmem:[%s14810_s4 + $0x3b0] ss:$8 sps:$4 sm:$0xff]   ;;  %v8972_v9 = vld [vmem:[%s14810_s4 + $0x6c0] ss:$8 sps:$4 sm:$0xff]  }
 0x33f   :  { %v8976_v42 = vld [vmem:[%s14810_s4 + $0x6d4] ss:$8 sps:$4 sm:$0xff]  }
 0x340   :  { %v10710_v50 = vadd.f32 %v3251_v57, %v10507_v55  ;;  %2572 = vmatmul.mubr.bf16.gmra.mrb[232].mxu0 %v8879_v38  ;;  %v8883_v55 = vld [vmem:[%s14810_s4 + $0x3c4] ss:$8 sps:$4 sm:$0xff]  }
 0x341   :  { %8245 = vmatprep.mubr.msk.bf16.mxu0 %vm1714_vm1, %v8880_v36 }
 0x342   :  { %2964 = vmatmul.mubr.bf16.gmra.mrb[48].mxu1 %v8966_v51 }
 0x343   :  { %v2365_v61 = vpop.f32.mrb[128].mxu0  ;;  %8294 = vmatprep.mubr.msk.bf16.mxu1 %vm1714_vm1, %v8970_v28 }
 0x344   :  { %v3252_v63 = vmul.f32 %v10600_v47, %v2365_v61  ;;  %v2367_v29 = vpop.f32.mrb[129].mxu0 }
 0x345   :  { %v2368_v62 = vpop.f32.mrb[130].mxu0 }
 0x346   :  { %v10727_v22 = vadd.f32 %v3252_v63, %v10525_v23  ;;  %v3253_v59 = vmul.f32 %v10600_v47, %v2368_v62  ;;  %v2370_v40 = vpop.f32.mrb[131].mxu0  ;;  %v8885_v23 = vld [vmem:[%s14810_s4 + $0x3c0] ss:$8 sps:$4 sm:$0xff]   ;;  %v8978_v63 = vld [vmem:[%s14810_s4 + $0x6d0] ss:$8 sps:$4 sm:$0xff]  }
 0x347   :  { %v8982_v40 = vld [vmem:[%s14810_s4 + $0x6e4] ss:$8 sps:$4 sm:$0xff]  }
 0x348   :  { %v10732_v41 = vadd.f32 %v3253_v59, %v10529_v56  ;;  %2580 = vmatmul.mubr.bf16.gmra.mrb[236].mxu0 %v8882_v32  ;;  %v8886_v56 = vld [vmem:[%s14810_s4 + $0x3d4] ss:$8 sps:$4 sm:$0xff]  }
 0x349   :  { %8246 = vmatprep.mubr.msk.bf16.mxu0 %vm1714_vm1, %v8883_v55 }
 0x34a   :  { %2972 = vmatmul.mubr.bf16.gmra.mrb[52].mxu1 %v8972_v9 }
 0x34b   :  { %v2373_v3 = vpop.f32.mrb[132].mxu0  ;;  %8295 = vmatprep.mubr.msk.bf16.mxu1 %vm1714_vm1, %v8976_v42 }
 0x34c   :  { %v3254_v1 = vmul.f32 %v10600_v47, %v2373_v3  ;;  %v2375_v6 = vpop.f32.mrb[133].mxu0 }
 0x34d   :  { %v2376_v19 = vpop.f32.mrb[134].mxu0 }
 0x34e   :  { %v10749_v49 = vadd.f32 %v3254_v1, %v10547_v53  ;;  %v3255_v38 = vmul.f32 %v10600_v47, %v2376_v19  ;;  %v2378_v11 = vpop.f32.mrb[135].mxu0  ;;  %v8888_v53 = vld [vmem:[%s14810_s4 + $0x3d0] ss:$8 sps:$4 sm:$0xff]   ;;  %v8984_v1 = vld [vmem:[%s14810_s4 + $0x6e0] ss:$8 sps:$4 sm:$0xff]  }
 0x350   :  { %v10754_v44 = vadd.f32 %v3255_v38, %v10551_v25  ;;  %2588 = vmatmul.mubr.bf16.gmra.mrb[240].mxu0 %v8885_v23  ;;  %v8889_v25 = vld [vmem:[%s14810_s4 + $0x3e4] ss:$8 sps:$4 sm:$0xff]  }
 0x351   :  { %8247 = vmatprep.mubr.msk.bf16.mxu0 %vm1714_vm1, %v8886_v56  ;;  %v10803_v56 = vld [vmem:[%s14831_s2 + $0x4] ss:$0 sm:$0xff] }
 0x352   :  { %2980 = vmatmul.mubr.bf16.gmra.mrb[56].mxu1 %v8978_v63 }
 0x353   :  { %v2381_v36 = vpop.f32.mrb[136].mxu0  ;;  %8296 = vmatprep.mubr.msk.bf16.mxu1 %vm1714_vm1, %v8982_v40 }
 0x354   :  { %v3256_v18 = vmul.f32 %v10600_v47, %v2381_v36  ;;  %v2383_v57 = vpop.f32.mrb[137].mxu0  ;;  %v8903_v36 = vld [vmem:[%s14810_s4 + $0x404] ss:$8 sps:$4 sm:$0xff]  }
 0x355   :  { %v2384_v61 = vpop.f32.mrb[138].mxu0 }
 0x356   :  { %v10771_v29 = vadd.f32 %v3256_v18, %v10569_v30  ;;  %v3257_v32 = vmul.f32 %v10600_v47, %v2384_v61  ;;  %v2386_v15 = vpop.f32.mrb[139].mxu0  ;;  %v8891_v30 = vld [vmem:[%s14810_s4 + $0x3e0] ss:$8 sps:$4 sm:$0xff]   ;;  %v8990_v18 = vld [vmem:[%s14810_s4 + $0x6f0] ss:$8 sps:$4 sm:$0xff]  }
 0x357   :  { %v8994_v15 = vld [vmem:[%s14810_s4 + $0x704] ss:$8 sps:$4 sm:$0xff]  }
 0x358   :  { %v10776_v62 = vadd.f32 %v3257_v32, %v10573_v8  ;;  %2596 = vmatmul.mubr.bf16.gmra.mrb[244].mxu0 %v8888_v53  ;;  %v8895_v8 = vld [vmem:[%s14810_s4 + $0x3f4] ss:$8 sps:$4 sm:$0xff]  }
 0x359   :  { %8248 = vmatprep.mubr.msk.bf16.mxu0 %vm1714_vm1, %v8889_v25 }
 0x35a   :  { %2988 = vmatmul.mubr.bf16.gmra.mrb[60].mxu1 %v8984_v1 }
 0x35b   :  { %v2389_v55 = vpop.f32.mrb[140].mxu0 }
 0x35c   :  { %v3258_v51 = vmul.f32 %v10600_v47, %v2389_v55  ;;  %v2391_v59 = vpop.f32.mrb[141].mxu0 }
 0x35d   :  { %v2392_v3 = vpop.f32.mrb[142].mxu0 }
 0x35e   :  { %v10793_v6 = vadd.f32 %v3258_v51, %v10591_v0  ;;  %v3259_v23 = vmul.f32 %v10600_v47, %v2392_v3  ;;  %v2394_v28 = vpop.f32.mrb[143].mxu0  ;;  %v8897_v47 = vld [vmem:[%s14810_s4 + $0x3f0] ss:$8 sps:$4 sm:$0xff]   ;;  %v8996_v51 = vld [vmem:[%s14810_s4 + $0x700] ss:$8 sps:$4 sm:$0xff]  }
 0x35f   :  { %v9000_v28 = vld [vmem:[%s14810_s4 + $0x714] ss:$8 sps:$4 sm:$0xff]  }
 0x360   :  { %v10798_v19 = vadd.f32 %v3259_v23, %v10595_v58  ;;  %2604 = vmatmul.mubr.bf16.gmra.mrb[248].mxu0 %v8891_v30  ;;  %v8988_v58 = vld [vmem:[%s14810_s4 + $0x6f4] ss:$8 sps:$4 sm:$0xff]  }
 0x361   :  { %8249 = vmatprep.mubr.msk.bf16.mxu0 %vm1714_vm1, %v8895_v8  ;;  %8297 = vmatprep.mubr.msk.bf16.mxu1 %vm1714_vm1, %v8988_v58 }
 0x362   :  { %2996 = vmatmul.mubr.bf16.gmra.mrb[64].mxu1 %v8990_v18 }
 0x363   :  { %v2397_v9 = vpop.f32.mrb[144].mxu0  ;;  %8298 = vmatprep.mubr.msk.bf16.mxu1 %vm1714_vm1, %v8994_v15 }
 0x364   :  { %v3284_v0 = vmul.f32 %v10803_v56, %v2397_v9  ;;  %v2399_v38 = vpop.f32.mrb[145].mxu0 }
 0x365   :  { %v2400_v11 = vpop.f32.mrb[146].mxu0 }
 0x366   :  { %v10820_v57 = vadd.f32 %v3284_v0, %v10618_v7  ;;  %v3285_v53 = vmul.f32 %v10803_v56, %v2400_v11  ;;  %v2402_v42 = vpop.f32.mrb[147].mxu0  ;;  %v8901_v7 = vld [vmem:[%s14810_s4 + $0x400] ss:$8 sps:$4 sm:$0xff]   ;;  %v9002_v0 = vld [vmem:[%s14810_s4 + $0x710] ss:$8 sps:$4 sm:$0xff]  }
 0x367   :  { %v9006_v42 = vld [vmem:[%s14810_s4 + $0x724] ss:$8 sps:$4 sm:$0xff]  }
 0x368   :  { %v10825_v61 = vadd.f32 %v3285_v53, %v10622_v13  ;;  %2612 = vmatmul.mubr.bf16.gmra.mrb[252].mxu0 %v8897_v47  ;;  %v8909_v13 = vld [vmem:[%s14810_s4 + $0x414] ss:$8 sps:$4 sm:$0xff]  }
 0x369   :  { %8250 = vmatprep.mubr.msk.bf16.mxu0 %vm1714_vm1, %v8903_v36 }
 0x36a   :  { %3004 = vmatmul.mubr.bf16.gmra.mrb[68].mxu1 %v8996_v51 }
 0x36b   :  { %v2405_v25 = vpop.f32.mrb[148].mxu0  ;;  %8299 = vmatprep.mubr.msk.bf16.mxu1 %vm1714_vm1, %v9000_v28 }
 0x36c   :  { %v3286_v63 = vmul.f32 %v10803_v56, %v2405_v25  ;;  %v2407_v32 = vpop.f32.mrb[149].mxu0 }
 0x36d   :  { %v2408_v55 = vpop.f32.mrb[150].mxu0 }
 0x36e   :  { %v10842_v59 = vadd.f32 %v3286_v63, %v10640_v31  ;;  %v3287_v30 = vmul.f32 %v10803_v56, %v2408_v55  ;;  %v2410_v40 = vpop.f32.mrb[151].mxu0  ;;  %v8907_v31 = vld [vmem:[%s14810_s4 + $0x410] ss:$8 sps:$4 sm:$0xff]   ;;  %v9008_v63 = vld [vmem:[%s14810_s4 + $0x720] ss:$8 sps:$4 sm:$0xff]  }
 0x36f   :  { %v9012_v40 = vld [vmem:[%s14810_s4 + $0x734] ss:$8 sps:$4 sm:$0xff]  }
 0x370   :  { %v10847_v3 = vadd.f32 %v3287_v30, %v10644_v20  ;;  %2620 = vmatmul.mubr.bf16.gmra.mrb[0].mxu0 %v8901_v7  ;;  %v8915_v20 = vld [vmem:[%s14810_s4 + $0x424] ss:$8 sps:$4 sm:$0xff]  }
 0x371   :  { %8251 = vmatprep.mubr.msk.bf16.mxu0 %vm1714_vm1, %v8909_v13 }
 0x372   :  { %3012 = vmatmul.mubr.bf16.gmra.mrb[72].mxu1 %v9002_v0 }
 0x373   :  { %v2413_v8 = vpop.f32.mrb[152].mxu0  ;;  %8300 = vmatprep.mubr.msk.bf16.mxu1 %vm1714_vm1, %v9006_v42 }
 0x374   :  { %v3288_v1 = vmul.f32 %v10803_v56, %v2413_v8  ;;  %v2415_v23 = vpop.f32.mrb[153].mxu0 }
 0x375   :  { %v2416_v9 = vpop.f32.mrb[154].mxu0 }
 0x376   :  { %v10864_v38 = vadd.f32 %v3288_v1, %v10662_v16  ;;  %v3289_v47 = vmul.f32 %v10803_v56, %v2416_v9  ;;  %v2418_v58 = vpop.f32.mrb[155].mxu0  ;;  %v8913_v16 = vld [vmem:[%s14810_s4 + $0x420] ss:$8 sps:$4 sm:$0xff]   ;;  %v9014_v1 = vld [vmem:[%s14810_s4 + $0x730] ss:$8 sps:$4 sm:$0xff]  }
 0x377   :  { %v9018_v58 = vld [vmem:[%s14810_s4 + $0x744] ss:$8 sps:$4 sm:$0xff]  }
 0x378   :  { %v10869_v11 = vadd.f32 %v3289_v47, %v10666_v60  ;;  %2628 = vmatmul.mubr.bf16.gmra.mrb[4].mxu0 %v8907_v31  ;;  %v8921_v60 = vld [vmem:[%s14810_s4 + $0x434] ss:$8 sps:$4 sm:$0xff]  }
 0x379   :  { %8252 = vmatprep.mubr.msk.bf16.mxu0 %vm1714_vm1, %v8915_v20 }
 0x37a   :  { %3020 = vmatmul.mubr.bf16.gmra.mrb[76].mxu1 %v9008_v63 }
 0x37b   :  { %v2421_v36 = vpop.f32.mrb[156].mxu0  ;;  %8301 = vmatprep.mubr.msk.bf16.mxu1 %vm1714_vm1, %v9012_v40 }
 0x37c   :  { %v3290_v18 = vmul.f32 %v10803_v56, %v2421_v36  ;;  %v2423_v53 = vpop.f32.mrb[157].mxu0 }
 0x37d   :  { %v2424_v25 = vpop.f32.mrb[158].mxu0 }
 0x37e   :  { %v10886_v32 = vadd.f32 %v3290_v18, %v10684_v35  ;;  %v3291_v7 = vmul.f32 %v10803_v56, %v2424_v25  ;;  %v2426_v15 = vpop.f32.mrb[159].mxu0  ;;  %v8919_v35 = vld [vmem:[%s14810_s4 + $0x430] ss:$8 sps:$4 sm:$0xff]   ;;  %v9020_v18 = vld [vmem:[%s14810_s4 + $0x740] ss:$8 sps:$4 sm:$0xff]  }
 0x380   :  { %v10891_v55 = vadd.f32 %v3291_v7, %v10688_v43  ;;  %2636 = vmatmul.mubr.bf16.gmra.mrb[8].mxu0 %v8913_v16  ;;  %v8927_v43 = vld [vmem:[%s14810_s4 + $0x444] ss:$8 sps:$4 sm:$0xff]  }
 0x381   :  { %8253 = vmatprep.mubr.msk.bf16.mxu0 %vm1714_vm1, %v8921_v60 }
 0x382   :  { %3028 = vmatmul.mubr.bf16.gmra.mrb[80].mxu1 %v9014_v1  ;;  %v8937_v1 = vld [vmem:[%s14810_s4 + $0x460] ss:$8 sps:$4 sm:$0xff]  }
 0x383   :  { %v2429_v13 = vpop.f32.mrb[160].mxu0  ;;  %8302 = vmatprep.mubr.msk.bf16.mxu1 %vm1714_vm1, %v9018_v58 }
 0x384   :  { %v3292_v51 = vmul.f32 %v10803_v56, %v2429_v13  ;;  %v2431_v30 = vpop.f32.mrb[161].mxu0  ;;  %v8939_v13 = vld [vmem:[%s14810_s4 + $0x464] ss:$8 sps:$4 sm:$0xff]  }
 0x385   :  { %v2432_v8 = vpop.f32.mrb[162].mxu0 }
 0x386   :  { %v10908_v23 = vadd.f32 %v3292_v51, %v10705_v37  ;;  %v3293_v31 = vmul.f32 %v10803_v56, %v2432_v8  ;;  %v2434_v28 = vpop.f32.mrb[163].mxu0  ;;  %v8925_v37 = vld [vmem:[%s14810_s4 + $0x440] ss:$8 sps:$4 sm:$0xff]  }
 0x388   :  { %v10913_v9 = vadd.f32 %v3293_v31, %v10710_v50  ;;  %2644 = vmatmul.mubr.bf16.gmra.mrb[12].mxu0 %v8919_v35  ;;  %v8933_v50 = vld [vmem:[%s14810_s4 + $0x454] ss:$8 sps:$4 sm:$0xff]  }
 0x389   :  { %8254 = vmatprep.mubr.msk.bf16.mxu0 %vm1714_vm1, %v8927_v43 }
 0x38a   :  { %3036 = vmatmul.mubr.bf16.gmra.mrb[84].mxu1 %v9020_v18  ;;  %v8951_v18 = vld [vmem:[%s14810_s4 + $0x484] ss:$8 sps:$4 sm:$0xff]  }
 0x38b   :  { %v2437_v20 = vpop.f32.mrb[164].mxu0 }
 0x38c   :  { %v3294_v0 = vmul.f32 %v10803_v56, %v2437_v20  ;;  %v2439_v47 = vpop.f32.mrb[165].mxu0 }
 0x38d   :  { %v2440_v36 = vpop.f32.mrb[166].mxu0  ;;  %v3104_v47 = vld [vmem:[%s14832_s0] sm:$0xff] }
 0x38e   :  { %v10930_v53 = vadd.f32 %v3294_v0, %v10727_v22  ;;  %v3295_v16 = vmul.f32 %v10803_v56, %v2440_v36  ;;  %v2442_v42 = vpop.f32.mrb[167].mxu0  ;;  %v8931_v22 = vld [vmem:[%s14810_s4 + $0x450] ss:$8 sps:$4 sm:$0xff]   ;;  %3964 = vperm.xlu0 %8701, %v3104_v47  }
 0x38f   :  { %v8955_v47 = vld [vmem:[%s14810_s4 + $0x490] ss:$8 sps:$4 sm:$0xff]  }
 0x390   :  { %v10935_v25 = vadd.f32 %v3295_v16, %v10732_v41  ;;  %2652 = vmatmul.mubr.bf16.gmra.mrb[16].mxu0 %v8925_v37  ;;  %v3105_v37 = vld [vmem:[%s14832_s0 + $0x8] sm:$0xff] }
 0x391   :  { %8255 = vmatprep.mubr.msk.bf16.mxu0 %vm1714_vm1, %v8933_v50  ;;  %3969 = vperm.xlu1 %8702, %v3105_v37  }
 0x393   :  { %v2445_v60 = vpop.f32.mrb[168].mxu0 }
 0x394   :  { %v3296_v63 = vmul.f32 %v10803_v56, %v2445_v60  ;;  %v2447_v7 = vpop.f32.mrb[169].mxu0 }
 0x395   :  { %v2448_v15 = vpop.f32.mrb[170].mxu0 }
 0x396   :  { %v10946_v51 = vadd.f32 %v3296_v63, %v10749_v49  ;;  %v3297_v41 = vmul.f32 %v10803_v56, %v2448_v15  ;;  %v2450_v30 = vpop.f32.mrb[171].mxu0  ;;  %v8945_v49 = vld [vmem:[%s14810_s4 + $0x474] ss:$8 sps:$4 sm:$0xff]  }
 0x397   :  { %v3106_v63 = vld [vmem:[%s14832_s0 + $0x10] sm:$0xff] }
 0x398   :  { %v10950_v35 = vadd.f32 %v3297_v41, %v10754_v44  ;;  %2660 = vmatmul.mubr.bf16.gmra.mrb[20].mxu0 %v8931_v22  ;;  %3974 = vperm.xlu1 %8702, %v3106_v63   ;;  %v3107_v22 = vld [vmem:[%s14832_s0 + $0x18] sm:$0xff]  ;;  %v8961_v63 = vld [vmem:[%s14810_s4 + $0x4a0] ss:$8 sps:$4 sm:$0xff]  }
 0x399   :  { %8256 = vmatprep.mubr.msk.bf16.mxu0 %vm1714_vm1, %v8939_v13  ;;  %v8957_v30 = vld [vmem:[%s14810_s4 + $0x494] ss:$8 sps:$4 sm:$0xff]  }
 0x39b   :  { %v2453_v40 = vpop.f32.mrb[172].mxu0 }
 0x39c   :  { %v3298_v8 = vmul.f32 %v10803_v56, %v2453_v40  ;;  %v2455_v43 = vpop.f32.mrb[173].mxu0  ;;  %3979 = vperm.xlu1 %8702, %v3107_v22  }
 0x39d   :  { %v2456_v31 = vpop.f32.mrb[174].mxu0 }
 0x39e   :  { %v10961_v28 = vadd.f32 %v3298_v8, %v10771_v29  ;;  %v3299_v44 = vmul.f32 %v10803_v56, %v2456_v31  ;;  %v2458_v20 = vpop.f32.mrb[175].mxu0 }
 0x3a0   :  { %v10965_v0 = vadd.f32 %v3299_v44, %v10776_v62  ;;  %2668 = vmatmul.mubr.bf16.gmra.mrb[24].mxu0 %v8937_v1  ;;  %v8943_v62 = vld [vmem:[%s14810_s4 + $0x470] ss:$8 sps:$4 sm:$0xff]   ;;  %v3108_v1 = vld [vmem:[%s14832_s0 + $0x20] sm:$0xff] }
 0x3a1   :  { %8257 = vmatprep.mubr.msk.bf16.mxu0 %vm1714_vm1, %v8945_v49  ;;  %3984 = vperm.xlu1 %8702, %v3108_v1   ;;  %v3109_v49 = vld [vmem:[%s14832_s0 + $0x28] sm:$0xff] }
 0x3a3   :  { %v2461_v29 = vpop.f32.mrb[176].mxu0 }
 0x3a4   :  { %v3300_v58 = vmul.f32 %v10803_v56, %v2461_v29  ;;  %v2463_v36 = vpop.f32.mrb[177].mxu0 }
 0x3a5   :  { %v2464_v50 = vpop.f32.mrb[178].mxu0  ;;  %3989 = vperm.xlu1 %8702, %v3109_v49   ;;  %v8975_v49 = vld [vmem:[%s14810_s4 + $0x4c4] ss:$8 sps:$4 sm:$0xff]  }
 0x3a6   :  { %v10982_v16 = vadd.f32 %v3300_v58, %v10793_v6  ;;  %v3301_v42 = vmul.f32 %v10803_v56, %v2464_v50  ;;  %v2466_v60 = vpop.f32.mrb[179].mxu0  ;;  %v10997_v6 = vld [vmem:[%s14831_s2 + $0x5] ss:$0 sm:$0xff] }
 0x3a8   :  { %v10989_v7 = vadd.f32 %v3301_v42, %v10798_v19  ;;  %2676 = vmatmul.mubr.bf16.gmra.mrb[28].mxu0 %v8943_v62  ;;  %v8949_v19 = vld [vmem:[%s14810_s4 + $0x480] ss:$8 sps:$4 sm:$0xff]   ;;  %v3110_v62 = vld [vmem:[%s14832_s0 + $0x30] sm:$0xff] }
 0x3a9   :  { %8258 = vmatprep.mubr.msk.bf16.mxu0 %vm1714_vm1, %v8951_v18  ;;  %3994 = vperm.xlu1 %8702, %v3110_v62   ;;  %v3111_v18 = vld [vmem:[%s14832_s0 + $0x38] sm:$0xff] }
 0x3aa   :  { %v8981_v62 = vld [vmem:[%s14810_s4 + $0x4d4] ss:$8 sps:$4 sm:$0xff]  }
 0x3ab   :  { %v2469_v56 = vpop.f32.mrb[180].mxu0 }
 0x3ac   :  { %v3326_v15 = vmul.f32 %v10997_v6, %v2469_v56  ;;  %v2471_v13 = vpop.f32.mrb[181].mxu0 }
 0x3ad   :  { %v2472_v41 = vpop.f32.mrb[182].mxu0  ;;  %3999 = vperm.xlu1 %8702, %v3111_v18  }
 0x3ae   :  { %v11008_v40 = vadd.f32 %v3326_v15, %v10820_v57  ;;  %v3327_v8 = vmul.f32 %v10997_v6, %v2472_v41  ;;  %v2474_v43 = vpop.f32.mrb[183].mxu0  ;;  %v3112_v41 = vld [vmem:[%s14832_s0 + $0x40] sm:$0xff] }
 0x3b0   :  { %v11015_v31 = vadd.f32 %v3327_v8, %v10825_v61  ;;  %2684 = vmatmul.mubr.bf16.gmra.mrb[32].mxu0 %v8949_v19  ;;  %v8963_v61 = vld [vmem:[%s14810_s4 + $0x4a4] ss:$8 sps:$4 sm:$0xff]  }
 0x3b1   :  { %8259 = vmatprep.mubr.msk.bf16.mxu0 %vm1714_vm1, %v8957_v30  ;;  %v3113_v30 = vld [vmem:[%s14832_s0 + $0x48] sm:$0xff]  ;;  %4004 = vperm.xlu1 %8702, %v3112_v41  }
 0x3b2   :  { %4009 = vperm.xlu0 %8701, %v3113_v30  }
 0x3b3   :  { %v2477_v57 = vpop.f32.mrb[184].mxu0 }
 0x3b4   :  { %v3328_v44 = vmul.f32 %v10997_v6, %v2477_v57  ;;  %v2479_v20 = vpop.f32.mrb[185].mxu0 }
 0x3b5   :  { %v2480_v37 = vpop.f32.mrb[186].mxu0 }
 0x3b6   :  { %v11029_v29 = vadd.f32 %v3328_v44, %v10842_v59  ;;  %v3329_v58 = vmul.f32 %v10997_v6, %v2480_v37  ;;  %v2482_v36 = vpop.f32.mrb[187].mxu0  ;;  %v3114_v37 = vld [vmem:[%s14832_s0 + $0x50] sm:$0xff] }
 0x3b7   :  { %4014 = vperm.xlu1 %8702, %v3114_v37  }
 0x3b8   :  { %v11036_v50 = vadd.f32 %v3329_v58, %v10847_v3  ;;  %2692 = vmatmul.mubr.bf16.gmra.mrb[36].mxu0 %v8955_v47  ;;  %v8969_v3 = vld [vmem:[%s14810_s4 + $0x4b4] ss:$8 sps:$4 sm:$0xff]   ;;  %v14722_v58 = vmov 0.0  }
 0x3b9   :  { %8260 = vmatprep.mubr.msk.bf16.mxu0 %vm1714_vm1, %v8963_v61  ;;  %v3115_v61 = vld [vmem:[%s14832_s0 + $0x58] sm:$0xff]  ;;  %8484 = vmatprep.subr.bf16.mxu1 %v14722_v58 }
 0x3ba   :  { %4019 = vperm.xlu0 %8701, %v3115_v61  }
 0x3bb   :  { %v2485_v59 = vpop.f32.mrb[188].mxu0 }
 0x3bc   :  { %v3330_v42 = vmul.f32 %v10997_v6, %v2485_v59  ;;  %v2487_v60 = vpop.f32.mrb[189].mxu0 }
 0x3bd   :  { %v2488_v22 = vpop.f32.mrb[190].mxu0 }
 0x3be   :  { %v11050_v56 = vadd.f32 %v3330_v42, %v10864_v38  ;;  %v3331_v15 = vmul.f32 %v10997_v6, %v2488_v22  ;;  %v2490_v13 = vpop.f32.mrb[191].mxu0 }
 0x3bf   :  { %v3117_v13 = vld [vmem:[%s14832_s0 + $0x68] sm:$0xff] }
 0x3c0   :  { %v11054_v19 = vadd.f32 %v3331_v15, %v10869_v11  ;;  %2700 = vmatmul.mubr.bf16.gmra.mrb[40].mxu0 %v8961_v63  ;;  %v8967_v11 = vld [vmem:[%s14810_s4 + $0x4b0] ss:$8 sps:$4 sm:$0xff]   ;;  %v3116_v15 = vld [vmem:[%s14832_s0 + $0x60] sm:$0xff]  ;;  %4029 = vperm.xlu0 %8701, %v3117_v13  }
 0x3c1   :  { %8261 = vmatprep.mubr.msk.bf16.mxu0 %vm1714_vm1, %v8969_v3  ;;  %4024 = vperm.xlu1 %8702, %v3116_v15  }
 0x3c3   :  { %v2493_v38 = vpop.f32.mrb[192].mxu0 }
 0x3c4   :  { %v3332_v8 = vmul.f32 %v10997_v6, %v2493_v38  ;;  %v2495_v43 = vpop.f32.mrb[193].mxu0 }
 0x3c5   :  { %v2496_v1 = vpop.f32.mrb[194].mxu0 }
 0x3c6   :  { %v11071_v57 = vadd.f32 %v3332_v8, %v10886_v32  ;;  %v3333_v44 = vmul.f32 %v10997_v6, %v2496_v1  ;;  %v2498_v20 = vpop.f32.mrb[195].mxu0  ;;  %v9045_v32 = vld [vmem:[%s14833_s8] sm:$0xff]  }
 0x3c7   :  { %8485 = vmatpush3.bf16.msra.mxu1 %v9045_v32  ;;  %v8987_v8 = vld [vmem:[%s14810_s4 + $0x4e4] ss:$8 sps:$4 sm:$0xff]   ;;  %v3119_v20 = vld [vmem:[%s14832_s0 + $0x78] sm:$0xff] }
 0x3c8   :  { %v11075_v47 = vadd.f32 %v3333_v44, %v10891_v55  ;;  %2708 = vmatmul.mubr.bf16.gmra.mrb[44].mxu0 %v8967_v11  ;;  %v8973_v55 = vld [vmem:[%s14810_s4 + $0x4c0] ss:$8 sps:$4 sm:$0xff]   ;;  %8486 = vmatprep.subr.bf16.mxu1 %v14722_v58  ;;  %v3118_v44 = vld [vmem:[%s14832_s0 + $0x70] sm:$0xff] }
 0x3c9   :  { %8262 = vmatprep.mubr.msk.bf16.mxu0 %vm1714_vm1, %v8975_v49  ;;  %4034 = vperm.xlu1 %8702, %v3118_v44  }
 0x3ca   :  { %4039 = vperm.xlu0 %8701, %v3119_v20   ;;  %v8997_v20 = vld [vmem:[%s14810_s4 + $0x500] ss:$8 sps:$4 sm:$0xff]  }
 0x3cb   :  { %v2501_v36 = vpop.f32.mrb[196].mxu0 }
 0x3cc   :  { %v3334_v18 = vmul.f32 %v10997_v6, %v2501_v36  ;;  %v2503_v59 = vpop.f32.mrb[197].mxu0 }
 0x3cd   :  { %v2504_v42 = vpop.f32.mrb[198].mxu0 }
 0x3ce   :  { %v11097_v60 = vadd.f32 %v3334_v18, %v10908_v23  ;;  %v3335_v63 = vmul.f32 %v10997_v6, %v2504_v42  ;;  %v2506_v22 = vpop.f32.mrb[199].mxu0  ;;  %v3120_v42 = vld [vmem:[%s14832_s0 + $0x80] sm:$0xff] }
 0x3cf   :  { %4044 = vperm.xlu1 %8702, %v3120_v42  }
 0x3d0   :  { %v11101_v3 = vadd.f32 %v3335_v63, %v10913_v9  ;;  %2716 = vmatmul.mubr.bf16.gmra.mrb[48].mxu0 %v8973_v55  ;;  %v8979_v9 = vld [vmem:[%s14810_s4 + $0x4d0] ss:$8 sps:$4 sm:$0xff]   ;;  %v8993_v55 = vld [vmem:[%s14810_s4 + $0x4f4] ss:$8 sps:$4 sm:$0xff]   ;;  %v3121_v63 = vld [vmem:[%s14832_s0 + $0x88] sm:$0xff] }
 0x3d1   :  { %8263 = vmatprep.mubr.msk.bf16.mxu0 %vm1714_vm1, %v8981_v62  ;;  %4049 = vperm.xlu0 %8701, %v3121_v63  }
 0x3d3   :  { %v2509_v23 = vpop.f32.mrb[200].mxu0 }
 0x3d4   :  { %v3336_v41 = vmul.f32 %v10997_v6, %v2509_v23  ;;  %v2511_v30 = vpop.f32.mrb[201].mxu0  ;;  %v8999_v23 = vld [vmem:[%s14810_s4 + $0x504] ss:$8 sps:$4 sm:$0xff]  }
 0x3d5   :  { %v2512_v38 = vpop.f32.mrb[202].mxu0 }
 0x3d6   :  { %v11118_v43 = vadd.f32 %v3336_v41, %v10930_v53  ;;  %v3337_v11 = vmul.f32 %v10997_v6, %v2512_v38  ;;  %v2514_v1 = vpop.f32.mrb[203].mxu0  ;;  %v9055_v38 = vld [vmem:[%s14810_s4 + $0x754] ss:$8 sps:$4 sm:$0xff]  }
 0x3d7   :  { %8303 = vmatprep.mubr.msk.bf16.mxu1 %vm1714_vm1, %v9055_v38 }
 0x3d8   :  { %v11122_v49 = vadd.f32 %v3337_v11, %v10935_v25  ;;  %2724 = vmatmul.mubr.bf16.gmra.mrb[52].mxu0 %v8979_v9  ;;  %v8985_v25 = vld [vmem:[%s14810_s4 + $0x4e0] ss:$8 sps:$4 sm:$0xff]  }
 0x3d9   :  { %8264 = vmatprep.mubr.msk.bf16.mxu0 %vm1714_vm1, %v8987_v8  ;;  %v9057_v8 = vld [vmem:[%s14810_s4 + $0x750] ss:$8 sps:$4 sm:$0xff]  }
 0x3da   :  { %3044 = vmatmul.mubr.bf16.gmra.mrb[88].mxu1 %v9057_v8 }
 0x3db   :  { %v2517_v53 = vpop.f32.mrb[204].mxu0 }
 0x3dc   :  { %v3338_v37 = vmul.f32 %v10997_v6, %v2517_v53  ;;  %v2519_v61 = vpop.f32.mrb[205].mxu0 }
 0x3dd   :  { %v2520_v32 = vpop.f32.mrb[206].mxu0 }
 0x3de   :  { %v11139_v36 = vadd.f32 %v3338_v37, %v10946_v51  ;;  %v3339_v62 = vmul.f32 %v10997_v6, %v2520_v32  ;;  %v2522_v18 = vpop.f32.mrb[207].mxu0  ;;  %v11185_v32 = vpop.f32.mrb[0].mxu1 }
 0x3e0   :  { %v11143_v59 = vadd.f32 %v3339_v62, %v10950_v35  ;;  %2732 = vmatmul.mubr.bf16.gmra.mrb[56].mxu0 %v8985_v25  ;;  %v8991_v35 = vld [vmem:[%s14810_s4 + $0x4f0] ss:$8 sps:$4 sm:$0xff]   ;;  %v2871_v62 = vpop.f32.mrb[1].mxu1 }
 0x3e1   :  { %8265 = vmatprep.mubr.msk.bf16.mxu0 %vm1714_vm1, %v8993_v55  ;;  %v9058_v55 = vld [vmem:[%s14810_s4 + $0x764] ss:$8 sps:$4 sm:$0xff]   ;;  %v11193_v42 = vpop.f32.mrb[2].mxu1 }
 0x3e2   :  { %8304 = vmatprep.mubr.msk.bf16.mxu1 %vm1714_vm1, %v9058_v55  ;;  %v2874_v63 = vpop.f32.mrb[3].mxu1 }
 0x3e3   :  { %v2525_v51 = vpop.f32.mrb[208].mxu0 }
 0x3e4   :  { %v3340_v22 = vmul.f32 %v10997_v6, %v2525_v51  ;;  %v2527_v15 = vpop.f32.mrb[209].mxu0 }
 0x3e5   :  { %v2528_v13 = vpop.f32.mrb[210].mxu0 }
 0x3e6   :  { %v11160_v41 = vadd.f32 %v3340_v22, %v10961_v28  ;;  %v3341_v30 = vmul.f32 %v10997_v6, %v2528_v13  ;;  %v2530_v9 = vpop.f32.mrb[211].mxu0  ;;  %v9003_v13 = vld [vmem:[%s14810_s4 + $0x510] ss:$8 sps:$4 sm:$0xff]  }
 0x3e7   :  { %v9011_v9 = vld [vmem:[%s14810_s4 + $0x524] ss:$8 sps:$4 sm:$0xff]  }
 0x3e8   :  { %v11170_v11 = vadd.f32 %v3341_v30, %v10965_v0  ;;  %2740 = vmatmul.mubr.bf16.gmra.mrb[60].mxu0 %v8991_v35  ;;  %v9005_v0 = vld [vmem:[%s14810_s4 + $0x514] ss:$8 sps:$4 sm:$0xff]  }
 0x3e9   :  { %8266 = vmatprep.mubr.msk.bf16.mxu0 %vm1714_vm1, %v8999_v23 }
 0x3eb   :  { %v2533_v28 = vpop.f32.mrb[212].mxu0 }
 0x3ec   :  { %v3342_v1 = vmul.f32 %v10997_v6, %v2533_v28  ;;  %v2535_v44 = vpop.f32.mrb[213].mxu0 }
 0x3ed   :  { %v2536_v53 = vpop.f32.mrb[214].mxu0 }
 0x3ee   :  { %v11182_v37 = vadd.f32 %v3342_v1, %v10982_v16  ;;  %v3343_v61 = vmul.f32 %v10997_v6, %v2536_v53  ;;  %v2538_v25 = vpop.f32.mrb[215].mxu0  ;;  %v9060_v16 = vld [vmem:[%s14810_s4 + $0x760] ss:$8 sps:$4 sm:$0xff]   ;;  %v11202_v6 = vld [vmem:[%s14831_s2 + $0x6] ss:$0 sm:$0xff] }
 0x3ef   :  { %3052 = vmatmul.mubr.bf16.gmra.mrb[92].mxu1 %v9060_v16 }
 0x3f0   :  { %v11191_v18 = vadd.f32 %v3343_v61, %v10989_v7  ;;  %2748 = vmatmul.mubr.bf16.gmra.mrb[64].mxu0 %v8997_v20  ;;  %v11205_v7 = vpop.f32.mrb[4].mxu1  ;;  %v9061_v20 = vld [vmem:[%s14810_s4 + $0x774] ss:$8 sps:$4 sm:$0xff]  }
 0x3f1   :  { %8267 = vmatprep.mubr.msk.bf16.mxu0 %vm1714_vm1, %v9005_v0  ;;  %14834 = vst [vmem:[#allocation20_spill] sm:$0xff] %v11205_v7  ;;  %v2879_v22 = vpop.f32.mrb[5].mxu1  ;;  %v9063_v0 = vld [vmem:[%s14810_s4 + $0x770] ss:$8 sps:$4 sm:$0xff]   ;;  %8305 = vmatprep.mubr.msk.bf16.mxu1 %vm1714_vm1, %v9061_v20 }
 0x3f2   :  { %v11211_v23 = vpop.f32.mrb[6].mxu1 }
 0x3f3   :  { %v2541_v51 = vpop.f32.mrb[216].mxu0  ;;  %14835 = vst [vmem:[#allocation21_spill] sm:$0xff] %v11211_v23  ;;  %v2882_v38 = vpop.f32.mrb[7].mxu1 }
 0x3f4   :  { %v3368_v15 = vmul.f32 %v11202_v6, %v2541_v51  ;;  %v2543_v35 = vpop.f32.mrb[217].mxu0  ;;  %v11220_v44 = vpop.f32.mrb[8].mxu1 }
 0x3f5   :  { %v2544_v30 = vpop.f32.mrb[218].mxu0  ;;  %14836 = vst [vmem:[#allocation22_spill] sm:$0xff] %v11220_v44  ;;  %v2887_v53 = vpop.f32.mrb[9].mxu1  ;;  %v9017_v35 = vld [vmem:[%s14810_s4 + $0x534] ss:$8 sps:$4 sm:$0xff]  }
 0x3f6   :  { %v11217_v8 = vadd.f32 %v3368_v15, %v11008_v40  ;;  %v3369_v28 = vmul.f32 %v11202_v6, %v2544_v30  ;;  %v2546_v1 = vpop.f32.mrb[219].mxu0  ;;  %v11231_v40 = vpop.f32.mrb[10].mxu1 }
 0x3f7   :  { %14837 = vst [vmem:[#allocation23_spill] sm:$0xff] %v11231_v40  ;;  %v2890_v25 = vpop.f32.mrb[11].mxu1  ;;  %3060 = vmatmul.mubr.bf16.gmra.mrb[96].mxu1 %v9063_v0 }
 0x3f8   :  { %v11229_v61 = vadd.f32 %v3369_v28, %v11015_v31  ;;  %2756 = vmatmul.mubr.bf16.gmra.mrb[68].mxu0 %v9003_v13  ;;  %v11235_v55 = vpop.f32.mrb[12].mxu1  ;;  %v9009_v31 = vld [vmem:[%s14810_s4 + $0x520] ss:$8 sps:$4 sm:$0xff]  }
 0x3f9   :  { %8268 = vmatprep.mubr.msk.bf16.mxu0 %vm1714_vm1, %v9011_v9  ;;  %14838 = vst [vmem:[#allocation24_spill] sm:$0xff] %v11235_v55  ;;  %v2895_v16 = vpop.f32.mrb[13].mxu1  ;;  %v3123_v25 = vld [vmem:[%s14842_s27 + $0x8] sm:$0xff] }
 0x3fa   :  { %v11241_v22 = vpop.f32.mrb[14].mxu1  ;;  %4161 = vperm.xlu0 %8701, %v3123_v25   ;;  %v3124_v25 = vld [vmem:[%s14842_s27 + $0x10] sm:$0xff] }
 0x3fb   :  { %v2549_v62 = vpop.f32.mrb[220].mxu0  ;;  %14839 = vst [vmem:[#allocation25_spill] sm:$0xff] %v11241_v22  ;;  %v2898_v13 = vpop.f32.mrb[15].mxu1 }
 0x3fc   :  { %v3370_v63 = vmul.f32 %v11202_v6, %v2549_v62  ;;  %v2551_v51 = vpop.f32.mrb[221].mxu0  ;;  %v11250_v28 = vpop.f32.mrb[16].mxu1  ;;  %v9023_v13 = vld [vmem:[%s14810_s4 + $0x544] ss:$8 sps:$4 sm:$0xff]  }
 0x3fd   :  { %v2552_v15 = vpop.f32.mrb[222].mxu0  ;;  %14840 = vst [vmem:[#allocation26_spill] sm:$0xff] %v11250_v28  ;;  %v2903_v1 = vpop.f32.mrb[17].mxu1 }
 0x3fe   :  { %v11247_v30 = vadd.f32 %v3370_v63, %v11029_v29  ;;  %v3371_v9 = vmul.f32 %v11202_v6, %v2552_v15  ;;  %v2554_v38 = vpop.f32.mrb[223].mxu0  ;;  %v11255_v53 = vpop.f32.mrb[18].mxu1  ;;  %v3122_v29 = vld [vmem:[%s14842_s27] sm:$0xff] }
 0x3ff   :  { %14841 = vst [vmem:[#allocation27_spill] sm:$0xff] %v11255_v53  ;;  %v2906_v0 = vpop.f32.mrb[19].mxu1  ;;  %4156 = vperm.xlu1 %8702, %v3122_v29  }
 0x400   :  { %v11253_v20 = vadd.f32 %v3371_v9, %v11036_v50  ;;  %2764 = vmatmul.mubr.bf16.gmra.mrb[72].mxu0 %v9009_v31  ;;  %v11264_v62 = vpop.f32.mrb[20].mxu1  ;;  %v9015_v31 = vld [vmem:[%s14810_s4 + $0x530] ss:$8 sps:$4 sm:$0xff]  }
 0x401   :  { %8269 = vmatprep.mubr.msk.bf16.mxu0 %vm1714_vm1, %v9017_v35  ;;  %14843 = vst [vmem:[#allocation28_spill] sm:$0xff] %v11264_v62  ;;  %v2911_v16 = vpop.f32.mrb[21].mxu1 }
 0x402   :  { %v11270_v15 = vpop.f32.mrb[22].mxu1 }
 0x403   :  { %v2557_v50 = vpop.f32.mrb[224].mxu0  ;;  %14844 = vst [vmem:[#allocation29_spill] sm:$0xff] %v11270_v15  ;;  %v2914_v9 = vpop.f32.mrb[23].mxu1  ;;  %4166 = vperm.xlu1 %8702, %v3124_v25  }
 0x404   :  { %v3372_v63 = vmul.f32 %v11202_v6, %v2557_v50  ;;  %v2559_v51 = vpop.f32.mrb[225].mxu0  ;;  %v11279_v29 = vpop.f32.mrb[24].mxu1  ;;  %v3125_v50 = vld [vmem:[%s14842_s27 + $0x18] sm:$0xff]  ;;  %v3126_v9 = vld [vmem:[%s14842_s27 + $0x20] sm:$0xff] }
 0x405   :  { %v2560_v35 = vpop.f32.mrb[226].mxu0  ;;  %14845 = vst [vmem:[#allocation30_spill] sm:$0xff] %v11279_v29  ;;  %4171 = vperm.xlu0 %8701, %v3125_v50   ;;  %v2919_v16 = vpop.f32.mrb[25].mxu1 }
 0x406   :  { %v11276_v38 = vadd.f32 %v3372_v63, %v11050_v56  ;;  %v3373_v1 = vmul.f32 %v11202_v6, %v2560_v35  ;;  %v2562_v0 = vpop.f32.mrb[227].mxu0  ;;  %v11290_v56 = vpop.f32.mrb[26].mxu1 }
 0x407   :  { %14846 = vst [vmem:[#allocation31_spill] sm:$0xff] %v11290_v56  ;;  %v2922_v63 = vpop.f32.mrb[27].mxu1  ;;  %v3127_v0 = vld [vmem:[%s14842_s27 + $0x28] sm:$0xff]  ;;  %4176 = vperm.xlu1 %8702, %v3126_v9  }
 0x408   :  { %v11288_v51 = vadd.f32 %v3373_v1, %v11054_v19  ;;  %2772 = vmatmul.mubr.bf16.gmra.mrb[76].mxu0 %v9015_v31  ;;  %v11293_v35 = vpop.f32.mrb[28].mxu1  ;;  %v9026_v63 = vld [vmem:[%s14810_s4 + $0x554] ss:$8 sps:$4 sm:$0xff]  }
 0x409   :  { %8270 = vmatprep.mubr.msk.bf16.mxu0 %vm1714_vm1, %v9023_v13  ;;  %14847 = vst [vmem:[#allocation32_spill] sm:$0xff] %v11293_v35  ;;  %4181 = vperm.xlu0 %8701, %v3127_v0   ;;  %v2927_v19 = vpop.f32.mrb[29].mxu1  ;;  %v9021_v13 = vld [vmem:[%s14810_s4 + $0x540] ss:$8 sps:$4 sm:$0xff]  }
 0x40a   :  { %v11305_v50 = vpop.f32.mrb[30].mxu1 }
 0x40b   :  { %v2565_v25 = vpop.f32.mrb[228].mxu0  ;;  %14848 = vst [vmem:[#allocation33_spill] sm:$0xff] %v11305_v50  ;;  %v2930_v33 = vpop.f32.mrb[31].mxu1 }
 0x40c   :  { %v3374_v31 = vmul.f32 %v11202_v6, %v2565_v25  ;;  %v2567_v1 = vpop.f32.mrb[229].mxu0  ;;  %v11314_v25 = vpop.f32.mrb[32].mxu1 }
 0x40d   :  { %v2568_v16 = vpop.f32.mrb[230].mxu0  ;;  %14849 = vst [vmem:[#allocation34_spill] sm:$0xff] %v11314_v25  ;;  %v2935_v19 = vpop.f32.mrb[33].mxu1 }
 0x40e   :  { %v11311_v58 = vadd.f32 %v3374_v31, %v11071_v57  ;;  %v3375_v9 = vmul.f32 %v11202_v6, %v2568_v16  ;;  %v2570_v0 = vpop.f32.mrb[231].mxu0  ;;  %v11319_v54 = vpop.f32.mrb[34].mxu1 }
 0x40f   :  { %14850 = vst [vmem:[#allocation35_spill] sm:$0xff] %v11319_v54  ;;  %v2938_v24 = vpop.f32.mrb[35].mxu1  ;;  %v9024_v0 = vld [vmem:[%s14810_s4 + $0x550] ss:$8 sps:$4 sm:$0xff]  }
 0x410   :  { %v11317_v1 = vadd.f32 %v3375_v9, %v11075_v47  ;;  %2780 = vmatmul.mubr.bf16.gmra.mrb[80].mxu0 %v9021_v13  ;;  %v11322_v46 = vpop.f32.mrb[36].mxu1  ;;  %v9029_v13 = vld [vmem:[%s14810_s4 + $0x564] ss:$8 sps:$4 sm:$0xff]  }
 0x411   :  { %8271 = vmatprep.mubr.msk.bf16.mxu0 %vm1714_vm1, %v9026_v63  ;;  %14851 = vst [vmem:[#allocation36_spill] sm:$0xff] %v11322_v46  ;;  %v2943_v57 = vpop.f32.mrb[37].mxu1 }
 0x412   :  { %v11328_v19 = vpop.f32.mrb[38].mxu1 }
 0x413   :  { %v2573_v33 = vpop.f32.mrb[232].mxu0  ;;  %14852 = vst [vmem:[#allocation37_spill] sm:$0xff] %v11328_v19  ;;  %v2946_v63 = vpop.f32.mrb[39].mxu1 }
 0x414   :  { %v3376_v31 = vmul.f32 %v11202_v6, %v2573_v33  ;;  %v2575_v16 = vpop.f32.mrb[233].mxu0  ;;  %v11337_v33 = vpop.f32.mrb[40].mxu1 }
 0x415   :  { %v2576_v47 = vpop.f32.mrb[234].mxu0  ;;  %14853 = vst [vmem:[#allocation38_spill] sm:$0xff] %v11337_v33  ;;  %v2951_v16 = vpop.f32.mrb[41].mxu1 }
 0x416   :  { %v11334_v24 = vadd.f32 %v3376_v31, %v11097_v60  ;;  %v3377_v9 = vmul.f32 %v11202_v6, %v2576_v47  ;;  %v2578_v57 = vpop.f32.mrb[235].mxu0  ;;  %v11342_v39 = vpop.f32.mrb[42].mxu1 }
 0x417   :  { %14854 = vst [vmem:[#allocation39_spill] sm:$0xff] %v11342_v39  ;;  %v2954_v21 = vpop.f32.mrb[43].mxu1  ;;  %v9027_v57 = vld [vmem:[%s14810_s4 + $0x560] ss:$8 sps:$4 sm:$0xff]  }
 0x418   :  { %v11340_v45 = vadd.f32 %v3377_v9, %v11101_v3  ;;  %2788 = vmatmul.mubr.bf16.gmra.mrb[84].mxu0 %v9024_v0  ;;  %v11345_v17 = vpop.f32.mrb[44].mxu1  ;;  %v9032_v0 = vld [vmem:[%s14810_s4 + $0x574] ss:$8 sps:$4 sm:$0xff]  }
 0x419   :  { %8272 = vmatprep.mubr.msk.bf16.mxu0 %vm1714_vm1, %v9029_v13  ;;  %14855 = vst [vmem:[#allocation40_spill] sm:$0xff] %v11345_v17  ;;  %v2959_v60 = vpop.f32.mrb[45].mxu1 }
 0x41a   :  { %v11351_v16 = vpop.f32.mrb[46].mxu1 }
 0x41b   :  { %v2581_v63 = vpop.f32.mrb[236].mxu0  ;;  %14856 = vst [vmem:[#allocation41_spill] sm:$0xff] %v11351_v16  ;;  %v2962_v13 = vpop.f32.mrb[47].mxu1 }
 0x41c   :  { %v3378_v31 = vmul.f32 %v11202_v6, %v2581_v63  ;;  %v2583_v47 = vpop.f32.mrb[237].mxu0  ;;  %v11360_v63 = vpop.f32.mrb[48].mxu1 }
 0x41d   :  { %v2584_v3 = vpop.f32.mrb[238].mxu0  ;;  %14857 = vst [vmem:[#allocation42_spill] sm:$0xff] %v11360_v63  ;;  %v2967_v47 = vpop.f32.mrb[49].mxu1 }
 0x41e   :  { %v11357_v21 = vadd.f32 %v3378_v31, %v11118_v43  ;;  %v3379_v9 = vmul.f32 %v11202_v6, %v2584_v3  ;;  %v2586_v60 = vpop.f32.mrb[239].mxu0  ;;  %v11365_v12 = vpop.f32.mrb[50].mxu1 }
 0x41f   :  { %14858 = vst [vmem:[#allocation43_spill] sm:$0xff] %v11365_v12  ;;  %v2970_v14 = vpop.f32.mrb[51].mxu1  ;;  %v9030_v60 = vld [vmem:[%s14810_s4 + $0x570] ss:$8 sps:$4 sm:$0xff]  }
 0x420   :  { %v11363_v26 = vadd.f32 %v3379_v9, %v11122_v49  ;;  %2796 = vmatmul.mubr.bf16.gmra.mrb[88].mxu0 %v9027_v57  ;;  %v11368_v2 = vpop.f32.mrb[52].mxu1  ;;  %v9064_v49 = vld [vmem:[%s14833_s8 + $0x8] sm:$0xff]  }
 0x421   :  { %8273 = vmatprep.mubr.msk.bf16.mxu0 %vm1714_vm1, %v9032_v0  ;;  %v2975_v43 = vpop.f32.mrb[53].mxu1  ;;  %v9035_v14 = vld [vmem:[%s14810_s4 + $0x584] ss:$8 sps:$4 sm:$0xff]   ;;  %8487 = vmatpush3.bf16.msra.mxu1 %v9064_v49  ;;  %v9033_v49 = vld [vmem:[%s14810_s4 + $0x580] ss:$8 sps:$4 sm:$0xff]  }
 0x422   :  { %v11374_v47 = vpop.f32.mrb[54].mxu1 }
 0x423   :  { %v2589_v13 = vpop.f32.mrb[240].mxu0  ;;  %v2978_v0 = vpop.f32.mrb[55].mxu1 }
 0x424   :  { %v3380_v31 = vmul.f32 %v11202_v6, %v2589_v13  ;;  %v2591_v3 = vpop.f32.mrb[241].mxu0 }
 0x425   :  { %v2592_v57 = vpop.f32.mrb[242].mxu0  ;;  %v14859_v3 = vmov 0.0   ;;  %v11393_v0 = vpop.f32.mrb[56].mxu1 }
 0x426   :  { %v11383_v9 = vadd.f32 %v3380_v31, %v11139_v36  ;;  %v3381_v13 = vmul.f32 %v11202_v6, %v2592_v57  ;;  %v2594_v43 = vpop.f32.mrb[243].mxu0  ;;  %8524 = vmatprep.subr.bf16.mxu1 %v14859_v3  ;;  %8488 = vmatprep.mubr.msk.bf16.mxu1 %vm9463_vm2, %v14859_v3  ;;  %v2983_v31 = vpop.f32.mrb[57].mxu1 }
 0x428   :  { %v11388_v5 = vadd.f32 %v3381_v13, %v11143_v59  ;;  %2804 = vmatmul.mubr.bf16.gmra.mrb[92].mxu0 %v9030_v60  ;;  %v11399_v59 = vpop.f32.mrb[58].mxu1  ;;  %v9038_v13 = vld [vmem:[%s14810_s4 + $0x594] ss:$8 sps:$4 sm:$0xff]  }
 0x429   :  { %8274 = vmatprep.mubr.msk.bf16.mxu0 %vm1714_vm1, %v9035_v14  ;;  %v2986_v4 = vpop.f32.mrb[59].mxu1 }
 0x42a   :  { %v9036_v4 = vld [vmem:[%s14810_s4 + $0x590] ss:$8 sps:$4 sm:$0xff]  }
 0x42b   :  { %v2597_v36 = vpop.f32.mrb[244].mxu0 }
 0x42c   :  { %v3382_v57 = vmul.f32 %v11202_v6, %v2597_v36  ;;  %v2599_v43 = vpop.f32.mrb[245].mxu0 }
 0x42d   :  { %v2600_v60 = vpop.f32.mrb[246].mxu0  ;;  %v11412_v43 = vpop.f32.mrb[60].mxu1 }
 0x42e   :  { %v11405_v14 = vadd.f32 %v3382_v57, %v11160_v41  ;;  %v3383_v31 = vmul.f32 %v11202_v6, %v2600_v60  ;;  %v2602_v52 = vpop.f32.mrb[247].mxu0  ;;  %v2991_v27 = vpop.f32.mrb[61].mxu1 }
 0x42f   :  { %v11418_v41 = vpop.f32.mrb[62].mxu1 }
 0x430   :  { %v11409_v36 = vadd.f32 %v3383_v31, %v11170_v11  ;;  %2812 = vmatmul.mubr.bf16.gmra.mrb[96].mxu0 %v9033_v49  ;;  %v9041_v11 = vld [vmem:[%s14810_s4 + $0x5a4] ss:$8 sps:$4 sm:$0xff]   ;;  %v2994_v57 = vpop.f32.mrb[63].mxu1 }
 0x431   :  { %8275 = vmatprep.mubr.msk.bf16.mxu0 %vm1714_vm1, %v9038_v13 }
 0x433   :  { %v2605_v34 = vpop.f32.mrb[248].mxu0 }
 0x434   :  { %v3384_v10 = vmul.f32 %v11202_v6, %v2605_v34  ;;  %v2607_v48 = vpop.f32.mrb[249].mxu0  ;;  %v11433_v34 = vld [vmem:[%s14831_s2 + $0x7] ss:$0 sm:$0xff] }
 0x435   :  { %v2608_v52 = vpop.f32.mrb[250].mxu0  ;;  %v11436_v13 = vpop.f32.mrb[64].mxu1 }
 0x436   :  { %v11424_v49 = vadd.f32 %v3384_v10, %v11182_v37  ;;  %v3385_v27 = vmul.f32 %v11202_v6, %v2608_v52  ;;  %v2610_v60 = vpop.f32.mrb[251].mxu0  ;;  %v2999_v57 = vpop.f32.mrb[65].mxu1  ;;  %v9044_v52 = vld [vmem:[%s14810_s4 + $0x5b4] ss:$8 sps:$4 sm:$0xff]  }
 0x437   :  { %v11442_v6 = vpop.f32.mrb[66].mxu1 }
 0x438   :  { %v11428_v48 = vadd.f32 %v3385_v27, %v11191_v18  ;;  %2820 = vmatmul.mubr.bf16.gmra.mrb[100].mxu0 %v9036_v4  ;;  %v9039_v18 = vld [vmem:[%s14810_s4 + $0x5a0] ss:$8 sps:$4 sm:$0xff]   ;;  %v3002_v27 = vpop.f32.mrb[67].mxu1 }
 0x439   :  { %8276 = vmatprep.mubr.msk.bf16.mxu0 %vm1714_vm1, %v9041_v11 }
 0x43b   :  { %v2613_v31 = vpop.f32.mrb[252].mxu0 }
 0x43c   :  { %v3410_v10 = vmul.f32 %v11433_v34, %v2613_v31  ;;  %v2615_v37 = vpop.f32.mrb[253].mxu0 }
 0x43d   :  { %v2616_v4 = vpop.f32.mrb[254].mxu0  ;;  %v11455_v37 = vpop.f32.mrb[68].mxu1 }
 0x43e   :  { %v11448_v11 = vadd.f32 %v3410_v10, %v11217_v8  ;;  %v3411_v60 = vmul.f32 %v11433_v34, %v2616_v4  ;;  %v2618_v57 = vpop.f32.mrb[255].mxu0  ;;  %v3007_v17 = vpop.f32.mrb[69].mxu1  ;;  %v9042_v8 = vld [vmem:[%s14810_s4 + $0x5b0] ss:$8 sps:$4 sm:$0xff]  }
 0x43f   :  { %v11461_v10 = vpop.f32.mrb[70].mxu1 }
 0x440   :  { %v11452_v31 = vadd.f32 %v3411_v60, %v11229_v61  ;;  %2828 = vmatmul.mubr.bf16.gmra.mrb[104].mxu0 %v9039_v18  ;;  %v9048_v61 = vld [vmem:[%s14810_s4 + $0x5c4] ss:$8 sps:$4 sm:$0xff]   ;;  %v3010_v18 = vpop.f32.mrb[71].mxu1 }
 0x441   :  { %8277 = vmatprep.mubr.msk.bf16.mxu0 %vm1714_vm1, %v9044_v52 }
 0x443   :  { %v2621_v16 = vpop.f32.mrb[0].mxu0 }
 0x444   :  { %v3412_v39 = vmul.f32 %v11433_v34, %v2621_v16  ;;  %v2623_v12 = vpop.f32.mrb[1].mxu0 }
 0x445   :  { %v2624_v4 = vpop.f32.mrb[2].mxu0  ;;  %v11474_v16 = vpop.f32.mrb[72].mxu1 }
 0x446   :  { %v11467_v52 = vadd.f32 %v3412_v39, %v11247_v30  ;;  %v3413_v17 = vmul.f32 %v11433_v34, %v2624_v4  ;;  %v2626_v27 = vpop.f32.mrb[3].mxu0  ;;  %v3015_v57 = vpop.f32.mrb[73].mxu1  ;;  %v9046_v39 = vld [vmem:[%s14810_s4 + $0x5c0] ss:$8 sps:$4 sm:$0xff]  }
 0x447   :  { %v11480_v30 = vpop.f32.mrb[74].mxu1 }
 0x448   :  { %v11471_v12 = vadd.f32 %v3413_v17, %v11253_v20  ;;  %2836 = vmatmul.mubr.bf16.gmra.mrb[108].mxu0 %v9042_v8  ;;  %v9051_v20 = vld [vmem:[%s14810_s4 + $0x5d4] ss:$8 sps:$4 sm:$0xff]   ;;  %v3018_v8 = vpop.f32.mrb[75].mxu1 }
 0x449   :  { %8278 = vmatprep.mubr.msk.bf16.mxu0 %vm1714_vm1, %v9048_v61 }
 0x44b   :  { %v2629_v60 = vpop.f32.mrb[4].mxu0 }
 0x44c   :  { %v3414_v63 = vmul.f32 %v11433_v34, %v2629_v60  ;;  %v2631_v33 = vpop.f32.mrb[5].mxu0 }
 0x44d   :  { %v2632_v4 = vpop.f32.mrb[6].mxu0  ;;  %v11493_v27 = vpop.f32.mrb[76].mxu1 }
 0x44e   :  { %v11486_v61 = vadd.f32 %v3414_v63, %v11276_v38  ;;  %v3415_v18 = vmul.f32 %v11433_v34, %v2632_v4  ;;  %v2634_v17 = vpop.f32.mrb[7].mxu0  ;;  %v3023_v57 = vpop.f32.mrb[77].mxu1  ;;  %v9049_v38 = vld [vmem:[%s14810_s4 + $0x5d0] ss:$8 sps:$4 sm:$0xff]  }
 0x44f   :  { %v11499_v63 = vpop.f32.mrb[78].mxu1 }
 0x450   :  { %v11490_v33 = vadd.f32 %v3415_v18, %v11288_v51  ;;  %2844 = vmatmul.mubr.bf16.gmra.mrb[112].mxu0 %v9046_v39  ;;  %v9054_v51 = vld [vmem:[%s14810_s4 + $0x5e4] ss:$8 sps:$4 sm:$0xff]   ;;  %v3026_v39 = vpop.f32.mrb[79].mxu1 }
 0x451   :  { %8279 = vmatprep.mubr.msk.bf16.mxu0 %vm1714_vm1, %v9051_v20 }
 0x453   :  { %v2637_v60 = vpop.f32.mrb[8].mxu0 }
 0x454   :  { %v3416_v19 = vmul.f32 %v11433_v34, %v2637_v60  ;;  %v2639_v46 = vpop.f32.mrb[9].mxu0 }
 0x455   :  { %v2640_v4 = vpop.f32.mrb[10].mxu0  ;;  %v11512_v17 = vpop.f32.mrb[80].mxu1 }
 0x456   :  { %v11505_v20 = vadd.f32 %v3416_v19, %v11311_v58  ;;  %v3417_v8 = vmul.f32 %v11433_v34, %v2640_v4  ;;  %v2642_v18 = vpop.f32.mrb[11].mxu0  ;;  %v3031_v57 = vpop.f32.mrb[81].mxu1  ;;  %v9052_v58 = vld [vmem:[%s14810_s4 + $0x5e0] ss:$8 sps:$4 sm:$0xff]  }
 0x457   :  { %v11518_v19 = vpop.f32.mrb[82].mxu1 }
 0x458   :  { %v11509_v46 = vadd.f32 %v3417_v8, %v11317_v1  ;;  %2852 = vmatmul.mubr.bf16.gmra.mrb[116].mxu0 %v9049_v38  ;;  %v3034_v39 = vpop.f32.mrb[83].mxu1 }
 0x459   :  { %8280 = vmatprep.mubr.msk.bf16.mxu0 %vm1714_vm1, %v9054_v51 }
 0x45b   :  { %v2645_v60 = vpop.f32.mrb[12].mxu0 }
 0x45c   :  { %v3418_v54 = vmul.f32 %v11433_v34, %v2645_v60  ;;  %v2647_v25 = vpop.f32.mrb[13].mxu0 }
 0x45d   :  { %v2648_v4 = vpop.f32.mrb[14].mxu0  ;;  %v11527_v18 = vpop.f32.mrb[84].mxu1 }
 0x45e   :  { %v11521_v1 = vadd.f32 %v3418_v54, %v11334_v24  ;;  %v3419_v38 = vmul.f32 %v11433_v34, %v2648_v4  ;;  %v2650_v51 = vpop.f32.mrb[15].mxu0  ;;  %v3039_v60 = vpop.f32.mrb[85].mxu1 }
 0x45f   :  { %v11530_v35 = vpop.f32.mrb[86].mxu1 }
 0x460   :  { %v11525_v8 = vadd.f32 %v3419_v38, %v11340_v45  ;;  %2860 = vmatmul.mubr.bf16.gmra.mrb[120].mxu0 %v9052_v58  ;;  %v3042_v56 = vpop.f32.mrb[87].mxu1 }
 0x463   :  { %v2653_v25 = vpop.f32.mrb[16].mxu0 }
 0x464   :  { %v3420_v57 = vmul.f32 %v11433_v34, %v2653_v25  ;;  %v2655_v50 = vpop.f32.mrb[17].mxu0 }
 0x465   :  { %v2656_v39 = vpop.f32.mrb[18].mxu0 }
 0x466   :  { %v11533_v54 = vadd.f32 %v3420_v57, %v11357_v21  ;;  %v3421_v24 = vmul.f32 %v11433_v34, %v2656_v39  ;;  %v2658_v4 = vpop.f32.mrb[19].mxu0 }
 0x468   :  { %v11537_v45 = vadd.f32 %v3421_v24, %v11363_v26 }
 0x46b   :  { %v2661_v58 = vpop.f32.mrb[20].mxu0 }
 0x46c   :  { %v3422_v38 = vmul.f32 %v11433_v34, %v2661_v58  ;;  %v2663_v51 = vpop.f32.mrb[21].mxu0 }
 0x46d   :  { %v2664_v60 = vpop.f32.mrb[22].mxu0 }
 0x46e   :  { %v11541_v50 = vadd.f32 %v3422_v38, %v11383_v9  ;;  %v3423_v25 = vmul.f32 %v11433_v34, %v2664_v60  ;;  %v2666_v56 = vpop.f32.mrb[23].mxu0 }
 0x470   :  { %v11545_v21 = vadd.f32 %v3423_v25, %v11388_v5 }
 0x473   :  { %v2669_v57 = vpop.f32.mrb[24].mxu0 }
 0x474   :  { %v3424_v39 = vmul.f32 %v11433_v34, %v2669_v57  ;;  %v2671_v4 = vpop.f32.mrb[25].mxu0 }
 0x475   :  { %v2672_v26 = vpop.f32.mrb[26].mxu0 }
 0x476   :  { %v11549_v24 = vadd.f32 %v3424_v39, %v11405_v14  ;;  %v3425_v58 = vmul.f32 %v11433_v34, %v2672_v26  ;;  %v2674_v51 = vpop.f32.mrb[27].mxu0  ;;  %v11566_v39 = vld [vmem:[%s14831_s2 + $0x8] ss:$0 sm:$0xff] }
 0x478   :  { %v11553_v9 = vadd.f32 %v3425_v58, %v11409_v36 }
 0x47b   :  { %v2677_v38 = vpop.f32.mrb[28].mxu0 }
 0x47c   :  { %v3426_v60 = vmul.f32 %v11433_v34, %v2677_v38  ;;  %v2679_v56 = vpop.f32.mrb[29].mxu0 }
 0x47d   :  { %v2680_v5 = vpop.f32.mrb[30].mxu0 }
 0x47e   :  { %v11557_v25 = vadd.f32 %v3426_v60, %v11424_v49  ;;  %v3427_v57 = vmul.f32 %v11433_v34, %v2680_v5  ;;  %v2682_v4 = vpop.f32.mrb[31].mxu0  ;;  %v11572_v49 = vld [vmem:[%s14860_s30] ss:$0 sm:$0xff] }
 0x480   :  { %v11561_v14 = vadd.f32 %v3427_v57, %v11428_v48 }
 0x483   :  { %v2685_v36 = vpop.f32.mrb[32].mxu0 }
 0x484   :  { %v3452_v26 = vmul.f32 %v11566_v39, %v2685_v36  ;;  %v2687_v58 = vpop.f32.mrb[33].mxu0 }
 0x485   :  { %v2688_v51 = vpop.f32.mrb[34].mxu0 }
 0x486   :  { %v3470_v34 = vadd.f32 %v3452_v26, %v11448_v11  ;;  %v3453_v48 = vmul.f32 %v11566_v39, %v2688_v51  ;;  %v2690_v38 = vpop.f32.mrb[35].mxu0 }
 0x488   :  { %v3806_v60 = vadd.f32 %v11572_v49, %v3470_v34  ;;  %v3471_v56 = vadd.f32 %v3453_v48, %v11452_v31 }
 0x48a   :  { %v3842_v5 = vmul.f32 0.70710677, %v3806_v60  ;;  %v3807_v57 = vadd.f32 %v11572_v49, %v3471_v56  ;;  %v3970_v56 = vpop.permute.xlu1 %3969 }
 0x48b   :  { %v2693_v4 = vpop.f32.mrb[36].mxu0 }
 0x48c   :  { %9113 = verf.f32 %v3842_v5  ;;  %v3843_v36 = vmul.f32 0.70710677, %v3807_v57  ;;  %v3454_v58 = vmul.f32 %v11566_v39, %v2693_v4  ;;  %v2695_v29 = vpop.f32.mrb[37].mxu0 }
 0x48d   :  { %v2696_v15 = vpop.f32.mrb[38].mxu0 }
 0x48e   :  { %9115 = verf.f32 %v3843_v36  ;;  %v3472_v11 = vadd.f32 %v3454_v58, %v11467_v52  ;;  %v3455_v26 = vmul.f32 %v11566_v39, %v2696_v15  ;;  %v2698_v51 = vpop.f32.mrb[39].mxu0 }
 0x490   :  { %v3808_v34 = vadd.f32 %v11572_v49, %v3472_v11  ;;  %v3473_v31 = vadd.f32 %v3455_v26, %v11471_v12  ;;  %v3824_v11 = vmul.f32 0.5, %v3806_v60 }
 0x492   :  { %v3844_v48 = vmul.f32 0.70710677, %v3808_v34  ;;  %v3809_v38 = vadd.f32 %v11572_v49, %v3473_v31 }
 0x493   :  { %v2701_v5 = vpop.f32.mrb[40].mxu0 }
 0x494   :  { %9117 = verf.f32 %v3844_v48  ;;  %v3845_v62 = vmul.f32 0.70710677, %v3809_v38  ;;  %v3456_v29 = vmul.f32 %v11566_v39, %v2701_v5  ;;  %v2703_v4 = vpop.f32.mrb[41].mxu0  ;;  %v11593_v48 = vld [vmem:[%s14861_s26] ss:$0 sm:$0xff]  ;;  %v3975_v5 = vpop.permute.xlu1 %3974  ;;  %v3827_v44 = vmul.f32 0.5, %v3809_v38 }
 0x495   :  { %v2704_v36 = vpop.f32.mrb[42].mxu0  ;;  %v3825_v4 = vmul.f32 0.5, %v3807_v57  ;;  %v3965_v57 = vpop.permute.xlu0 %3964 }
 0x496   :  { %v9114_v53 = vpop.eup %9113  ;;  %9119 = verf.f32 %v3845_v62  ;;  %v3474_v15 = vadd.f32 %v3456_v29, %v11486_v61  ;;  %v3457_v52 = vmul.f32 %v11566_v39, %v2704_v36  ;;  %v2706_v58 = vpop.f32.mrb[43].mxu0 }
 0x497   :  { %v3878_v12 = vadd.f32 1.0, %v9114_v53  ;;  %v11599_v53 = vld [vmem:[%s14696_s9] ss:$0 sm:$0xff] }
 0x498   :  { %v9116_v26 = vpop.eup %9115  ;;  %v3810_v51 = vadd.f32 %v11572_v49, %v3474_v15  ;;  %v3475_v31 = vadd.f32 %v3457_v52, %v11490_v33 }
 0x499   :  { %v3896_v62 = vmul.f32 %v3878_v12, %v3824_v11  ;;  %v3879_v28 = vadd.f32 1.0, %v9116_v26 }
 0x49a   :  { %v3846_v61 = vmul.f32 0.70710677, %v3810_v51  ;;  %v3811_v29 = vadd.f32 %v11572_v49, %v3475_v31 }
 0x49b   :  { %v2709_v60 = vpop.f32.mrb[44].mxu0  ;;  %v3920_v33 = vmul.f32 %v11593_v48, %v3896_v62  ;;  %v3897_v36 = vmul.f32 %v3879_v28, %v3825_v4  ;;  %v3980_v62 = vpop.permute.xlu1 %3979  ;;  %v3826_v28 = vmul.f32 0.5, %v3808_v34 }
 0x49c   :  { %9121 = verf.f32 %v3846_v61  ;;  %v3847_v15 = vmul.f32 0.70710677, %v3811_v29  ;;  %v3458_v52 = vmul.f32 %v11566_v39, %v2709_v60  ;;  %v2711_v58 = vpop.f32.mrb[45].mxu0 }
 0x49d   :  { %v2712_v11 = vpop.f32.mrb[46].mxu0  ;;  %v3944_v12 = vadd.f32 %v11599_v53, %v3920_v33  ;;  %v3921_v26 = vmul.f32 %v11593_v48, %v3897_v36 }
 0x49e   :  { %v9118_v31 = vpop.eup %9117  ;;  %9123 = verf.f32 %v3847_v15  ;;  %v3476_v22 = vadd.f32 %v3458_v52, %v11505_v20  ;;  %v3459_v55 = vmul.f32 %v11566_v39, %v2712_v11  ;;  %v2714_v40 = vpop.f32.mrb[47].mxu0 }
 0x49f   :  { %v4052_v4 = vmul.f32 %v3965_v57, %v3944_v12  ;;  %v3945_v61 = vadd.f32 %v11599_v53, %v3921_v26  ;;  %v3880_v60 = vadd.f32 1.0, %v9118_v31 }
 0x4a0   :  { %v9120_v58 = vpop.eup %9119  ;;  %v3812_v23 = vadd.f32 %v11572_v49, %v3476_v22  ;;  %v3477_v33 = vadd.f32 %v3459_v55, %v11509_v46  ;;  %v3985_v55 = vpop.permute.xlu1 %3984 }
 0x4a1   :  { %v4053_v36 = vmul.f32 %v3970_v56, %v3945_v61  ;;  %v4070_v15 = vadd.f32 %v4052_v4, %v11368_v2  ;;  %v3898_v7 = vmul.f32 %v3880_v60, %v3826_v28  ;;  %v3881_v20 = vadd.f32 1.0, %v9120_v58  ;;  %v9065_v2 = vld [vmem:[%s14833_s8 + $0x10] sm:$0xff]  }
 0x4a2   :  { %v3848_v52 = vmul.f32 0.70710677, %v3812_v23  ;;  %v3813_v40 = vadd.f32 %v11572_v49, %v3477_v33  ;;  %v3828_v61 = vmul.f32 0.5, %v3810_v51 }
 0x4a3   :  { %v4071_v34 = vadd.f32 %v4053_v36, %v11374_v47  ;;  %v2717_v57 = vpop.f32.mrb[48].mxu0  ;;  %v3922_v11 = vmul.f32 %v11593_v48, %v3898_v7  ;;  %v3899_v12 = vmul.f32 %v3881_v20, %v3827_v44 }
 0x4a4   :  { %9125 = verf.f32 %v3848_v52  ;;  %v3849_v38 = vmul.f32 0.70710677, %v3813_v40  ;;  %v3460_v22 = vmul.f32 %v11566_v39, %v2717_v57  ;;  %v2719_v26 = vpop.f32.mrb[49].mxu0 }
 0x4a5   :  { %v4289_v46 = vpack.c.bf16 %v4071_v34, %v4070_v15  ;;  %v3946_v56 = vadd.f32 %v11599_v53, %v3922_v11  ;;  %v2720_v31 = vpop.f32.mrb[50].mxu0  ;;  %v3923_v47 = vmul.f32 %v11593_v48, %v3899_v12  ;;  %v3829_v15 = vmul.f32 0.5, %v3811_v29  ;;  %v3990_v11 = vpop.permute.xlu1 %3989 }
 0x4a6   :  { %v9122_v28 = vpop.eup %9121  ;;  %9127 = verf.f32 %v3849_v38  ;;  %v3478_v7 = vadd.f32 %v3460_v22, %v11521_v1  ;;  %v3461_v44 = vmul.f32 %v11566_v39, %v2720_v31  ;;  %v2722_v4 = vpop.f32.mrb[51].mxu0 }
 0x4a7   :  { %v4054_v60 = vmul.f32 %v3975_v5, %v3946_v56  ;;  %8489 = vmatmul.mubr.msk.bf16.vlgmr.msra.gmra.mrb[100].mxu1 %vm99_vm0, %v4289_v46  ;;  %v3947_v58 = vadd.f32 %v11599_v53, %v3923_v47  ;;  %v3882_v33 = vadd.f32 1.0, %v9122_v28 }
 0x4a8   :  { %v9124_v36 = vpop.eup %9123  ;;  %v11625_v20 = vadd.f32 %v11572_v49, %v3478_v7  ;;  %v3479_v52 = vadd.f32 %v3461_v44, %v11525_v8  ;;  %8492 = vmatprep.mubr.msk.bf16.mxu1 %vm9463_vm2, %v14859_v3  ;;  %8525 = vmatpush3.bf16.msra.mxu1 %v9065_v2  ;;  %v3830_v44 = vmul.f32 0.5, %v3812_v23 }
 0x4a9   :  { %v4055_v1 = vmul.f32 %v3980_v62, %v3947_v58  ;;  %v4072_v51 = vadd.f32 %v4054_v60, %v11393_v0  ;;  %v3900_v5 = vmul.f32 %v3882_v33, %v3828_v61  ;;  %v3883_v34 = vadd.f32 1.0, %v9124_v36  ;;  %8526 = vmatprep.subr.bf16.mxu1 %v14859_v3 }
 0x4aa   :  { %v3850_v57 = vmul.f32 0.70710677, %v11625_v20  ;;  %v3815_v29 = vadd.f32 %v11572_v49, %v3479_v52  ;;  %v3831_v33 = vmul.f32 0.5, %v3813_v40  ;;  %v3995_v52 = vpop.permute.xlu1 %3994 }
 0x4ab   :  { %v4073_v12 = vadd.f32 %v4055_v1, %v11399_v59  ;;  %v2725_v38 = vpop.f32.mrb[52].mxu0  ;;  %v3924_v8 = vmul.f32 %v11593_v48, %v3900_v5  ;;  %v3901_v22 = vmul.f32 %v3883_v34, %v3829_v15 }
 0x4ac   :  { %9129 = verf.f32 %v3850_v57  ;;  %v3851_v26 = vmul.f32 0.70710677, %v3815_v29  ;;  %v3462_v62 = vmul.f32 %v11566_v39, %v2725_v38  ;;  %v2727_v0 = vpop.f32.mrb[53].mxu0 }
 0x4ad   :  { %v4290_v2 = vpack.c.bf16 %v4073_v12, %v4072_v51  ;;  %v3948_v46 = vadd.f32 %v11599_v53, %v3924_v8  ;;  %v2728_v56 = vpop.f32.mrb[54].mxu0  ;;  %v3925_v31 = vmul.f32 %v11593_v48, %v3901_v22 }
 0x4ae   :  { %v9126_v47 = vpop.eup %9125  ;;  %9131 = verf.f32 %v3851_v26  ;;  %v3480_v28 = vadd.f32 %v3462_v62, %v11533_v54  ;;  %v3463_v59 = vmul.f32 %v11566_v39, %v2728_v56  ;;  %v2730_v7 = vpop.f32.mrb[55].mxu0  ;;  %v3832_v56 = vmul.f32 0.5, %v11625_v20 }
 0x4af   :  { %v4056_v4 = vmul.f32 %v3985_v55, %v3948_v46  ;;  %8493 = vmatmul.mubr.msk.bf16.gmra.mrb[104].mxu1 %vm99_vm0, %v4290_v2  ;;  %v3949_v61 = vadd.f32 %v11599_v53, %v3925_v31  ;;  %v3884_v60 = vadd.f32 1.0, %v9126_v47  ;;  %v4000_v46 = vpop.permute.xlu1 %3999  ;;  %v3833_v7 = vmul.f32 0.5, %v3815_v29 }
 0x4b0   :  { %v9128_v58 = vpop.eup %9127  ;;  %v11644_v36 = vadd.f32 %v11572_v49, %v3480_v28  ;;  %v3481_v15 = vadd.f32 %v3463_v59, %v11537_v45  ;;  %8496 = vmatprep.mubr.msk.bf16.mxu1 %vm9463_vm2, %v14859_v3 }
 0x4b1   :  { %v4057_v54 = vmul.f32 %v3990_v11, %v3949_v61  ;;  %v4074_v23 = vadd.f32 %v4056_v4, %v11412_v43  ;;  %v3902_v55 = vmul.f32 %v3884_v60, %v3830_v44  ;;  %v3885_v1 = vadd.f32 1.0, %v9128_v58 }
 0x4b2   :  { %v3852_v51 = vmul.f32 0.70710677, %v11644_v36  ;;  %v3817_v5 = vadd.f32 %v11572_v49, %v3481_v15 }
 0x4b3   :  { %v4075_v40 = vadd.f32 %v4057_v54, %v11418_v41  ;;  %v2733_v34 = vpop.f32.mrb[56].mxu0  ;;  %v3926_v57 = vmul.f32 %v11593_v48, %v3902_v55  ;;  %v3903_v12 = vmul.f32 %v3885_v1, %v3831_v33 }
 0x4b4   :  { %9133 = verf.f32 %v3852_v51  ;;  %v3853_v45 = vmul.f32 0.70710677, %v3817_v5  ;;  %v3464_v38 = vmul.f32 %v11566_v39, %v2733_v34  ;;  %v2735_v8 = vpop.f32.mrb[57].mxu0 }
 0x4b5   :  { %v4291_v11 = vpack.c.bf16 %v4075_v40, %v4074_v23  ;;  %v3950_v43 = vadd.f32 %v11599_v53, %v3926_v57  ;;  %v2736_v22 = vpop.f32.mrb[58].mxu0  ;;  %v3927_v26 = vmul.f32 %v11593_v48, %v3903_v12  ;;  %v9066_v8 = vld [vmem:[%s14833_s8 + $0x18] sm:$0xff]  }
 0x4b6   :  { %v9130_v62 = vpop.eup %9129  ;;  %9135 = verf.f32 %v3853_v45  ;;  %v3482_v0 = vadd.f32 %v3464_v38, %v11541_v50  ;;  %v3465_v41 = vmul.f32 %v11566_v39, %v2736_v22  ;;  %v2738_v2 = vpop.f32.mrb[59].mxu0  ;;  %8527 = vmatpush3.bf16.msra.mxu1 %v9066_v8 }
 0x4b7   :  { %v4058_v31 = vmul.f32 %v3995_v52, %v3950_v43  ;;  %8497 = vmatmul.mubr.msk.bf16.gmra.mrb[108].mxu1 %vm99_vm0, %v4291_v11  ;;  %v3951_v47 = vadd.f32 %v11599_v53, %v3927_v26  ;;  %v3886_v28 = vadd.f32 1.0, %v9130_v62  ;;  %v4010_v38 = vpop.permute.xlu0 %4009  ;;  %v3834_v11 = vmul.f32 0.5, %v11644_v36  ;;  %v11693_v2 = vpop.f32.mrb[88].mxu1  ;;  %8540 = vmatprep.subr.bf16.mxu1 %v14859_v3 }
 0x4b8   :  { %v9132_v59 = vpop.eup %9131  ;;  %v11663_v44 = vadd.f32 %v11572_v49, %v3482_v0  ;;  %v3483_v4 = vadd.f32 %v3465_v41, %v11545_v21  ;;  %8500 = vmatprep.mubr.msk.bf16.mxu1 %vm9463_vm2, %v14859_v3  ;;  %v3835_v0 = vmul.f32 0.5, %v3817_v5  ;;  %14862 = vst [vmem:[#allocation44_spill] sm:$0xff] %v11693_v2 }
 0x4b9   :  { %v4059_v50 = vmul.f32 %v4000_v46, %v3951_v47  ;;  %v4076_v61 = vadd.f32 %v4058_v31, %v11436_v13  ;;  %v3904_v20 = vmul.f32 %v3886_v28, %v3832_v56  ;;  %v3887_v60 = vadd.f32 1.0, %v9132_v59  ;;  %v4005_v13 = vpop.permute.xlu1 %4004  ;;  %v3047_v47 = vpop.f32.mrb[89].mxu1 }
 0x4ba   :  { %v3854_v58 = vmul.f32 0.70710677, %v11663_v44  ;;  %v11671_v33 = vadd.f32 %v11572_v49, %v3483_v4 }
 0x4bb   :  { %v4077_v29 = vadd.f32 %v4059_v50, %v11442_v6  ;;  %v2741_v15 = vpop.f32.mrb[60].mxu0  ;;  %v3928_v52 = vmul.f32 %v11593_v48, %v3904_v20  ;;  %v3905_v54 = vmul.f32 %v3887_v60, %v3833_v7 }
 0x4bc   :  { %9137 = verf.f32 %v3854_v58  ;;  %v3855_v21 = vmul.f32 0.70710677, %v11671_v33  ;;  %v3466_v23 = vmul.f32 %v11566_v39, %v2741_v15  ;;  %v2743_v55 = vpop.f32.mrb[61].mxu0 }
 0x4bd   :  { %v4292_v1 = vpack.c.bf16 %v4077_v29, %v4076_v61  ;;  %v2744_v51 = vpop.f32.mrb[62].mxu0  ;;  %v3952_v40 = vadd.f32 %v11599_v53, %v3928_v52  ;;  %v3929_v34 = vmul.f32 %v11593_v48, %v3905_v54  ;;  %v4015_v20 = vpop.permute.xlu1 %4014  ;;  %v3836_v55 = vmul.f32 0.5, %v11663_v44 }
 0x4be   :  { %v9134_v57 = vpop.eup %9133  ;;  %9139 = verf.f32 %v3855_v21  ;;  %v3484_v6 = vadd.f32 %v3466_v23, %v11549_v24  ;;  %v3467_v12 = vmul.f32 %v11566_v39, %v2744_v51  ;;  %v2746_v45 = vpop.f32.mrb[63].mxu0 }
 0x4bf   :  { %v4060_v43 = vmul.f32 %v4005_v13, %v3952_v40  ;;  %8501 = vmatmul.mubr.msk.bf16.gmra.mrb[112].mxu1 %vm99_vm0, %v4292_v1  ;;  %v3953_v22 = vadd.f32 %v11599_v53, %v3929_v34  ;;  %v3888_v26 = vadd.f32 1.0, %v9134_v57  ;;  %v4020_v23 = vpop.permute.xlu0 %4019  ;;  %v11712_v40 = vpop.f32.mrb[90].mxu1  ;;  %v3837_v57 = vmul.f32 0.5, %v11671_v33 }
 0x4c0   :  { %v9136_v62 = vpop.eup %9135  ;;  %v11688_v24 = vadd.f32 %v11572_v49, %v3484_v6  ;;  %v3485_v41 = vadd.f32 %v3467_v12, %v11553_v9  ;;  %8504 = vmatprep.mubr.msk.bf16.mxu1 %vm9463_vm2, %v14859_v3  ;;  %14863 = vst [vmem:[#allocation45_spill] sm:$0xff] %v11712_v40  ;;  %v14887_v40 = vld [vmem:[#allocation35_spill] sm:$0xff] }
 0x4c1   :  { %v4078_v36 = vadd.f32 %v4060_v43, %v11455_v37  ;;  %v4061_v46 = vmul.f32 %v4010_v38, %v3953_v22  ;;  %v3906_v56 = vmul.f32 %v3888_v26, %v3834_v11  ;;  %v3889_v31 = vadd.f32 1.0, %v9136_v62  ;;  %v4025_v45 = vpop.permute.xlu1 %4024 }
 0x4c2   :  { %v3856_v5 = vmul.f32 0.70710677, %v11688_v24  ;;  %v11699_v28 = vadd.f32 %v11572_v49, %v3485_v41 }
 0x4c3   :  { %v4079_v9 = vadd.f32 %v4061_v46, %v11461_v10  ;;  %v2749_v59 = vpop.f32.mrb[64].mxu0  ;;  %v3930_v7 = vmul.f32 %v11593_v48, %v3906_v56  ;;  %v3907_v4 = vmul.f32 %v3889_v31, %v3835_v0  ;;  %v4030_v22 = vpop.permute.xlu0 %4029 }
 0x4c4   :  { %9141 = verf.f32 %v3856_v5  ;;  %v3857_v37 = vmul.f32 0.70710677, %v11699_v28  ;;  %v3468_v50 = vmul.f32 %v11566_v39, %v2749_v59  ;;  %v2751_v61 = vpop.f32.mrb[65].mxu0 }
 0x4c5   :  { %v4293_v60 = vpack.c.bf16 %v4079_v9, %v4078_v36  ;;  %v2752_v58 = vpop.f32.mrb[66].mxu0  ;;  %v3954_v29 = vadd.f32 %v11599_v53, %v3930_v7  ;;  %v3931_v15 = vmul.f32 %v11593_v48, %v3907_v4  ;;  %v3838_v7 = vmul.f32 0.5, %v11688_v24 }
 0x4c6   :  { %v9138_v52 = vpop.eup %9137  ;;  %9143 = verf.f32 %v3857_v37  ;;  %v3486_v10 = vadd.f32 %v3468_v50, %v11557_v25  ;;  %v3469_v54 = vmul.f32 %v11566_v39, %v2752_v58  ;;  %v2754_v21 = vpop.f32.mrb[67].mxu0 }
 0x4c7   :  { %v4062_v13 = vmul.f32 %v4015_v20, %v3954_v29  ;;  %8505 = vmatmul.mubr.msk.bf16.gmra.mrb[116].mxu1 %vm99_vm0, %v4293_v60  ;;  %v3955_v1 = vadd.f32 %v11599_v53, %v3931_v15  ;;  %v3890_v51 = vadd.f32 1.0, %v9138_v52  ;;  %v3050_v39 = vpop.f32.mrb[91].mxu1  ;;  %v3839_v60 = vmul.f32 0.5, %v11699_v28 }
 0x4c8   :  { %v9140_v34 = vpop.eup %9139  ;;  %v3822_v6 = vadd.f32 %v11572_v49, %v3486_v10  ;;  %v3487_v25 = vadd.f32 %v3469_v54, %v11561_v14  ;;  %8508 = vmatprep.mubr.msk.bf16.mxu1 %vm9463_vm2, %v14859_v3  ;;  %v11721_v26 = vpop.f32.mrb[92].mxu1 }
 0x4c9   :  { %v4080_v44 = vadd.f32 %v4062_v13, %v11474_v16  ;;  %v4063_v12 = vmul.f32 %v4020_v23, %v3955_v1  ;;  %v3908_v38 = vmul.f32 %v3890_v51, %v3836_v55  ;;  %v3891_v8 = vadd.f32 1.0, %v9140_v34  ;;  %14864 = vst [vmem:[#allocation46_spill] sm:$0xff] %v11721_v26  ;;  %v3055_v41 = vpop.f32.mrb[93].mxu1  ;;  %v4035_v55 = vpop.permute.xlu1 %4034 }
 0x4ca   :  { %v3858_v11 = vmul.f32 0.70710677, %v3822_v6  ;;  %v3823_v43 = vadd.f32 %v11572_v49, %v3487_v25  ;;  %v11727_v46 = vpop.f32.mrb[94].mxu1  ;;  %v3840_v25 = vmul.f32 0.5, %v3822_v6 }
 0x4cb   :  { %v4081_v33 = vadd.f32 %v4063_v12, %v11480_v30  ;;  %v11724_v62 = vpop.f32.mrb[68].mxu0  ;;  %v3932_v14 = vmul.f32 %v11593_v48, %v3908_v38  ;;  %v3909_v0 = vmul.f32 %v3891_v8, %v3837_v57  ;;  %14865 = vst [vmem:[#allocation47_spill] sm:$0xff] %v11727_v46  ;;  %v3058_v5 = vpop.f32.mrb[95].mxu1 }
 0x4cc   :  { %9145 = verf.f32 %v3858_v11  ;;  %v3859_v16 = vmul.f32 0.70710677, %v3823_v43  ;;  %v2759_v36 = vpop.f32.mrb[69].mxu0  ;;  %v11733_v59 = vpop.f32.mrb[96].mxu1 }
 0x4cd   :  { %v4294_v56 = vpack.c.bf16 %v4081_v33, %v4080_v44  ;;  %v11729_v31 = vpop.f32.mrb[70].mxu0  ;;  %v3956_v49 = vadd.f32 %v11599_v53, %v3932_v14  ;;  %v3933_v47 = vmul.f32 %v11593_v48, %v3909_v0  ;;  %14866 = vst [vmem:[#allocation48_spill] sm:$0xff] %v11733_v59  ;;  %v3063_v61 = vpop.f32.mrb[97].mxu1  ;;  %v14884_v59 = vld [vmem:[#allocation34_spill] sm:$0xff] }
 0x4ce   :  { %v9142_v30 = vpop.eup %9141  ;;  %9147 = verf.f32 %v3859_v16  ;;  %v2762_v9 = vpop.f32.mrb[71].mxu0 }
 0x4cf   :  { %v4064_v4 = vmul.f32 %v4025_v45, %v3956_v49  ;;  %8509 = vmatmul.mubr.msk.bf16.gmra.mrb[120].mxu1 %vm99_vm0, %v4294_v56  ;;  %v3957_v37 = vadd.f32 %v11599_v53, %v3933_v47  ;;  %v3892_v50 = vadd.f32 1.0, %v9142_v30  ;;  %v4040_v57 = vpop.permute.xlu0 %4039  ;;  %v3841_v45 = vmul.f32 0.5, %v3823_v43  ;;  %v4045_v16 = vpop.permute.xlu1 %4044  ;;  %v8315_v30 = vld [vmem:[%s14697_s5] ss:$0 sm:$0xff] }
 0x4d0   :  { %v9144_v20 = vpop.eup %9143  ;;  %8512 = vmatprep.mubr.msk.bf16.mxu1 %vm9463_vm2, %v14859_v3  ;;  %v8316_v9 = vld [vmem:[%s14698_s6] ss:$0 sm:$0xff] }
 0x4d1   :  { %v4082_v58 = vadd.f32 %v4064_v4, %v11493_v27  ;;  %v4065_v29 = vmul.f32 %v4030_v22, %v3957_v37  ;;  %v3910_v15 = vmul.f32 %v3892_v50, %v3838_v7  ;;  %v3893_v52 = vadd.f32 1.0, %v9144_v20  ;;  %v11771_v7 = vpop.f32.mrb[98].mxu1  ;;  %v8318_v37 = vld [vmem:[%s14698_s6 + $0x1] ss:$0 sm:$0xff] }
 0x4d2   :  { %14867 = vst [vmem:[#allocation49_spill] sm:$0xff] %v11771_v7  ;;  %v3066_v50 = vpop.f32.mrb[99].mxu1  ;;  %v14883_v7 = vld [vmem:[#allocation33_spill] sm:$0xff] }
 0x4d3   :  { %v4083_v24 = vadd.f32 %v4065_v29, %v11499_v63  ;;  %v11743_v10 = vpop.f32.mrb[72].mxu0  ;;  %v3934_v54 = vmul.f32 %v11593_v48, %v3910_v15  ;;  %v3911_v21 = vmul.f32 %v3893_v52, %v3839_v60  ;;  %v3494_v60 = vmul.f32 %v8315_v30, %v11724_v62 }
 0x4d4   :  { %v2767_v23 = vpop.f32.mrb[73].mxu0  ;;  %v3495_v52 = vmul.f32 %v8315_v30, %v11729_v31 }
 0x4d5   :  { %v4295_v13 = vpack.c.bf16 %v4083_v24, %v4082_v58  ;;  %v11746_v1 = vpop.f32.mrb[74].mxu0  ;;  %v3958_v28 = vadd.f32 %v11599_v53, %v3934_v54  ;;  %v3935_v51 = vmul.f32 %v11593_v48, %v3911_v21  ;;  %v3506_v58 = vmul.f32 %v8316_v9, %v11724_v62 }
 0x4d6   :  { %v9146_v27 = vpop.eup %9145  ;;  %v2770_v34 = vpop.f32.mrb[75].mxu0  ;;  %v3507_v24 = vmul.f32 %v8316_v9, %v11729_v31 }
 0x4d7   :  { %v4066_v39 = vmul.f32 %v4035_v55, %v3958_v28  ;;  %8513 = vmatmul.mubr.msk.bf16.gmra.mrb[124].mxu1 %vm99_vm0, %v4295_v13  ;;  %v3959_v63 = vadd.f32 %v11599_v53, %v3935_v51  ;;  %v3894_v44 = vadd.f32 1.0, %v9146_v27  ;;  %v3496_v34 = vmul.f32 %v8315_v30, %v11743_v10 }
 0x4d8   :  { %v9148_v12 = vpop.eup %9147  ;;  %8516 = vmatprep.mubr.msk.bf16.mxu1 %vm9463_vm2, %v14859_v3 }
 0x4d9   :  { %v4084_v38 = vadd.f32 %v4066_v39, %v11512_v17  ;;  %v4067_v8 = vmul.f32 %v4040_v57, %v3959_v63  ;;  %v3912_v11 = vmul.f32 %v3894_v44, %v3840_v25  ;;  %v3895_v22 = vadd.f32 1.0, %v9148_v12  ;;  %v4050_v17 = vpop.permute.xlu0 %4049 }
 0x4da   :  { %v3508_v57 = vmul.f32 %v8316_v9, %v11743_v10  ;;  %v3497_v63 = vmul.f32 %v8315_v30, %v11746_v1  ;;  %v3509_v44 = vmul.f32 %v8316_v9, %v11746_v1 }
 0x4db   :  { %v4085_v33 = vadd.f32 %v4067_v8, %v11518_v19  ;;  %v11756_v14 = vpop.f32.mrb[76].mxu0  ;;  %v3936_v6 = vmul.f32 %v11593_v48, %v3912_v11  ;;  %v3913_v0 = vmul.f32 %v3895_v22, %v3841_v45 }
 0x4dc   :  { %v2775_v41 = vpop.f32.mrb[77].mxu0  ;;  %v3510_v10 = vmul.f32 %v8316_v9, %v11756_v14 }
 0x4dd   :  { %v4296_v36 = vpack.c.bf16 %v4085_v33, %v4084_v38  ;;  %v2776_v56 = vpop.f32.mrb[78].mxu0  ;;  %v3960_v43 = vadd.f32 %v11599_v53, %v3936_v6  ;;  %v3937_v49 = vmul.f32 %v11593_v48, %v3913_v0  ;;  %v3498_v41 = vmul.f32 %v8315_v30, %v11756_v14  ;;  %v8320_v14 = vld [vmem:[%s14698_s6 + $0x2] ss:$0 sm:$0xff] }
 0x4de   :  { %v2778_v47 = vpop.f32.mrb[79].mxu0 }
 0x4df   :  { %v4068_v5 = vmul.f32 %v4045_v16, %v3960_v43  ;;  %8517 = vmatmul.mubr.msk.bf16.gmra.mrb[128].mxu1 %vm99_vm0, %v4296_v36  ;;  %v3961_v19 = vadd.f32 %v11599_v53, %v3937_v49  ;;  %v8317_v53 = vld [vmem:[%s14697_s5 + $0x1] ss:$0 sm:$0xff]  ;;  %v3499_v49 = vmul.f32 %v8315_v30, %v2776_v56  ;;  %v3511_v47 = vmul.f32 %v8316_v9, %v2776_v56 }
 0x4e0   :  { %8520 = vmatprep.mubr.msk.bf16.mxu1 %vm9463_vm2, %v14859_v3 }
 0x4e1   :  { %v4086_v48 = vadd.f32 %v4068_v5, %v11527_v18  ;;  %v4069_v4 = vmul.f32 %v4050_v17, %v3961_v19 }
 0x4e3   :  { %v4087_v61 = vadd.f32 %v4069_v4, %v11530_v35  ;;  %v2781_v20 = vpop.f32.mrb[80].mxu0 }
 0x4e4   :  { %v3518_v29 = vmul.f32 %v8317_v53, %v2781_v20  ;;  %v3536_v15 = vmul.f32 %v8318_v37, %v2781_v20  ;;  %v2783_v18 = vpop.f32.mrb[81].mxu0  ;;  %v8319_v20 = vld [vmem:[%s14697_s5 + $0x2] ss:$0 sm:$0xff] }
 0x4e5   :  { %v4297_v54 = vpack.c.bf16 %v4087_v61, %v4086_v48  ;;  %v2784_v21 = vpop.f32.mrb[82].mxu0 }
 0x4e6   :  { %v3524_v23 = vadd.f32 %v3518_v29, %v3494_v60  ;;  %v3542_v55 = vadd.f32 %v3536_v15, %v3506_v58  ;;  %v3519_v13 = vmul.f32 %v8317_v53, %v2784_v21  ;;  %v3537_v28 = vmul.f32 %v8318_v37, %v2784_v21  ;;  %v2786_v51 = vpop.f32.mrb[83].mxu0 }
 0x4e7   :  { %8521 = vmatmul.mubr.msk.bf16.gmra.mrb[132].mxu1 %vm99_vm0, %v4297_v54 }
 0x4e8   :  { %v3525_v35 = vadd.f32 %v3519_v13, %v3495_v52  ;;  %v3543_v27 = vadd.f32 %v3537_v28, %v3507_v24  ;;  %8528 = vmatprep.mubr.msk.bf16.mxu1 %vm9463_vm2, %v14859_v3 }
 0x4eb   :  { %v2789_v62 = vpop.f32.mrb[84].mxu0 }
 0x4ec   :  { %v3520_v31 = vmul.f32 %v8317_v53, %v2789_v62  ;;  %v3538_v25 = vmul.f32 %v8318_v37, %v2789_v62  ;;  %v2791_v39 = vpop.f32.mrb[85].mxu0 }
 0x4ed   :  { %v2792_v12 = vpop.f32.mrb[86].mxu0 }
 0x4ee   :  { %v3526_v45 = vadd.f32 %v3520_v31, %v3496_v34  ;;  %v3544_v38 = vadd.f32 %v3538_v25, %v3508_v57  ;;  %v3521_v8 = vmul.f32 %v8317_v53, %v2792_v12  ;;  %v3539_v11 = vmul.f32 %v8318_v37, %v2792_v12  ;;  %v2794_v22 = vpop.f32.mrb[87].mxu0 }
 0x4f0   :  { %v3527_v33 = vadd.f32 %v3521_v8, %v3497_v63  ;;  %v3545_v6 = vadd.f32 %v3539_v11, %v3509_v44 }
 0x4f3   :  { %v2797_v0 = vpop.f32.mrb[88].mxu0 }
 0x4f4   :  { %v3522_v16 = vmul.f32 %v8317_v53, %v2797_v0  ;;  %v3540_v36 = vmul.f32 %v8318_v37, %v2797_v0  ;;  %v2799_v43 = vpop.f32.mrb[89].mxu0 }
 0x4f5   :  { %v2800_v17 = vpop.f32.mrb[90].mxu0 }
 0x4f6   :  { %v3528_v1 = vadd.f32 %v3522_v16, %v3498_v41  ;;  %v3546_v5 = vadd.f32 %v3540_v36, %v3510_v10  ;;  %v3523_v19 = vmul.f32 %v8317_v53, %v2800_v17  ;;  %v3541_v48 = vmul.f32 %v8318_v37, %v2800_v17  ;;  %v2802_v4 = vpop.f32.mrb[91].mxu0 }
 0x4f8   :  { %v3529_v50 = vadd.f32 %v3523_v19, %v3499_v49  ;;  %v3547_v61 = vadd.f32 %v3541_v48, %v3511_v47  ;;  %v11829_v19 = vld [vmem:[%s14697_s5 + $0x4] ss:$0 sm:$0xff] }
 0x4f9   :  { %v11834_v48 = vld [vmem:[%s14698_s6 + $0x4] ss:$0 sm:$0xff] }
 0x4fb   :  { %v2805_v60 = vpop.f32.mrb[92].mxu0 }
 0x4fc   :  { %v3554_v58 = vmul.f32 %v8319_v20, %v2805_v60  ;;  %v3572_v30 = vmul.f32 %v8320_v14, %v2805_v60  ;;  %v2807_v56 = vpop.f32.mrb[93].mxu0  ;;  %v11852_v60 = vmul.f32 %v11834_v48, %v11185_v32 }
 0x4fd   :  { %v2808_v9 = vpop.f32.mrb[94].mxu0  ;;  %v11860_v56 = vmul.f32 %v11834_v48, %v11193_v42 }
 0x4fe   :  { %v3560_v29 = vadd.f32 %v3554_v58, %v3524_v23  ;;  %v3578_v15 = vadd.f32 %v3572_v30, %v3542_v55  ;;  %v3555_v53 = vmul.f32 %v8319_v20, %v2808_v9  ;;  %v3573_v37 = vmul.f32 %v8320_v14, %v2808_v9  ;;  %v2810_v18 = vpop.f32.mrb[95].mxu0 }
 0x4ff   :  { %v11856_v30 = vmul.f32 %v11829_v19, %v11193_v42  ;;  %v14869_v18 = vld [vmem:[#allocation21_spill] sm:$0xff]  ;;  %v8327_v42 = vld [vmem:[%s14697_s5 + $0x6] ss:$0 sm:$0xff] }
 0x500   :  { %v3561_v52 = vadd.f32 %v3555_v53, %v3525_v35  ;;  %v3579_v24 = vadd.f32 %v3573_v37, %v3543_v27  ;;  %v14868_v53 = vld [vmem:[#allocation20_spill] sm:$0xff] }
 0x503   :  { %v2813_v54 = vpop.f32.mrb[96].mxu0 }
 0x504   :  { %v3556_v21 = vmul.f32 %v8319_v20, %v2813_v54  ;;  %v3574_v13 = vmul.f32 %v8320_v14, %v2813_v54  ;;  %v2815_v28 = vpop.f32.mrb[97].mxu0 }
 0x505   :  { %v2816_v51 = vpop.f32.mrb[98].mxu0 }
 0x506   :  { %v3562_v62 = vadd.f32 %v3556_v21, %v3526_v45  ;;  %v3580_v34 = vadd.f32 %v3574_v13, %v3544_v38  ;;  %v3557_v57 = vmul.f32 %v8319_v20, %v2816_v51  ;;  %v3575_v31 = vmul.f32 %v8320_v14, %v2816_v51  ;;  %v2818_v25 = vpop.f32.mrb[99].mxu0  ;;  %v11811_v38 = vld [vmem:[%s14697_s5 + $0x3] ss:$0 sm:$0xff]  ;;  %v8328_v21 = vld [vmem:[%s14698_s6 + $0x6] ss:$0 sm:$0xff] }
 0x507   :  { %v14870_v25 = vld [vmem:[#allocation22_spill] sm:$0xff] }
 0x508   :  { %v3563_v39 = vadd.f32 %v3557_v57, %v3527_v33  ;;  %v3581_v63 = vadd.f32 %v3575_v31, %v3545_v6  ;;  %v11816_v33 = vld [vmem:[%s14698_s6 + $0x3] ss:$0 sm:$0xff] }
 0x50b   :  { %v2821_v44 = vpop.f32.mrb[100].mxu0 }
 0x50c   :  { %v3558_v23 = vmul.f32 %v8319_v20, %v2821_v44  ;;  %v3576_v55 = vmul.f32 %v8320_v14, %v2821_v44  ;;  %v2823_v12 = vpop.f32.mrb[101].mxu0 }
 0x50d   :  { %v2824_v8 = vpop.f32.mrb[102].mxu0 }
 0x50e   :  { %v11800_v11 = vadd.f32 %v3558_v23, %v3528_v1  ;;  %v11802_v35 = vadd.f32 %v3576_v55, %v3546_v5  ;;  %v3559_v27 = vmul.f32 %v8319_v20, %v2824_v8  ;;  %v3577_v22 = vmul.f32 %v8320_v14, %v2824_v8  ;;  %v2826_v0 = vpop.f32.mrb[103].mxu0  ;;  %v8326_v20 = vld [vmem:[%s14698_s6 + $0x5] ss:$0 sm:$0xff]  ;;  %v14871_v55 = vld [vmem:[#allocation23_spill] sm:$0xff] }
 0x50f   :  { %v11848_v14 = vmul.f32 %v11829_v19, %v11185_v32  ;;  %v11868_v32 = vmul.f32 %v8326_v20, %v14868_v53  ;;  %v11892_v23 = vmul.f32 %v8326_v20, %v14870_v25  ;;  %v11898_v8 = vmul.f32 %v8326_v20, %v14871_v55 }
 0x510   :  { %v11804_v41 = vadd.f32 %v3559_v27, %v3529_v50  ;;  %v11806_v45 = vadd.f32 %v3577_v22, %v3547_v61  ;;  %v8325_v61 = vld [vmem:[%s14697_s5 + $0x5] ss:$0 sm:$0xff] }
 0x511   :  { %v11865_v37 = vmul.f32 %v8325_v61, %v14868_v53  ;;  %v11889_v44 = vmul.f32 %v8325_v61, %v14870_v25  ;;  %v11895_v12 = vmul.f32 %v8325_v61, %v14871_v55 }
 0x513   :  { %v2829_v6 = vpop.f32.mrb[104].mxu0 }
 0x514   :  { %v3590_v10 = vmul.f32 %v11811_v38, %v2829_v6  ;;  %v3608_v16 = vmul.f32 %v11816_v33, %v2829_v6  ;;  %v2831_v36 = vpop.f32.mrb[105].mxu0  ;;  %v14873_v6 = vld [vmem:[#allocation25_spill] sm:$0xff] }
 0x515   :  { %v2832_v43 = vpop.f32.mrb[106].mxu0  ;;  %v14874_v36 = vld [vmem:[#allocation26_spill] sm:$0xff] }
 0x516   :  { %v11820_v49 = vadd.f32 %v3590_v10, %v3560_v29  ;;  %v11822_v47 = vadd.f32 %v3608_v16, %v3578_v15  ;;  %v3591_v17 = vmul.f32 %v11811_v38, %v2832_v43  ;;  %v3609_v1 = vmul.f32 %v11816_v33, %v2832_v43  ;;  %v2834_v5 = vpop.f32.mrb[107].mxu0 }
 0x517   :  { %v3667_v10 = vmul.f32 %v8325_v61, %v14873_v6  ;;  %v3685_v16 = vmul.f32 %v8326_v20, %v14873_v6  ;;  %v11909_v43 = vmul.f32 %v8327_v42, %v14874_v36 }
 0x518   :  { %v11836_v4 = vadd.f32 %v3591_v17, %v3561_v52  ;;  %v11838_v50 = vadd.f32 %v3609_v1, %v3579_v24  ;;  %v11871_v52 = vmul.f32 %v8325_v61, %v14869_v18  ;;  %v11874_v24 = vmul.f32 %v8326_v20, %v14869_v18  ;;  %v14875_v1 = vld [vmem:[#allocation27_spill] sm:$0xff]  ;;  %v14880_v18 = vld [vmem:[#allocation30_spill] sm:$0xff] }
 0x519   :  { %v11912_v17 = vmul.f32 %v8328_v21, %v14874_v36  ;;  %v11915_v5 = vmul.f32 %v8327_v42, %v14875_v1 }
 0x51b   :  { %v2837_v58 = vpop.f32.mrb[108].mxu0 }
 0x51c   :  { %v3592_v9 = vmul.f32 %v11811_v38, %v2837_v58  ;;  %v3610_v29 = vmul.f32 %v11816_v33, %v2837_v58  ;;  %v2839_v15 = vpop.f32.mrb[109].mxu0  ;;  %v11918_v58 = vmul.f32 %v8328_v21, %v14875_v1  ;;  %v14882_v1 = vld [vmem:[#allocation32_spill] sm:$0xff] }
 0x51d   :  { %v2840_v54 = vpop.f32.mrb[110].mxu0 }
 0x51e   :  { %v11882_v13 = vadd.f32 %v3592_v9, %v3562_v62  ;;  %v11884_v28 = vadd.f32 %v3610_v29, %v3580_v34  ;;  %v3593_v51 = vmul.f32 %v11811_v38, %v2840_v54  ;;  %v3611_v57 = vmul.f32 %v11816_v33, %v2840_v54  ;;  %v2842_v31 = vpop.f32.mrb[111].mxu0  ;;  %v14872_v62 = vld [vmem:[#allocation24_spill] sm:$0xff]  ;;  %v14877_v29 = vld [vmem:[#allocation29_spill] sm:$0xff] }
 0x51f   :  { %v3666_v34 = vmul.f32 %v8325_v61, %v14872_v62  ;;  %v3684_v27 = vmul.f32 %v8326_v20, %v14872_v62  ;;  %v8329_v61 = vld [vmem:[%s14697_s5 + $0x7] ss:$0 sm:$0xff]  ;;  %v11933_v15 = vmul.f32 %v8327_v42, %v14877_v29  ;;  %v11936_v53 = vmul.f32 %v8328_v21, %v14877_v29  ;;  %v14881_v31 = vld [vmem:[#allocation31_spill] sm:$0xff] }
 0x520   :  { %v11902_v22 = vadd.f32 %v3593_v51, %v3563_v39  ;;  %v11904_v0 = vadd.f32 %v3611_v57, %v3581_v63  ;;  %v14876_v39 = vld [vmem:[#allocation28_spill] sm:$0xff]  ;;  %v8330_v20 = vld [vmem:[%s14698_s6 + $0x7] ss:$0 sm:$0xff]  ;;  %v3702_v54 = vmul.f32 %v8327_v42, %v14880_v18  ;;  %v3720_v51 = vmul.f32 %v8328_v21, %v14880_v18 }
 0x521   :  { %v11921_v9 = vmul.f32 %v8327_v42, %v14876_v39  ;;  %v11924_v63 = vmul.f32 %v8328_v21, %v14876_v39  ;;  %14878 = vst [vmem:[#allocation20_spill] sm:$0xff] %v11933_v15  ;;  %14879 = vst [vmem:[#allocation21_spill] sm:$0xff] %v11936_v53  ;;  %v3703_v25 = vmul.f32 %v8327_v42, %v14881_v31 }
 0x522   :  { %v3721_v55 = vmul.f32 %v8328_v21, %v14881_v31  ;;  %v11945_v39 = vmul.f32 %v8329_v61, %v14882_v1  ;;  %v11948_v29 = vmul.f32 %v8330_v20, %v14882_v1  ;;  %v11951_v3 = vmul.f32 %v8329_v61, %v14883_v7 }
 0x523   :  { %v2845_v57 = vpop.f32.mrb[112].mxu0  ;;  %v11954_v18 = vmul.f32 %v8330_v20, %v14883_v7  ;;  %v11961_v26 = vmul.f32 %v8329_v61, %v14884_v59  ;;  %v11964_v1 = vmul.f32 %v8330_v20, %v14884_v59  ;;  %v11967_v2 = vmul.f32 %v8329_v61, %v14887_v40 }
 0x524   :  { %v3594_v62 = vmul.f32 %v11811_v38, %v2845_v57  ;;  %v3612_v6 = vmul.f32 %v11816_v33, %v2845_v57  ;;  %v2847_v36 = vpop.f32.mrb[113].mxu0  ;;  %v11970_v7 = vmul.f32 %v8330_v20, %v14887_v40  ;;  %v14890_v40 = vld [vmem:[#allocation36_spill] sm:$0xff] }
 0x525   :  { %v2848_v42 = vpop.f32.mrb[114].mxu0  ;;  %14885 = vst [vmem:[#allocation22_spill] sm:$0xff] %v11961_v26  ;;  %14886 = vst [vmem:[#allocation23_spill] sm:$0xff] %v11964_v1 }
 0x526   :  { %v3600_v21 = vadd.f32 %v3594_v62, %v11800_v11  ;;  %v3618_v31 = vadd.f32 %v3612_v6, %v11802_v35  ;;  %v3595_v57 = vmul.f32 %v11811_v38, %v2848_v42  ;;  %v3613_v36 = vmul.f32 %v11816_v33, %v2848_v42  ;;  %v2850_v46 = vpop.f32.mrb[115].mxu0  ;;  %14888 = vst [vmem:[#allocation24_spill] sm:$0xff] %v11967_v2  ;;  %v11975_v11 = vld [vmem:[%s14697_s5 + $0x8] ss:$0 sm:$0xff]  ;;  %v14891_v42 = vld [vmem:[#allocation37_spill] sm:$0xff] }
 0x527   :  { %14889 = vst [vmem:[#allocation25_spill] sm:$0xff] %v11970_v7  ;;  %v11980_v46 = vld [vmem:[%s14698_s6 + $0x8] ss:$0 sm:$0xff]  ;;  %v3738_v62 = vmul.f32 %v8329_v61, %v14890_v40  ;;  %v3756_v6 = vmul.f32 %v8330_v20, %v14890_v40  ;;  %v3739_v7 = vmul.f32 %v8329_v61, %v14891_v42  ;;  %v3757_v2 = vmul.f32 %v8330_v20, %v14891_v42 }
 0x528   :  { %v3636_v35 = vadd.f32 %v11848_v14, %v3600_v21  ;;  %v3654_v59 = vadd.f32 %v11852_v60, %v3618_v31  ;;  %v3601_v38 = vadd.f32 %v3595_v57, %v11804_v41  ;;  %v3619_v33 = vadd.f32 %v3613_v36, %v11806_v45  ;;  %v14892_v21 = vld [vmem:[#allocation38_spill] sm:$0xff] }
 0x529   :  { %v3770_v60 = vmul.f32 %v11975_v11, %v14892_v21  ;;  %v3788_v41 = vmul.f32 %v11980_v46, %v14892_v21  ;;  %v14893_v45 = vld [vmem:[#allocation42_spill] sm:$0xff] }
 0x52a   :  { %v3672_v53 = vadd.f32 %v3666_v34, %v3636_v35  ;;  %v3690_v15 = vadd.f32 %v3684_v27, %v3654_v59  ;;  %v3637_v1 = vadd.f32 %v11856_v30, %v3601_v38  ;;  %v3655_v14 = vadd.f32 %v11860_v56, %v3619_v33  ;;  %v14894_v35 = vld [vmem:[#allocation43_spill] sm:$0xff] }
 0x52b   :  { %v3774_v31 = vmul.f32 %v11975_v11, %v14893_v45  ;;  %v3792_v61 = vmul.f32 %v11980_v46, %v14893_v45  ;;  %v2853_v57 = vpop.f32.mrb[116].mxu0  ;;  %v3775_v56 = vmul.f32 %v11975_v11, %v14894_v35  ;;  %v3793_v59 = vmul.f32 %v11980_v46, %v14894_v35 }
 0x52c   :  { %v3708_v20 = vadd.f32 %v3702_v54, %v3672_v53  ;;  %v3726_v34 = vadd.f32 %v3720_v51, %v3690_v15  ;;  %v3673_v27 = vadd.f32 %v3667_v10, %v3637_v1  ;;  %v3691_v36 = vadd.f32 %v3685_v16, %v3655_v14  ;;  %v2855_v30 = vpop.f32.mrb[117].mxu0 }
 0x52d   :  { %v3626_v38 = vmul.f32 %v11829_v19, %v2853_v57  ;;  %v3644_v33 = vmul.f32 %v11834_v48, %v2853_v57  ;;  %v2856_v40 = vpop.f32.mrb[118].mxu0 }
 0x52e   :  { %v3744_v42 = vadd.f32 %v3738_v62, %v3708_v20  ;;  %v3762_v21 = vadd.f32 %v3756_v6, %v3726_v34  ;;  %v3709_v45 = vadd.f32 %v3703_v25, %v3673_v27  ;;  %v3727_v26 = vadd.f32 %v3721_v55, %v3691_v36  ;;  %v2858_v53 = vpop.f32.mrb[119].mxu0 }
 0x52f   :  { %v3632_v10 = vadd.f32 %v3626_v38, %v11820_v49  ;;  %v3650_v16 = vadd.f32 %v3644_v33, %v11822_v47  ;;  %v3627_v15 = vmul.f32 %v11829_v19, %v2856_v40  ;;  %v3645_v54 = vmul.f32 %v11834_v48, %v2856_v40  ;;  %v14895_v49 = vld [vmem:[#allocation39_spill] sm:$0xff] }
 0x530   :  { %v3780_v51 = vadd.f32 %v3774_v31, %v3744_v42  ;;  %v12010_v1 = vadd.f32 %v3792_v61, %v3762_v21  ;;  %v3745_v14 = vadd.f32 %v3739_v7, %v3709_v45  ;;  %v3763_v30 = vadd.f32 %v3757_v2, %v3727_v26 }
 0x531   :  { %v3668_v57 = vadd.f32 %v11865_v37, %v3632_v10  ;;  %v3686_v62 = vadd.f32 %v11868_v32, %v3650_v16  ;;  %v3633_v25 = vadd.f32 %v3627_v15, %v11836_v4  ;;  %v3651_v55 = vadd.f32 %v3645_v54, %v11838_v50  ;;  %v14896_v50 = vld [vmem:[#allocation40_spill] sm:$0xff]  ;;  %v14898_v54 = vld [vmem:[#allocation22_spill] sm:$0xff] }
 0x532   :  { %v3771_v47 = vmul.f32 %v11975_v11, %v14895_v49  ;;  %v3789_v6 = vmul.f32 %v11980_v46, %v14895_v49  ;;  %v12020_v20 = vadd.f32 %v3775_v56, %v3745_v14  ;;  %v12022_v31 = vadd.f32 %v3793_v59, %v3763_v30  ;;  %v14899_v30 = vld [vmem:[#allocation23_spill] sm:$0xff] }
 0x533   :  { %v3704_v2 = vadd.f32 %v11909_v43, %v3668_v57  ;;  %v3722_v26 = vadd.f32 %v11912_v17, %v3686_v62  ;;  %v3669_v37 = vadd.f32 %v11871_v52, %v3633_v25  ;;  %v3687_v4 = vadd.f32 %v11874_v24, %v3651_v55  ;;  %v2861_v32 = vpop.f32.mrb[120].mxu0  ;;  %v14900_v62 = vld [vmem:[#allocation20_spill] sm:$0xff]  ;;  %v14901_v55 = vld [vmem:[#allocation21_spill] sm:$0xff] }
 0x534   :  { %v3772_v7 = vmul.f32 %v11975_v11, %v14896_v50  ;;  %v3790_v61 = vmul.f32 %v11980_v46, %v14896_v50  ;;  %v3628_v34 = vmul.f32 %v11829_v19, %v2861_v32  ;;  %v3646_v27 = vmul.f32 %v11834_v48, %v2861_v32  ;;  %v2863_v36 = vpop.f32.mrb[121].mxu0 }
 0x535   :  { %v3740_v43 = vadd.f32 %v11945_v39, %v3704_v2  ;;  %v3758_v17 = vadd.f32 %v11948_v29, %v3722_v26  ;;  %v3705_v52 = vadd.f32 %v11915_v5, %v3669_v37  ;;  %v3723_v24 = vadd.f32 %v11918_v58, %v3687_v4  ;;  %v2864_v35 = vpop.f32.mrb[122].mxu0  ;;  %v14903_v2 = vld [vmem:[#allocation25_spill] sm:$0xff] }
 0x536   :  { %v3634_v56 = vadd.f32 %v3628_v34, %v11882_v13  ;;  %v3652_v59 = vadd.f32 %v3646_v27, %v11884_v28  ;;  %v3629_v38 = vmul.f32 %v11829_v19, %v2864_v35  ;;  %v3647_v33 = vmul.f32 %v11834_v48, %v2864_v35  ;;  %v2866_v40 = vpop.f32.mrb[123].mxu0  ;;  %v8336_v19 = vld [vmem:[%s14860_s30 + $0x1] ss:$0 sm:$0xff]  ;;  %v8339_v48 = vld [vmem:[%s14860_s30 + $0x2] ss:$0 sm:$0xff] }
 0x537   :  { %v3776_v42 = vadd.f32 %v3770_v60, %v3740_v43  ;;  %v3794_v21 = vadd.f32 %v3788_v41, %v3758_v17  ;;  %v3741_v39 = vadd.f32 %v11951_v3, %v3705_v52  ;;  %v3759_v29 = vadd.f32 %v11954_v18, %v3723_v24  ;;  %v14897_v41 = vld [vmem:[#allocation41_spill] sm:$0xff] }
 0x538   :  { %v3670_v5 = vadd.f32 %v11889_v44, %v3634_v56  ;;  %v3688_v58 = vadd.f32 %v11892_v23, %v3652_v59  ;;  %v3635_v45 = vadd.f32 %v3629_v38, %v11902_v22  ;;  %v3653_v13 = vadd.f32 %v3647_v33, %v11904_v0 }
 0x539   :  { %v3777_v28 = vadd.f32 %v3771_v47, %v3741_v39  ;;  %v3795_v3 = vadd.f32 %v3789_v6, %v3759_v29  ;;  %v4094_v60 = vadd.f32 %v8336_v19, %v3776_v42  ;;  %v4202_v18 = vadd.f32 %v8339_v48, %v3794_v21 }
 0x53a   :  { %v3706_v44 = vadd.f32 %v11921_v9, %v3670_v5  ;;  %v3724_v23 = vadd.f32 %v11924_v63, %v3688_v58  ;;  %v3671_v22 = vadd.f32 %v11895_v12, %v3635_v45  ;;  %v3689_v0 = vadd.f32 %v11898_v8, %v3653_v13  ;;  %v4157_v58 = vpop.permute.xlu1 %4156 }
 0x53b   :  { %v3773_v53 = vmul.f32 %v11975_v11, %v14897_v41  ;;  %v4106_v10 = vmul.f32 0.70710677, %v4094_v60  ;;  %v4214_v16 = vmul.f32 0.70710677, %v4202_v18  ;;  %v4098_v15 = vadd.f32 %v8336_v19, %v3780_v51  ;;  %v14902_v11 = vld [vmem:[#allocation24_spill] sm:$0xff] }
 0x53c   :  { %v3742_v14 = vadd.f32 %v14898_v54, %v3706_v44  ;;  %v3760_v57 = vadd.f32 %v14899_v30, %v3724_v23  ;;  %v3707_v25 = vadd.f32 %v14900_v62, %v3671_v22  ;;  %v3725_v9 = vadd.f32 %v14901_v55, %v3689_v0  ;;  %v12090_v22 = vld [vmem:[%s14696_s9 + $0x1] ss:$0 sm:$0xff] }
 0x53d   :  { %v3791_v63 = vmul.f32 %v11980_v46, %v14897_v41  ;;  %9149 = verf.f32 %v4106_v10  ;;  %v4095_v12 = vadd.f32 %v8336_v19, %v3777_v28  ;;  %v4203_v8 = vadd.f32 %v8339_v48, %v3795_v3  ;;  %v12084_v3 = vld [vmem:[%s14861_s26 + $0x2] ss:$0 sm:$0xff] }
 0x53e   :  { %v3778_v49 = vadd.f32 %v3772_v7, %v3742_v14  ;;  %v3796_v47 = vadd.f32 %v3790_v61, %v3760_v57  ;;  %v3743_v6 = vadd.f32 %v14902_v11, %v3707_v25  ;;  %v3761_v51 = vadd.f32 %v14903_v2, %v3725_v9  ;;  %v12097_v57 = vld [vmem:[%s14696_s9 + $0x2] ss:$0 sm:$0xff] }
 0x53f   :  { %9151 = verf.f32 %v4214_v16  ;;  %v4107_v26 = vmul.f32 0.70710677, %v4095_v12  ;;  %v4110_v37 = vmul.f32 0.70710677, %v4098_v15  ;;  %v4215_v50 = vmul.f32 0.70710677, %v4203_v8 }
 0x540   :  { %v3779_v4 = vadd.f32 %v3773_v53, %v3743_v6  ;;  %v3797_v32 = vadd.f32 %v3791_v63, %v3761_v51  ;;  %v4096_v34 = vadd.f32 %v8336_v19, %v3778_v49  ;;  %v4204_v27 = vadd.f32 %v8339_v48, %v3796_v47  ;;  %v4167_v6 = vpop.permute.xlu1 %4166 }
 0x541   :  { %9153 = verf.f32 %v4107_v26  ;;  %v4206_v46 = vadd.f32 %v8339_v48, %v12010_v1  ;;  %v4099_v52 = vadd.f32 %v8336_v19, %v12020_v20  ;;  %v12071_v56 = vadd.f32 %v8339_v48, %v12022_v31  ;;  %v12077_v31 = vld [vmem:[%s14861_s26 + $0x1] ss:$0 sm:$0xff] }
 0x542   :  { %9155 = verf.f32 %v4215_v50  ;;  %v4108_v36 = vmul.f32 0.70710677, %v4096_v34  ;;  %v4097_v43 = vadd.f32 %v8336_v19, %v3779_v4  ;;  %v4216_v7 = vmul.f32 0.70710677, %v4204_v27  ;;  %v4162_v4 = vpop.permute.xlu0 %4161 }
 0x543   :  { %v4205_v61 = vadd.f32 %v8339_v48, %v3797_v32  ;;  %9157 = verf.f32 %v4110_v37  ;;  %v4218_v35 = vmul.f32 0.70710677, %v4206_v46  ;;  %v4100_v1 = vmul.f32 0.5, %v4094_v60  ;;  %v14904_v32 = vld [vmem:[#allocation44_spill] sm:$0xff] }
 0x544   :  { %9159 = verf.f32 %v4108_v36  ;;  %v4109_v17 = vmul.f32 0.70710677, %v4097_v43  ;;  %v4111_v33 = vmul.f32 0.70710677, %v4099_v52  ;;  %v4219_v42 = vmul.f32 0.70710677, %v12071_v56 }
 0x545   :  { %9161 = verf.f32 %v4216_v7  ;;  %v4217_v24 = vmul.f32 0.70710677, %v4205_v61  ;;  %v4208_v39 = vmul.f32 0.5, %v4202_v18  ;;  %v4104_v20 = vmul.f32 0.5, %v4098_v15 }
 0x546   :  { %9163 = verf.f32 %v4109_v17  ;;  %v4101_v45 = vmul.f32 0.5, %v4095_v12  ;;  %v4209_v13 = vmul.f32 0.5, %v4203_v8  ;;  %v4102_v19 = vmul.f32 0.5, %v4096_v34 }
 0x547   :  { %v9150_v59 = vpop.eup %9149  ;;  %9165 = verf.f32 %v4217_v24  ;;  %v12079_v48 = vmul.f32 0.5, %v4206_v46  ;;  %v4210_v41 = vmul.f32 0.5, %v4204_v27  ;;  %v4103_v53 = vmul.f32 0.5, %v4097_v43 }
 0x548   :  { %v4118_v38 = vadd.f32 1.0, %v9150_v59  ;;  %9167 = verf.f32 %v4218_v35  ;;  %v4211_v55 = vmul.f32 0.5, %v4205_v61  ;;  %v12099_v9 = vmul.f32 0.5, %v4099_v52 }
 0x549   :  { %v9152_v40 = vpop.eup %9151  ;;  %9169 = verf.f32 %v4111_v33 }
 0x54a   :  { %v4124_v21 = vmul.f32 %v4118_v38, %v4100_v1  ;;  %v4226_v29 = vadd.f32 1.0, %v9152_v40  ;;  %9171 = verf.f32 %v4219_v42 }
 0x54b   :  { %v9154_v5 = vpop.eup %9153 }
 0x54c   :  { %v9156_v28 = vpop.eup %9155  ;;  %v4136_v60 = vmul.f32 %v12077_v31, %v4124_v21  ;;  %v4232_v18 = vmul.f32 %v4226_v29, %v4208_v39  ;;  %v4119_v44 = vadd.f32 1.0, %v9154_v5  ;;  %v14905_v21 = vld [vmem:[#allocation45_spill] sm:$0xff] }
 0x54d   :  { %v9158_v23 = vpop.eup %9157  ;;  %v4227_v0 = vadd.f32 1.0, %v9156_v28 }
 0x54e   :  { %v9160_v10 = vpop.eup %9159  ;;  %v4148_v16 = vadd.f32 %v12090_v22, %v4136_v60  ;;  %v4244_v15 = vmul.f32 %v12084_v3, %v4232_v18  ;;  %v4125_v54 = vmul.f32 %v4119_v44, %v4101_v45  ;;  %v4122_v14 = vadd.f32 1.0, %v9158_v23  ;;  %v4177_v45 = vpop.permute.xlu1 %4176  ;;  %v9067_v18 = vld [vmem:[%s14833_s8 + $0x20] sm:$0xff]  }
 0x54f   :  { %v9162_v30 = vpop.eup %9161  ;;  %v4233_v62 = vmul.f32 %v4227_v0, %v4209_v13  ;;  %v4120_v25 = vadd.f32 1.0, %v9160_v10  ;;  %v4172_v44 = vpop.permute.xlu0 %4171 }
 0x550   :  { %v9164_v63 = vpop.eup %9163  ;;  %v4184_v12 = vmul.f32 %v4157_v58, %v4148_v16  ;;  %v4256_v8 = vadd.f32 %v12097_v57, %v4244_v15  ;;  %v4137_v49 = vmul.f32 %v12077_v31, %v4125_v54  ;;  %v4228_v47 = vadd.f32 1.0, %v9162_v30  ;;  %v14906_v16 = vld [vmem:[#allocation46_spill] sm:$0xff] }
 0x551   :  { %v9166_v11 = vpop.eup %9165  ;;  %v4245_v2 = vmul.f32 %v12084_v3, %v4233_v62  ;;  %v4126_v51 = vmul.f32 %v4120_v25, %v4102_v19  ;;  %v4121_v26 = vadd.f32 1.0, %v9164_v63  ;;  %v4128_v37 = vmul.f32 %v4122_v14, %v4104_v20  ;;  %v14907_v62 = vld [vmem:[#allocation48_spill] sm:$0xff] }
 0x552   :  { %v4190_v50 = vadd.f32 %v4184_v12, %v14904_v32  ;;  %v4262_v34 = vmul.f32 %v4256_v8, %v4157_v58  ;;  %v4149_v27 = vadd.f32 %v12090_v22, %v4137_v49  ;;  %v4234_v46 = vmul.f32 %v4228_v47, %v4210_v41  ;;  %v9168_v36 = vpop.eup %9167  ;;  %v14908_v12 = vld [vmem:[#allocation47_spill] sm:$0xff] }
 0x553   :  { %v4257_v43 = vadd.f32 %v12097_v57, %v4245_v2  ;;  %v4138_v7 = vmul.f32 %v12077_v31, %v4126_v51  ;;  %v4127_v61 = vmul.f32 %v4121_v26, %v4103_v53  ;;  %v4229_v17 = vadd.f32 1.0, %v9166_v11  ;;  %v9170_v42 = vpop.eup %9169 }
 0x554   :  { %v12109_v52 = vadd.f32 %v4262_v34, %v14904_v32  ;;  %v4185_v24 = vmul.f32 %v4162_v4, %v4149_v27  ;;  %v4246_v35 = vmul.f32 %v12084_v3, %v4234_v46  ;;  %v4140_v59 = vmul.f32 %v12077_v31, %v4128_v37  ;;  %v9172_v58 = vpop.eup %9171 }
 0x555   :  { %v4263_v1 = vmul.f32 %v4257_v43, %v4162_v4  ;;  %v4150_v38 = vadd.f32 %v12090_v22, %v4138_v7  ;;  %v4139_v33 = vmul.f32 %v12077_v31, %v4127_v61  ;;  %v4235_v40 = vmul.f32 %v4229_v17, %v4211_v55 }
 0x556   :  { %v4191_v39 = vadd.f32 %v4185_v24, %v14905_v21  ;;  %v4258_v29 = vadd.f32 %v12097_v57, %v4246_v35  ;;  %v4152_v20 = vadd.f32 %v12090_v22, %v4140_v59  ;;  %v4230_v5 = vadd.f32 1.0, %v9168_v36 }
 0x557   :  { %v4269_v13 = vadd.f32 %v4263_v1, %v14905_v21  ;;  %v4186_v19 = vmul.f32 %v4167_v6, %v4150_v38  ;;  %v4151_v28 = vadd.f32 %v12090_v22, %v4139_v33  ;;  %v4247_v60 = vmul.f32 %v12084_v3, %v4235_v40 }
 0x558   :  { %v4448_v23 = vpack.c.bf16 %v4191_v39, %v4190_v50  ;;  %v4264_v0 = vmul.f32 %v4258_v29, %v4167_v6  ;;  %v4188_v41 = vmul.f32 %v4177_v45, %v4152_v20  ;;  %v4236_v53 = vmul.f32 %v4230_v5, %v12079_v48  ;;  %v9068_v6 = vld [vmem:[%s14833_s8 + $0x28] sm:$0xff]  }
 0x559   :  { %v4535_v10 = vpack.c.bf16 %v4269_v13, %v12109_v52  ;;  %v4192_v15 = vadd.f32 %v4186_v19, %v14906_v16  ;;  %v4187_v54 = vmul.f32 %v4172_v44, %v4151_v28  ;;  %v4259_v14 = vadd.f32 %v12097_v57, %v4247_v60 }
 0x55a   :  { %v4270_v30 = vadd.f32 %v4264_v0, %v14906_v16  ;;  %v4194_v25 = vadd.f32 %v4188_v41, %v14907_v62  ;;  %v4248_v55 = vmul.f32 %v12084_v3, %v4236_v53  ;;  %v4123_v63 = vadd.f32 1.0, %v9170_v42  ;;  %8529 = vmatmul.mubr.msk.bf16.vlgmr.msra.gmra.mrb[136].mxu1 %vm99_vm0, %v4448_v23 }
 0x55b   :  { %v4193_v8 = vadd.f32 %v4187_v54, %v14908_v12  ;;  %v4265_v49 = vmul.f32 %v4259_v14, %v4172_v44  ;;  %v4213_v48 = vmul.f32 0.5, %v12071_v56  ;;  %v4231_v47 = vadd.f32 1.0, %v9172_v58  ;;  %8541 = vmatpush3.bf16.msra.mxu1 %v9067_v18 }
 0x55c   :  { %v14909_v11 = vmov 0.0   ;;  %v4260_v2 = vadd.f32 %v12097_v57, %v4248_v55  ;;  %v4129_v51 = vmul.f32 %v4123_v63, %v12099_v9  ;;  %v14910_v36 = vmov 0   ;;  %v4182_v9 = vpop.permute.xlu0 %4181 }
 0x55d   :  { %8532 = vmatprep.mubr.msk.bf16.mxu1 %vm9463_vm2, %v14909_v11  ;;  %8542 = vmatprep.subr.bf16.mxu1 %v14909_v11  ;;  %v4271_v26 = vadd.f32 %v4265_v49, %v14908_v12  ;;  %v4449_v37 = vpack.c.bf16 %v4193_v8, %v4192_v15  ;;  %v4237_v4 = vmul.f32 %v4231_v47, %v4213_v48 }
 0x55e   :  { %v4266_v56 = vmul.f32 %v4260_v2, %v4177_v45  ;;  %v4141_v32 = vmul.f32 %v12077_v31, %v4129_v51  ;;  %v14911_v31 = vld [vmem:[#allocation49_spill] sm:$0xff] }
 0x55f   :  { %v4536_v50 = vpack.c.bf16 %v4271_v26, %v4270_v30  ;;  %v4249_v34 = vmul.f32 %v12084_v3, %v4237_v4  ;;  %8543 = vmatpush3.bf16.msra.mxu1 %v9068_v6 }
 0x560   :  { %v4272_v27 = vadd.f32 %v4266_v56, %v14907_v62  ;;  %v4153_v46 = vadd.f32 %v12090_v22, %v4141_v32  ;;  %4818 = vmatprep.subr.bf16.mxu1 %v14910_v36  ;;  %v12164_v22 = vld [vmem:[%s14699_s13] ss:$0 sm:$0xff] }
 0x561   :  { %v4261_v43 = vadd.f32 %v12097_v57, %v4249_v34 }
 0x562   :  { %v4189_v7 = vmul.f32 %v4182_v9, %v4153_v46  ;;  %8533 = vmatmul.mubr.msk.bf16.gmra.mrb[140].mxu1 %vm99_vm0, %v4449_v37 }
 0x563   :  { %v4267_v61 = vmul.f32 %v4261_v43, %v4182_v9  ;;  %8536 = vmatprep.mubr.msk.bf16.mxu1 %vm9463_vm2, %v14909_v11 }
 0x564   :  { %v4195_v17 = vadd.f32 %v4189_v7, %v14911_v31 }
 0x565   :  { %v4273_v3 = vadd.f32 %v4267_v61, %v14911_v31 }
 0x566   :  { %v4450_v52 = vpack.c.bf16 %v4195_v17, %v4194_v25 }
 0x567   :  { %v4537_v24 = vpack.c.bf16 %v4273_v3, %v4272_v27 }
 0x56a   :  { %8537 = vmatmul.mubr.msk.bf16.gmra.mrb[144].mxu1 %vm99_vm0, %v4450_v52 }
 0x56b   :  { %8544 = vmatprep.mubr.msk.bf16.mxu1 %vm9463_vm2, %v14909_v11 }
 0x572   :  { %8545 = vmatmul.mubr.msk.bf16.vlgmr.msra.gmra.mrb[148].mxu1 %vm99_vm0, %v4535_v10 }
 0x573   :  { %8548 = vmatprep.mubr.msk.bf16.mxu1 %vm9463_vm2, %v14909_v11 }
 0x57a   :  { %8549 = vmatmul.mubr.msk.bf16.gmra.mrb[152].mxu1 %vm99_vm0, %v4536_v50  ;;  %v4377_v57 = vpop.f32.mrb[100].mxu1 }
 0x57b   :  { %v8490_v35 = vpop.f32.mrb[101].mxu1  ;;  %8552 = vmatprep.mubr.msk.bf16.mxu1 %vm9463_vm2, %v14909_v11  ;;  %v12169_v1 = vadd.f32 %v12164_v22, %v4377_v57 }
 0x57c   :  { %v4380_v59 = vpop.f32.mrb[102].mxu1 }
 0x57d   :  { %v12172_v38 = vadd.f32 %v12164_v22, %v4380_v59  ;;  %v8491_v33 = vpop.f32.mrb[103].mxu1  ;;  %v8354_v59 = vld [vmem:[%s14699_s13 + $0x1] ss:$0 sm:$0xff] }
 0x582   :  { %8553 = vmatmul.mubr.msk.bf16.gmra.mrb[156].mxu1 %vm99_vm0, %v4537_v24  ;;  %v4385_v42 = vpop.f32.mrb[104].mxu1 }
 0x583   :  { %v8494_v21 = vpop.f32.mrb[105].mxu1  ;;  %4850 = vmatprep.mubr.bf16.mxu1 %v14910_v36  ;;  %v12179_v29 = vadd.f32 %v12164_v22, %v4385_v42  ;;  %v12248_v42 = vld [vmem:[%s14700_s14] ss:$0 sm:$0xff] }
 0x584   :  { %v4388_v39 = vpop.f32.mrb[106].mxu1  ;;  %v12253_v21 = vld [vmem:[%s14700_s14 + $0x1] ss:$0 sm:$0xff] }
 0x585   :  { %v12182_v20 = vadd.f32 %v12164_v22, %v4388_v39  ;;  %v8495_v5 = vpop.f32.mrb[107].mxu1 }
 0x586   :  { %v12258_v5 = vld [vmem:[%s14700_s14 + $0x2] ss:$0 sm:$0xff] }
 0x58a   :  { %v4393_v45 = vpop.f32.mrb[108].mxu1 }
 0x58b   :  { %v8498_v13 = vpop.f32.mrb[109].mxu1  ;;  %v12187_v28 = vadd.f32 %v12164_v22, %v4393_v45  ;;  %v12263_v45 = vld [vmem:[%s14700_s14 + $0x3] ss:$0 sm:$0xff] }
 0x58c   :  { %v4396_v19 = vpop.f32.mrb[110].mxu1 }
 0x58d   :  { %v12190_v60 = vadd.f32 %v12164_v22, %v4396_v19  ;;  %v8499_v18 = vpop.f32.mrb[111].mxu1 }
 0x592   :  { %v4401_v23 = vpop.f32.mrb[112].mxu1 }
 0x593   :  { %v8502_v0 = vpop.f32.mrb[113].mxu1  ;;  %v12195_v53 = vadd.f32 %v12164_v22, %v4401_v23 }
 0x594   :  { %v4404_v41 = vpop.f32.mrb[114].mxu1 }
 0x595   :  { %v12198_v10 = vadd.f32 %v12164_v22, %v4404_v41  ;;  %v8503_v16 = vpop.f32.mrb[115].mxu1 }
 0x59a   :  { %v4409_v54 = vpop.f32.mrb[116].mxu1 }
 0x59b   :  { %v8506_v14 = vpop.f32.mrb[117].mxu1  ;;  %v12203_v62 = vadd.f32 %v12164_v22, %v4409_v54 }
 0x59c   :  { %v4412_v30 = vpop.f32.mrb[118].mxu1 }
 0x59d   :  { %v12206_v25 = vadd.f32 %v12164_v22, %v4412_v30  ;;  %v8507_v55 = vpop.f32.mrb[119].mxu1 }
 0x5a2   :  { %v4417_v12 = vpop.f32.mrb[120].mxu1 }
 0x5a3   :  { %v8510_v8 = vpop.f32.mrb[121].mxu1  ;;  %v12211_v48 = vadd.f32 %v12164_v22, %v4417_v12 }
 0x5a4   :  { %v4420_v49 = vpop.f32.mrb[122].mxu1 }
 0x5a5   :  { %v12214_v47 = vadd.f32 %v12164_v22, %v4420_v49  ;;  %v8511_v6 = vpop.f32.mrb[123].mxu1 }
 0x5aa   :  { %v4425_v51 = vpop.f32.mrb[124].mxu1 }
 0x5ab   :  { %v8514_v26 = vpop.f32.mrb[125].mxu1  ;;  %v12219_v4 = vadd.f32 %v12164_v22, %v4425_v51 }
 0x5ac   :  { %v4428_v37 = vpop.f32.mrb[126].mxu1 }
 0x5ad   :  { %14912 = vst [vmem:[#allocation26_spill] sm:$0xff] %v12219_v4  ;;  %v12222_v56 = vadd.f32 %v12164_v22, %v4428_v37  ;;  %v8515_v32 = vpop.f32.mrb[127].mxu1 }
 0x5b2   :  { %v4433_v34 = vpop.f32.mrb[128].mxu1 }
 0x5b3   :  { %v8518_v27 = vpop.f32.mrb[129].mxu1  ;;  %v12227_v9 = vadd.f32 %v12164_v22, %v4433_v34 }
 0x5b4   :  { %v4436_v46 = vpop.f32.mrb[130].mxu1 }
 0x5b5   :  { %14913 = vst [vmem:[#allocation27_spill] sm:$0xff] %v12227_v9  ;;  %v12230_v43 = vadd.f32 %v12164_v22, %v4436_v46  ;;  %v8519_v7 = vpop.f32.mrb[131].mxu1 }
 0x5b7   :  { %14914 = vst [vmem:[#allocation28_spill] sm:$0xff] %v12230_v43 }
 0x5ba   :  { %v4441_v31 = vpop.f32.mrb[132].mxu1 }
 0x5bb   :  { %v12235_v17 = vadd.f32 %v12164_v22, %v4441_v31  ;;  %v8522_v3 = vpop.f32.mrb[133].mxu1 }
 0x5bc   :  { %v4444_v52 = vpop.f32.mrb[134].mxu1 }
 0x5bd   :  { %14915 = vst [vmem:[#allocation29_spill] sm:$0xff] %v12235_v17  ;;  %v12238_v24 = vadd.f32 %v12164_v22, %v4444_v52  ;;  %v8523_v57 = vpop.f32.mrb[135].mxu1 }
 0x5bf   :  { %14916 = vst [vmem:[#allocation30_spill] sm:$0xff] %v12238_v24 }
 0x62d   :  { %v4512_v33 = vpop.f32.mrb[136].mxu1 }
 0x62e   :  { %v4513_v22 = vadd.f32 %v8354_v59, %v4512_v33  ;;  %v8530_v39 = vpop.f32.mrb[137].mxu1 }
 0x62f   :  { %v4515_v13 = vpop.f32.mrb[138].mxu1 }
 0x630   :  { %v4516_v19 = vadd.f32 %v8354_v59, %v4515_v13  ;;  %v8531_v18 = vpop.f32.mrb[139].mxu1  ;;  %v4632_v23 = vmul.f32 %v12248_v42, %v4513_v22  ;;  %v12267_v0 = vmul.f32 %v12253_v21, %v4513_v22  ;;  %v12270_v41 = vmul.f32 %v12258_v5, %v4513_v22 }
 0x631   :  { %v12273_v16 = vmul.f32 %v12263_v45, %v4513_v22 }
 0x632   :  { %v4633_v54 = vmul.f32 %v12248_v42, %v4516_v19  ;;  %v12277_v14 = vmul.f32 %v12253_v21, %v4516_v19  ;;  %v12280_v30 = vmul.f32 %v12258_v5, %v4516_v19  ;;  %v12283_v55 = vmul.f32 %v12263_v45, %v4516_v19 }
 0x634   :  { %v4707_v12 = vpack.c.bf16 %v4633_v54, %v4632_v23  ;;  %v4710_v8 = vpack.c.bf16 %v12277_v14, %v12267_v0 }
 0x635   :  { %v4520_v51 = vpop.f32.mrb[140].mxu1 }
 0x636   :  { %v4521_v26 = vadd.f32 %v8354_v59, %v4520_v51  ;;  %v8534_v37 = vpop.f32.mrb[141].mxu1  ;;  %v4783_v32 = vsel %vm99_vm0, %v4707_v12, 0 }
 0x637   :  { %v4523_v34 = vpop.f32.mrb[142].mxu1  ;;  %4819 = vmatpush1.bf16.xpose.msra.mxu1 %v4783_v32 }
 0x638   :  { %v4524_v27 = vadd.f32 %v8354_v59, %v4523_v34  ;;  %v8535_v46 = vpop.f32.mrb[143].mxu1  ;;  %4820 = vmatprep.subr.bf16.mxu1 %v14910_v36  ;;  %v4634_v7 = vmul.f32 %v12248_v42, %v4521_v26  ;;  %v12295_v31 = vmul.f32 %v12253_v21, %v4521_v26  ;;  %v12298_v3 = vmul.f32 %v12258_v5, %v4521_v26 }
 0x639   :  { %v12301_v52 = vmul.f32 %v12263_v45, %v4521_v26 }
 0x63a   :  { %v4635_v57 = vmul.f32 %v12248_v42, %v4524_v27  ;;  %v12305_v33 = vmul.f32 %v12253_v21, %v4524_v27  ;;  %v12308_v22 = vmul.f32 %v12258_v5, %v4524_v27  ;;  %v12311_v39 = vmul.f32 %v12263_v45, %v4524_v27 }
 0x63c   :  { %v4708_v13 = vpack.c.bf16 %v4635_v57, %v4634_v7  ;;  %v14917_v24 = vpack.c.bf16 %v12305_v33, %v12295_v31 }
 0x63d   :  { %v4528_v54 = vpop.f32.mrb[144].mxu1 }
 0x63e   :  { %v4529_v12 = vadd.f32 %v8354_v59, %v4528_v54  ;;  %v8538_v51 = vpop.f32.mrb[145].mxu1  ;;  %v4786_v26 = vsel %vm99_vm0, %v4708_v13, 0  ;;  %v4795_v9 = vsel %vm99_vm0, %v14917_v24, 0 }
 0x63f   :  { %v4531_v37 = vpop.f32.mrb[146].mxu1  ;;  %4821 = vmatpush1.bf16.xpose.msra.mxu1 %v4786_v26  ;;  %v8360_v26 = vld [vmem:[%s14699_s13 + $0x2] ss:$0 sm:$0xff] }
 0x640   :  { %v4532_v32 = vadd.f32 %v8354_v59, %v4531_v37  ;;  %v8539_v34 = vpop.f32.mrb[147].mxu1  ;;  %4822 = vmatprep.subr.bf16.mxu1 %v14910_v36  ;;  %v4636_v27 = vmul.f32 %v12248_v42, %v4529_v12  ;;  %v12323_v46 = vmul.f32 %v12253_v21, %v4529_v12  ;;  %v12326_v7 = vmul.f32 %v12258_v5, %v4529_v12 }
 0x641   :  { %v12329_v57 = vmul.f32 %v12263_v45, %v4529_v12 }
 0x642   :  { %v4637_v54 = vmul.f32 %v12248_v42, %v4532_v32  ;;  %v12333_v13 = vmul.f32 %v12253_v21, %v4532_v32  ;;  %v12336_v59 = vmul.f32 %v12258_v5, %v4532_v32  ;;  %v12339_v51 = vmul.f32 %v12263_v45, %v4532_v32 }
 0x644   :  { %v4709_v37 = vpack.c.bf16 %v4637_v54, %v4636_v27 }
 0x645   :  { %v4599_v61 = vpop.f32.mrb[148].mxu1 }
 0x646   :  { %v4600_v50 = vadd.f32 %v8360_v26, %v4599_v61  ;;  %v8546_v2 = vpop.f32.mrb[149].mxu1  ;;  %v4789_v32 = vsel %vm99_vm0, %v4709_v37, 0 }
 0x647   :  { %v4602_v63 = vpop.f32.mrb[150].mxu1  ;;  %4823 = vmatpush1.bf16.xpose.msra.mxu1 %v4789_v32 }
 0x648   :  { %v12352_v15 = vmul.f32 %v12248_v42, %v4600_v50  ;;  %v12355_v27 = vmul.f32 %v12253_v21, %v4600_v50  ;;  %v12358_v54 = vmul.f32 %v12258_v5, %v4600_v50  ;;  %v12361_v44 = vmul.f32 %v12263_v45, %v4600_v50  ;;  %v8547_v58 = vpop.f32.mrb[151].mxu1  ;;  %4824 = vmatprep.subr.bf16.mxu1 %v14910_v36 }
 0x649   :  { %v4603_v2 = vadd.f32 %v8360_v26, %v4602_v63 }
 0x64b   :  { %v12365_v61 = vmul.f32 %v12248_v42, %v4603_v2  ;;  %v12368_v37 = vmul.f32 %v12253_v21, %v4603_v2  ;;  %v12371_v32 = vmul.f32 %v12258_v5, %v4603_v2  ;;  %v12374_v40 = vmul.f32 %v12263_v45, %v4603_v2 }
 0x64c   :  { %v4792_v2 = vsel %vm99_vm0, %v4710_v8, 0 }
 0x64d   :  { %v4607_v35 = vpop.f32.mrb[152].mxu1 }
 0x64e   :  { %v4608_v6 = vadd.f32 %v8360_v26, %v4607_v35  ;;  %v8550_v34 = vpop.f32.mrb[153].mxu1 }
 0x64f   :  { %v4610_v18 = vpop.f32.mrb[154].mxu1  ;;  %4825 = vmatpush1.bf16.xpose.msra.mxu1 %v4792_v2 }
 0x650   :  { %v4676_v50 = vmul.f32 %v12248_v42, %v4608_v6  ;;  %v12390_v49 = vmul.f32 %v12253_v21, %v4608_v6  ;;  %v12393_v58 = vmul.f32 %v12258_v5, %v4608_v6  ;;  %v12396_v63 = vmul.f32 %v12263_v45, %v4608_v6  ;;  %v8551_v35 = vpop.f32.mrb[155].mxu1  ;;  %4826 = vmatprep.subr.bf16.mxu1 %v14910_v36 }
 0x651   :  { %v4611_v34 = vadd.f32 %v8360_v26, %v4610_v18 }
 0x653   :  { %v4677_v0 = vmul.f32 %v12248_v42, %v4611_v34  ;;  %v4683_v14 = vmul.f32 %v12253_v21, %v4611_v34  ;;  %v12402_v8 = vmul.f32 %v12258_v5, %v4611_v34  ;;  %v12405_v2 = vmul.f32 %v12263_v45, %v4611_v34 }
 0x655   :  { %v4615_v23 = vpop.f32.mrb[156].mxu1  ;;  %v6861_v12 = vpack.c.bf16 %v4677_v0, %v4676_v50  ;;  %v6864_v19 = vpack.c.bf16 %v4683_v14, %v12390_v49 }
 0x656   :  { %v4616_v35 = vadd.f32 %v8360_v26, %v4615_v23  ;;  %v8554_v17 = vpop.f32.mrb[157].mxu1 }
 0x657   :  { %v4618_v43 = vpop.f32.mrb[158].mxu1  ;;  %4827 = vmatpush1.bf16.xpose.msra.mxu1 %v4795_v9 }
 0x658   :  { %v4678_v34 = vmul.f32 %v12248_v42, %v4616_v35  ;;  %v4684_v50 = vmul.f32 %v12253_v21, %v4616_v35  ;;  %v4690_v49 = vmul.f32 %v12258_v5, %v4616_v35  ;;  %v12420_v0 = vmul.f32 %v12263_v45, %v4616_v35  ;;  %v8555_v14 = vpop.f32.mrb[159].mxu1  ;;  %4828 = vmatprep.subr.bf16.mxu1 %v14910_v36 }
 0x659   :  { %v4619_v17 = vadd.f32 %v8360_v26, %v4618_v43  ;;  %v14918_v35 = vpack.c.bf16 %v12333_v13, %v12323_v46  ;;  %v14919_v43 = vpack.c.bf16 %v12280_v30, %v12270_v41  ;;  %v14922_v41 = vpack.c.bf16 %v12283_v55, %v12273_v16 }
 0x65a   :  { %v14925_v16 = vpack.c.bf16 %v12172_v38, %v12169_v1  ;;  %v14926_v55 = vpack.c.bf16 %v12365_v61, %v12352_v15  ;;  %v14928_v1 = vpack.c.bf16 %v12368_v37, %v12355_v27  ;;  %v14929_v38 = vpack.c.bf16 %v12190_v60, %v12187_v28  ;;  %v4944_v27 = vld [vmem:[%s14701_s16 + $0x6] sm:$0x3] }
 0x65b   :  { %v4679_v23 = vmul.f32 %v12248_v42, %v4619_v17  ;;  %v4685_v31 = vmul.f32 %v12253_v21, %v4619_v17  ;;  %v4691_v24 = vmul.f32 %v12258_v5, %v4619_v17  ;;  %v4697_v9 = vmul.f32 %v12263_v45, %v4619_v17 }
 0x65c   :  { %v4798_v14 = vsel %vm99_vm0, %v14918_v35, 0  ;;  %v4801_v42 = vsel %vm99_vm0, %v14919_v43, 0  ;;  %v14920_v21 = vpack.c.bf16 %v12308_v22, %v12298_v3  ;;  %v14921_v45 = vpack.c.bf16 %v12336_v59, %v12326_v7 }
 0x65d   :  { %v6862_v33 = vpack.c.bf16 %v4679_v23, %v4678_v34  ;;  %v6865_v18 = vpack.c.bf16 %v4685_v31, %v4684_v50  ;;  %v6868_v6 = vpack.c.bf16 %v4691_v24, %v4690_v49  ;;  %v6871_v4 = vpack.c.bf16 %v4697_v9, %v12420_v0  ;;  %v4721_v49 = vld [vmem:[%s14702_s15 + $0x10] sm:$0xff] }
 0x65e   :  { %v4804_v5 = vsel %vm99_vm0, %v14920_v21, 0  ;;  %v4807_v46 = vsel %vm99_vm0, %v14921_v45, 0  ;;  %v4810_v30 = vsel %vm99_vm0, %v14922_v41, 0  ;;  %v14923_v3 = vpack.c.bf16 %v12311_v39, %v12301_v52  ;;  %v14943_v39 = vld [vmem:[#allocation29_spill] sm:$0xff] }
 0x65f   :  { %4829 = vmatpush1.bf16.xpose.msra.mxu1 %v4798_v14  ;;  %v14924_v7 = vpack.c.bf16 %v12339_v51, %v12329_v57  ;;  %v14927_v52 = vpack.c.bf16 %v12182_v20, %v12179_v29  ;;  %v14930_v29 = vpack.c.bf16 %v12198_v10, %v12195_v53  ;;  %v14931_v20 = vpack.c.bf16 %v12371_v32, %v12358_v54  ;;  %v4941_v57 = vld [vmem:[%s14701_s16] sm:$0x3]  ;;  %v4943_v51 = vld [vmem:[%s14701_s16 + $0x4] sm:$0x3] }
 0x660   :  { %4830 = vmatprep.subr.bf16.mxu1 %v14910_v36  ;;  %v4813_v22 = vsel %vm99_vm0, %v14923_v3, 0  ;;  %v14932_v28 = vpack.c.bf16 %v12402_v8, %v12393_v58  ;;  %v14933_v60 = vpack.c.bf16 %v12206_v25, %v12203_v62  ;;  %v14934_v53 = vpack.c.bf16 %v12374_v40, %v12361_v44  ;;  %v14937_v40 = vld [vmem:[#allocation26_spill] sm:$0xff]  ;;  %v14939_v62 = vld [vmem:[#allocation28_spill] sm:$0xff]  ;;  %v14940_v25 = vld [vmem:[#allocation27_spill] sm:$0xff] }
 0x661   :  { %v4816_v13 = vsel %vm99_vm0, %v14924_v7, 0  ;;  %v14935_v10 = vpack.c.bf16 %v12214_v47, %v12211_v48  ;;  %v14936_v15 = vpack.c.bf16 %v12405_v2, %v12396_v63  ;;  %v14938_v44 = vpack.c.bf16 %v12222_v56, %v14937_v40  ;;  %v14942_v47 = vld [vmem:[#allocation30_spill] sm:$0xff]  ;;  %v4720_v2 = vld [vmem:[%s14702_s15 + $0x8] sm:$0xff] }
 0x662   :  { %v14941_v48 = vpack.c.bf16 %v14939_v62, %v14940_v25  ;;  %v4942_v56 = vld [vmem:[%s14701_s16 + $0x2] sm:$0x3]  ;;  %v4992_v26 = vsub.f32 1.0, %v4941_v57  ;;  %v5713_v58 = vsub.f32 1.0, %v4944_v27 }
 0x663   :  { %v4719_v63 = vld [vmem:[%s14702_s15] sm:$0xff] }
 0x664   :  { %v4993_v32 = vmul.f32 -1e+30, %v4992_v26  ;;  %v5714_v43 = vmul.f32 -1e+30, %v5713_v58 }
 0x667   :  { %4831 = vmatpush1.bf16.xpose.msra.mxu1 %v4801_v42 }
 0x668   :  { %4832 = vmatprep.subr.bf16.mxu1 %v14910_v36 }
 0x66f   :  { %4833 = vmatpush1.bf16.xpose.msra.mxu1 %v4804_v5 }
 0x670   :  { %4834 = vmatprep.subr.bf16.mxu1 %v14910_v36 }
 0x677   :  { %4835 = vmatpush1.bf16.xpose.msra.mxu1 %v4807_v46 }
 0x678   :  { %4836 = vmatprep.subr.bf16.mxu1 %v14910_v36 }
 0x67f   :  { %4837 = vmatpush1.bf16.xpose.msra.mxu1 %v4810_v30 }
 0x680   :  { %4838 = vmatprep.subr.bf16.mxu1 %v14910_v36 }
 0x687   :  { %4839 = vmatpush1.bf16.xpose.msra.mxu1 %v4813_v22 }
 0x688   :  { %4840 = vmatprep.subr.bf16.mxu1 %v14910_v36 }
 0x68f   :  { %4841 = vmatpush1.bf16.xpose.msra.mxu1 %v4816_v13 }
 0x690   :  { %6899 = vmatprep.subr.bf16.mxu1 %v14910_v36 }
 0x696   :  { %8370 = vmatmul.mubr.msk.bf16.vlgmr.msra.gmra.mrb[160].mxu1 %vm99_vm0, %v14925_v16 }
 0x697   :  { %6900 = vmatpush1.bf16.msra.mxu1 %v14926_v55  ;;  %4860 = vmatprep.mubr.bf16.mxu1 %v14910_v36 }
 0x698   :  { %6901 = vmatprep.subr.bf16.mxu1 %v14910_v36 }
 0x69b   :  { %6902 = vmatpush1.bf16.msra.mxu1 %v6861_v12  ;;  %v5473_v12 = vsub.f32 1.0, %v4943_v51 }
 0x69c   :  { %6903 = vmatprep.subr.bf16.mxu1 %v14910_v36 }
 0x69d   :  { %v5474_v8 = vmul.f32 -1e+30, %v5473_v12 }
 0x69e   :  { %8371 = vmatmul.mubr.msk.bf16.gmra.mrb[164].mxu1 %vm99_vm0, %v14927_v52 }
 0x69f   :  { %6904 = vmatpush1.bf16.msra.mxu1 %v6862_v33  ;;  %4870 = vmatprep.mubr.bf16.mxu1 %v14910_v36  ;;  %v4722_v33 = vld [vmem:[%s14702_s15 + $0x18] sm:$0xff] }
 0x6a0   :  { %6905 = vmatprep.subr.bf16.mxu1 %v14910_v36 }
 0x6a3   :  { %6906 = vmatpush1.bf16.msra.mxu1 %v14928_v1 }
 0x6a4   :  { %6907 = vmatprep.subr.bf16.mxu1 %v14910_v36 }
 0x6a6   :  { %8372 = vmatmul.mubr.msk.bf16.gmra.mrb[168].mxu1 %vm99_vm0, %v14929_v38 }
 0x6a7   :  { %6908 = vmatpush1.bf16.msra.mxu1 %v6864_v19  ;;  %4880 = vmatprep.mubr.bf16.mxu1 %v14910_v36  ;;  %v14944_v19 = vpack.c.bf16 %v14942_v47, %v14943_v39 }
 0x6a8   :  { %6909 = vmatprep.subr.bf16.mxu1 %v14910_v36 }
 0x6ab   :  { %6910 = vmatpush1.bf16.msra.mxu1 %v6865_v18 }
 0x6ac   :  { %6911 = vmatprep.subr.bf16.mxu1 %v14910_v36 }
 0x6ae   :  { %8373 = vmatmul.mubr.msk.bf16.gmra.mrb[172].mxu1 %vm99_vm0, %v14930_v29 }
 0x6af   :  { %6912 = vmatpush1.bf16.msra.mxu1 %v14931_v20  ;;  %4890 = vmatprep.mubr.bf16.mxu1 %v14910_v36 }
 0x6b0   :  { %6913 = vmatprep.subr.bf16.mxu1 %v14910_v36 }
 0x6b3   :  { %6914 = vmatpush1.bf16.msra.mxu1 %v14932_v28 }
 0x6b4   :  { %6915 = vmatprep.subr.bf16.mxu1 %v14910_v36 }
 0x6b6   :  { %8374 = vmatmul.mubr.msk.bf16.gmra.mrb[176].mxu1 %vm99_vm0, %v14933_v60 }
 0x6b7   :  { %6916 = vmatpush1.bf16.msra.mxu1 %v6868_v6  ;;  %4900 = vmatprep.mubr.bf16.mxu1 %v14910_v36 }
 0x6b8   :  { %6917 = vmatprep.subr.bf16.mxu1 %v14910_v36 }
 0x6bb   :  { %6918 = vmatpush1.bf16.msra.mxu1 %v14934_v53 }
 0x6bc   :  { %6919 = vmatprep.subr.bf16.mxu1 %v14910_v36 }
 0x6be   :  { %8375 = vmatmul.mubr.msk.bf16.gmra.mrb[180].mxu1 %vm99_vm0, %v14935_v10 }
 0x6bf   :  { %6920 = vmatpush1.bf16.msra.mxu1 %v14936_v15  ;;  %4910 = vmatprep.mubr.bf16.mxu1 %v14910_v36  ;;  %v4724_v15 = vld [vmem:[%s14702_s15 + $0x28] sm:$0xff] }
 0x6c0   :  { %6921 = vmatprep.subr.bf16.mxu1 %v14910_v36 }
 0x6c3   :  { %6922 = vmatpush1.bf16.msra.mxu1 %v6871_v4  ;;  %v4946_v4 = vlaneseq }
 0x6c4   :  { %8556 = vmatprep.subr.bf16.mxu1 %v14909_v11 }
 0x6c5   :  { %v4947_v59 = vshrl.u32 %v4946_v4, 7 }
 0x6c6   :  { %8376 = vmatmul.mubr.msk.bf16.gmra.mrb[184].mxu1 %vm99_vm0, %v14938_v44 }
 0x6c7   :  { %4920 = vmatprep.mubr.bf16.mxu1 %v14910_v36  ;;  %v4948_v54 = vsub.s32 0, %v4947_v59  ;;  %v4952_v61 = vsub.s32 1, %v4947_v59  ;;  %v4725_v59 = vld [vmem:[%s14702_s15 + $0x30] sm:$0xff] }
 0x6c9   :  { %v12555_v6 = vrot.slane %v4942_v56, %v4948_v54  ;;  %v12557_v18 = vrot.slane %v4942_v56, %v4952_v61  ;;  %v12559_v34 = vrot.slane %v4941_v57, %v4948_v54  ;;  %v12568_v23 = vrot.slane %v4941_v57, %v4952_v61 }
 0x6ca   :  { %v12570_v31 = vrot.slane %v4943_v51, %v4952_v61  ;;  %v12577_v35 = vrot.slane %v4993_v32, %v4948_v54  ;;  %v12579_v14 = vrot.slane %v4943_v51, %v4948_v54  ;;  %v12583_v5 = vrot.slane %v4993_v32, %v4952_v61 }
 0x6cb   :  { %v12585_v45 = vrot.slane %v5474_v8, %v4952_v61  ;;  %v12587_v46 = vrot.slane %v4944_v27, %v4948_v54  ;;  %v12595_v7 = vrot.slane %v4944_v27, %v4952_v61  ;;  %v12607_v38 = vrot.slane %v5474_v8, %v4948_v54 }
 0x6cc   :  { %v12609_v29 = vrot.slane %v5714_v43, %v4948_v54  ;;  %v12611_v20 = vrot.slane %v5714_v43, %v4952_v61 }
 0x6ce   :  { %8377 = vmatmul.mubr.msk.bf16.gmra.mrb[188].mxu1 %vm99_vm0, %v14941_v48 }
 0x6cf   :  { %4930 = vmatprep.mubr.bf16.mxu1 %v14910_v36  ;;  %v5233_v36 = vsub.f32 1.0, %v4942_v56  ;;  %v4723_v56 = vld [vmem:[%s14702_s15 + $0x20] sm:$0xff] }
 0x6d1   :  { %v5234_v37 = vmul.f32 -1e+30, %v5233_v36 }
 0x6d3   :  { %v12564_v0 = vrot.slane %v5234_v37, %v4948_v54  ;;  %v12566_v17 = vrot.slane %v5234_v37, %v4952_v61  ;;  %v4726_v61 = vld [vmem:[%s14702_s15 + $0x38] sm:$0xff] }
 0x6d6   :  { %8378 = vmatmul.mubr.msk.bf16.gmra.mrb[192].mxu1 %vm99_vm0, %v14944_v19 }
 0x769   :  { %v4852_v50 = vpop.f32.mrb[160].mxu1 }
 0x76a   :  { %v12572_v24 = vadd.f32 %v4852_v50, %v4719_v63  ;;  %v4854_v9 = vpop.f32.mrb[161].mxu1 }
 0x76b   :  { %v12581_v42 = vadd.f32 %v4854_v9, %v4720_v2  ;;  %v4856_v21 = vpop.f32.mrb[162].mxu1 }
 0x76c   :  { %v12589_v41 = vadd.f32 %v4856_v21, %v4721_v49  ;;  %v4858_v30 = vpop.f32.mrb[163].mxu1  ;;  %v5197_v3 = vmul.f32 %v12555_v6, %v12572_v24  ;;  %v4956_v22 = vmul.f32 %v12559_v34, %v12572_v24  ;;  %v5437_v1 = vmul.f32 %v12579_v14, %v12572_v24 }
 0x76d   :  { %v12597_v13 = vadd.f32 %v4858_v30, %v4722_v33  ;;  %v5198_v16 = vmul.f32 %v12557_v18, %v12581_v42  ;;  %v4957_v55 = vmul.f32 %v12568_v23, %v12581_v42  ;;  %v5438_v52 = vmul.f32 %v12570_v31, %v12581_v42 }
 0x76e   :  { %v5246_v40 = vadd.f32 %v12564_v0, %v5197_v3  ;;  %v5005_v44 = vadd.f32 %v12577_v35, %v4956_v22  ;;  %v5199_v62 = vmul.f32 %v12555_v6, %v12589_v41  ;;  %v5678_v25 = vmul.f32 %v12595_v7, %v12581_v42 }
 0x76f   :  { %v5247_v28 = vadd.f32 %v12566_v17, %v5198_v16  ;;  %v5006_v60 = vadd.f32 %v12583_v5, %v4957_v55  ;;  %v5487_v53 = vadd.f32 %v12585_v45, %v5438_v52  ;;  %v5200_v10 = vmul.f32 %v12557_v18, %v12597_v13 }
 0x770   :  { %v5677_v4 = vmul.f32 %v12587_v46, %v12572_v24  ;;  %v5486_v26 = vadd.f32 %v12607_v38, %v5437_v1  ;;  %v5727_v32 = vadd.f32 %v12611_v20, %v5678_v25  ;;  %v5439_v58 = vmul.f32 %v12579_v14, %v12589_v41 }
 0x771   :  { %v4862_v48 = vpop.f32.mrb[164].mxu1  ;;  %v5282_v47 = vsel %vm5041_vm3, %v5247_v28, -inf  ;;  %v5042_v39 = vsel %vm5041_vm3, %v5006_v60, -inf  ;;  %v5249_v19 = vadd.f32 %v12566_v17, %v5200_v10  ;;  %v5522_v12 = vsel %vm5041_vm3, %v5487_v53, -inf }
 0x772   :  { %v4864_v57 = vpop.f32.mrb[165].mxu1  ;;  %v5283_v51 = vmax.f32 %v5246_v40, %v5282_v47  ;;  %v5043_v36 = vmax.f32 %v5005_v44, %v5042_v39  ;;  %v5248_v8 = vadd.f32 %v12564_v0, %v5199_v62  ;;  %v5440_v2 = vmul.f32 %v12570_v31, %v12597_v13 }
 0x773   :  { %v12640_v27 = vadd.f32 %v4864_v57, %v4724_v15  ;;  %v4866_v54 = vpop.f32.mrb[166].mxu1  ;;  %v5286_v37 = vsel %vm5041_vm3, %v5249_v19, -inf  ;;  %v12652_v50 = vadd.f32 %v4862_v48, %v4723_v56  ;;  %v5523_v9 = vmax.f32 %v5486_v26, %v5522_v12 }
 0x774   :  { %v4868_v63 = vpop.f32.mrb[167].mxu1  ;;  %5284 = vmax.xlane.f32.xlu0 %v5283_v51  ;;  %5044 = vmax.xlane.f32.xlu1 %v5043_v36  ;;  %v12654_v49 = vadd.f32 %v4866_v54, %v4725_v59  ;;  %v5726_v33 = vadd.f32 %v12609_v29, %v5677_v4  ;;  %v5287_v21 = vmax.f32 %v5248_v8, %v5286_v37  ;;  %v5762_v22 = vsel %vm5041_vm3, %v5727_v32, -inf  ;;  %v4727_v54 = vld [vmem:[%s14702_s15 + $0x40] sm:$0xff] }
 0x775   :  { %v12657_v43 = vadd.f32 %v4868_v63, %v4726_v61  ;;  %v5489_v30 = vadd.f32 %v12585_v45, %v5440_v2  ;;  %v4959_v3 = vmul.f32 %v12568_v23, %v12597_v13  ;;  %v5488_v16 = vadd.f32 %v12607_v38, %v5439_v58 }
 0x776   :  { %14945 = vst [vmem:[#allocation31_spill] sm:$0xff] %v12654_v49  ;;  %v5680_v55 = vmul.f32 %v12595_v7, %v12597_v13  ;;  %v4961_v52 = vmul.f32 %v12568_v23, %v12640_v27  ;;  %v4958_v28 = vmul.f32 %v12559_v34, %v12589_v41  ;;  %v5679_v53 = vmul.f32 %v12587_v46, %v12589_v41 }
 0x777   :  { %14946 = vst [vmem:[#allocation32_spill] sm:$0xff] %v12657_v43  ;;  %v5526_v1 = vsel %vm5041_vm3, %v5489_v30, -inf  ;;  %v5008_v60 = vadd.f32 %v12583_v5, %v4959_v3  ;;  %v4960_v40 = vmul.f32 %v12559_v34, %v12652_v50  ;;  %v5763_v62 = vmax.f32 %v5726_v33, %v5762_v22  ;;  %v4728_v33 = vld [vmem:[%s14702_s15 + $0x48] sm:$0xff] }
 0x778   :  { %5524 = vmax.xlane.f32.xlu0 %v5523_v9  ;;  %5288 = vmax.xlane.f32.xlu1 %v5287_v21  ;;  %v5729_v15 = vadd.f32 %v12611_v20, %v5680_v55  ;;  %v5527_v25 = vmax.f32 %v5488_v16, %v5526_v1  ;;  %v4963_v48 = vmul.f32 %v12568_v23, %v12657_v43  ;;  %v4730_v16 = vld [vmem:[%s14702_s15 + $0x58] sm:$0xff] }
 0x779   :  { %v4872_v10 = vpop.f32.mrb[168].mxu1  ;;  %v5046_v39 = vsel %vm5041_vm3, %v5008_v60, -inf  ;;  %v5010_v4 = vadd.f32 %v12583_v5, %v4961_v52  ;;  %v5007_v57 = vadd.f32 %v12577_v35, %v4958_v28  ;;  %v5728_v59 = vadd.f32 %v12609_v29, %v5679_v53  ;;  %v4729_v28 = vld [vmem:[%s14702_s15 + $0x50] sm:$0xff] }
 0x77a   :  { %v4874_v44 = vpop.f32.mrb[169].mxu1  ;;  %v5766_v19 = vsel %vm5041_vm3, %v5729_v15, -inf  ;;  %v4962_v51 = vmul.f32 %v12559_v34, %v12654_v49  ;;  %v5009_v36 = vadd.f32 %v12577_v35, %v4960_v40  ;;  %v5012_v26 = vadd.f32 %v12583_v5, %v4963_v48 }
 0x77b   :  { %v4876_v47 = vpop.f32.mrb[170].mxu1  ;;  %v5202_v12 = vmul.f32 %v12557_v18, %v12640_v27  ;;  %v5047_v61 = vmax.f32 %v5007_v57, %v5046_v39  ;;  %v5767_v37 = vmax.f32 %v5728_v59, %v5766_v19  ;;  %v5204_v32 = vmul.f32 %v12557_v18, %v12657_v43 }
 0x77c   :  { %v4878_v56 = vpop.f32.mrb[171].mxu1  ;;  %5764 = vmax.xlane.f32.xlu0 %v5763_v62  ;;  %5528 = vmax.xlane.f32.xlu1 %v5527_v25  ;;  %v5442_v58 = vmul.f32 %v12570_v31, %v12640_v27  ;;  %v5050_v63 = vsel %vm5041_vm3, %v5010_v4, -inf  ;;  %v5054_v8 = vsel %vm5041_vm3, %v5012_v26, -inf  ;;  %v5201_v2 = vmul.f32 %v12555_v6, %v12652_v50 }
 0x77d   :  { %v5251_v9 = vadd.f32 %v12566_v17, %v5202_v12  ;;  %v5011_v21 = vadd.f32 %v12577_v35, %v4962_v51  ;;  %v5203_v30 = vmul.f32 %v12555_v6, %v12654_v49  ;;  %v5253_v3 = vadd.f32 %v12566_v17, %v5204_v32 }
 0x77e   :  { %v12709_v22 = vadd.f32 %v4872_v10, %v4727_v54  ;;  %v5441_v52 = vmul.f32 %v12579_v14, %v12652_v50  ;;  %v5444_v1 = vmul.f32 %v12570_v31, %v12657_v43  ;;  %v5051_v53 = vmax.f32 %v5009_v36, %v5050_v63 }
 0x77f   :  { %v5055_v10 = vmax.f32 %v5011_v21, %v5054_v8  ;;  %v5290_v15 = vsel %vm5041_vm3, %v5251_v9, -inf  ;;  %v5491_v40 = vadd.f32 %v12585_v45, %v5442_v58  ;;  %v12727_v62 = vadd.f32 %v4874_v44, %v4728_v33 }
 0x780   :  { %5048 = vmax.xlane.f32.xlu0 %v5047_v61  ;;  %5768 = vmax.xlane.f32.xlu1 %v5767_v37  ;;  %14947 = vst [vmem:[#allocation33_spill] sm:$0xff] %v12709_v22  ;;  %v5250_v48 = vadd.f32 %v12564_v0, %v5201_v2  ;;  %v5294_v39 = vsel %vm5041_vm3, %v5253_v3, -inf  ;;  %v5493_v19 = vadd.f32 %v12585_v45, %v5444_v1 }
 0x781   :  { %v12714_v55 = vpop.f32.mrb[172].mxu1  ;;  %14948 = vst [vmem:[#allocation34_spill] sm:$0xff] %v12727_v62  ;;  %v12734_v4 = vadd.f32 %v4878_v56, %v4730_v16  ;;  %v5252_v59 = vadd.f32 %v12564_v0, %v5203_v30  ;;  %v5443_v51 = vmul.f32 %v12579_v14, %v12654_v49  ;;  %v12739_v44 = vadd.f32 %v4876_v47, %v4729_v28 }
 0x782   :  { %v12723_v60 = vpop.f32.mrb[173].mxu1  ;;  %v5291_v36 = vmax.f32 %v5250_v48, %v5290_v15  ;;  %v5490_v26 = vadd.f32 %v12607_v38, %v5441_v52  ;;  %v5682_v12 = vmul.f32 %v12595_v7, %v12640_v27  ;;  %v5530_v56 = vsel %vm5041_vm3, %v5491_v40, -inf }
 0x783   :  { %v12729_v25 = vpop.f32.mrb[174].mxu1  ;;  %14949 = vst [vmem:[#allocation35_spill] sm:$0xff] %v12734_v4  ;;  %14950 = vst [vmem:[#allocation36_spill] sm:$0xff] %v12739_v44  ;;  %v5295_v54 = vmax.f32 %v5252_v59, %v5294_v39  ;;  %v5681_v61 = vmul.f32 %v12587_v46, %v12652_v50  ;;  %v5684_v37 = vmul.f32 %v12595_v7, %v12657_v43  ;;  %v5534_v32 = vsel %vm5041_vm3, %v5493_v19, -inf }
 0x784   :  { %v4888_v57 = vpop.f32.mrb[175].mxu1  ;;  %5052 = vmax.xlane.f32.xlu0 %v5051_v53  ;;  %5056 = vmax.xlane.f32.xlu1 %v5055_v10  ;;  %v5731_v47 = vadd.f32 %v12611_v20, %v5682_v12  ;;  %v5683_v58 = vmul.f32 %v12587_v46, %v12654_v49  ;;  %v4965_v63 = vmul.f32 %v12568_v23, %v12727_v62  ;;  %v4732_v12 = vld [vmem:[%s14702_s15 + $0x68] sm:$0xff] }
 0x785   :  { %v5492_v8 = vadd.f32 %v12607_v38, %v5443_v51  ;;  %v5733_v2 = vadd.f32 %v12611_v20, %v5684_v37  ;;  %v4967_v9 = vmul.f32 %v12568_v23, %v12734_v4  ;;  %v5531_v21 = vmax.f32 %v5490_v26, %v5530_v56 }
 0x786   :  { %v4964_v30 = vmul.f32 %v12559_v34, %v12709_v22  ;;  %v5014_v3 = vadd.f32 %v12583_v5, %v4965_v63  ;;  %v5770_v1 = vsel %vm5041_vm3, %v5731_v47, -inf  ;;  %v5730_v15 = vadd.f32 %v12609_v29, %v5681_v61 }
 0x787   :  { %v5535_v52 = vmax.f32 %v5492_v8, %v5534_v32  ;;  %v5774_v28 = vsel %vm5041_vm3, %v5733_v2, -inf  ;;  %v5016_v53 = vadd.f32 %v12583_v5, %v4967_v9  ;;  %v5732_v40 = vadd.f32 %v12609_v29, %v5683_v58  ;;  %v4731_v9 = vld [vmem:[%s14702_s15 + $0x60] sm:$0xff] }
 0x788   :  { %5292 = vmax.xlane.f32.xlu0 %v5291_v36  ;;  %5296 = vmax.xlane.f32.xlu1 %v5295_v54  ;;  %v4966_v48 = vmul.f32 %v12559_v34, %v12739_v44  ;;  %v5206_v39 = vmul.f32 %v12557_v18, %v12727_v62  ;;  %v5771_v59 = vmax.f32 %v5730_v15, %v5770_v1  ;;  %v5058_v26 = vsel %vm5041_vm3, %v5014_v3, -inf  ;;  %v4734_v54 = vld [vmem:[%s14702_s15 + $0x78] sm:$0xff] }
 0x789   :  { %v12759_v33 = vpop.f32.mrb[176].mxu1  ;;  %v5775_v51 = vmax.f32 %v5732_v40, %v5774_v28  ;;  %v5013_v36 = vadd.f32 %v12577_v35, %v4964_v30  ;;  %v5062_v56 = vsel %vm5041_vm3, %v5016_v53, -inf  ;;  %v5208_v37 = vmul.f32 %v12557_v18, %v12734_v4  ;;  %v4733_v30 = vld [vmem:[%s14702_s15 + $0x70] sm:$0xff] }
 0x78a   :  { %v12764_v16 = vpop.f32.mrb[177].mxu1  ;;  %v5255_v61 = vadd.f32 %v12566_v17, %v5206_v39  ;;  %v5446_v32 = vmul.f32 %v12570_v31, %v12727_v62  ;;  %v5015_v47 = vadd.f32 %v12577_v35, %v4966_v48  ;;  %v5205_v58 = vmul.f32 %v12555_v6, %v12709_v22 }
 0x78b   :  { %v12769_v10 = vpop.f32.mrb[178].mxu1  ;;  %v5207_v63 = vmul.f32 %v12555_v6, %v12739_v44  ;;  %v5448_v8 = vmul.f32 %v12570_v31, %v12734_v4  ;;  %v5257_v2 = vadd.f32 %v12566_v17, %v5208_v37  ;;  %v12810_v3 = vadd.f32 %v4888_v57, %v4734_v54 }
 0x78c   :  { %v12777_v19 = vpop.f32.mrb[179].mxu1  ;;  %5532 = vmax.xlane.f32.xlu0 %v5531_v21  ;;  %5536 = vmax.xlane.f32.xlu1 %v5535_v52  ;;  %v12805_v21 = vadd.f32 %v12723_v60, %v4732_v12  ;;  %v5059_v1 = vmax.f32 %v5013_v36, %v5058_v26  ;;  %v5063_v28 = vmax.f32 %v5015_v47, %v5062_v56  ;;  %v5298_v15 = vsel %vm5041_vm3, %v5255_v61, -inf }
 0x78d   :  { %14952 = vst [vmem:[#allocation38_spill] sm:$0xff] %v12810_v3  ;;  %v5302_v40 = vsel %vm5041_vm3, %v5257_v2, -inf  ;;  %v5495_v48 = vadd.f32 %v12585_v45, %v5446_v32  ;;  %v5686_v60 = vmul.f32 %v12595_v7, %v12727_v62  ;;  %v5254_v57 = vadd.f32 %v12564_v0, %v5205_v58 }
 0x78e   :  { %14951 = vst [vmem:[#allocation37_spill] sm:$0xff] %v12805_v21  ;;  %v5497_v36 = vadd.f32 %v12585_v45, %v5448_v8  ;;  %v12829_v26 = vadd.f32 %v12714_v55, %v4731_v9  ;;  %v12832_v12 = vadd.f32 %v12729_v25, %v4733_v30  ;;  %v5447_v56 = vmul.f32 %v12579_v14, %v12739_v44 }
 0x78f   :  { %v5299_v61 = vmax.f32 %v5254_v57, %v5298_v15  ;;  %v5685_v32 = vmul.f32 %v12587_v46, %v12709_v22  ;;  %v5688_v47 = vmul.f32 %v12595_v7, %v12734_v4  ;;  %v5538_v55 = vsel %vm5041_vm3, %v5495_v48, -inf }
 0x790   :  { %5772 = vmax.xlane.f32.xlu0 %v5771_v59  ;;  %5776 = vmax.xlane.f32.xlu1 %v5775_v51  ;;  %v5256_v59 = vadd.f32 %v12564_v0, %v5207_v63  ;;  %v5445_v51 = vmul.f32 %v12579_v14, %v12709_v22  ;;  %14953 = vst [vmem:[#allocation42_spill] sm:$0xff] %v12829_v26  ;;  %14954 = vst [vmem:[#allocation43_spill] sm:$0xff] %v12832_v12  ;;  %v5542_v2 = vsel %vm5041_vm3, %v5497_v36, -inf }
 0x791   :  { %v12812_v52 = vpop.f32.mrb[180].mxu1  ;;  %v5735_v25 = vadd.f32 %v12611_v20, %v5686_v60  ;;  %v4969_v58 = vmul.f32 %v12568_v23, %v12805_v21  ;;  %v4971_v63 = vmul.f32 %v12568_v23, %v12810_v3  ;;  %v5687_v9 = vmul.f32 %v12587_v46, %v12739_v44 }
 0x792   :  { %v12814_v53 = vpop.f32.mrb[181].mxu1  ;;  %v5303_v37 = vmax.f32 %v5256_v59, %v5302_v40  ;;  %v5494_v8 = vadd.f32 %v12607_v38, %v5445_v51  ;;  %v5737_v30 = vadd.f32 %v12611_v20, %v5688_v47  ;;  %v5210_v48 = vmul.f32 %v12557_v18, %v12805_v21 }
 0x793   :  { %v12821_v39 = vpop.f32.mrb[182].mxu1  ;;  %v5018_v40 = vadd.f32 %v12583_v5, %v4969_v58  ;;  %v5778_v59 = vsel %vm5041_vm3, %v5735_v25, -inf  ;;  %v5020_v36 = vadd.f32 %v12583_v5, %v4971_v63  ;;  %v4968_v47 = vmul.f32 %v12559_v34, %v12829_v26  ;;  %v4736_v63 = vld [vmem:[%s14702_s15 + $0x88] sm:$0xff] }
 0x794   :  { %v12834_v54 = vpop.f32.mrb[183].mxu1  ;;  %5060 = vmax.xlane.f32.xlu0 %v5059_v1  ;;  %5064 = vmax.xlane.f32.xlu1 %v5063_v28  ;;  %v5496_v1 = vadd.f32 %v12607_v38, %v5447_v56  ;;  %v5539_v15 = vmax.f32 %v5494_v8, %v5538_v55  ;;  %v5782_v51 = vsel %vm5041_vm3, %v5737_v30, -inf  ;;  %v5734_v56 = vadd.f32 %v12609_v29, %v5685_v32  ;;  %v4738_v32 = vld [vmem:[%s14702_s15 + $0x98] sm:$0xff] }
 0x795   :  { %v4970_v55 = vmul.f32 %v12559_v34, %v12832_v12  ;;  %v5212_v25 = vmul.f32 %v12557_v18, %v12810_v3  ;;  %v5259_v30 = vadd.f32 %v12566_v17, %v5210_v48  ;;  %v5452_v11 = vmul.f32 %v12570_v31, %v12810_v3 }
 0x796   :  { %v5543_v57 = vmax.f32 %v5496_v1, %v5542_v2  ;;  %v5779_v8 = vmax.f32 %v5734_v56, %v5778_v59  ;;  %v5070_v1 = vsel %vm5041_vm3, %v5020_v36, -inf  ;;  %v5017_v4 = vadd.f32 %v12577_v35, %v4968_v47  ;;  %v4735_v36 = vld [vmem:[%s14702_s15 + $0x80] sm:$0xff]  ;;  %v4737_v56 = vld [vmem:[%s14702_s15 + $0x90] sm:$0xff] }
 0x797   :  { %v5019_v44 = vadd.f32 %v12577_v35, %v4970_v55  ;;  %v5209_v59 = vmul.f32 %v12555_v6, %v12829_v26  ;;  %v12897_v48 = vadd.f32 %v12764_v16, %v4736_v63  ;;  %v5306_v16 = vsel %vm5041_vm3, %v5259_v30, -inf }
 0x798   :  { %5300 = vmax.xlane.f32.xlu0 %v5299_v61  ;;  %5304 = vmax.xlane.f32.xlu1 %v5303_v37  ;;  %v5736_v37 = vadd.f32 %v12609_v29, %v5687_v9  ;;  %v5066_v9 = vsel %vm5041_vm3, %v5018_v40, -inf  ;;  %v5211_v40 = vmul.f32 %v12555_v6, %v12832_v12  ;;  %v5451_v30 = vmul.f32 %v12579_v14, %v12832_v12 }
 0x799   :  { %v12854_v28 = vpop.f32.mrb[184].mxu1  ;;  %v5067_v47 = vmax.f32 %v5017_v4, %v5066_v9  ;;  %v5071_v55 = vmax.f32 %v5019_v44, %v5070_v1  ;;  %v5258_v4 = vadd.f32 %v12564_v0, %v5209_v59  ;;  %v5449_v9 = vmul.f32 %v12579_v14, %v12829_v26 }
 0x79a   :  { %v12859_v60 = vpop.f32.mrb[185].mxu1  ;;  %v5783_v2 = vmax.f32 %v5736_v37, %v5782_v51  ;;  %v12900_v51 = vadd.f32 %v12777_v19, %v4738_v32  ;;  %v5690_v19 = vmul.f32 %v12595_v7, %v12805_v21  ;;  %v5260_v44 = vadd.f32 %v12564_v0, %v5211_v40 }
 0x79b   :  { %v12864_v61 = vpop.f32.mrb[186].mxu1  ;;  %v12929_v1 = vadd.f32 %v12759_v33, %v4735_v36  ;;  %v5498_v36 = vadd.f32 %v12607_v38, %v5449_v9 }
 0x79c   :  { %v12872_v58 = vpop.f32.mrb[187].mxu1  ;;  %5540 = vmax.xlane.f32.xlu0 %v5539_v15  ;;  %5544 = vmax.xlane.f32.xlu1 %v5543_v57  ;;  %v5261_v15 = vadd.f32 %v12566_v17, %v5212_v25  ;;  %v5450_v57 = vmul.f32 %v12570_v31, %v12805_v21  ;;  %14955 = vst [vmem:[#allocation39_spill] sm:$0xff] %v12900_v51 }
 0x79d   :  { %v5739_v40 = vadd.f32 %v12611_v20, %v5690_v19 }
 0x79e   :  { %v5310_v63 = vsel %vm5041_vm3, %v5261_v15, -inf  ;;  %v5499_v32 = vadd.f32 %v12585_v45, %v5450_v57  ;;  %v5307_v57 = vmax.f32 %v5258_v4, %v5306_v16 }
 0x79f   :  { %v5311_v59 = vmax.f32 %v5260_v44, %v5310_v63  ;;  %v5786_v4 = vsel %vm5041_vm3, %v5739_v40, -inf }
 0x7a0   :  { %5780 = vmax.xlane.f32.xlu0 %v5779_v8  ;;  %5784 = vmax.xlane.f32.xlu1 %v5783_v2  ;;  %v5501_v8 = vadd.f32 %v12585_v45, %v5452_v11  ;;  %v5692_v2 = vmul.f32 %v12595_v7, %v12810_v3  ;;  %v12932_v11 = vadd.f32 %v12769_v10, %v4737_v56  ;;  %v5546_v21 = vsel %vm5041_vm3, %v5499_v32, -inf }
 0x7a1   :  { %v12908_v37 = vpop.f32.mrb[188].mxu1  ;;  %v4973_v3 = vmul.f32 %v12568_v23, %v12897_v48  ;;  %v4975_v10 = vmul.f32 %v12568_v23, %v12900_v51  ;;  %v5500_v56 = vadd.f32 %v12607_v38, %v5451_v30  ;;  %v5547_v19 = vmax.f32 %v5498_v36, %v5546_v21 }
 0x7a2   :  { %v12913_v25 = vpop.f32.mrb[189].mxu1  ;;  %v5550_v22 = vsel %vm5041_vm3, %v5501_v8, -inf  ;;  %v5741_v33 = vadd.f32 %v12611_v20, %v5692_v2  ;;  %v5214_v8 = vmul.f32 %v12557_v18, %v12897_v48  ;;  %v5216_v30 = vmul.f32 %v12557_v18, %v12900_v51 }
 0x7a3   :  { %v12920_v62 = vpop.f32.mrb[190].mxu1  ;;  %v5551_v63 = vmax.f32 %v5500_v56, %v5550_v22  ;;  %v5022_v32 = vadd.f32 %v12583_v5, %v4973_v3  ;;  %v5024_v9 = vadd.f32 %v12583_v5, %v4975_v10  ;;  %v4972_v3 = vmul.f32 %v12559_v34, %v12929_v1  ;;  %v4742_v10 = vld [vmem:[%s14702_s15 + $0xb8] sm:$0xff] }
 0x7a4   :  { %v12934_v15 = vpop.f32.mrb[191].mxu1  ;;  %5068 = vmax.xlane.f32.xlu0 %v5067_v47  ;;  %5072 = vmax.xlane.f32.xlu1 %v5071_v55  ;;  %v5689_v47 = vmul.f32 %v12587_v46, %v12829_v26  ;;  %v5691_v55 = vmul.f32 %v12587_v46, %v12832_v12  ;;  %v5790_v44 = vsel %vm5041_vm3, %v5741_v33, -inf  ;;  %v4740_v33 = vld [vmem:[%s14702_s15 + $0xa8] sm:$0xff]  ;;  %v5265_v26 = vadd.f32 %v12566_v17, %v5216_v30  ;;  %v4741_v30 = vld [vmem:[%s14702_s15 + $0xb0] sm:$0xff] }
 0x7a5   :  { %v5078_v12 = vsel %vm5041_vm3, %v5024_v9, -inf  ;;  %v5021_v43 = vadd.f32 %v12577_v35, %v4972_v3  ;;  %v4739_v9 = vld [vmem:[%s14702_s15 + $0xa0] sm:$0xff] }
 0x7a6   :  { %v5738_v22 = vadd.f32 %v12609_v29, %v5689_v47  ;;  %v5740_v21 = vadd.f32 %v12609_v29, %v5691_v55  ;;  %v5074_v47 = vsel %vm5041_vm3, %v5022_v32, -inf  ;;  %v5263_v55 = vadd.f32 %v12566_v17, %v5214_v8 }
 0x7a7   :  { %v5215_v32 = vmul.f32 %v12555_v6, %v12932_v11  ;;  %v12993_v8 = vadd.f32 %v12814_v53, %v4740_v33  ;;  %v5694_v53 = vmul.f32 %v12595_v7, %v12897_v48 }
 0x7a8   :  { %5308 = vmax.xlane.f32.xlu0 %v5307_v57  ;;  %5312 = vmax.xlane.f32.xlu1 %v5311_v59  ;;  %v4974_v59 = vmul.f32 %v12559_v34, %v12932_v11  ;;  %v5787_v36 = vmax.f32 %v5738_v22, %v5786_v4  ;;  %v5791_v56 = vmax.f32 %v5740_v21, %v5790_v44  ;;  %v5314_v3 = vsel %vm5041_vm3, %v5263_v55, -inf }
 0x7a9   :  { %v12950_v16 = vpop.f32.mrb[192].mxu1  ;;  %v5213_v4 = vmul.f32 %v12555_v6, %v12929_v1  ;;  %v12996_v44 = vadd.f32 %v12834_v54, %v4742_v10  ;;  %v5075_v22 = vmax.f32 %v5021_v43, %v5074_v47  ;;  %v5318_v54 = vsel %vm5041_vm3, %v5265_v26, -inf }
 0x7aa   :  { %v12955_v2 = vpop.f32.mrb[193].mxu1  ;;  %v5023_v49 = vadd.f32 %v12577_v35, %v4974_v59  ;;  %v5696_v10 = vmul.f32 %v12595_v7, %v12900_v51  ;;  %v5455_v43 = vmul.f32 %v12579_v14, %v12932_v11  ;;  %v13022_v26 = vadd.f32 %v12821_v39, %v4741_v30 }
 0x7ab   :  { %v12962_v57 = vpop.f32.mrb[194].mxu1  ;;  %v5693_v30 = vmul.f32 %v12587_v46, %v12929_v1 }
 0x7ac   :  { %v12970_v40 = vpop.f32.mrb[195].mxu1  ;;  %5548 = vmax.xlane.f32.xlu0 %v5547_v19  ;;  %5552 = vmax.xlane.f32.xlu1 %v5551_v63  ;;  %v5454_v19 = vmul.f32 %v12570_v31, %v12897_v48  ;;  %v5456_v63 = vmul.f32 %v12570_v31, %v12900_v51  ;;  %v5079_v21 = vmax.f32 %v5023_v49, %v5078_v12 }
 0x7ad   :  { %v5453_v49 = vmul.f32 %v12579_v14, %v12929_v1  ;;  %v13019_v12 = vadd.f32 %v12812_v52, %v4739_v9  ;;  %v5745_v51 = vadd.f32 %v12611_v20, %v5696_v10  ;;  %v4979_v52 = vmul.f32 %v12568_v23, %v12996_v44 }
 0x7ae   :  { %v5503_v59 = vadd.f32 %v12585_v45, %v5454_v19  ;;  %v5505_v33 = vadd.f32 %v12585_v45, %v5456_v63  ;;  %v5743_v19 = vadd.f32 %v12611_v20, %v5694_v53  ;;  %v4977_v63 = vmul.f32 %v12568_v23, %v12993_v8 }
 0x7af   :  { %v5502_v39 = vadd.f32 %v12607_v38, %v5453_v49  ;;  %v5504_v9 = vadd.f32 %v12607_v38, %v5455_v43  ;;  %v5218_v10 = vmul.f32 %v12557_v18, %v12993_v8  ;;  %v4976_v43 = vmul.f32 %v12559_v34, %v13019_v12 }
 0x7b0   :  { %5788 = vmax.xlane.f32.xlu0 %v5787_v36  ;;  %5792 = vmax.xlane.f32.xlu1 %v5791_v56  ;;  %v5262_v36 = vadd.f32 %v12564_v0, %v5213_v4  ;;  %v5264_v56 = vadd.f32 %v12564_v0, %v5215_v32  ;;  %v5554_v4 = vsel %vm5041_vm3, %v5503_v59, -inf  ;;  %v5558_v32 = vsel %vm5041_vm3, %v5505_v33, -inf }
 0x7b1   :  { %v5794_v53 = vsel %vm5041_vm3, %v5743_v19, -inf  ;;  %v5798_v59 = vsel %vm5041_vm3, %v5745_v51, -inf  ;;  %v5028_v33 = vadd.f32 %v12583_v5, %v4979_v52  ;;  %v4744_v51 = vld [vmem:[%s14702_s15 + $0xc8] sm:$0xff] }
 0x7b2   :  { %v5315_v47 = vmax.f32 %v5262_v36, %v5314_v3  ;;  %v5319_v55 = vmax.f32 %v5264_v56, %v5318_v54  ;;  %v5559_v3 = vmax.f32 %v5504_v9, %v5558_v32  ;;  %v5026_v54 = vadd.f32 %v12583_v5, %v4977_v63 }
 0x7b3   :  { %v5220_v36 = vmul.f32 %v12557_v18, %v12996_v44  ;;  %v5742_v56 = vadd.f32 %v12609_v29, %v5693_v30  ;;  %v5458_v32 = vmul.f32 %v12570_v31, %v12993_v8  ;;  %v5086_v52 = vsel %vm5041_vm3, %v5028_v33, -inf  ;;  %v4743_v33 = vld [vmem:[%s14702_s15 + $0xc0] sm:$0xff] }
 0x7b4   :  { %5076 = vmax.xlane.f32.xlu0 %v5075_v22  ;;  %5080 = vmax.xlane.f32.xlu1 %v5079_v21  ;;  %v5695_v22 = vmul.f32 %v12587_v46, %v12932_v11  ;;  %v5555_v21 = vmax.f32 %v5502_v39, %v5554_v4  ;;  %v5082_v4 = vsel %vm5041_vm3, %v5026_v54, -inf  ;;  %v5267_v39 = vadd.f32 %v12566_v17, %v5218_v10  ;;  %v4745_v10 = vld [vmem:[%s14702_s15 + $0xd0] sm:$0xff] }
 0x7b5   :  { %v5795_v19 = vmax.f32 %v5742_v56, %v5794_v53  ;;  %v5269_v9 = vadd.f32 %v12566_v17, %v5220_v36  ;;  %v5460_v30 = vmul.f32 %v12570_v31, %v12996_v44  ;;  %v5219_v53 = vmul.f32 %v12555_v6, %v13022_v26 }
 0x7b6   :  { %v5744_v49 = vadd.f32 %v12609_v29, %v5695_v22  ;;  %v5025_v22 = vadd.f32 %v12577_v35, %v4976_v43  ;;  %v13073_v54 = vadd.f32 %v12859_v60, %v4744_v51  ;;  %v5698_v60 = vmul.f32 %v12595_v7, %v12993_v8 }
 0x7b7   :  { %v5326_v43 = vsel %vm5041_vm3, %v5269_v9, -inf  ;;  %v5700_v51 = vmul.f32 %v12595_v7, %v12996_v44 }
 0x7b8   :  { %5316 = vmax.xlane.f32.xlu0 %v5315_v47  ;;  %5320 = vmax.xlane.f32.xlu1 %v5319_v55  ;;  %v4978_v47 = vmul.f32 %v12559_v34, %v13022_v26  ;;  %v4746_v55 = vld [vmem:[%s14702_s15 + $0xd8] sm:$0xff]  ;;  %v5799_v63 = vmax.f32 %v5744_v49, %v5798_v59  ;;  %v5083_v36 = vmax.f32 %v5025_v22, %v5082_v4 }
 0x7b9   :  { %v13076_v59 = vadd.f32 %v12872_v58, %v4746_v55  ;;  %v5507_v49 = vadd.f32 %v12585_v45, %v5458_v32  ;;  %v5322_v58 = vsel %vm5041_vm3, %v5267_v39, -inf  ;;  %v5459_v4 = vmul.f32 %v12579_v14, %v13022_v26 }
 0x7ba   :  { %v13099_v32 = vadd.f32 %v12854_v28, %v4743_v33  ;;  %v5747_v22 = vadd.f32 %v12611_v20, %v5698_v60 }
 0x7bb   :  { %v4983_v28 = vmul.f32 %v12568_v23, %v13076_v59  ;;  %v5508_v33 = vadd.f32 %v12607_v38, %v5459_v4 }
 0x7bc   :  { %5556 = vmax.xlane.f32.xlu0 %v5555_v21  ;;  %5560 = vmax.xlane.f32.xlu1 %v5559_v3  ;;  %v5027_v21 = vadd.f32 %v12577_v35, %v4978_v47  ;;  %v5217_v3 = vmul.f32 %v12555_v6, %v13019_v12  ;;  %v5509_v47 = vadd.f32 %v12585_v45, %v5460_v30  ;;  %v5562_v30 = vsel %vm5041_vm3, %v5507_v49, -inf }
 0x7bd   :  { %v5802_v60 = vsel %vm5041_vm3, %v5747_v22, -inf  ;;  %v4980_v4 = vmul.f32 %v12559_v34, %v13099_v32 }
 0x7be   :  { %v5087_v56 = vmax.f32 %v5027_v21, %v5086_v52  ;;  %v5266_v55 = vadd.f32 %v12564_v0, %v5217_v3  ;;  %v13102_v52 = vadd.f32 %v12864_v61, %v4745_v10  ;;  %v5566_v21 = vsel %vm5041_vm3, %v5509_v47, -inf }
 0x7bf   :  { %v5749_v3 = vadd.f32 %v12611_v20, %v5700_v51  ;;  %v5697_v10 = vmul.f32 %v12587_v46, %v13019_v12  ;;  %v5567_v49 = vmax.f32 %v5508_v33, %v5566_v21  ;;  %v5032_v51 = vadd.f32 %v12583_v5, %v4983_v28 }
 0x7c0   :  { %5796 = vmax.xlane.f32.xlu0 %v5795_v19  ;;  %5800 = vmax.xlane.f32.xlu1 %v5799_v63  ;;  %v5268_v19 = vadd.f32 %v12564_v0, %v5219_v53  ;;  %v5457_v63 = vmul.f32 %v12579_v14, %v13019_v12  ;;  %v5323_v39 = vmax.f32 %v5266_v55, %v5322_v58 }
 0x7c1   :  { %v4981_v53 = vmul.f32 %v12568_v23, %v13073_v54  ;;  %v5222_v58 = vmul.f32 %v12557_v18, %v13073_v54  ;;  %v5224_v55 = vmul.f32 %v12557_v18, %v13076_v59 }
 0x7c2   :  { %v5327_v9 = vmax.f32 %v5268_v19, %v5326_v43  ;;  %v5506_v61 = vadd.f32 %v12607_v38, %v5457_v63  ;;  %v5806_v43 = vsel %vm5041_vm3, %v5749_v3, -inf  ;;  %v5746_v19 = vadd.f32 %v12609_v29, %v5697_v10 }
 0x7c3   :  { %v5030_v47 = vadd.f32 %v12583_v5, %v4981_v53  ;;  %v5271_v3 = vadd.f32 %v12566_v17, %v5222_v58  ;;  %v5462_v53 = vmul.f32 %v12570_v31, %v13073_v54  ;;  %v5273_v33 = vadd.f32 %v12566_v17, %v5224_v55 }
 0x7c4   :  { %5084 = vmax.xlane.f32.xlu0 %v5083_v36  ;;  %5088 = vmax.xlane.f32.xlu1 %v5087_v56  ;;  %v5699_v36 = vmul.f32 %v12587_v46, %v13022_v26  ;;  %v5563_v56 = vmax.f32 %v5506_v61, %v5562_v30  ;;  %v4750_v30 = vld [vmem:[%s14702_s15 + $0xf8] sm:$0xff]  ;;  %v5803_v22 = vmax.f32 %v5746_v19, %v5802_v60  ;;  %v5094_v61 = vsel %vm5041_vm3, %v5032_v51, -inf  ;;  %v4749_v51 = vld [vmem:[%s14702_s15 + $0xf0] sm:$0xff] }
 0x7c5   :  { %v5090_v28 = vsel %vm5041_vm3, %v5030_v47, -inf  ;;  %v5464_v10 = vmul.f32 %v12570_v31, %v13076_v59  ;;  %v5223_v60 = vmul.f32 %v12555_v6, %v13102_v52  ;;  %v4747_v47 = vld [vmem:[%s14702_s15 + $0xe0] sm:$0xff] }
 0x7c6   :  { %v5748_v63 = vadd.f32 %v12609_v29, %v5699_v36  ;;  %v5029_v36 = vadd.f32 %v12577_v35, %v4980_v4  ;;  %v5334_v4 = vsel %vm5041_vm3, %v5273_v33, -inf }
 0x7c8   :  { %5324 = vmax.xlane.f32.xlu0 %v5323_v39  ;;  %5328 = vmax.xlane.f32.xlu1 %v5327_v9  ;;  %v4982_v39 = vmul.f32 %v12559_v34, %v13102_v52  ;;  %v4748_v9 = vld [vmem:[%s14702_s15 + $0xe8] sm:$0xff]  ;;  %v5807_v21 = vmax.f32 %v5748_v63, %v5806_v43  ;;  %v13156_v43 = vadd.f32 %v12934_v15, %v4750_v30  ;;  %v5330_v63 = vsel %vm5041_vm3, %v5271_v3, -inf }
 0x7c9   :  { %v13153_v58 = vadd.f32 %v12913_v25, %v4748_v9  ;;  %v5091_v55 = vmax.f32 %v5029_v36, %v5090_v28  ;;  %v5511_v25 = vadd.f32 %v12585_v45, %v5462_v53  ;;  %v5513_v15 = vadd.f32 %v12585_v45, %v5464_v10 }
 0x7ca   :  { %v5704_v9 = vmul.f32 %v12595_v7, %v13076_v59  ;;  %v5463_v3 = vmul.f32 %v12579_v14, %v13102_v52  ;;  %v13179_v53 = vadd.f32 %v12908_v37, %v4747_v47  ;;  %v13182_v28 = vadd.f32 %v12920_v62, %v4749_v51 }
 0x7cb   :  { %v5570_v10 = vsel %vm5041_vm3, %v5511_v25, -inf  ;;  %v4985_v36 = vmul.f32 %v12568_v23, %v13153_v58  ;;  %v4987_v37 = vmul.f32 %v12568_v23, %v13156_v43  ;;  %v5701_v51 = vmul.f32 %v12587_v46, %v13099_v32 }
 0x7cc   :  { %5564 = vmax.xlane.f32.xlu0 %v5563_v56  ;;  %5568 = vmax.xlane.f32.xlu1 %v5567_v49  ;;  %v5031_v56 = vadd.f32 %v12577_v35, %v4982_v39  ;;  %v5221_v49 = vmul.f32 %v12555_v6, %v13099_v32  ;;  %v5702_v39 = vmul.f32 %v12595_v7, %v13073_v54 }
 0x7cd   :  { %v5512_v47 = vadd.f32 %v12607_v38, %v5463_v3  ;;  %v5034_v25 = vadd.f32 %v12583_v5, %v4985_v36  ;;  %v4984_v3 = vmul.f32 %v12559_v34, %v13179_v53 }
 0x7ce   :  { %v5095_v19 = vmax.f32 %v5031_v56, %v5094_v61  ;;  %v5270_v30 = vadd.f32 %v12564_v0, %v5221_v49  ;;  %v5574_v56 = vsel %vm5041_vm3, %v5513_v15, -inf  ;;  %v5751_v49 = vadd.f32 %v12611_v20, %v5702_v39 }
 0x7d0   :  { %5804 = vmax.xlane.f32.xlu0 %v5803_v22  ;;  %5808 = vmax.xlane.f32.xlu1 %v5807_v21  ;;  %v5272_v22 = vadd.f32 %v12564_v0, %v5223_v60  ;;  %v5461_v21 = vmul.f32 %v12579_v14, %v13099_v32  ;;  %v5331_v61 = vmax.f32 %v5270_v30, %v5330_v63  ;;  %v5810_v15 = vsel %vm5041_vm3, %v5751_v49, -inf }
 0x7d1   :  { %v5753_v60 = vadd.f32 %v12611_v20, %v5704_v9  ;;  %v5575_v63 = vmax.f32 %v5512_v47, %v5574_v56  ;;  %v5036_v9 = vadd.f32 %v12583_v5, %v4987_v37  ;;  %v5228_v30 = vmul.f32 %v12557_v18, %v13156_v43 }
 0x7d2   :  { %v5335_v33 = vmax.f32 %v5272_v22, %v5334_v4  ;;  %v5510_v62 = vadd.f32 %v12607_v38, %v5461_v21  ;;  %v5226_v4 = vmul.f32 %v12557_v18, %v13153_v58  ;;  %v5750_v22 = vadd.f32 %v12609_v29, %v5701_v51 }
 0x7d3   :  { %v5814_v39 = vsel %vm5041_vm3, %v5753_v60, -inf  ;;  %v5098_v49 = vsel %vm5041_vm3, %v5034_v25, -inf  ;;  %v5102_v37 = vsel %vm5041_vm3, %v5036_v9, -inf  ;;  %v5466_v47 = vmul.f32 %v12570_v31, %v13153_v58 }
 0x7d4   :  { %5092 = vmax.xlane.f32.xlu0 %v5091_v55  ;;  %5096 = vmax.xlane.f32.xlu1 %v5095_v19  ;;  %v5703_v55 = vmul.f32 %v12587_v46, %v13102_v52  ;;  %v5571_v19 = vmax.f32 %v5510_v62, %v5570_v10  ;;  %v4754_v10 = vld [vmem:[%s14702_s15 + $0x118] sm:$0xff]  ;;  %v5811_v36 = vmax.f32 %v5750_v22, %v5810_v15 }
 0x7d5   :  { %v5275_v60 = vadd.f32 %v12566_v17, %v5226_v4  ;;  %v5277_v62 = vadd.f32 %v12566_v17, %v5228_v30  ;;  %v5468_v51 = vmul.f32 %v12570_v31, %v13156_v43  ;;  %v5227_v25 = vmul.f32 %v12555_v6, %v13182_v28 }
 0x7d6   :  { %v5752_v21 = vadd.f32 %v12609_v29, %v5703_v55  ;;  %v5033_v55 = vadd.f32 %v12577_v35, %v4984_v3  ;;  %v13236_v15 = vadd.f32 %v12970_v40, %v4754_v10  ;;  %v5465_v22 = vmul.f32 %v12579_v14, %v13179_v53 }
 0x7d7   :  { %v5338_v30 = vsel %vm5041_vm3, %v5275_v60, -inf  ;;  %v5342_v3 = vsel %vm5041_vm3, %v5277_v62, -inf  ;;  %v5517_v40 = vadd.f32 %v12585_v45, %v5468_v51  ;;  %v5276_v10 = vadd.f32 %v12564_v0, %v5227_v25  ;;  %v4753_v60 = vld [vmem:[%s14702_s15 + $0x110] sm:$0xff] }
 0x7d8   :  { %5332 = vmax.xlane.f32.xlu0 %v5331_v61  ;;  %5336 = vmax.xlane.f32.xlu1 %v5335_v33  ;;  %v4986_v61 = vmul.f32 %v12559_v34, %v13182_v28  ;;  %v4752_v33 = vld [vmem:[%s14702_s15 + $0x108] sm:$0xff]  ;;  %v5815_v56 = vmax.f32 %v5752_v21, %v5814_v39  ;;  %v5099_v39 = vmax.f32 %v5033_v55, %v5098_v49  ;;  %v4751_v21 = vld [vmem:[%s14702_s15 + $0x100] sm:$0xff] }
 0x7d9   :  { %v13233_v4 = vadd.f32 %v12955_v2, %v4752_v33  ;;  %v5515_v2 = vadd.f32 %v12585_v45, %v5466_v47  ;;  %v13256_v49 = vadd.f32 %v12950_v16, %v4751_v21  ;;  %v5343_v62 = vmax.f32 %v5276_v10, %v5342_v3 }
 0x7da   :  { %v5514_v47 = vadd.f32 %v12607_v38, %v5465_v22  ;;  %v5582_v55 = vsel %vm5041_vm3, %v5517_v40, -inf  ;;  %v5705_v25 = vmul.f32 %v12587_v46, %v13179_v53  ;;  %v5707_v22 = vmul.f32 %v12587_v46, %v13182_v28 }
 0x7db   :  { %v5578_v51 = vsel %vm5041_vm3, %v5515_v2, -inf }
 0x7dc   :  { %5572 = vmax.xlane.f32.xlu0 %v5571_v19  ;;  %5576 = vmax.xlane.f32.xlu1 %v5575_v63  ;;  %v5035_v19 = vadd.f32 %v12577_v35, %v4986_v61  ;;  %v5225_v63 = vmul.f32 %v12555_v6, %v13179_v53  ;;  %v5706_v61 = vmul.f32 %v12595_v7, %v13153_v58 }
 0x7dd   :  { %v5579_v21 = vmax.f32 %v5514_v47, %v5578_v51 }
 0x7de   :  { %v5103_v9 = vmax.f32 %v5035_v19, %v5102_v37  ;;  %v5274_v33 = vadd.f32 %v12564_v0, %v5225_v63  ;;  %v5755_v19 = vadd.f32 %v12611_v20, %v5706_v61  ;;  %v4989_v63 = vmul.f32 %v12568_v23, %v13233_v4 }
 0x7df   :  { %v5230_v61 = vmul.f32 %v12557_v18, %v13233_v4 }
 0x7e0   :  { %5812 = vmax.xlane.f32.xlu0 %v5811_v36  ;;  %5816 = vmax.xlane.f32.xlu1 %v5815_v56  ;;  %v5467_v36 = vmul.f32 %v12579_v14, %v13182_v28  ;;  %v5708_v56 = vmul.f32 %v12595_v7, %v13156_v43  ;;  %v5339_v37 = vmax.f32 %v5274_v33, %v5338_v30  ;;  %v5818_v2 = vsel %vm5041_vm3, %v5755_v19, -inf }
 0x7e1   :  { %v13274_v30 = vadd.f32 %v12962_v57, %v4753_v60  ;;  %v5038_v40 = vadd.f32 %v12583_v5, %v4989_v63  ;;  %v5232_v33 = vmul.f32 %v12557_v18, %v13236_v15  ;;  %v5754_v57 = vadd.f32 %v12609_v29, %v5705_v25 }
 0x7e2   :  { %v5516_v16 = vadd.f32 %v12607_v38, %v5467_v36  ;;  %v4988_v36 = vmul.f32 %v12559_v34, %v13256_v49  ;;  %v5756_v60 = vadd.f32 %v12609_v29, %v5707_v22  ;;  %v5472_v25 = vmul.f32 %v12570_v31, %v13236_v15 }
 0x7e3   :  { %v5106_v51 = vsel %vm5041_vm3, %v5038_v40, -inf  ;;  %v5281_v19 = vadd.f32 %v12566_v17, %v5232_v33  ;;  %v5469_v40 = vmul.f32 %v12579_v14, %v13256_v49 }
 0x7e4   :  { %5100 = vmax.xlane.f32.xlu0 %v5099_v39  ;;  %5104 = vmax.xlane.f32.xlu1 %v5103_v9  ;;  %v5757_v39 = vadd.f32 %v12611_v20, %v5708_v56  ;;  %v4991_v9 = vmul.f32 %v12568_v23, %v13236_v15  ;;  %v5583_v3 = vmax.f32 %v5516_v16, %v5582_v55 }
 0x7e5   :  { %v5279_v55 = vadd.f32 %v12566_v17, %v5230_v61  ;;  %v5037_v63 = vadd.f32 %v12577_v35, %v4988_v36  ;;  %v5231_v17 = vmul.f32 %v12555_v6, %v13274_v30  ;;  %v5521_v33 = vadd.f32 %v12585_v45, %v5472_v25 }
 0x7e6   :  { %v5822_v10 = vsel %vm5041_vm3, %v5757_v39, -inf  ;;  %v5040_v56 = vadd.f32 %v12583_v5, %v4991_v9  ;;  %v5470_v5 = vmul.f32 %v12570_v31, %v13233_v4  ;;  %v5229_v9 = vmul.f32 %v12555_v6, %v13256_v49 }
 0x7e7   :  { %v5823_v47 = vmax.f32 %v5756_v60, %v5822_v10  ;;  %v5107_v22 = vmax.f32 %v5037_v63, %v5106_v51  ;;  %v5280_v36 = vadd.f32 %v12564_v0, %v5231_v17  ;;  %v5711_v63 = vmul.f32 %v12587_v46, %v13274_v30 }
 0x7e8   :  { %5340 = vmax.xlane.f32.xlu0 %v5339_v37  ;;  %5344 = vmax.xlane.f32.xlu1 %v5343_v62  ;;  %v4990_v37 = vmul.f32 %v12559_v34, %v13274_v30  ;;  %v5819_v62 = vmax.f32 %v5754_v57, %v5818_v2  ;;  %v5110_v16 = vsel %vm5041_vm3, %v5040_v56, -inf  ;;  %v5350_v2 = vsel %vm5041_vm3, %v5281_v19, -inf }
 0x7e9   :  { %v5519_v61 = vadd.f32 %v12585_v45, %v5470_v5  ;;  %v5712_v57 = vmul.f32 %v12595_v7, %v13236_v15  ;;  %v5278_v10 = vadd.f32 %v12564_v0, %v5229_v9  ;;  %v5471_v56 = vmul.f32 %v12579_v14, %v13274_v30 }
 0x7ea   :  { %v5039_v39 = vadd.f32 %v12577_v35, %v4990_v37  ;;  %v5710_v35 = vmul.f32 %v12595_v7, %v13233_v4  ;;  %v5351_v37 = vmax.f32 %v5280_v36, %v5350_v2  ;;  %v5709_v0 = vmul.f32 %v12587_v46, %v13256_v49 }
 0x7eb   :  { %v5586_v45 = vsel %vm5041_vm3, %v5519_v61, -inf  ;;  %v5520_v19 = vadd.f32 %v12607_v38, %v5471_v56  ;;  %v5760_v9 = vadd.f32 %v12609_v29, %v5711_v63 }
 0x7ec   :  { %5580 = vmax.xlane.f32.xlu0 %v5579_v21  ;;  %5584 = vmax.xlane.f32.xlu1 %v5583_v3  ;;  %v5111_v21 = vmax.f32 %v5039_v39, %v5110_v16  ;;  %v5346_v3 = vsel %vm5041_vm3, %v5279_v55, -inf  ;;  %v5759_v51 = vadd.f32 %v12611_v20, %v5710_v35  ;;  %v5761_v55 = vadd.f32 %v12611_v20, %v5712_v57 }
 0x7ed   :  { %v5347_v60 = vmax.f32 %v5278_v10, %v5346_v3  ;;  %v5758_v20 = vadd.f32 %v12609_v29, %v5709_v0 }
 0x7ee   :  { %v5826_v25 = vsel %vm5041_vm3, %v5759_v51, -inf  ;;  %v5830_v39 = vsel %vm5041_vm3, %v5761_v55, -inf }
 0x7ef   :  { %v5827_v17 = vmax.f32 %v5758_v20, %v5826_v25 }
 0x7f0   :  { %5820 = vmax.xlane.f32.xlu0 %v5819_v62  ;;  %5824 = vmax.xlane.f32.xlu1 %v5823_v47  ;;  %v5518_v62 = vadd.f32 %v12607_v38, %v5469_v40  ;;  %v5590_v47 = vsel %vm5041_vm3, %v5521_v33, -inf  ;;  %v5831_v38 = vmax.f32 %v5760_v9, %v5830_v39 }
 0x7f1   :  { %v5591_v5 = vmax.f32 %v5520_v19, %v5590_v47 }
 0x7f2   :  { %v5587_v16 = vmax.f32 %v5518_v62, %v5586_v45 }
 0x7f4   :  { %5108 = vmax.xlane.f32.xlu0 %v5107_v22  ;;  %5112 = vmax.xlane.f32.xlu1 %v5111_v21 }
 0x7f8   :  { %5348 = vmax.xlane.f32.xlu0 %v5347_v60  ;;  %5352 = vmax.xlane.f32.xlu1 %v5351_v37 }
 0x7fc   :  { %5588 = vmax.xlane.f32.xlu0 %v5587_v16  ;;  %5592 = vmax.xlane.f32.xlu1 %v5591_v5 }
 0x800   :  { %5828 = vmax.xlane.f32.xlu0 %v5827_v17  ;;  %5832 = vmax.xlane.f32.xlu1 %v5831_v38 }
 0x801   :  { %v5285_v22 = vpop.xlane.xlu0 %5284  ;;  %v5045_v21 = vpop.xlane.xlu1 %5044 }
 0x802   :  { %v5354_v3 = vmul.f32 %v5285_v22, %v12555_v6  ;;  %v5355_v2 = vmul.f32 %v5285_v22, %v12557_v18  ;;  %v5114_v40 = vmul.f32 %v5045_v21, %v12559_v34  ;;  %v5115_v61 = vmul.f32 %v5045_v21, %v12568_v23 }
 0x804   :  { %v5390_v10 = vadd.f32 %v5354_v3, %v5114_v40  ;;  %v5391_v36 = vadd.f32 %v5355_v2, %v5115_v61 }
 0x805   :  { %v5525_v33 = vpop.xlane.xlu0 %5524  ;;  %v5289_v35 = vpop.xlane.xlu1 %5288 }
 0x806   :  { %v5594_v57 = vmul.f32 %v5525_v33, %v12579_v14  ;;  %v5595_v29 = vmul.f32 %v5525_v33, %v12570_v31  ;;  %v5356_v19 = vmul.f32 %v5289_v35, %v12555_v6  ;;  %v5357_v0 = vmul.f32 %v5289_v35, %v12557_v18 }
 0x808   :  { %v5630_v37 = vadd.f32 %v5594_v57, %v5390_v10  ;;  %v5631_v62 = vadd.f32 %v5595_v29, %v5391_v36 }
 0x809   :  { %v5765_v56 = vpop.xlane.xlu0 %5764  ;;  %v5529_v60 = vpop.xlane.xlu1 %5528 }
 0x80a   :  { %v5834_v45 = vmul.f32 %v5765_v56, %v12587_v46  ;;  %v5835_v47 = vmul.f32 %v5765_v56, %v12595_v7  ;;  %v5596_v9 = vmul.f32 %v5529_v60, %v12579_v14  ;;  %v5597_v17 = vmul.f32 %v5529_v60, %v12570_v31 }
 0x80c   :  { %v5870_v51 = vadd.f32 %v5834_v45, %v5630_v37  ;;  %v5871_v55 = vadd.f32 %v5835_v47, %v5631_v62 }
 0x80d   :  { %v5049_v63 = vpop.xlane.xlu0 %5048  ;;  %v5769_v16 = vpop.xlane.xlu1 %5768 }
 0x80e   :  { %v5906_v5 = vsub.f32 %v12572_v24, %v5870_v51  ;;  %v5907_v25 = vsub.f32 %v12581_v42, %v5871_v55  ;;  %v5116_v39 = vmul.f32 %v5049_v63, %v12559_v34  ;;  %v5117_v20 = vmul.f32 %v5049_v63, %v12568_v23 }
 0x80f   :  { %v5836_v2 = vmul.f32 %v5769_v16, %v12587_v46  ;;  %v5837_v42 = vmul.f32 %v5769_v16, %v12595_v7 }
 0x810   :  { %v5942_v38 = vmul.f32 1.442695, %v5906_v5  ;;  %v5944_v22 = vmul.f32 1.442695, %v5907_v25  ;;  %v5392_v21 = vadd.f32 %v5356_v19, %v5116_v39  ;;  %v5393_v3 = vadd.f32 %v5357_v0, %v5117_v20 }
 0x811   :  { %v5053_v40 = vpop.xlane.xlu0 %5052  ;;  %v5057_v61 = vpop.xlane.xlu1 %5056 }
 0x812   :  { %9173 = vpow2.f32 %v5942_v38  ;;  %v5632_v24 = vadd.f32 %v5596_v9, %v5392_v21  ;;  %v5633_v33 = vadd.f32 %v5597_v17, %v5393_v3  ;;  %v5118_v62 = vmul.f32 %v5053_v40, %v12559_v34 }
 0x813   :  { %9175 = vpow2.f32 %v5944_v22  ;;  %v5119_v45 = vmul.f32 %v5053_v40, %v12568_v23  ;;  %v5120_v0 = vmul.f32 %v5057_v61, %v12559_v34 }
 0x814   :  { %v5872_v35 = vadd.f32 %v5836_v2, %v5632_v24  ;;  %v5873_v57 = vadd.f32 %v5837_v42, %v5633_v33 }
 0x815   :  { %v5293_v29 = vpop.xlane.xlu0 %5292  ;;  %v5297_v10 = vpop.xlane.xlu1 %5296 }
 0x816   :  { %v5908_v36 = vsub.f32 %v12589_v41, %v5872_v35  ;;  %v5909_v56 = vsub.f32 %v12597_v13, %v5873_v57  ;;  %v5358_v60 = vmul.f32 %v5293_v29, %v12555_v6  ;;  %v5359_v37 = vmul.f32 %v5293_v29, %v12557_v18 }
 0x817   :  { %v5360_v47 = vmul.f32 %v5297_v10, %v12555_v6  ;;  %v5361_v51 = vmul.f32 %v5297_v10, %v12557_v18  ;;  %v5121_v41 = vmul.f32 %v5057_v61, %v12568_v23 }
 0x818   :  { %v5946_v55 = vmul.f32 1.442695, %v5908_v36  ;;  %v5948_v19 = vmul.f32 1.442695, %v5909_v56  ;;  %v5394_v63 = vadd.f32 %v5358_v60, %v5118_v62  ;;  %v5395_v13 = vadd.f32 %v5359_v37, %v5119_v45 }
 0x819   :  { %v5533_v16 = vpop.xlane.xlu0 %5532  ;;  %v5537_v5 = vpop.xlane.xlu1 %5536  ;;  %v5396_v9 = vadd.f32 %v5360_v47, %v5120_v0  ;;  %v5397_v17 = vadd.f32 %v5361_v51, %v5121_v41 }
 0x81a   :  { %9177 = vpow2.f32 %v5946_v55  ;;  %v5598_v25 = vmul.f32 %v5533_v16, %v12579_v14  ;;  %v5599_v39 = vmul.f32 %v5533_v16, %v12570_v31  ;;  %v5600_v20 = vmul.f32 %v5537_v5, %v12579_v14 }
 0x81b   :  { %9179 = vpow2.f32 %v5948_v19  ;;  %v5601_v38 = vmul.f32 %v5537_v5, %v12570_v31 }
 0x81c   :  { %v13366_v22 = vpop.eup %9173  ;;  %v5634_v21 = vadd.f32 %v5598_v25, %v5394_v63  ;;  %v5635_v3 = vadd.f32 %v5599_v39, %v5395_v13  ;;  %v5636_v40 = vadd.f32 %v5600_v20, %v5396_v9  ;;  %v14956_v39 = vld [vmem:[#allocation31_spill] sm:$0xff]  ;;  %v14957_v9 = vld [vmem:[#allocation32_spill] sm:$0xff] }
 0x81d   :  { %v13368_v2 = vpop.eup %9175  ;;  %v5637_v61 = vadd.f32 %v5601_v38, %v5397_v17  ;;  %v5773_v24 = vpop.xlane.xlu0 %5772  ;;  %v6014_v42 = vmul.f32 %v13366_v22, %v12559_v34  ;;  %v6212_v35 = vmul.f32 %v13366_v22, %v12555_v6  ;;  %v6410_v37 = vmul.f32 %v13366_v22, %v12579_v14 }
 0x81e   :  { %v5777_v33 = vpop.xlane.xlu1 %5776  ;;  %v5838_v57 = vmul.f32 %v5773_v24, %v12587_v46  ;;  %v5839_v29 = vmul.f32 %v5773_v24, %v12595_v7  ;;  %v6015_v56 = vmul.f32 %v13368_v2, %v12568_v23  ;;  %v6213_v60 = vmul.f32 %v13368_v2, %v12557_v18 }
 0x81f   :  { %v5840_v10 = vmul.f32 %v5777_v33, %v12587_v46  ;;  %v5841_v36 = vmul.f32 %v5777_v33, %v12595_v7  ;;  %v6411_v62 = vmul.f32 %v13368_v2, %v12570_v31  ;;  %v13391_v16 = vmul.f32 %v13366_v22, %v12587_v46 }
 0x820   :  { %v5874_v45 = vadd.f32 %v5838_v57, %v5634_v21  ;;  %v5875_v47 = vadd.f32 %v5839_v29, %v5635_v3  ;;  %v6050_v41 = vsel %vm5041_vm3, %v6015_v56, 0.0  ;;  %v6248_v63 = vsel %vm5041_vm3, %v6213_v60, 0.0 }
 0x821   :  { %v5876_v51 = vadd.f32 %v5840_v10, %v5636_v40  ;;  %v5877_v55 = vadd.f32 %v5841_v36, %v5637_v61  ;;  %v5061_v19 = vpop.xlane.xlu0 %5060  ;;  %v6446_v13 = vsel %vm5041_vm3, %v6411_v62, 0.0  ;;  %v6609_v40 = vmul.f32 %v13368_v2, %v12595_v7 }
 0x822   :  { %v5065_v0 = vpop.xlane.xlu1 %5064  ;;  %v5910_v5 = vsub.f32 %v12652_v50, %v5874_v45  ;;  %v5911_v25 = vsub.f32 %v12640_v27, %v5875_v47  ;;  %v5122_v38 = vmul.f32 %v5061_v19, %v12559_v34  ;;  %v5123_v21 = vmul.f32 %v5061_v19, %v12568_v23 }
 0x823   :  { %v5912_v20 = vsub.f32 %v14956_v39, %v5876_v51  ;;  %v5913_v17 = vsub.f32 %v14957_v9, %v5877_v55  ;;  %v5124_v3 = vmul.f32 %v5065_v0, %v12559_v34  ;;  %v6051_v57 = vadd.f32 %v6050_v41, %v6014_v42 }
 0x824   :  { %v13402_v61 = vpop.eup %9177  ;;  %v5950_v24 = vmul.f32 1.442695, %v5910_v5  ;;  %v5952_v33 = vmul.f32 1.442695, %v5911_v25  ;;  %v5125_v10 = vmul.f32 %v5065_v0, %v12568_v23  ;;  %v6249_v60 = vadd.f32 %v6248_v63, %v6212_v35 }
 0x825   :  { %v5954_v50 = vmul.f32 1.442695, %v5912_v20  ;;  %v13404_v27 = vpop.eup %9179  ;;  %v5956_v29 = vmul.f32 1.442695, %v5913_v17  ;;  %v5301_v36 = vpop.xlane.xlu0 %5300  ;;  %v6447_v62 = vadd.f32 %v6446_v13, %v6410_v37  ;;  %6052 = vadd.xlane.f32.xlu0 %v6051_v57  ;;  %v6016_v55 = vmul.f32 %v13402_v61, %v12559_v34 }
 0x826   :  { %v5305_v56 = vpop.xlane.xlu1 %5304  ;;  %9181 = vpow2.f32 %v5950_v24  ;;  %v5362_v45 = vmul.f32 %v5301_v36, %v12555_v6  ;;  %v5363_v47 = vmul.f32 %v5301_v36, %v12557_v18  ;;  %v6017_v19 = vmul.f32 %v13404_v27, %v12568_v23 }
 0x827   :  { %v5364_v51 = vmul.f32 %v5305_v56, %v12555_v6  ;;  %9183 = vpow2.f32 %v5952_v33  ;;  %v5365_v42 = vmul.f32 %v5305_v56, %v12557_v18  ;;  %v6644_v0 = vsel %vm5041_vm3, %v6609_v40, 0.0 }
 0x828   :  { %9185 = vpow2.f32 %v5954_v50  ;;  %v5398_v35 = vadd.f32 %v5362_v45, %v5122_v38  ;;  %v5399_v37 = vadd.f32 %v5363_v47, %v5123_v21  ;;  %v6054_v25 = vsel %vm5041_vm3, %v6017_v19, 0.0 }
 0x829   :  { %9187 = vpow2.f32 %v5956_v29  ;;  %v5400_v41 = vadd.f32 %v5364_v51, %v5124_v3  ;;  %v5401_v63 = vadd.f32 %v5365_v42, %v5125_v10  ;;  %v5541_v13 = vpop.xlane.xlu0 %5540  ;;  %6250 = vadd.xlane.f32.xlu0 %v6249_v60  ;;  %v6055_v38 = vadd.f32 %v6054_v25, %v6016_v55 }
 0x82a   :  { %v5545_v5 = vpop.xlane.xlu1 %5544  ;;  %v5602_v39 = vmul.f32 %v5541_v13, %v12579_v14  ;;  %v5603_v20 = vmul.f32 %v5541_v13, %v12570_v31  ;;  %v6214_v21 = vmul.f32 %v13402_v61, %v12555_v6  ;;  %v6215_v3 = vmul.f32 %v13404_v27, %v12557_v18 }
 0x82b   :  { %v5604_v9 = vmul.f32 %v5545_v5, %v12579_v14  ;;  %v5605_v17 = vmul.f32 %v5545_v5, %v12570_v31  ;;  %v6412_v40 = vmul.f32 %v13402_v61, %v12579_v14  ;;  %6056 = vadd.xlane.f32.xlu1 %v6055_v38  ;;  %v6413_v56 = vmul.f32 %v13404_v27, %v12570_v31 }
 0x82c   :  { %v5638_v24 = vadd.f32 %v5602_v39, %v5398_v35  ;;  %v5639_v33 = vadd.f32 %v5603_v20, %v5399_v37  ;;  %v6252_v36 = vsel %vm5041_vm3, %v6215_v3, 0.0  ;;  %v6610_v60 = vmul.f32 %v13402_v61, %v12587_v46 }
 0x82d   :  { %v5640_v50 = vadd.f32 %v5604_v9, %v5400_v41  ;;  %v5641_v57 = vadd.f32 %v5605_v17, %v5401_v63  ;;  %v5781_v29 = vpop.xlane.xlu0 %5780  ;;  %v6611_v45 = vmul.f32 %v13404_v27, %v12595_v7  ;;  %6448 = vadd.xlane.f32.xlu0 %v6447_v62  ;;  %v6645_v19 = vadd.f32 %v6644_v0, %v13391_v16 }
 0x82e   :  { %v5785_v10 = vpop.xlane.xlu1 %5784  ;;  %v5842_v47 = vmul.f32 %v5781_v29, %v12587_v46  ;;  %v5843_v51 = vmul.f32 %v5781_v29, %v12595_v7  ;;  %v6253_v35 = vadd.f32 %v6252_v36, %v6214_v21  ;;  %v6450_v37 = vsel %vm5041_vm3, %v6413_v56, 0.0  ;;  %v14960_v21 = vld [vmem:[#allocation33_spill] sm:$0xff]  ;;  %v14961_v29 = vld [vmem:[#allocation34_spill] sm:$0xff] }
 0x82f   :  { %v5844_v42 = vmul.f32 %v5785_v10, %v12587_v46  ;;  %v5845_v55 = vmul.f32 %v5785_v10, %v12595_v7  ;;  %v6648_v41 = vsel %vm5041_vm3, %v6611_v45, 0.0  ;;  %v6451_v17 = vadd.f32 %v6450_v37, %v6412_v40 }
 0x830   :  { %v13441_v63 = vpop.eup %9181  ;;  %v5878_v13 = vadd.f32 %v5842_v47, %v5638_v24  ;;  %v5879_v5 = vadd.f32 %v5843_v51, %v5639_v33  ;;  %6254 = vadd.xlane.f32.xlu1 %v6253_v35  ;;  %v6649_v0 = vadd.f32 %v6648_v41, %v6610_v60  ;;  %v14962_v24 = vld [vmem:[#allocation36_spill] sm:$0xff] }
 0x831   :  { %14958 = vst [vmem:[#allocation40_spill] sm:$0xff] %v13441_v63  ;;  %v5880_v62 = vadd.f32 %v5844_v42, %v5640_v50  ;;  %v5881_v25 = vadd.f32 %v5845_v55, %v5641_v57  ;;  %v13443_v39 = vpop.eup %9183  ;;  %v5069_v20 = vpop.xlane.xlu0 %5068  ;;  %v6018_v16 = vmul.f32 %v13441_v63, %v12559_v34  ;;  %v14963_v50 = vld [vmem:[#allocation35_spill] sm:$0xff]  ;;  %6646 = vadd.xlane.f32.xlu0 %v6645_v19 }
 0x832   :  { %14959 = vst [vmem:[#allocation41_spill] sm:$0xff] %v13443_v39  ;;  %v5073_v9 = vpop.xlane.xlu1 %5072  ;;  %v13447_v38 = vpop.eup %9185  ;;  %v5914_v3 = vsub.f32 %v14960_v21, %v5878_v13  ;;  %v5915_v10 = vsub.f32 %v14961_v29, %v5879_v5  ;;  %v5126_v56 = vmul.f32 %v5069_v20, %v12559_v34  ;;  %v5127_v40 = vmul.f32 %v5069_v20, %v12568_v23 }
 0x833   :  { %v5916_v33 = vsub.f32 %v14962_v24, %v5880_v62  ;;  %v5917_v57 = vsub.f32 %v14963_v50, %v5881_v25  ;;  %v13453_v36 = vpop.eup %9187  ;;  %v5128_v45 = vmul.f32 %v5073_v9, %v12559_v34  ;;  %v6216_v60 = vmul.f32 %v13441_v63, %v12555_v6 }
 0x834   :  { %v5958_v47 = vmul.f32 1.442695, %v5914_v3  ;;  %v5960_v51 = vmul.f32 1.442695, %v5915_v10  ;;  %v6019_v55 = vmul.f32 %v13443_v39, %v12568_v23  ;;  %v5129_v19 = vmul.f32 %v5073_v9, %v12568_v23  ;;  %6452 = vadd.xlane.f32.xlu1 %v6451_v17 }
 0x835   :  { %v5962_v42 = vmul.f32 1.442695, %v5916_v33  ;;  %v5964_v35 = vmul.f32 1.442695, %v5917_v57  ;;  %v5309_v37 = vpop.xlane.xlu0 %5308  ;;  %v6217_v13 = vmul.f32 %v13443_v39, %v12557_v18  ;;  %v6020_v5 = vmul.f32 %v13447_v38, %v12559_v34 }
 0x836   :  { %v5313_v41 = vpop.xlane.xlu1 %5312  ;;  %9189 = vpow2.f32 %v5958_v47  ;;  %v5366_v62 = vmul.f32 %v5309_v37, %v12555_v6  ;;  %v5367_v25 = vmul.f32 %v5309_v37, %v12557_v18  ;;  %v6058_v9 = vsel %vm5041_vm3, %v6019_v55, 0.0 }
 0x837   :  { %v5368_v20 = vmul.f32 %v5313_v41, %v12555_v6  ;;  %9191 = vpow2.f32 %v5960_v51  ;;  %v5369_v21 = vmul.f32 %v5313_v41, %v12557_v18  ;;  %v6021_v17 = vmul.f32 %v13453_v36, %v12568_v23 }
 0x838   :  { %9193 = vpow2.f32 %v5962_v42  ;;  %v5402_v3 = vadd.f32 %v5366_v62, %v5126_v56  ;;  %v5403_v29 = vadd.f32 %v5367_v25, %v5127_v40  ;;  %v6256_v10 = vsel %vm5041_vm3, %v6217_v13, 0.0  ;;  %6650 = vadd.xlane.f32.xlu1 %v6649_v0 }
 0x839   :  { %9195 = vpow2.f32 %v5964_v35  ;;  %v5404_v24 = vadd.f32 %v5368_v20, %v5128_v45  ;;  %v5405_v33 = vadd.f32 %v5369_v21, %v5129_v19  ;;  %v6059_v50 = vadd.f32 %v6058_v9, %v6018_v16  ;;  %v5549_v57 = vpop.xlane.xlu0 %5548 }
 0x83a   :  { %v5553_v47 = vpop.xlane.xlu1 %5552  ;;  %v5606_v51 = vmul.f32 %v5549_v57, %v12579_v14  ;;  %v5607_v37 = vmul.f32 %v5549_v57, %v12570_v31  ;;  %v6257_v56 = vadd.f32 %v6256_v10, %v6216_v60  ;;  %v6062_v40 = vsel %vm5041_vm3, %v6021_v17, 0.0 }
 0x83b   :  { %v5608_v55 = vmul.f32 %v5553_v47, %v12579_v14  ;;  %v5609_v41 = vmul.f32 %v5553_v47, %v12570_v31  ;;  %6060 = vadd.xlane.f32.xlu0 %v6059_v50  ;;  %v6414_v45 = vmul.f32 %v13441_v63, %v12579_v14  ;;  %v6415_v16 = vmul.f32 %v13443_v39, %v12570_v31 }
 0x83c   :  { %v5642_v0 = vadd.f32 %v5606_v51, %v5402_v3  ;;  %v5643_v42 = vadd.f32 %v5607_v37, %v5403_v29  ;;  %v6218_v19 = vmul.f32 %v13447_v38, %v12555_v6  ;;  %v6063_v62 = vadd.f32 %v6062_v40, %v6020_v5 }
 0x83d   :  { %v5644_v35 = vadd.f32 %v5608_v55, %v5404_v24  ;;  %v5645_v13 = vadd.f32 %v5609_v41, %v5405_v33  ;;  %v5789_v25 = vpop.xlane.xlu0 %5788  ;;  %v6454_v60 = vsel %vm5041_vm3, %v6415_v16, 0.0  ;;  %v6219_v21 = vmul.f32 %v13453_v36, %v12557_v18 }
 0x83e   :  { %v5793_v20 = vpop.xlane.xlu1 %5792  ;;  %v5846_v9 = vmul.f32 %v5789_v25, %v12587_v46  ;;  %v5847_v17 = vmul.f32 %v5789_v25, %v12595_v7  ;;  %6064 = vadd.xlane.f32.xlu1 %v6063_v62  ;;  %v6455_v10 = vadd.f32 %v6454_v60, %v6414_v45  ;;  %v6612_v24 = vmul.f32 %v13441_v63, %v12587_v46 }
 0x83f   :  { %v5848_v3 = vmul.f32 %v5793_v20, %v12587_v46  ;;  %v5849_v29 = vmul.f32 %v5793_v20, %v12595_v7  ;;  %6258 = vadd.xlane.f32.xlu0 %v6257_v56  ;;  %v6260_v5 = vsel %vm5041_vm3, %v6219_v21, 0.0  ;;  %v6613_v33 = vmul.f32 %v13443_v39, %v12595_v7  ;;  %v14966_v20 = vld [vmem:[#allocation42_spill] sm:$0xff] }
 0x840   :  { %v13498_v50 = vpop.eup %9189  ;;  %v5882_v57 = vadd.f32 %v5846_v9, %v5642_v0  ;;  %v5883_v47 = vadd.f32 %v5847_v17, %v5643_v42  ;;  %v6261_v41 = vadd.f32 %v6260_v5, %v6218_v19  ;;  %v6416_v16 = vmul.f32 %v13447_v38, %v12579_v14  ;;  %v14967_v42 = vld [vmem:[#allocation37_spill] sm:$0xff]  ;;  %v14970_v9 = vld [vmem:[#allocation38_spill] sm:$0xff] }
 0x841   :  { %14964 = vst [vmem:[#allocation22_spill] sm:$0xff] %v13498_v50  ;;  %v5884_v51 = vadd.f32 %v5848_v3, %v5644_v35  ;;  %v5885_v37 = vadd.f32 %v5849_v29, %v5645_v13  ;;  %v13500_v55 = vpop.eup %9191  ;;  %v5077_v56 = vpop.xlane.xlu0 %5076  ;;  %v6652_v45 = vsel %vm5041_vm3, %v6613_v33, 0.0  ;;  %v6417_v62 = vmul.f32 %v13453_v36, %v12570_v31  ;;  %v14968_v13 = vld [vmem:[#allocation43_spill] sm:$0xff] }
 0x842   :  { %v5081_v40 = vpop.xlane.xlu1 %5080  ;;  %v13507_v25 = vpop.eup %9193  ;;  %v5918_v0 = vsub.f32 %v14966_v20, %v5882_v57  ;;  %v5919_v35 = vsub.f32 %v14967_v42, %v5883_v47  ;;  %v6022_v19 = vmul.f32 %v13498_v50, %v12559_v34  ;;  %6262 = vadd.xlane.f32.xlu1 %v6261_v41  ;;  %v5130_v3 = vmul.f32 %v5077_v56, %v12559_v34 }
 0x843   :  { %14965 = vst [vmem:[#allocation23_spill] sm:$0xff] %v13507_v25  ;;  %v5920_v60 = vsub.f32 %v14968_v13, %v5884_v51  ;;  %v13514_v21 = vpop.eup %9195  ;;  %v5921_v17 = vsub.f32 %v14970_v9, %v5885_v37  ;;  %6456 = vadd.xlane.f32.xlu0 %v6455_v10  ;;  %v5131_v29 = vmul.f32 %v5077_v56, %v12568_v23  ;;  %v6458_v5 = vsel %vm5041_vm3, %v6417_v62, 0.0 }
 0x844   :  { %14969 = vst [vmem:[#allocation20_spill] sm:$0xff] %v13514_v21  ;;  %v5966_v33 = vmul.f32 1.442695, %v5918_v0  ;;  %v5968_v57 = vmul.f32 1.442695, %v5919_v35  ;;  %v5132_v51 = vmul.f32 %v5081_v40, %v12559_v34  ;;  %v5133_v20 = vmul.f32 %v5081_v40, %v12568_v23 }
 0x845   :  { %v5970_v47 = vmul.f32 1.442695, %v5920_v60  ;;  %v6653_v42 = vadd.f32 %v6652_v45, %v6612_v24  ;;  %v6459_v13 = vadd.f32 %v6458_v5, %v6416_v16  ;;  %v5317_v63 = vpop.xlane.xlu0 %5316  ;;  %v6023_v10 = vmul.f32 %v13500_v55, %v12568_v23 }
 0x846   :  { %v5321_v39 = vpop.xlane.xlu1 %5320  ;;  %9197 = vpow2.f32 %v5966_v33  ;;  %v5370_v37 = vmul.f32 %v5317_v63, %v12555_v6  ;;  %v5371_v41 = vmul.f32 %v5317_v63, %v12557_v18  ;;  %v5972_v62 = vmul.f32 1.442695, %v5921_v17 }
 0x847   :  { %v5372_v56 = vmul.f32 %v5321_v39, %v12555_v6  ;;  %9199 = vpow2.f32 %v5968_v57  ;;  %6654 = vadd.xlane.f32.xlu0 %v6653_v42  ;;  %6460 = vadd.xlane.f32.xlu1 %v6459_v13  ;;  %v5373_v40 = vmul.f32 %v5321_v39, %v12557_v18  ;;  %v6066_v24 = vsel %vm5041_vm3, %v6023_v10, 0.0 }
 0x848   :  { %9201 = vpow2.f32 %v5970_v47  ;;  %v5406_v45 = vadd.f32 %v5370_v37, %v5130_v3  ;;  %v5407_v16 = vadd.f32 %v5371_v41, %v5131_v29  ;;  %v6614_v0 = vmul.f32 %v13447_v38, %v12587_v46 }
 0x849   :  { %v5408_v35 = vadd.f32 %v5372_v56, %v5132_v51  ;;  %v5409_v60 = vadd.f32 %v5373_v40, %v5133_v20  ;;  %v6067_v9 = vadd.f32 %v6066_v24, %v6022_v19  ;;  %v6615_v63 = vmul.f32 %v13453_v36, %v12595_v7  ;;  %v5557_v5 = vpop.xlane.xlu0 %5556 }
 0x84a   :  { %v5561_v17 = vpop.xlane.xlu1 %5560  ;;  %v5610_v33 = vmul.f32 %v5557_v5, %v12579_v14  ;;  %v5611_v39 = vmul.f32 %v5557_v5, %v12570_v31  ;;  %v6220_v47 = vmul.f32 %v13498_v50, %v12555_v6  ;;  %v6221_v19 = vmul.f32 %v13500_v55, %v12557_v18 }
 0x84b   :  { %v5612_v57 = vmul.f32 %v5561_v17, %v12579_v14  ;;  %v5613_v3 = vmul.f32 %v5561_v17, %v12570_v31  ;;  %6068 = vadd.xlane.f32.xlu0 %v6067_v9  ;;  %v6656_v29 = vsel %vm5041_vm3, %v6615_v63, 0.0  ;;  %v6024_v51 = vmul.f32 %v13507_v25, %v12559_v34 }
 0x84c   :  { %v6657_v20 = vadd.f32 %v6656_v29, %v6614_v0  ;;  %v5646_v42 = vadd.f32 %v5610_v33, %v5406_v45  ;;  %v5647_v13 = vadd.f32 %v5611_v39, %v5407_v16  ;;  %v6264_v41 = vsel %vm5041_vm3, %v6221_v19, 0.0 }
 0x84d   :  { %v5648_v10 = vadd.f32 %v5612_v57, %v5408_v35  ;;  %v5649_v37 = vadd.f32 %v5613_v3, %v5409_v60  ;;  %v6025_v56 = vmul.f32 %v13514_v21, %v12568_v23  ;;  %v5797_v40 = vpop.xlane.xlu0 %5796  ;;  %v6418_v9 = vmul.f32 %v13498_v50, %v12579_v14 }
 0x84e   :  { %v5801_v24 = vpop.xlane.xlu1 %5800  ;;  %6658 = vadd.xlane.f32.xlu1 %v6657_v20  ;;  %v6265_v63 = vadd.f32 %v6264_v41, %v6220_v47  ;;  %v5850_v5 = vmul.f32 %v5797_v40, %v12587_v46  ;;  %v5851_v0 = vmul.f32 %v5797_v40, %v12595_v7  ;;  %v6419_v60 = vmul.f32 %v13500_v55, %v12570_v31 }
 0x84f   :  { %v5852_v45 = vmul.f32 %v5801_v24, %v12587_v46  ;;  %v6070_v16 = vsel %vm5041_vm3, %v6025_v56, 0.0  ;;  %v5853_v35 = vmul.f32 %v5801_v24, %v12595_v7  ;;  %v6222_v17 = vmul.f32 %v13507_v25, %v12555_v6 }
 0x850   :  { %v13558_v33 = vpop.eup %9197  ;;  %6266 = vadd.xlane.f32.xlu0 %v6265_v63  ;;  %v6071_v39 = vadd.f32 %v6070_v16, %v6024_v51  ;;  %v5886_v57 = vadd.f32 %v5850_v5, %v5646_v42  ;;  %v5887_v3 = vadd.f32 %v5851_v0, %v5647_v13  ;;  %9203 = vpow2.f32 %v5972_v62 }
 0x851   :  { %14971 = vst [vmem:[#allocation21_spill] sm:$0xff] %v13558_v33  ;;  %v5888_v29 = vadd.f32 %v5852_v45, %v5648_v10  ;;  %v13560_v47 = vpop.eup %9199  ;;  %v5889_v19 = vadd.f32 %v5853_v35, %v5649_v37  ;;  %v6462_v20 = vsel %vm5041_vm3, %v6419_v60, 0.0  ;;  %v6223_v41 = vmul.f32 %v13514_v21, %v12557_v18  ;;  %v5085_v56 = vpop.xlane.xlu0 %5084  ;;  %v14973_v10 = vld [vmem:[#allocation39_spill] sm:$0xff] }
 0x852   :  { %v5089_v40 = vpop.xlane.xlu1 %5088  ;;  %v13565_v24 = vpop.eup %9201  ;;  %6072 = vadd.xlane.f32.xlu1 %v6071_v39  ;;  %v5922_v63 = vsub.f32 %v12929_v1, %v5886_v57  ;;  %v5923_v51 = vsub.f32 %v12897_v48, %v5887_v3  ;;  %v6463_v13 = vadd.f32 %v6462_v20, %v6418_v9  ;;  %v5134_v5 = vmul.f32 %v5085_v56, %v12559_v34 }
 0x853   :  { %14972 = vst [vmem:[#allocation24_spill] sm:$0xff] %v13565_v24  ;;  %v5924_v42 = vsub.f32 %v12932_v11, %v5888_v29  ;;  %v5925_v62 = vsub.f32 %v14973_v10, %v5889_v19  ;;  %v6268_v37 = vsel %vm5041_vm3, %v6223_v41, 0.0  ;;  %v6616_v0 = vmul.f32 %v13498_v50, %v12587_v46 }
 0x854   :  { %v5974_v45 = vmul.f32 1.442695, %v5922_v63  ;;  %v5976_v16 = vmul.f32 1.442695, %v5923_v51  ;;  %6464 = vadd.xlane.f32.xlu0 %v6463_v13  ;;  %v6269_v60 = vadd.f32 %v6268_v37, %v6222_v17  ;;  %v5135_v48 = vmul.f32 %v5085_v56, %v12568_v23 }
 0x855   :  { %v5978_v35 = vmul.f32 1.442695, %v5924_v42  ;;  %v13575_v1 = vmul.f32 1.442695, %v5925_v62  ;;  %v5136_v11 = vmul.f32 %v5089_v40, %v12559_v34  ;;  %v6617_v9 = vmul.f32 %v13500_v55, %v12595_v7  ;;  %v5325_v39 = vpop.xlane.xlu0 %5324 }
 0x856   :  { %v5329_v57 = vpop.xlane.xlu1 %5328  ;;  %9205 = vpow2.f32 %v5974_v45  ;;  %6270 = vadd.xlane.f32.xlu1 %v6269_v60  ;;  %v6420_v3 = vmul.f32 %v13507_v25, %v12579_v14  ;;  %v6421_v29 = vmul.f32 %v13514_v21, %v12570_v31  ;;  %v5374_v17 = vmul.f32 %v5325_v39, %v12555_v6 }
 0x857   :  { %9207 = vpow2.f32 %v5976_v16  ;;  %v6660_v19 = vsel %vm5041_vm3, %v6617_v9, 0.0  ;;  %v5375_v20 = vmul.f32 %v5325_v39, %v12557_v18  ;;  %v5376_v41 = vmul.f32 %v5329_v57, %v12555_v6 }
 0x858   :  { %9209 = vpow2.f32 %v5978_v35  ;;  %v5137_v56 = vmul.f32 %v5089_v40, %v12568_v23  ;;  %v6661_v63 = vadd.f32 %v6660_v19, %v6616_v0  ;;  %v6466_v51 = vsel %vm5041_vm3, %v6421_v29, 0.0 }
 0x859   :  { %v6467_v42 = vadd.f32 %v6466_v51, %v6420_v3  ;;  %v5410_v13 = vadd.f32 %v5374_v17, %v5134_v5  ;;  %v5411_v10 = vadd.f32 %v5375_v20, %v5135_v48  ;;  %v5377_v62 = vmul.f32 %v5329_v57, %v12557_v18  ;;  %v5565_v37 = vpop.xlane.xlu0 %5564 }
 0x85a   :  { %v5569_v45 = vpop.xlane.xlu1 %5568  ;;  %6662 = vadd.xlane.f32.xlu0 %v6661_v63  ;;  %v5412_v16 = vadd.f32 %v5376_v41, %v5136_v11  ;;  %v6026_v60 = vmul.f32 %v13558_v33, %v12559_v34  ;;  %v6027_v35 = vmul.f32 %v13560_v47, %v12568_v23  ;;  %v6618_v40 = vmul.f32 %v13507_v25, %v12587_v46  ;;  %v13598_v0 = vpop.eup %9203 }
 0x85b   :  { %6468 = vadd.xlane.f32.xlu1 %v6467_v42  ;;  %v5413_v5 = vadd.f32 %v5377_v62, %v5137_v56  ;;  %v6619_v48 = vmul.f32 %v13514_v21, %v12595_v7  ;;  %v5614_v9 = vmul.f32 %v5565_v37, %v12579_v14  ;;  %v5615_v11 = vmul.f32 %v5565_v37, %v12570_v31 }
 0x85c   :  { %v6074_v39 = vsel %vm5041_vm3, %v6027_v35, 0.0  ;;  %v5616_v57 = vmul.f32 %v5569_v45, %v12579_v14  ;;  %v5617_v3 = vmul.f32 %v5569_v45, %v12570_v31  ;;  %v6224_v29 = vmul.f32 %v13558_v33, %v12555_v6 }
 0x85d   :  { %v6075_v17 = vadd.f32 %v6074_v39, %v6026_v60  ;;  %v6664_v19 = vsel %vm5041_vm3, %v6619_v48, 0.0  ;;  %v5650_v20 = vadd.f32 %v5614_v9, %v5410_v13  ;;  %v5651_v41 = vadd.f32 %v5615_v11, %v5411_v10  ;;  %v5805_v56 = vpop.xlane.xlu0 %5804 }
 0x85e   :  { %v5809_v63 = vpop.xlane.xlu1 %5808  ;;  %v6665_v51 = vadd.f32 %v6664_v19, %v6618_v40  ;;  %v5652_v42 = vadd.f32 %v5616_v57, %v5412_v16  ;;  %v5653_v62 = vadd.f32 %v5617_v3, %v5413_v5  ;;  %v6225_v37 = vmul.f32 %v13560_v47, %v12557_v18 }
 0x85f   :  { %6076 = vadd.xlane.f32.xlu0 %v6075_v17  ;;  %v6028_v45 = vmul.f32 %v13565_v24, %v12559_v34  ;;  %v6029_v35 = vmul.f32 %v13598_v0, %v12568_v23  ;;  %v5854_v60 = vmul.f32 %v5805_v56, %v12587_v46  ;;  %v5855_v13 = vmul.f32 %v5805_v56, %v12595_v7 }
 0x860   :  { %v13618_v10 = vpop.eup %9205  ;;  %6666 = vadd.xlane.f32.xlu1 %v6665_v51  ;;  %v6272_v16 = vsel %vm5041_vm3, %v6225_v37, 0.0  ;;  %v5856_v40 = vmul.f32 %v5809_v63, %v12587_v46  ;;  %v5857_v5 = vmul.f32 %v5809_v63, %v12595_v7  ;;  %v6422_v48 = vmul.f32 %v13558_v33, %v12579_v14 }
 0x861   :  { %v13625_v9 = vpop.eup %9207  ;;  %v6273_v11 = vadd.f32 %v6272_v16, %v6224_v29  ;;  %v6078_v39 = vsel %vm5041_vm3, %v6029_v35, 0.0  ;;  %v5890_v57 = vadd.f32 %v5854_v60, %v5650_v20  ;;  %v5891_v3 = vadd.f32 %v5855_v13, %v5651_v41  ;;  %v5093_v17 = vpop.xlane.xlu0 %5092 }
 0x862   :  { %v5097_v19 = vpop.xlane.xlu1 %5096  ;;  %v13628_v56 = vpop.eup %9209  ;;  %v6079_v51 = vadd.f32 %v6078_v39, %v6028_v45  ;;  %v5892_v37 = vadd.f32 %v5856_v40, %v5652_v42  ;;  %v5893_v25 = vadd.f32 %v5857_v5, %v5653_v62  ;;  %v6423_v63 = vmul.f32 %v13560_v47, %v12570_v31 }
 0x863   :  { %6274 = vadd.xlane.f32.xlu0 %v6273_v11  ;;  %v5926_v50 = vsub.f32 %v13019_v12, %v5890_v57  ;;  %v5927_v21 = vsub.f32 %v12993_v8, %v5891_v3  ;;  %v6226_v29 = vmul.f32 %v13565_v24, %v12555_v6  ;;  %v6227_v20 = vmul.f32 %v13598_v0, %v12557_v18 }
 0x864   :  { %9211 = vpow2.f32 %v13575_v1  ;;  %6080 = vadd.xlane.f32.xlu1 %v6079_v51  ;;  %v5928_v41 = vsub.f32 %v13022_v26, %v5892_v37  ;;  %v5929_v42 = vsub.f32 %v12996_v44, %v5893_v25  ;;  %v6470_v62 = vsel %vm5041_vm3, %v6423_v63, 0.0 }
 0x865   :  { %v5982_v45 = vmul.f32 1.442695, %v5926_v50  ;;  %v6471_v35 = vadd.f32 %v6470_v62, %v6422_v48  ;;  %v6276_v12 = vsel %vm5041_vm3, %v6227_v20, 0.0  ;;  %v5333_v8 = vpop.xlane.xlu0 %5332  ;;  %v5984_v13 = vmul.f32 1.442695, %v5927_v21 }
 0x866   :  { %v5337_v60 = vpop.xlane.xlu1 %5336  ;;  %v6277_v16 = vadd.f32 %v6276_v12, %v6226_v29  ;;  %v5138_v40 = vmul.f32 %v5093_v17, %v12559_v34  ;;  %v13644_v5 = vmul.f32 1.442695, %v5928_v41  ;;  %v13646_v1 = vmul.f32 1.442695, %v5929_v42 }
 0x867   :  { %6472 = vadd.xlane.f32.xlu0 %v6471_v35  ;;  %v5139_v26 = vmul.f32 %v5093_v17, %v12568_v23  ;;  %v6620_v44 = vmul.f32 %v13558_v33, %v12587_v46  ;;  %9213 = vpow2.f32 %v5982_v45  ;;  %v6621_v50 = vmul.f32 %v13560_v47, %v12595_v7 }
 0x868   :  { %6278 = vadd.xlane.f32.xlu1 %v6277_v16  ;;  %v6424_v25 = vmul.f32 %v13565_v24, %v12579_v14  ;;  %v6425_v21 = vmul.f32 %v13598_v0, %v12570_v31  ;;  %v5140_v48 = vmul.f32 %v5097_v19, %v12559_v34  ;;  %v5378_v11 = vmul.f32 %v5333_v8, %v12555_v6 }
 0x869   :  { %v5379_v39 = vmul.f32 %v5333_v8, %v12557_v18  ;;  %v5380_v57 = vmul.f32 %v5337_v60, %v12555_v6  ;;  %v5573_v3 = vpop.xlane.xlu0 %5572  ;;  %v5141_v51 = vmul.f32 %v5097_v19, %v12568_v23  ;;  %v6668_v37 = vsel %vm5041_vm3, %v6621_v50, 0.0 }
 0x86a   :  { %v5577_v17 = vpop.xlane.xlu1 %5576  ;;  %v6474_v63 = vsel %vm5041_vm3, %v6425_v21, 0.0  ;;  %v5381_v29 = vmul.f32 %v5337_v60, %v12557_v18  ;;  %v6669_v20 = vadd.f32 %v6668_v37, %v6620_v44  ;;  %v5414_v42 = vadd.f32 %v5378_v11, %v5138_v40 }
 0x86b   :  { %v6475_v41 = vadd.f32 %v6474_v63, %v6424_v25  ;;  %v5415_v62 = vadd.f32 %v5379_v39, %v5139_v26  ;;  %v5416_v45 = vadd.f32 %v5380_v57, %v5140_v48  ;;  %v6030_v12 = vmul.f32 %v13618_v10, %v12559_v34 }
 0x86c   :  { %v5417_v35 = vadd.f32 %v5381_v29, %v5141_v51  ;;  %v6031_v8 = vmul.f32 %v13625_v9, %v12568_v23  ;;  %9215 = vpow2.f32 %v5984_v13  ;;  %6670 = vadd.xlane.f32.xlu0 %v6669_v20  ;;  %v6622_v19 = vmul.f32 %v13565_v24, %v12587_v46 }
 0x86d   :  { %6476 = vadd.xlane.f32.xlu1 %v6475_v41  ;;  %v6623_v60 = vmul.f32 %v13598_v0, %v12595_v7  ;;  %v5618_v16 = vmul.f32 %v5573_v3, %v12579_v14  ;;  %v5813_v40 = vpop.xlane.xlu0 %5812  ;;  %v5619_v25 = vmul.f32 %v5573_v3, %v12570_v31  ;;  %v5620_v13 = vmul.f32 %v5577_v17, %v12579_v14 }
 0x86e   :  { %v5817_v26 = vpop.xlane.xlu1 %5816  ;;  %v13674_v44 = vpop.eup %9211  ;;  %v6082_v50 = vsel %vm5041_vm3, %v6031_v8, 0.0  ;;  %v5621_v21 = vmul.f32 %v5577_v17, %v12570_v31  ;;  %v6228_v57 = vmul.f32 %v13618_v10, %v12555_v6  ;;  %v6229_v20 = vmul.f32 %v13625_v9, %v12557_v18 }
 0x86f   :  { %v6083_v48 = vadd.f32 %v6082_v50, %v6030_v12  ;;  %v6672_v11 = vsel %vm5041_vm3, %v6623_v60, 0.0  ;;  %v5654_v39 = vadd.f32 %v5618_v16, %v5414_v42  ;;  %v5655_v37 = vadd.f32 %v5619_v25, %v5415_v62 }
 0x870   :  { %v6673_v51 = vadd.f32 %v6672_v11, %v6622_v19  ;;  %v5656_v63 = vadd.f32 %v5620_v13, %v5416_v45  ;;  %v5657_v29 = vadd.f32 %v5621_v21, %v5417_v35  ;;  %v6032_v3 = vmul.f32 %v13628_v56, %v12559_v34 }
 0x871   :  { %6084 = vadd.xlane.f32.xlu0 %v6083_v48  ;;  %v6033_v17 = vmul.f32 %v13674_v44, %v12568_v23  ;;  %v5858_v41 = vmul.f32 %v5813_v40, %v12587_v46  ;;  %v5101_v42 = vpop.xlane.xlu0 %5100  ;;  %v13690_v8 = vpop.eup %9213  ;;  %v5859_v62 = vmul.f32 %v5813_v40, %v12595_v7  ;;  %v5860_v45 = vmul.f32 %v5817_v26, %v12587_v46 }
 0x872   :  { %v5105_v12 = vpop.xlane.xlu1 %5104  ;;  %6674 = vadd.xlane.f32.xlu1 %v6673_v51  ;;  %v5861_v35 = vmul.f32 %v5817_v26, %v12595_v7  ;;  %v6426_v19 = vmul.f32 %v13618_v10, %v12579_v14  ;;  %v6280_v60 = vsel %vm5041_vm3, %v6229_v20, 0.0  ;;  %v6427_v25 = vmul.f32 %v13625_v9, %v12570_v31 }
 0x873   :  { %v6086_v16 = vsel %vm5041_vm3, %v6033_v17, 0.0  ;;  %v5894_v50 = vadd.f32 %v5858_v41, %v5654_v39  ;;  %v6281_v13 = vadd.f32 %v6280_v60, %v6228_v57  ;;  %v5895_v48 = vadd.f32 %v5859_v62, %v5655_v37 }
 0x874   :  { %v6087_v21 = vadd.f32 %v6086_v16, %v6032_v3  ;;  %v5896_v11 = vadd.f32 %v5860_v45, %v5656_v63  ;;  %v5897_v51 = vadd.f32 %v5861_v35, %v5657_v29  ;;  %v6478_v26 = vsel %vm5041_vm3, %v6427_v25, 0.0 }
 0x875   :  { %v5930_v40 = vsub.f32 %v13099_v32, %v5894_v50  ;;  %v5341_v24 = vpop.xlane.xlu0 %5340  ;;  %9217 = vpow2.f32 %v13644_v5  ;;  %6282 = vadd.xlane.f32.xlu0 %v6281_v13  ;;  %v5931_v39 = vsub.f32 %v13073_v54, %v5895_v48  ;;  %v6230_v57 = vmul.f32 %v13628_v56, %v12555_v6 }
 0x876   :  { %v5345_v33 = vpop.xlane.xlu1 %5344  ;;  %6088 = vadd.xlane.f32.xlu1 %v6087_v21  ;;  %v5932_v20 = vsub.f32 %v13102_v52, %v5896_v11  ;;  %v13708_v37 = vpop.eup %9215  ;;  %9219 = vpow2.f32 %v13646_v1  ;;  %v5933_v63 = vsub.f32 %v13076_v59, %v5897_v51  ;;  %v6231_v29 = vmul.f32 %v13674_v44, %v12557_v18 }
 0x877   :  { %v5990_v32 = vmul.f32 1.442695, %v5930_v40  ;;  %v5992_v5 = vmul.f32 1.442695, %v5931_v39  ;;  %v6479_v3 = vadd.f32 %v6478_v26, %v6426_v19  ;;  %v5142_v17 = vmul.f32 %v5101_v42, %v12559_v34 }
 0x878   :  { %v13715_v54 = vmul.f32 1.442695, %v5932_v20  ;;  %v6284_v52 = vsel %vm5041_vm3, %v6231_v29, 0.0  ;;  %v5143_v41 = vmul.f32 %v5101_v42, %v12568_v23  ;;  %v5144_v62 = vmul.f32 %v5105_v12, %v12559_v34 }
 0x879   :  { %v5581_v45 = vpop.xlane.xlu0 %5580  ;;  %9221 = vpow2.f32 %v5990_v32  ;;  %6480 = vadd.xlane.f32.xlu0 %v6479_v3  ;;  %v6285_v59 = vadd.f32 %v6284_v52, %v6230_v57  ;;  %v6624_v35 = vmul.f32 %v13618_v10, %v12587_v46  ;;  %v6625_v19 = vmul.f32 %v13625_v9, %v12595_v7 }
 0x87a   :  { %v5585_v1 = vpop.xlane.xlu1 %5584  ;;  %v13724_v60 = vmul.f32 1.442695, %v5933_v63  ;;  %v6428_v16 = vmul.f32 %v13628_v56, %v12579_v14  ;;  %v6429_v42 = vmul.f32 %v13674_v44, %v12570_v31  ;;  %v5382_v50 = vmul.f32 %v5341_v24, %v12555_v6 }
 0x87b   :  { %6286 = vadd.xlane.f32.xlu1 %v6285_v59  ;;  %v5145_v25 = vmul.f32 %v5105_v12, %v12568_v23  ;;  %v6676_v13 = vsel %vm5041_vm3, %v6625_v19, 0.0  ;;  %v5383_v21 = vmul.f32 %v5341_v24, %v12557_v18  ;;  %v5384_v48 = vmul.f32 %v5345_v33, %v12555_v6 }
 0x87c   :  { %v6677_v11 = vadd.f32 %v6676_v13, %v6624_v35  ;;  %v6482_v40 = vsel %vm5041_vm3, %v6429_v42, 0.0  ;;  %v5418_v51 = vadd.f32 %v5382_v50, %v5142_v17  ;;  %v5385_v26 = vmul.f32 %v5345_v33, %v12557_v18 }
 0x87d   :  { %v5821_v39 = vpop.xlane.xlu0 %5820  ;;  %v6483_v57 = vadd.f32 %v6482_v40, %v6428_v16  ;;  %v5419_v32 = vadd.f32 %v5383_v21, %v5143_v41  ;;  %v5420_v63 = vadd.f32 %v5384_v48, %v5144_v62  ;;  %v6034_v12 = vmul.f32 %v13690_v8, %v12559_v34 }
 0x87e   :  { %v5825_v20 = vpop.xlane.xlu1 %5824  ;;  %6678 = vadd.xlane.f32.xlu0 %v6677_v11  ;;  %v5421_v29 = vadd.f32 %v5385_v26, %v5145_v25  ;;  %v6035_v24 = vmul.f32 %v13708_v37, %v12568_v23  ;;  %v6626_v3 = vmul.f32 %v13628_v56, %v12587_v46  ;;  %v6627_v17 = vmul.f32 %v13674_v44, %v12595_v7 }
 0x87f   :  { %v13745_v33 = vpop.eup %9217  ;;  %6484 = vadd.xlane.f32.xlu1 %v6483_v57  ;;  %v5622_v52 = vmul.f32 %v5581_v45, %v12579_v14  ;;  %v5623_v41 = vmul.f32 %v5581_v45, %v12570_v31  ;;  %v5624_v62 = vmul.f32 %v5585_v1, %v12579_v14  ;;  %v5625_v59 = vmul.f32 %v5585_v1, %v12570_v31 }
 0x880   :  { %v13751_v35 = vpop.eup %9219  ;;  %v6090_v19 = vsel %vm5041_vm3, %v6035_v24, 0.0  ;;  %v6680_v16 = vsel %vm5041_vm3, %v6627_v17, 0.0  ;;  %v6232_v42 = vmul.f32 %v13690_v8, %v12555_v6  ;;  %v6233_v50 = vmul.f32 %v13708_v37, %v12557_v18 }
 0x881   :  { %v5109_v25 = vpop.xlane.xlu0 %5108  ;;  %v6091_v13 = vadd.f32 %v6090_v19, %v6034_v12  ;;  %v6681_v21 = vadd.f32 %v6680_v16, %v6626_v3  ;;  %v5658_v45 = vadd.f32 %v5622_v52, %v5418_v51  ;;  %v5659_v48 = vadd.f32 %v5623_v41, %v5419_v32 }
 0x882   :  { %v5113_v11 = vpop.xlane.xlu1 %5112  ;;  %v5660_v40 = vadd.f32 %v5624_v62, %v5420_v63  ;;  %v5661_v1 = vadd.f32 %v5625_v59, %v5421_v29  ;;  %v6288_v26 = vsel %vm5041_vm3, %v6233_v50, 0.0  ;;  %v6036_v57 = vmul.f32 %v13745_v33, %v12559_v34 }
 0x883   :  { %v13762_v24 = vpop.eup %9221  ;;  %9223 = vpow2.f32 %v5992_v5  ;;  %6092 = vadd.xlane.f32.xlu0 %v6091_v13  ;;  %6682 = vadd.xlane.f32.xlu1 %v6681_v21  ;;  %v6289_v17 = vadd.f32 %v6288_v26, %v6232_v42  ;;  %v6037_v12 = vmul.f32 %v13751_v35, %v12568_v23  ;;  %v5862_v51 = vmul.f32 %v5821_v39, %v12587_v46 }
 0x884   :  { %v5863_v32 = vmul.f32 %v5821_v39, %v12595_v7  ;;  %v5864_v63 = vmul.f32 %v5825_v20, %v12587_v46  ;;  %v5865_v29 = vmul.f32 %v5825_v20, %v12595_v7  ;;  %v6430_v3 = vmul.f32 %v13690_v8, %v12579_v14 }
 0x885   :  { %v6094_v52 = vsel %vm5041_vm3, %v6037_v12, 0.0  ;;  %v5898_v5 = vadd.f32 %v5862_v51, %v5658_v45  ;;  %v6431_v41 = vmul.f32 %v13708_v37, %v12570_v31  ;;  %v6234_v62 = vmul.f32 %v13745_v33, %v12555_v6  ;;  %v5349_v42 = vpop.xlane.xlu0 %5348 }
 0x886   :  { %v6095_v59 = vadd.f32 %v6094_v52, %v6036_v57  ;;  %v5899_v19 = vadd.f32 %v5863_v32, %v5659_v48  ;;  %v5900_v16 = vadd.f32 %v5864_v63, %v5660_v40  ;;  %v5901_v39 = vadd.f32 %v5865_v29, %v5661_v1  ;;  %v5353_v21 = vpop.xlane.xlu1 %5352 }
 0x887   :  { %9225 = vpow2.f32 %v13715_v54  ;;  %6290 = vadd.xlane.f32.xlu0 %v6289_v17  ;;  %v5934_v20 = vsub.f32 %v13179_v53, %v5898_v5  ;;  %v6486_v50 = vsel %vm5041_vm3, %v6431_v41, 0.0  ;;  %v6235_v13 = vmul.f32 %v13751_v35, %v12557_v18 }
 0x888   :  { %9227 = vpow2.f32 %v13724_v60  ;;  %6096 = vadd.xlane.f32.xlu1 %v6095_v59  ;;  %v5935_v45 = vsub.f32 %v13153_v58, %v5899_v19  ;;  %v5936_v48 = vsub.f32 %v13182_v28, %v5900_v16  ;;  %v5937_v40 = vsub.f32 %v13156_v43, %v5901_v39 }
 0x889   :  { %v5998_v1 = vmul.f32 1.442695, %v5934_v20  ;;  %v6487_v54 = vadd.f32 %v6486_v50, %v6430_v3  ;;  %v6292_v26 = vsel %vm5041_vm3, %v6235_v13, 0.0  ;;  %v5146_v53 = vmul.f32 %v5109_v25, %v12559_v34  ;;  %v5589_v29 = vpop.xlane.xlu0 %5588 }
 0x88a   :  { %v6000_v57 = vmul.f32 1.442695, %v5935_v45  ;;  %v6002_v17 = vmul.f32 1.442695, %v5936_v48  ;;  %v6293_v12 = vadd.f32 %v6292_v26, %v6234_v62  ;;  %v5147_v51 = vmul.f32 %v5109_v25, %v12568_v23  ;;  %v5593_v62 = vpop.xlane.xlu1 %5592 }
 0x88b   :  { %v6004_v32 = vmul.f32 1.442695, %v5937_v40  ;;  %6488 = vadd.xlane.f32.xlu0 %v6487_v54  ;;  %v5148_v60 = vmul.f32 %v5113_v11, %v12559_v34  ;;  %v6628_v58 = vmul.f32 %v13690_v8, %v12587_v46  ;;  %v6629_v43 = vmul.f32 %v13708_v37, %v12595_v7 }
 0x88c   :  { %9229 = vpow2.f32 %v5998_v1  ;;  %6294 = vadd.xlane.f32.xlu1 %v6293_v12  ;;  %v6432_v28 = vmul.f32 %v13745_v33, %v12579_v14  ;;  %v6433_v63 = vmul.f32 %v13751_v35, %v12570_v31  ;;  %v5386_v25 = vmul.f32 %v5349_v42, %v12555_v6 }
 0x88d   :  { %v13799_v3 = vpop.eup %9223  ;;  %9231 = vpow2.f32 %v6000_v57  ;;  %v6684_v52 = vsel %vm5041_vm3, %v6629_v43, 0.0  ;;  %v5387_v5 = vmul.f32 %v5349_v42, %v12557_v18  ;;  %v5388_v41 = vmul.f32 %v5353_v21, %v12555_v6 }
 0x88e   :  { %9233 = vpow2.f32 %v6002_v17  ;;  %v5149_v59 = vmul.f32 %v5113_v11, %v12568_v23  ;;  %v6685_v19 = vadd.f32 %v6684_v52, %v6628_v58  ;;  %v6490_v16 = vsel %vm5041_vm3, %v6433_v63, 0.0  ;;  %v5829_v58 = vpop.xlane.xlu0 %5828 }
 0x88f   :  { %v6491_v39 = vadd.f32 %v6490_v16, %v6432_v28  ;;  %v5422_v20 = vadd.f32 %v5386_v25, %v5146_v53  ;;  %v5423_v50 = vadd.f32 %v5387_v5, %v5147_v51  ;;  %v5389_v13 = vmul.f32 %v5353_v21, %v12557_v18  ;;  %v5833_v25 = vpop.xlane.xlu1 %5832 }
 0x890   :  { %6686 = vadd.xlane.f32.xlu0 %v6685_v19  ;;  %v6038_v45 = vmul.f32 %v13762_v24, %v12559_v34  ;;  %v6039_v42 = vmul.f32 %v13799_v3, %v12568_v23  ;;  %v6630_v48 = vmul.f32 %v13745_v33, %v12587_v46  ;;  %v6631_v11 = vmul.f32 %v13751_v35, %v12595_v7 }
 0x891   :  { %v13815_v40 = vpop.eup %9225  ;;  %6492 = vadd.xlane.f32.xlu1 %v6491_v39  ;;  %v5424_v1 = vadd.f32 %v5388_v41, %v5148_v60  ;;  %v5425_v54 = vadd.f32 %v5389_v13, %v5149_v59  ;;  %v5626_v21 = vmul.f32 %v5589_v29, %v12579_v14  ;;  %v5627_v26 = vmul.f32 %v5589_v29, %v12570_v31 }
 0x892   :  { %v13819_v53 = vpop.eup %9227  ;;  %v6098_v57 = vsel %vm5041_vm3, %v6039_v42, 0.0  ;;  %v6688_v17 = vsel %vm5041_vm3, %v6631_v11, 0.0  ;;  %v5628_v12 = vmul.f32 %v5593_v62, %v12579_v14  ;;  %v5629_v51 = vmul.f32 %v5593_v62, %v12570_v31 }
 0x893   :  { %v6099_v43 = vadd.f32 %v6098_v57, %v6038_v45  ;;  %v6689_v28 = vadd.f32 %v6688_v17, %v6630_v48  ;;  %v5662_v63 = vadd.f32 %v5626_v21, %v5422_v20  ;;  %v6236_v60 = vmul.f32 %v13762_v24, %v12555_v6 }
 0x894   :  { %v5663_v52 = vadd.f32 %v5627_v26, %v5423_v50  ;;  %v5665_v29 = vadd.f32 %v5629_v51, %v5425_v54  ;;  %v6237_v5 = vmul.f32 %v13799_v3, %v12557_v18  ;;  %v6040_v41 = vmul.f32 %v13815_v40, %v12559_v34 }
 0x895   :  { %9235 = vpow2.f32 %v6004_v32  ;;  %6100 = vadd.xlane.f32.xlu0 %v6099_v43  ;;  %6690 = vadd.xlane.f32.xlu1 %v6689_v28  ;;  %v6041_v62 = vmul.f32 %v13819_v53, %v12568_v23  ;;  %v5866_v59 = vmul.f32 %v5829_v58, %v12587_v46  ;;  %v5867_v19 = vmul.f32 %v5829_v58, %v12595_v7 }
 0x896   :  { %v13835_v16 = vpop.eup %9229  ;;  %v6296_v39 = vsel %vm5041_vm3, %v6237_v5, 0.0  ;;  %v5868_v20 = vmul.f32 %v5833_v25, %v12587_v46  ;;  %v5869_v50 = vmul.f32 %v5833_v25, %v12595_v7  ;;  %v6434_v32 = vmul.f32 %v13762_v24, %v12579_v14 }
 0x897   :  { %v13842_v13 = vpop.eup %9231  ;;  %v6297_v45 = vadd.f32 %v6296_v39, %v6236_v60  ;;  %v6102_v42 = vsel %vm5041_vm3, %v6041_v62, 0.0  ;;  %v5902_v48 = vadd.f32 %v5866_v59, %v5662_v63  ;;  %v5903_v11 = vadd.f32 %v5867_v19, %v5663_v52 }
 0x898   :  { %v13845_v54 = vpop.eup %9233  ;;  %v5664_v21 = vadd.f32 %v5628_v12, %v5424_v1  ;;  %v6103_v26 = vadd.f32 %v6102_v42, %v6040_v41  ;;  %v5905_v57 = vadd.f32 %v5869_v50, %v5665_v29  ;;  %v6435_v17 = vmul.f32 %v13799_v3, %v12570_v31 }
 0x899   :  { %6298 = vadd.xlane.f32.xlu0 %v6297_v45  ;;  %v5938_v51 = vsub.f32 %v13256_v49, %v5902_v48  ;;  %v5939_v58 = vsub.f32 %v13233_v4, %v5903_v11  ;;  %v6238_v43 = vmul.f32 %v13815_v40, %v12555_v6  ;;  %v6239_v28 = vmul.f32 %v13819_v53, %v12557_v18 }
 0x89a   :  { %6104 = vadd.xlane.f32.xlu1 %v6103_v26  ;;  %v5904_v63 = vadd.f32 %v5868_v20, %v5664_v21  ;;  %v5941_v1 = vsub.f32 %v13236_v15, %v5905_v57  ;;  %v6494_v12 = vsel %vm5041_vm3, %v6435_v17, 0.0  ;;  %v6632_v49 = vmul.f32 %v13762_v24, %v12587_v46 }
 0x89b   :  { %v6008_v60 = vmul.f32 1.442695, %v5939_v58  ;;  %v6495_v25 = vadd.f32 %v6494_v12, %v6434_v32  ;;  %v6300_v52 = vsel %vm5041_vm3, %v6239_v28, 0.0  ;;  %v6006_v4 = vmul.f32 1.442695, %v5938_v51 }
 0x89c   :  { %v6301_v29 = vadd.f32 %v6300_v52, %v6238_v43  ;;  %v6633_v5 = vmul.f32 %v13799_v3, %v12595_v7  ;;  %v6436_v41 = vmul.f32 %v13815_v40, %v12579_v14  ;;  %v6437_v15 = vmul.f32 %v13819_v53, %v12570_v31 }
 0x89d   :  { %6496 = vadd.xlane.f32.xlu0 %v6495_v25  ;;  %v6042_v62 = vmul.f32 %v13835_v16, %v12559_v34  ;;  %9237 = vpow2.f32 %v6008_v60  ;;  %v5940_v59 = vsub.f32 %v13274_v30, %v5904_v63  ;;  %v6043_v39 = vmul.f32 %v13842_v13, %v12568_v23 }
 0x89e   :  { %6302 = vadd.xlane.f32.xlu1 %v6301_v29  ;;  %v6692_v19 = vsel %vm5041_vm3, %v6633_v5, 0.0  ;;  %v6012_v50 = vmul.f32 1.442695, %v5941_v1  ;;  %v6498_v45 = vsel %vm5041_vm3, %v6437_v15, 0.0  ;;  %v6635_v42 = vmul.f32 %v13819_v53, %v12595_v7 }
 0x89f   :  { %v13872_v20 = vpop.eup %9235  ;;  %v6693_v32 = vadd.f32 %v6692_v19, %v6632_v49  ;;  %9239 = vpow2.f32 %v6006_v4  ;;  %v6499_v48 = vadd.f32 %v6498_v45, %v6436_v41  ;;  %v6106_v11 = vsel %vm5041_vm3, %v6043_v39, 0.0 }
 0x8a0   :  { %v6634_v30 = vmul.f32 %v13815_v40, %v12587_v46  ;;  %v6107_v21 = vadd.f32 %v6106_v11, %v6042_v62  ;;  %v6696_v26 = vsel %vm5041_vm3, %v6635_v42, 0.0  ;;  %v6241_v57 = vmul.f32 %v13842_v13, %v12557_v18 }
 0x8a1   :  { %6694 = vadd.xlane.f32.xlu0 %v6693_v32  ;;  %v6045_v17 = vmul.f32 %v13872_v20, %v12568_v23  ;;  %v6010_v51 = vmul.f32 1.442695, %v5940_v59  ;;  %9241 = vpow2.f32 %v6012_v50  ;;  %v6240_v58 = vmul.f32 %v13835_v16, %v12555_v6 }
 0x8a2   :  { %6500 = vadd.xlane.f32.xlu1 %v6499_v48  ;;  %v6697_v43 = vadd.f32 %v6696_v26, %v6634_v30  ;;  %v6304_v28 = vsel %vm5041_vm3, %v6241_v57, 0.0  ;;  %v6044_v63 = vmul.f32 %v13845_v54, %v12559_v34  ;;  %v6439_v1 = vmul.f32 %v13842_v13, %v12570_v31 }
 0x8a3   :  { %v6110_v12 = vsel %vm5041_vm3, %v6045_v17, 0.0  ;;  %v6243_v60 = vmul.f32 %v13872_v20, %v12557_v18  ;;  %9243 = vpow2.f32 %v6010_v51  ;;  %v6305_v25 = vadd.f32 %v6304_v28, %v6240_v58 }
 0x8a4   :  { %v6438_v52 = vmul.f32 %v13835_v16, %v12579_v14  ;;  %v6111_v4 = vadd.f32 %v6110_v12, %v6044_v63  ;;  %v6502_v29 = vsel %vm5041_vm3, %v6439_v1, 0.0  ;;  %v6242_v5 = vmul.f32 %v13845_v54, %v12555_v6 }
 0x8a5   :  { %6108 = vadd.xlane.f32.xlu0 %v6107_v21  ;;  %v6637_v41 = vmul.f32 %v13842_v13, %v12595_v7  ;;  %v6308_v15 = vsel %vm5041_vm3, %v6243_v60, 0.0  ;;  %v6441_v62 = vmul.f32 %v13872_v20, %v12570_v31  ;;  %v6636_v50 = vmul.f32 %v13835_v16, %v12587_v46 }
 0x8a6   :  { %6698 = vadd.xlane.f32.xlu1 %v6697_v43  ;;  %v6503_v39 = vadd.f32 %v6502_v29, %v6438_v52  ;;  %v6309_v32 = vadd.f32 %v6308_v15, %v6242_v5  ;;  %v6440_v42 = vmul.f32 %v13845_v54, %v12579_v14  ;;  %v6639_v21 = vmul.f32 %v13872_v20, %v12595_v7 }
 0x8a7   :  { %v13897_v49 = vpop.eup %9237  ;;  %v6700_v45 = vsel %vm5041_vm3, %v6637_v41, 0.0  ;;  %v6506_v11 = vsel %vm5041_vm3, %v6441_v62, 0.0  ;;  %v6638_v51 = vmul.f32 %v13845_v54, %v12587_v46 }
 0x8a8   :  { %v6047_v19 = vmul.f32 %v13897_v49, %v12568_v23  ;;  %v6701_v57 = vadd.f32 %v6700_v45, %v6636_v50  ;;  %v6507_v17 = vadd.f32 %v6506_v11, %v6440_v42  ;;  %v6245_v58 = vmul.f32 %v13897_v49, %v12557_v18 }
 0x8a9   :  { %6306 = vadd.xlane.f32.xlu0 %v6305_v25  ;;  %v13907_v59 = vpop.eup %9239  ;;  %v6704_v63 = vsel %vm5041_vm3, %v6639_v21, 0.0  ;;  %v6443_v29 = vmul.f32 %v13897_v49, %v12570_v31  ;;  %v6641_v45 = vmul.f32 %v13897_v49, %v12595_v7 }
 0x8aa   :  { %14974 = vst [vmem:[#allocation25_spill] sm:$0xff] %v13907_v59  ;;  %6112 = vadd.xlane.f32.xlu1 %v6111_v4  ;;  %v6046_v30 = vmul.f32 %v13907_v59, %v12559_v34  ;;  %v6114_v26 = vsel %vm5041_vm3, %v6047_v19, 0.0  ;;  %v6244_v60 = vmul.f32 %v13907_v59, %v12555_v6  ;;  %v6705_v25 = vadd.f32 %v6704_v63, %v6638_v51 }
 0x8ab   :  { %v13916_v48 = vpop.eup %9241  ;;  %v6312_v52 = vsel %vm5041_vm3, %v6245_v58, 0.0  ;;  %v6442_v19 = vmul.f32 %v13907_v59, %v12579_v14  ;;  %v6510_v50 = vsel %vm5041_vm3, %v6443_v29, 0.0  ;;  %v6708_v51 = vsel %vm5041_vm3, %v6641_v45, 0.0 }
 0x8ac   :  { %v6115_v28 = vadd.f32 %v6114_v26, %v6046_v30  ;;  %v6049_v1 = vmul.f32 %v13916_v48, %v12568_v23  ;;  %v6247_v41 = vmul.f32 %v13916_v48, %v12557_v18  ;;  %v6313_v62 = vadd.f32 %v6312_v52, %v6244_v60 }
 0x8ad   :  { %6504 = vadd.xlane.f32.xlu0 %v6503_v39  ;;  %v13928_v43 = vpop.eup %9243  ;;  %v6445_v11 = vmul.f32 %v13916_v48, %v12570_v31  ;;  %v6511_v26 = vadd.f32 %v6510_v50, %v6442_v19  ;;  %v6643_v63 = vmul.f32 %v13916_v48, %v12595_v7 }
 0x8ae   :  { %6310 = vadd.xlane.f32.xlu1 %v6309_v32  ;;  %14975 = vst [vmem:[#allocation44_spill] sm:$0xff] %v13928_v43  ;;  %v6048_v4 = vmul.f32 %v13928_v43, %v12559_v34  ;;  %v6118_v5 = vsel %vm5041_vm3, %v6049_v1, 0.0  ;;  %v6246_v32 = vmul.f32 %v13928_v43, %v12555_v6  ;;  %v6316_v42 = vsel %vm5041_vm3, %v6247_v41, 0.0 }
 0x8af   :  { %v6444_v58 = vmul.f32 %v13928_v43, %v12579_v14 }
 0x8b0   :  { %v6119_v39 = vadd.f32 %v6118_v5, %v6048_v4  ;;  %v6712_v4 = vsel %vm5041_vm3, %v6643_v63, 0.0 }
 0x8b1   :  { %6702 = vadd.xlane.f32.xlu0 %v6701_v57  ;;  %v6640_v57 = vmul.f32 %v13907_v59, %v12587_v46 }
 0x8b2   :  { %6508 = vadd.xlane.f32.xlu1 %v6507_v17  ;;  %v6053_v12 = vpop.xlane.xlu0 %6052  ;;  %v6317_v17 = vadd.f32 %v6316_v42, %v6246_v32 }
 0x8b5   :  { %6116 = vadd.xlane.f32.xlu0 %v6115_v28  ;;  %v6514_v28 = vsel %vm5041_vm3, %v6445_v11, 0.0 }
 0x8b6   :  { %6706 = vadd.xlane.f32.xlu1 %v6705_v25  ;;  %v6251_v15 = vpop.xlane.xlu0 %6250  ;;  %v6709_v25 = vadd.f32 %v6708_v51, %v6640_v57  ;;  %v6515_v52 = vadd.f32 %v6514_v28, %v6444_v58 }
 0x8b7   :  { %9245 = vrcp.f32 %v6251_v15 }
 0x8b8   :  { %v6057_v30 = vpop.xlane.xlu1 %6056  ;;  %9247 = vrcp.f32 %v6053_v12  ;;  %v6642_v12 = vmul.f32 %v13928_v43, %v12587_v46 }
 0x8b9   :  { %6314 = vadd.xlane.f32.xlu0 %v6313_v62 }
 0x8ba   :  { %6120 = vadd.xlane.f32.xlu1 %v6119_v39  ;;  %v6449_v21 = vpop.xlane.xlu0 %6448  ;;  %v6713_v5 = vadd.f32 %v6712_v4, %v6642_v12 }
 0x8bb   :  { %9249 = vrcp.f32 %v6449_v21 }
 0x8bd   :  { %6512 = vadd.xlane.f32.xlu0 %v6511_v26  ;;  %v6255_v1 = vpop.xlane.xlu1 %6254 }
 0x8be   :  { %6318 = vadd.xlane.f32.xlu1 %v6317_v17  ;;  %v6647_v60 = vpop.xlane.xlu0 %6646  ;;  %9251 = vrcp.f32 %v6255_v1 }
 0x8bf   :  { %9253 = vrcp.f32 %v6647_v60 }
 0x8c0   :  { %9255 = vrcp.f32 %v6057_v30 }
 0x8c1   :  { %6710 = vadd.xlane.f32.xlu0 %v6709_v25  ;;  %v6453_v29 = vpop.xlane.xlu1 %6452  ;;  %v9246_v41 = vpop.eup %9245 }
 0x8c2   :  { %6516 = vadd.xlane.f32.xlu1 %v6515_v52  ;;  %9257 = vrcp.f32 %v6453_v29  ;;  %v9248_v62 = vpop.eup %9247  ;;  %v6338_v32 = vmul.f32 %v9246_v41, %v12555_v6  ;;  %v6339_v45 = vmul.f32 %v9246_v41, %v12557_v18 }
 0x8c3   :  { %v6140_v30 = vmul.f32 %v9248_v62, %v12559_v34  ;;  %v6141_v21 = vmul.f32 %v9248_v62, %v12568_v23 }
 0x8c5   :  { %v6651_v15 = vpop.xlane.xlu1 %6650  ;;  %v9250_v19 = vpop.eup %9249  ;;  %v6374_v1 = vadd.f32 %v6338_v32, %v6140_v30  ;;  %v6375_v60 = vadd.f32 %v6339_v45, %v6141_v21 }
 0x8c6   :  { %6714 = vadd.xlane.f32.xlu1 %v6713_v5  ;;  %9259 = vrcp.f32 %v6651_v15  ;;  %v6536_v26 = vmul.f32 %v9250_v19, %v12579_v14  ;;  %v6537_v57 = vmul.f32 %v9250_v19, %v12570_v31 }
 0x8c8   :  { %v6061_v39 = vpop.xlane.xlu0 %6060  ;;  %v9252_v50 = vpop.eup %9251  ;;  %v6572_v41 = vadd.f32 %v6536_v26, %v6374_v1  ;;  %v6573_v15 = vadd.f32 %v6537_v57, %v6375_v60 }
 0x8c9   :  { %v9254_v42 = vpop.eup %9253  ;;  %v6340_v17 = vmul.f32 %v9252_v50, %v12555_v6  ;;  %v6341_v51 = vmul.f32 %v9252_v50, %v12557_v18  ;;  %9261 = vrcp.f32 %v6061_v39 }
 0x8ca   :  { %v9256_v11 = vpop.eup %9255  ;;  %v6734_v25 = vmul.f32 %v9254_v42, %v12587_v46  ;;  %v6735_v52 = vmul.f32 %v9254_v42, %v12595_v7 }
 0x8cb   :  { %v6065_v28 = vpop.xlane.xlu1 %6064  ;;  %v6142_v12 = vmul.f32 %v9256_v11, %v12559_v34  ;;  %v6143_v4 = vmul.f32 %v9256_v11, %v12568_v23 }
 0x8cc   :  { %v6259_v58 = vpop.xlane.xlu0 %6258  ;;  %v9258_v63 = vpop.eup %9257  ;;  %v6770_v30 = vadd.f32 %v6734_v25, %v6572_v41  ;;  %v6771_v42 = vadd.f32 %v6735_v52, %v6573_v15 }
 0x8cd   :  { %v6538_v29 = vmul.f32 %v9258_v63, %v12579_v14  ;;  %v6539_v5 = vmul.f32 %v9258_v63, %v12570_v31  ;;  %v6376_v62 = vadd.f32 %v6340_v17, %v6142_v12  ;;  %v6377_v19 = vadd.f32 %v6341_v51, %v6143_v4 }
 0x8ce   :  { %9263 = vrcp.f32 %v6259_v58  ;;  %v6807_v17 = vmul.f32 %v13368_v2, %v6771_v42  ;;  %v6806_v58 = vmul.f32 %v13366_v22, %v6770_v30 }
 0x8cf   :  { %v6263_v32 = vpop.xlane.xlu1 %6262  ;;  %9265 = vrcp.f32 %v6065_v28  ;;  %v6574_v21 = vadd.f32 %v6538_v29, %v6376_v62  ;;  %v6575_v59 = vadd.f32 %v6539_v5, %v6377_v19 }
 0x8d0   :  { %v6457_v50 = vpop.xlane.xlu0 %6456  ;;  %v9260_v45 = vpop.eup %9259 }
 0x8d1   :  { %v6736_v43 = vmul.f32 %v9260_v45, %v12587_v46  ;;  %v6737_v11 = vmul.f32 %v9260_v45, %v12595_v7  ;;  %9267 = vrcp.f32 %v6457_v50 }
 0x8d2   :  { %9269 = vrcp.f32 %v6263_v32 }
 0x8d3   :  { %v6772_v63 = vadd.f32 %v6736_v43, %v6574_v21  ;;  %v6773_v57 = vadd.f32 %v6737_v11, %v6575_v59  ;;  %v9262_v52 = vpop.eup %9261 }
 0x8d4   :  { %v6655_v39 = vpop.xlane.xlu0 %6654  ;;  %v6461_v26 = vpop.xlane.xlu1 %6460  ;;  %v6145_v62 = vmul.f32 %v9262_v52, %v12568_v23 }
 0x8d5   :  { %9271 = vrcp.f32 %v6655_v39  ;;  %v6809_v51 = vmul.f32 %v13404_v27, %v6773_v57  ;;  %v6808_v28 = vmul.f32 %v13402_v61, %v6772_v63  ;;  %v6144_v61 = vmul.f32 %v9262_v52, %v12559_v34 }
 0x8d6   :  { %9273 = vrcp.f32 %v6461_v26 }
 0x8d7   :  { %v6843_v60 = vpack.c.bf16 %v6809_v51, %v6807_v17  ;;  %v6842_v25 = vpack.c.bf16 %v6808_v28, %v6806_v58 }
 0x8d8   :  { %v6069_v1 = vpop.xlane.xlu0 %6068  ;;  %v9264_v12 = vpop.eup %9263 }
 0x8d9   :  { %8379 = vmatprep.mubr.msk.bf16.mxu1 %vm5041_vm3, %v6843_v60  ;;  %v9266_v43 = vpop.eup %9265  ;;  %v6343_v27 = vmul.f32 %v9264_v12, %v12557_v18  ;;  %v6342_v15 = vmul.f32 %v9264_v12, %v12555_v6 }
 0x8da   :  { %6932 = vmatmul.mubr.bf16.vlgmr.msra.gmra.mrb[196].mxu1 %v6842_v25  ;;  %v6146_v19 = vmul.f32 %v9266_v43, %v12559_v34  ;;  %v6147_v30 = vmul.f32 %v9266_v43, %v12568_v23 }
 0x8db   :  { %v6659_v4 = vpop.xlane.xlu1 %6658  ;;  %v9268_v59 = vpop.eup %9267  ;;  %v6379_v11 = vadd.f32 %v6343_v27, %v6145_v62  ;;  %v6378_v17 = vadd.f32 %v6342_v15, %v6144_v61  ;;  %v14976_v61 = vld [vmem:[#allocation41_spill] sm:$0xff] }
 0x8dc   :  { %9275 = vrcp.f32 %v6659_v4  ;;  %v9270_v29 = vpop.eup %9269  ;;  %v6541_v50 = vmul.f32 %v9268_v59, %v12570_v31  ;;  %v6540_v42 = vmul.f32 %v9268_v59, %v12579_v14 }
 0x8dd   :  { %v6267_v2 = vpop.xlane.xlu0 %6266  ;;  %v6345_v32 = vmul.f32 %v9270_v29, %v12557_v18  ;;  %v6344_v21 = vmul.f32 %v9270_v29, %v12555_v6 }
 0x8de   :  { %9277 = vrcp.f32 %v6267_v2  ;;  %v6577_v28 = vadd.f32 %v6541_v50, %v6379_v11  ;;  %v6576_v52 = vadd.f32 %v6540_v42, %v6378_v17 }
 0x8df   :  { %v9272_v5 = vpop.eup %9271  ;;  %v6073_v22 = vpop.xlane.xlu1 %6072  ;;  %9279 = vrcp.f32 %v6069_v1  ;;  %v6381_v58 = vadd.f32 %v6345_v32, %v6147_v30  ;;  %v6380_v25 = vadd.f32 %v6344_v21, %v6146_v19  ;;  %v14977_v32 = vld [vmem:[#allocation40_spill] sm:$0xff] }
 0x8e0   :  { %v9274_v41 = vpop.eup %9273  ;;  %v6739_v63 = vmul.f32 %v9272_v5, %v12595_v7  ;;  %9281 = vrcp.f32 %v6073_v22  ;;  %v6738_v51 = vmul.f32 %v9272_v5, %v12587_v46 }
 0x8e1   :  { %v6465_v45 = vpop.xlane.xlu0 %6464  ;;  %v6543_v39 = vmul.f32 %v9274_v41, %v12570_v31  ;;  %v6542_v57 = vmul.f32 %v9274_v41, %v12579_v14  ;;  %v9069_v41 = vld [vmem:[%s14703_s17] sm:$0xff]  }
 0x8e2   :  { %9283 = vrcp.f32 %v6465_v45  ;;  %v6775_v59 = vadd.f32 %v6739_v63, %v6577_v28  ;;  %v6774_v27 = vadd.f32 %v6738_v51, %v6576_v52  ;;  %8557 = vmatpush3.bf16.msra.mxu1 %v9069_v41  ;;  %v14978_v63 = vmov 0.0  }
 0x8e3   :  { %v6271_v26 = vpop.xlane.xlu1 %6270  ;;  %v6579_v4 = vadd.f32 %v6543_v39, %v6381_v58  ;;  %v6578_v29 = vadd.f32 %v6542_v57, %v6380_v25  ;;  %8558 = vmatprep.subr.bf16.mxu1 %v14978_v63 }
 0x8e4   :  { %9285 = vrcp.f32 %v6271_v26  ;;  %v6811_v15 = vmul.f32 %v14976_v61, %v6775_v59  ;;  %v6810_v45 = vmul.f32 %v14977_v32, %v6774_v27 }
 0x8e6   :  { %v9276_v60 = vpop.eup %9275 }
 0x8e7   :  { %v6741_v12 = vmul.f32 %v9276_v60, %v12595_v7  ;;  %v6663_v43 = vpop.xlane.xlu0 %6662  ;;  %v6740_v1 = vmul.f32 %v9276_v60, %v12587_v46 }
 0x8e8   :  { %9287 = vrcp.f32 %v6663_v43  ;;  %v6469_v2 = vpop.xlane.xlu1 %6468  ;;  %v9278_v19 = vpop.eup %9277 }
 0x8e9   :  { %9289 = vrcp.f32 %v6469_v2  ;;  %v6777_v5 = vadd.f32 %v6741_v12, %v6579_v4  ;;  %v6776_v22 = vadd.f32 %v6740_v1, %v6578_v29  ;;  %v9280_v42 = vpop.eup %9279  ;;  %v6347_v17 = vmul.f32 %v9278_v19, %v12557_v18 }
 0x8ea   :  { %v9282_v39 = vpop.eup %9281  ;;  %v6346_v51 = vmul.f32 %v9278_v19, %v12555_v6  ;;  %v6148_v25 = vmul.f32 %v9280_v42, %v12559_v34 }
 0x8eb   :  { %v6813_v62 = vmul.f32 %v13453_v36, %v6777_v5  ;;  %v6812_v30 = vmul.f32 %v13447_v38, %v6776_v22  ;;  %v6149_v38 = vmul.f32 %v9280_v42, %v12568_v23  ;;  %v6150_v59 = vmul.f32 %v9282_v39, %v12559_v34 }
 0x8ec   :  { %v6077_v50 = vpop.xlane.xlu0 %6076  ;;  %v9284_v57 = vpop.eup %9283  ;;  %v6382_v5 = vadd.f32 %v6346_v51, %v6148_v25  ;;  %v6151_v41 = vmul.f32 %v9282_v39, %v12568_v23 }
 0x8ed   :  { %v6667_v21 = vpop.xlane.xlu1 %6666  ;;  %v6845_v11 = vpack.c.bf16 %v6813_v62, %v6811_v15  ;;  %v6844_v26 = vpack.c.bf16 %v6812_v30, %v6810_v45  ;;  %v6544_v52 = vmul.f32 %v9284_v57, %v12579_v14  ;;  %v6545_v12 = vmul.f32 %v9284_v57, %v12570_v31 }
 0x8ee   :  { %9291 = vrcp.f32 %v6667_v21  ;;  %v9286_v36 = vpop.eup %9285  ;;  %v6383_v4 = vadd.f32 %v6347_v17, %v6149_v38 }
 0x8ef   :  { %8380 = vmatprep.mubr.msk.bf16.mxu1 %vm5041_vm3, %v6845_v11  ;;  %v6348_v1 = vmul.f32 %v9286_v36, %v12555_v6  ;;  %v6349_v2 = vmul.f32 %v9286_v36, %v12557_v18  ;;  %9293 = vrcp.f32 %v6077_v50  ;;  %v6580_v32 = vadd.f32 %v6544_v52, %v6382_v5  ;;  %v14980_v52 = vld [vmem:[#allocation22_spill] sm:$0xff] }
 0x8f0   :  { %v6275_v58 = vpop.xlane.xlu0 %6274  ;;  %6940 = vmatmul.mubr.bf16.gmra.mrb[200].mxu1 %v6844_v26  ;;  %v6581_v19 = vadd.f32 %v6545_v12, %v6383_v4  ;;  %v14981_v12 = vld [vmem:[#allocation23_spill] sm:$0xff] }
 0x8f1   :  { %v6081_v28 = vpop.xlane.xlu1 %6080  ;;  %9295 = vrcp.f32 %v6275_v58  ;;  %v6385_v45 = vadd.f32 %v6349_v2, %v6151_v41  ;;  %v6384_v30 = vadd.f32 %v6348_v1, %v6150_v59 }
 0x8f2   :  { %v9288_v60 = vpop.eup %9287 }
 0x8f3   :  { %v9290_v43 = vpop.eup %9289  ;;  %v6743_v29 = vmul.f32 %v9288_v60, %v12595_v7  ;;  %v6742_v22 = vmul.f32 %v9288_v60, %v12587_v46  ;;  %v14979_v60 = vld [vmem:[#allocation20_spill] sm:$0xff] }
 0x8f4   :  { %v6473_v27 = vpop.xlane.xlu0 %6472  ;;  %v6546_v61 = vmul.f32 %v9290_v43, %v12579_v14  ;;  %v6547_v15 = vmul.f32 %v9290_v43, %v12570_v31 }
 0x8f5   :  { %v6279_v62 = vpop.xlane.xlu1 %6278  ;;  %9297 = vrcp.f32 %v6473_v27  ;;  %v6779_v50 = vadd.f32 %v6743_v29, %v6581_v19  ;;  %v6778_v21 = vadd.f32 %v6742_v22, %v6580_v32 }
 0x8f6   :  { %9299 = vrcp.f32 %v6279_v62  ;;  %v6583_v26 = vadd.f32 %v6547_v15, %v6385_v45  ;;  %v6582_v39 = vadd.f32 %v6546_v61, %v6384_v30 }
 0x8f7   :  { %9301 = vrcp.f32 %v6081_v28  ;;  %v6815_v38 = vmul.f32 %v13500_v55, %v6779_v50  ;;  %v6814_v28 = vmul.f32 %v14980_v52, %v6778_v21 }
 0x8f8   :  { %v9292_v42 = vpop.eup %9291 }
 0x8f9   :  { %v6745_v11 = vmul.f32 %v9292_v42, %v12595_v7  ;;  %v6744_v57 = vmul.f32 %v9292_v42, %v12587_v46  ;;  %v6671_v17 = vpop.xlane.xlu0 %6670  ;;  %v9294_v4 = vpop.eup %9293 }
 0x8fa   :  { %v6477_v36 = vpop.xlane.xlu1 %6476  ;;  %9303 = vrcp.f32 %v6671_v17  ;;  %v6152_v15 = vmul.f32 %v9294_v4, %v12559_v34  ;;  %v6153_v32 = vmul.f32 %v9294_v4, %v12568_v23 }
 0x8fb   :  { %v6781_v51 = vadd.f32 %v6745_v11, %v6583_v26  ;;  %v6780_v58 = vadd.f32 %v6744_v57, %v6582_v39  ;;  %9305 = vrcp.f32 %v6477_v36  ;;  %v9296_v1 = vpop.eup %9295 }
 0x8fc   :  { %v6350_v55 = vmul.f32 %v9296_v1, %v12555_v6  ;;  %v6351_v61 = vmul.f32 %v9296_v1, %v12557_v18 }
 0x8fd   :  { %v6817_v25 = vmul.f32 %v14979_v60, %v6781_v51  ;;  %v6816_v43 = vmul.f32 %v14981_v12, %v6780_v58 }
 0x8fe   :  { %v6085_v59 = vpop.xlane.xlu0 %6084  ;;  %v6387_v39 = vadd.f32 %v6351_v61, %v6153_v32  ;;  %v6386_v17 = vadd.f32 %v6350_v55, %v6152_v15 }
 0x8ff   :  { %v6675_v2 = vpop.xlane.xlu1 %6674  ;;  %v6847_v29 = vpack.c.bf16 %v6817_v25, %v6815_v38  ;;  %v6846_v27 = vpack.c.bf16 %v6816_v43, %v6814_v28  ;;  %v9298_v5 = vpop.eup %9297 }
 0x900   :  { %9307 = vrcp.f32 %v6675_v2  ;;  %v9300_v22 = vpop.eup %9299  ;;  %v6548_v45 = vmul.f32 %v9298_v5, %v12579_v14  ;;  %v6549_v30 = vmul.f32 %v9298_v5, %v12570_v31 }
 0x901   :  { %8381 = vmatprep.mubr.msk.bf16.mxu1 %vm5041_vm3, %v6847_v29  ;;  %v9302_v41 = vpop.eup %9301  ;;  %v6353_v42 = vmul.f32 %v9300_v22, %v12557_v18  ;;  %v6352_v11 = vmul.f32 %v9300_v22, %v12555_v6 }
 0x902   :  { %6948 = vmatmul.mubr.bf16.gmra.mrb[204].mxu1 %v6846_v27  ;;  %v6283_v62 = vpop.xlane.xlu0 %6282  ;;  %v6155_v21 = vmul.f32 %v9302_v41, %v12568_v23  ;;  %v6154_v51 = vmul.f32 %v9302_v41, %v12559_v34  ;;  %v6585_v52 = vadd.f32 %v6549_v30, %v6387_v39  ;;  %v6584_v28 = vadd.f32 %v6548_v45, %v6386_v17  ;;  %v14983_v45 = vld [vmem:[#allocation24_spill] sm:$0xff] }
 0x903   :  { %v6089_v19 = vpop.xlane.xlu1 %6088  ;;  %9309 = vrcp.f32 %v6283_v62 }
 0x904   :  { %v9304_v50 = vpop.eup %9303  ;;  %v6389_v25 = vadd.f32 %v6353_v42, %v6155_v21  ;;  %9311 = vrcp.f32 %v6085_v59  ;;  %v6388_v43 = vadd.f32 %v6352_v11, %v6154_v51 }
 0x905   :  { %v9306_v26 = vpop.eup %9305  ;;  %v6747_v57 = vmul.f32 %v9304_v50, %v12595_v7  ;;  %v6746_v36 = vmul.f32 %v9304_v50, %v12587_v46  ;;  %9313 = vrcp.f32 %v6089_v19  ;;  %v14982_v19 = vld [vmem:[#allocation21_spill] sm:$0xff] }
 0x906   :  { %v6550_v58 = vmul.f32 %v9306_v26, %v12579_v14  ;;  %v6551_v38 = vmul.f32 %v9306_v26, %v12570_v31  ;;  %v6481_v60 = vpop.xlane.xlu0 %6480 }
 0x907   :  { %9315 = vrcp.f32 %v6481_v60  ;;  %v6783_v2 = vadd.f32 %v6747_v57, %v6585_v52  ;;  %v6782_v29 = vadd.f32 %v6746_v36, %v6584_v28 }
 0x908   :  { %v6287_v12 = vpop.xlane.xlu1 %6286  ;;  %v6587_v1 = vadd.f32 %v6551_v38, %v6389_v25  ;;  %v6586_v5 = vadd.f32 %v6550_v58, %v6388_v43 }
 0x909   :  { %9317 = vrcp.f32 %v6287_v12  ;;  %v6819_v15 = vmul.f32 %v13560_v47, %v6783_v2  ;;  %v6818_v32 = vmul.f32 %v14982_v19, %v6782_v29 }
 0x90a   :  { %v9308_v4 = vpop.eup %9307 }
 0x90b   :  { %v6749_v27 = vmul.f32 %v9308_v4, %v12595_v7  ;;  %v6748_v22 = vmul.f32 %v9308_v4, %v12587_v46  ;;  %v6679_v41 = vpop.xlane.xlu0 %6678 }
 0x90c   :  { %9319 = vrcp.f32 %v6679_v41  ;;  %v6485_v55 = vpop.xlane.xlu1 %6484 }
 0x90d   :  { %v6785_v59 = vadd.f32 %v6749_v27, %v6587_v1  ;;  %v6784_v61 = vadd.f32 %v6748_v22, %v6586_v5  ;;  %9321 = vrcp.f32 %v6485_v55  ;;  %v9310_v42 = vpop.eup %9309 }
 0x90e   :  { %v9312_v39 = vpop.eup %9311  ;;  %v6355_v36 = vmul.f32 %v9310_v42, %v12557_v18 }
 0x90f   :  { %v6821_v62 = vmul.f32 %v13598_v0, %v6785_v59  ;;  %v6820_v30 = vmul.f32 %v14983_v45, %v6784_v61  ;;  %v9314_v57 = vpop.eup %9313  ;;  %v6354_v0 = vmul.f32 %v9310_v42, %v12555_v6  ;;  %v6157_v58 = vmul.f32 %v9312_v39, %v12568_v23 }
 0x910   :  { %v6093_v50 = vpop.xlane.xlu0 %6092  ;;  %v6683_v21 = vpop.xlane.xlu1 %6682  ;;  %v6156_v25 = vmul.f32 %v9312_v39, %v12559_v34  ;;  %v6158_v4 = vmul.f32 %v9314_v57, %v12559_v34  ;;  %v6159_v41 = vmul.f32 %v9314_v57, %v12568_v23 }
 0x911   :  { %v6849_v11 = vpack.c.bf16 %v6821_v62, %v6819_v15  ;;  %v6848_v26 = vpack.c.bf16 %v6820_v30, %v6818_v32  ;;  %9323 = vrcp.f32 %v6683_v21  ;;  %v9316_v17 = vpop.eup %9315  ;;  %v6391_v43 = vadd.f32 %v6355_v36, %v6157_v58 }
 0x912   :  { %v6552_v52 = vmul.f32 %v9316_v17, %v12579_v14  ;;  %v6553_v28 = vmul.f32 %v9316_v17, %v12570_v31  ;;  %v6390_v5 = vadd.f32 %v6354_v0, %v6156_v25 }
 0x913   :  { %8382 = vmatprep.mubr.msk.bf16.mxu1 %vm5041_vm3, %v6849_v11  ;;  %v9318_v47 = vpop.eup %9317 }
 0x914   :  { %6956 = vmatmul.mubr.bf16.gmra.mrb[208].mxu1 %v6848_v26  ;;  %v6291_v51 = vpop.xlane.xlu0 %6290  ;;  %v6356_v1 = vmul.f32 %v9318_v47, %v12555_v6  ;;  %v6357_v2 = vmul.f32 %v9318_v47, %v12557_v18  ;;  %v6589_v15 = vadd.f32 %v6553_v28, %v6391_v43  ;;  %v6588_v62 = vadd.f32 %v6552_v52, %v6390_v5 }
 0x915   :  { %v6097_v38 = vpop.xlane.xlu1 %6096  ;;  %9325 = vrcp.f32 %v6291_v51 }
 0x916   :  { %v9320_v60 = vpop.eup %9319  ;;  %9327 = vrcp.f32 %v6093_v50  ;;  %v6393_v19 = vadd.f32 %v6357_v2, %v6159_v41  ;;  %v6392_v32 = vadd.f32 %v6356_v1, %v6158_v4 }
 0x917   :  { %v9322_v12 = vpop.eup %9321  ;;  %v6751_v29 = vmul.f32 %v9320_v60, %v12595_v7  ;;  %v6750_v22 = vmul.f32 %v9320_v60, %v12587_v46 }
 0x918   :  { %v6489_v27 = vpop.xlane.xlu0 %6488  ;;  %v6554_v55 = vmul.f32 %v9322_v12, %v12579_v14  ;;  %v6555_v59 = vmul.f32 %v9322_v12, %v12570_v31 }
 0x919   :  { %v6295_v61 = vpop.xlane.xlu1 %6294  ;;  %9329 = vrcp.f32 %v6489_v27  ;;  %v6787_v30 = vadd.f32 %v6751_v29, %v6589_v15  ;;  %v6786_v42 = vadd.f32 %v6750_v22, %v6588_v62 }
 0x91a   :  { %9331 = vrcp.f32 %v6295_v61  ;;  %v6591_v26 = vadd.f32 %v6555_v59, %v6393_v19  ;;  %v6590_v39 = vadd.f32 %v6554_v55, %v6392_v32 }
 0x91b   :  { %v9324_v45 = vpop.eup %9323  ;;  %9333 = vrcp.f32 %v6097_v38  ;;  %v6823_v47 = vmul.f32 %v13625_v9, %v6787_v30  ;;  %v6822_v51 = vmul.f32 %v13618_v10, %v6786_v42 }
 0x91c   :  { %v6753_v21 = vmul.f32 %v9324_v45, %v12595_v7  ;;  %v6752_v57 = vmul.f32 %v9324_v45, %v12587_v46 }
 0x91d   :  { %v6687_v11 = vpop.xlane.xlu0 %6686 }
 0x91e   :  { %9335 = vrcp.f32 %v6687_v11  ;;  %v6493_v50 = vpop.xlane.xlu1 %6492  ;;  %v6789_v17 = vadd.f32 %v6753_v21, %v6591_v26  ;;  %v6788_v36 = vadd.f32 %v6752_v57, %v6590_v39 }
 0x91f   :  { %9337 = vrcp.f32 %v6493_v50  ;;  %v9326_v38 = vpop.eup %9325 }
 0x920   :  { %v6825_v0 = vmul.f32 %v13674_v44, %v6789_v17  ;;  %v6824_v58 = vmul.f32 %v13628_v56, %v6788_v36  ;;  %v9328_v52 = vpop.eup %9327  ;;  %v6359_v1 = vmul.f32 %v9326_v38, %v12557_v18  ;;  %v6358_v56 = vmul.f32 %v9326_v38, %v12555_v6 }
 0x921   :  { %v6161_v10 = vmul.f32 %v9328_v52, %v12568_v23  ;;  %v6160_v27 = vmul.f32 %v9328_v52, %v12559_v34  ;;  %v9070_v52 = vld [vmem:[%s14703_s17 + $0x8] sm:$0xff]  }
 0x922   :  { %v6101_v60 = vpop.xlane.xlu0 %6100  ;;  %v6691_v25 = vpop.xlane.xlu1 %6690  ;;  %v6851_v28 = vpack.c.bf16 %v6825_v0, %v6823_v47  ;;  %v6850_v12 = vpack.c.bf16 %v6824_v58, %v6822_v51  ;;  %8559 = vmatpush3.bf16.msra.mxu1 %v9070_v52 }
 0x923   :  { %v9330_v43 = vpop.eup %9329  ;;  %9339 = vrcp.f32 %v6691_v25  ;;  %v6395_v55 = vadd.f32 %v6359_v1, %v6161_v10  ;;  %v6394_v21 = vadd.f32 %v6358_v56, %v6160_v27  ;;  %8596 = vmatprep.subr.bf16.mxu1 %v14978_v63 }
 0x924   :  { %v9332_v4 = vpop.eup %9331  ;;  %8383 = vmatprep.mubr.msk.bf16.mxu1 %vm5041_vm3, %v6851_v28  ;;  %v6557_v5 = vmul.f32 %v9330_v43, %v12570_v31  ;;  %9341 = vrcp.f32 %v6101_v60  ;;  %v6556_v15 = vmul.f32 %v9330_v43, %v12579_v14 }
 0x925   :  { %v9334_v9 = vpop.eup %9333  ;;  %6964 = vmatmul.mubr.bf16.gmra.mrb[212].mxu1 %v6850_v12  ;;  %v6361_v22 = vmul.f32 %v9332_v4, %v12557_v18  ;;  %v6360_v61 = vmul.f32 %v9332_v4, %v12555_v6 }
 0x926   :  { %v6299_v2 = vpop.xlane.xlu0 %6298  ;;  %v6163_v59 = vmul.f32 %v9334_v9, %v12568_v23  ;;  %v6162_v45 = vmul.f32 %v9334_v9, %v12559_v34  ;;  %v6593_v26 = vadd.f32 %v6557_v5, %v6395_v55  ;;  %v6592_v0 = vadd.f32 %v6556_v15, %v6394_v21 }
 0x927   :  { %v6105_v44 = vpop.xlane.xlu1 %6104  ;;  %9343 = vrcp.f32 %v6299_v2 }
 0x928   :  { %v9336_v29 = vpop.eup %9335  ;;  %9345 = vrcp.f32 %v6105_v44  ;;  %v6397_v11 = vadd.f32 %v6361_v22, %v6163_v59  ;;  %v6396_v57 = vadd.f32 %v6360_v61, %v6162_v45 }
 0x929   :  { %v9338_v41 = vpop.eup %9337  ;;  %v6755_v62 = vmul.f32 %v9336_v29, %v12595_v7  ;;  %v6754_v39 = vmul.f32 %v9336_v29, %v12587_v46 }
 0x92a   :  { %v6559_v19 = vmul.f32 %v9338_v41, %v12570_v31  ;;  %v6497_v32 = vpop.xlane.xlu0 %6496  ;;  %v6558_v30 = vmul.f32 %v9338_v41, %v12579_v14 }
 0x92b   :  { %9347 = vrcp.f32 %v6497_v32  ;;  %v6303_v42 = vpop.xlane.xlu1 %6302  ;;  %v6791_v47 = vadd.f32 %v6755_v62, %v6593_v26  ;;  %v6790_v25 = vadd.f32 %v6754_v39, %v6592_v0 }
 0x92c   :  { %9349 = vrcp.f32 %v6303_v42  ;;  %v6595_v36 = vadd.f32 %v6559_v19, %v6397_v11  ;;  %v6594_v38 = vadd.f32 %v6558_v30, %v6396_v57 }
 0x92d   :  { %v9340_v50 = vpop.eup %9339  ;;  %v6827_v2 = vmul.f32 %v13708_v37, %v6791_v47  ;;  %v6826_v44 = vmul.f32 %v13690_v8, %v6790_v25 }
 0x92e   :  { %v6695_v17 = vpop.xlane.xlu0 %6694  ;;  %v6757_v51 = vmul.f32 %v9340_v50, %v12595_v7  ;;  %v6756_v60 = vmul.f32 %v9340_v50, %v12587_v46  ;;  %v9342_v43 = vpop.eup %9341 }
 0x92f   :  { %9351 = vrcp.f32 %v6695_v17  ;;  %v6501_v58 = vpop.xlane.xlu1 %6500  ;;  %v6164_v61 = vmul.f32 %v9342_v43, %v12559_v34  ;;  %v6165_v15 = vmul.f32 %v9342_v43, %v12568_v23 }
 0x930   :  { %9353 = vrcp.f32 %v6501_v58  ;;  %v6793_v28 = vadd.f32 %v6757_v51, %v6595_v36  ;;  %v6792_v12 = vadd.f32 %v6756_v60, %v6594_v38 }
 0x931   :  { %v9344_v1 = vpop.eup %9343 }
 0x932   :  { %v6109_v4 = vpop.xlane.xlu0 %6108  ;;  %v6829_v10 = vmul.f32 %v13751_v35, %v6793_v28  ;;  %v9346_v56 = vpop.eup %9345  ;;  %v6828_v29 = vmul.f32 %v13745_v33, %v6792_v12  ;;  %v6363_v41 = vmul.f32 %v9344_v1, %v12557_v18  ;;  %v6362_v37 = vmul.f32 %v9344_v1, %v12555_v6 }
 0x933   :  { %v6699_v9 = vpop.xlane.xlu1 %6698  ;;  %v6166_v19 = vmul.f32 %v9346_v56, %v12559_v34  ;;  %v6167_v32 = vmul.f32 %v9346_v56, %v12568_v23 }
 0x934   :  { %9355 = vrcp.f32 %v6699_v9  ;;  %v6853_v5 = vpack.c.bf16 %v6829_v10, %v6827_v2  ;;  %v6852_v59 = vpack.c.bf16 %v6828_v29, %v6826_v44  ;;  %v6399_v42 = vadd.f32 %v6363_v41, %v6165_v15 }
 0x935   :  { %v9348_v27 = vpop.eup %9347  ;;  %9357 = vrcp.f32 %v6109_v4  ;;  %v6398_v17 = vadd.f32 %v6362_v37, %v6164_v61 }
 0x936   :  { %v9350_v22 = vpop.eup %9349  ;;  %v6307_v55 = vpop.xlane.xlu0 %6306  ;;  %8384 = vmatprep.mubr.msk.bf16.mxu1 %vm5041_vm3, %v6853_v5  ;;  %v6561_v8 = vmul.f32 %v9348_v27, %v12570_v31  ;;  %v6560_v21 = vmul.f32 %v9348_v27, %v12579_v14 }
 0x937   :  { %v6113_v35 = vpop.xlane.xlu1 %6112  ;;  %v6365_v33 = vmul.f32 %v9350_v22, %v12557_v18  ;;  %6972 = vmatmul.mubr.bf16.gmra.mrb[216].mxu1 %v6852_v59  ;;  %v6364_v45 = vmul.f32 %v9350_v22, %v12555_v6  ;;  %9359 = vrcp.f32 %v6307_v55 }
 0x938   :  { %9361 = vrcp.f32 %v6113_v35  ;;  %v6597_v47 = vadd.f32 %v6561_v8, %v6399_v42  ;;  %v6596_v52 = vadd.f32 %v6560_v21, %v6398_v17 }
 0x939   :  { %v9352_v62 = vpop.eup %9351  ;;  %v6401_v36 = vadd.f32 %v6365_v33, %v6167_v32  ;;  %v6400_v51 = vadd.f32 %v6364_v45, %v6166_v19 }
 0x93a   :  { %v9354_v30 = vpop.eup %9353  ;;  %v6759_v11 = vmul.f32 %v9352_v62, %v12595_v7  ;;  %v6505_v26 = vpop.xlane.xlu0 %6504  ;;  %v6758_v0 = vmul.f32 %v9352_v62, %v12587_v46 }
 0x93b   :  { %v6562_v39 = vmul.f32 %v9354_v30, %v12579_v14  ;;  %v6563_v57 = vmul.f32 %v9354_v30, %v12570_v31  ;;  %9363 = vrcp.f32 %v6505_v26  ;;  %v6311_v50 = vpop.xlane.xlu1 %6310 }
 0x93c   :  { %9365 = vrcp.f32 %v6311_v50  ;;  %v6795_v25 = vadd.f32 %v6759_v11, %v6597_v47  ;;  %v6794_v1 = vadd.f32 %v6758_v0, %v6596_v52 }
 0x93d   :  { %v6599_v60 = vadd.f32 %v6563_v57, %v6401_v36  ;;  %v6598_v43 = vadd.f32 %v6562_v39, %v6400_v51 }
 0x93e   :  { %v9356_v58 = vpop.eup %9355  ;;  %v6703_v38 = vpop.xlane.xlu0 %6702  ;;  %v6831_v27 = vmul.f32 %v13799_v3, %v6795_v25  ;;  %v6830_v41 = vmul.f32 %v13762_v24, %v6794_v1 }
 0x93f   :  { %v6761_v28 = vmul.f32 %v9356_v58, %v12595_v7  ;;  %9367 = vrcp.f32 %v6703_v38  ;;  %v6509_v12 = vpop.xlane.xlu1 %6508  ;;  %v6760_v4 = vmul.f32 %v9356_v58, %v12587_v46  ;;  %v9358_v10 = vpop.eup %9357 }
 0x940   :  { %9369 = vrcp.f32 %v6509_v12  ;;  %v6168_v62 = vmul.f32 %v9358_v10, %v12559_v34  ;;  %v6169_v3 = vmul.f32 %v9358_v10, %v12568_v23 }
 0x941   :  { %v6797_v9 = vadd.f32 %v6761_v28, %v6599_v60  ;;  %v6796_v2 = vadd.f32 %v6760_v4, %v6598_v43  ;;  %v9360_v44 = vpop.eup %9359 }
 0x942   :  { %v6117_v56 = vpop.xlane.xlu0 %6116  ;;  %v9362_v22 = vpop.eup %9361  ;;  %v6366_v35 = vmul.f32 %v9360_v44, %v12555_v6  ;;  %v6367_v15 = vmul.f32 %v9360_v44, %v12557_v18 }
 0x943   :  { %v6707_v29 = vpop.xlane.xlu1 %6706  ;;  %v6833_v5 = vmul.f32 %v13819_v53, %v6797_v9  ;;  %v6832_v55 = vmul.f32 %v13815_v40, %v6796_v2  ;;  %v6171_v45 = vmul.f32 %v9362_v22, %v12568_v23  ;;  %v6170_v50 = vmul.f32 %v9362_v22, %v12559_v34 }
 0x944   :  { %9371 = vrcp.f32 %v6707_v29  ;;  %v6403_v21 = vadd.f32 %v6367_v15, %v6169_v3  ;;  %v6402_v39 = vadd.f32 %v6366_v35, %v6168_v62 }
 0x945   :  { %v9364_v59 = vpop.eup %9363  ;;  %v6855_v61 = vpack.c.bf16 %v6833_v5, %v6831_v27  ;;  %v6854_v33 = vpack.c.bf16 %v6832_v55, %v6830_v41  ;;  %9373 = vrcp.f32 %v6117_v56 }
 0x946   :  { %v9366_v37 = vpop.eup %9365  ;;  %v6315_v8 = vpop.xlane.xlu0 %6314  ;;  %v6564_v24 = vmul.f32 %v9364_v59, %v12579_v14  ;;  %v6565_v40 = vmul.f32 %v9364_v59, %v12570_v31 }
 0x947   :  { %8385 = vmatprep.mubr.msk.bf16.mxu1 %vm5041_vm3, %v6855_v61  ;;  %v6121_v53 = vpop.xlane.xlu1 %6120  ;;  %v6369_v19 = vmul.f32 %v9366_v37, %v12557_v18  ;;  %v6368_v30 = vmul.f32 %v9366_v37, %v12555_v6  ;;  %9375 = vrcp.f32 %v6315_v8 }
 0x948   :  { %6980 = vmatmul.mubr.bf16.gmra.mrb[220].mxu1 %v6854_v33  ;;  %v6601_v51 = vadd.f32 %v6565_v40, %v6403_v21  ;;  %v6600_v58 = vadd.f32 %v6564_v24, %v6402_v39 }
 0x949   :  { %v9368_v32 = vpop.eup %9367  ;;  %v6405_v0 = vadd.f32 %v6369_v19, %v6171_v45  ;;  %v6404_v38 = vadd.f32 %v6368_v30, %v6170_v50 }
 0x94a   :  { %v9370_v42 = vpop.eup %9369  ;;  %v6763_v11 = vmul.f32 %v9368_v32, %v12595_v7  ;;  %v6513_v26 = vpop.xlane.xlu0 %6512  ;;  %v6762_v57 = vmul.f32 %v9368_v32, %v12587_v46 }
 0x94b   :  { %v6566_v17 = vmul.f32 %v9370_v42, %v12579_v14  ;;  %v6567_v36 = vmul.f32 %v9370_v42, %v12570_v31  ;;  %9377 = vrcp.f32 %v6513_v26  ;;  %v6319_v47 = vpop.xlane.xlu1 %6318 }
 0x94c   :  { %9379 = vrcp.f32 %v6319_v47  ;;  %v6799_v28 = vadd.f32 %v6763_v11, %v6601_v51  ;;  %v6798_v12 = vadd.f32 %v6762_v57, %v6600_v58 }
 0x94d   :  { %9381 = vrcp.f32 %v6121_v53  ;;  %v6603_v52 = vadd.f32 %v6567_v36, %v6405_v0  ;;  %v6602_v1 = vadd.f32 %v6566_v17, %v6404_v38  ;;  %v14985_v38 = vld [vmem:[#allocation44_spill] sm:$0xff] }
 0x94e   :  { %v9372_v60 = vpop.eup %9371  ;;  %v6711_v25 = vpop.xlane.xlu0 %6710  ;;  %v6835_v27 = vmul.f32 %v13842_v13, %v6799_v28  ;;  %v6834_v22 = vmul.f32 %v13835_v16, %v6798_v12 }
 0x94f   :  { %v6765_v43 = vmul.f32 %v9372_v60, %v12595_v7  ;;  %9383 = vrcp.f32 %v6711_v25  ;;  %v6517_v4 = vpop.xlane.xlu1 %6516  ;;  %v6764_v9 = vmul.f32 %v9372_v60, %v12587_v46  ;;  %v9374_v56 = vpop.eup %9373 }
 0x950   :  { %9385 = vrcp.f32 %v6517_v4  ;;  %v6172_v13 = vmul.f32 %v9374_v56, %v12559_v34 }
 0x951   :  { %v6801_v2 = vadd.f32 %v6765_v43, %v6603_v52  ;;  %v6800_v10 = vadd.f32 %v6764_v9, %v6602_v1  ;;  %v9376_v44 = vpop.eup %9375 }
 0x952   :  { %v6370_v35 = vmul.f32 %v9376_v44, %v12555_v6  ;;  %v6371_v15 = vmul.f32 %v9376_v44, %v12557_v18 }
 0x953   :  { %v6715_v29 = vpop.xlane.xlu1 %6714  ;;  %v6837_v5 = vmul.f32 %v13872_v20, %v6801_v2  ;;  %v6836_v41 = vmul.f32 %v13845_v54, %v6800_v10  ;;  %v6173_v20 = vmul.f32 %v9374_v56, %v12568_v23 }
 0x954   :  { %9387 = vrcp.f32 %v6715_v29  ;;  %v6406_v19 = vadd.f32 %v6370_v35, %v6172_v13 }
 0x955   :  { %v9378_v55 = vpop.eup %9377  ;;  %v6857_v59 = vpack.c.bf16 %v6837_v5, %v6835_v27  ;;  %v6856_v61 = vpack.c.bf16 %v6836_v41, %v6834_v22  ;;  %v6407_v24 = vadd.f32 %v6371_v15, %v6173_v20 }
 0x956   :  { %v9380_v37 = vpop.eup %9379  ;;  %v6568_v16 = vmul.f32 %v9378_v55, %v12579_v14  ;;  %v6569_v54 = vmul.f32 %v9378_v55, %v12570_v31 }
 0x957   :  { %8386 = vmatprep.mubr.msk.bf16.mxu1 %vm5041_vm3, %v6857_v59  ;;  %v9382_v8 = vpop.eup %9381  ;;  %v6372_v62 = vmul.f32 %v9380_v37, %v12555_v6  ;;  %v6373_v3 = vmul.f32 %v9380_v37, %v12557_v18 }
 0x958   :  { %6988 = vmatmul.mubr.bf16.gmra.mrb[224].mxu1 %v6856_v61  ;;  %v6174_v45 = vmul.f32 %v9382_v8, %v12559_v34  ;;  %v6175_v30 = vmul.f32 %v9382_v8, %v12568_v23  ;;  %v6605_v11 = vadd.f32 %v6569_v54, %v6407_v24  ;;  %v6604_v26 = vadd.f32 %v6568_v16, %v6406_v19 }
 0x959   :  { %v9384_v33 = vpop.eup %9383 }
 0x95a   :  { %v9386_v53 = vpop.eup %9385  ;;  %v6767_v40 = vmul.f32 %v9384_v33, %v12595_v7  ;;  %v6766_v32 = vmul.f32 %v9384_v33, %v12587_v46  ;;  %v6409_v6 = vadd.f32 %v6373_v3, %v6175_v30  ;;  %v6408_v39 = vadd.f32 %v6372_v62, %v6174_v45 }
 0x95b   :  { %v6570_v42 = vmul.f32 %v9386_v53, %v12579_v14  ;;  %v6571_v21 = vmul.f32 %v9386_v53, %v12570_v31  ;;  %v14984_v31 = vld [vmem:[#allocation25_spill] sm:$0xff] }
 0x95c   :  { %v6803_v57 = vadd.f32 %v6767_v40, %v6605_v11  ;;  %v6802_v50 = vadd.f32 %v6766_v32, %v6604_v26 }
 0x95d   :  { %v6607_v36 = vadd.f32 %v6571_v21, %v6409_v6  ;;  %v6606_v47 = vadd.f32 %v6570_v42, %v6408_v39  ;;  %v14193_v39 = vld [vmem:[%s14704_s18] ss:$0 sm:$0xff] }
 0x95e   :  { %v9388_v18 = vpop.eup %9387  ;;  %v6839_v23 = vmul.f32 %v13897_v49, %v6803_v57  ;;  %v6838_v58 = vmul.f32 %v14984_v31, %v6802_v50 }
 0x95f   :  { %v6769_v17 = vmul.f32 %v9388_v18, %v12595_v7  ;;  %v6768_v0 = vmul.f32 %v9388_v18, %v12587_v46 }
 0x961   :  { %v6805_v34 = vadd.f32 %v6769_v17, %v6607_v36  ;;  %v6804_v51 = vadd.f32 %v6768_v0, %v6606_v47  ;;  %v14986_v36 = vld [vmem:[#allocation2_spill] sm:$0xff] }
 0x963   :  { %v6841_v14 = vmul.f32 %v13916_v48, %v6805_v34  ;;  %v6840_v60 = vmul.f32 %v14985_v38, %v6804_v51  ;;  %v14987_v51 = vld [vmem:[#allocation3_spill] sm:$0xff] }
 0x965   :  { %v6859_v25 = vpack.c.bf16 %v6841_v14, %v6839_v23  ;;  %v6858_v52 = vpack.c.bf16 %v6840_v60, %v6838_v58 }
 0x967   :  { %8387 = vmatprep.mubr.msk.bf16.mxu1 %vm5041_vm3, %v6859_v25 }
 0x968   :  { %6996 = vmatmul.mubr.bf16.gmra.mrb[228].mxu1 %v6858_v52  ;;  %v14988_v52 = vld [vmem:[#allocation4_spill] sm:$0xff] }
 0x969   :  { %8560 = vmatprep.mubr.msk.bf16.mxu1 %vm9463_vm2, %v14978_v63 }
 0x9ad   :  { %v6933_v7 = vpop.f32.mrb[196].mxu1 }
 0x9ae   :  { %v6935_v46 = vpop.f32.mrb[197].mxu1 }
 0x9af   :  { %v6936_v28 = vpop.f32.mrb[198].mxu1 }
 0x9b0   :  { %v7004_v12 = vpack.c.bf16 %v6936_v28, %v6933_v7  ;;  %v6938_v43 = vpop.f32.mrb[199].mxu1 }
 0x9b2   :  { %8561 = vmatmul.mubr.msk.bf16.vlgmr.msra.gmra.mrb[232].mxu1 %vm99_vm0, %v7004_v12  ;;  %v14989_v12 = vld [vmem:[#allocation5_spill] sm:$0xff] }
 0x9b3   :  { %8564 = vmatprep.mubr.msk.bf16.mxu1 %vm9463_vm2, %v14978_v63 }
 0x9c3   :  { %v6941_v49 = vpop.f32.mrb[200].mxu1 }
 0x9c4   :  { %v6943_v48 = vpop.f32.mrb[201].mxu1 }
 0x9c5   :  { %v6944_v4 = vpop.f32.mrb[202].mxu1 }
 0x9c6   :  { %v7005_v1 = vpack.c.bf16 %v6944_v4, %v6941_v49  ;;  %v6946_v9 = vpop.f32.mrb[203].mxu1 }
 0x9c8   :  { %8565 = vmatmul.mubr.msk.bf16.gmra.mrb[236].mxu1 %vm99_vm0, %v7005_v1 }
 0x9c9   :  { %8568 = vmatprep.mubr.msk.bf16.mxu1 %vm9463_vm2, %v14978_v63 }
 0x9d5   :  { %v6949_v2 = vpop.f32.mrb[204].mxu1 }
 0x9d6   :  { %v6951_v10 = vpop.f32.mrb[205].mxu1 }
 0x9d7   :  { %v6952_v56 = vpop.f32.mrb[206].mxu1  ;;  %v14990_v10 = vld [vmem:[#allocation6_spill] sm:$0xff] }
 0x9d8   :  { %v7006_v44 = vpack.c.bf16 %v6952_v56, %v6949_v2  ;;  %v6954_v29 = vpop.f32.mrb[207].mxu1 }
 0x9da   :  { %8569 = vmatmul.mubr.msk.bf16.gmra.mrb[240].mxu1 %vm99_vm0, %v7006_v44 }
 0x9db   :  { %8572 = vmatprep.mubr.msk.bf16.mxu1 %vm9463_vm2, %v14978_v63 }
 0x9e7   :  { %v6957_v27 = vpop.f32.mrb[208].mxu1 }
 0x9e8   :  { %v6959_v5 = vpop.f32.mrb[209].mxu1 }
 0x9e9   :  { %v6960_v22 = vpop.f32.mrb[210].mxu1 }
 0x9ea   :  { %v7007_v41 = vpack.c.bf16 %v6960_v22, %v6957_v27  ;;  %v6962_v55 = vpop.f32.mrb[211].mxu1  ;;  %v14991_v27 = vld [vmem:[#allocation7_spill] sm:$0xff] }
 0x9ec   :  { %8573 = vmatmul.mubr.msk.bf16.gmra.mrb[244].mxu1 %vm99_vm0, %v7007_v41 }
 0x9ed   :  { %8576 = vmatprep.mubr.msk.bf16.mxu1 %vm9463_vm2, %v14978_v63 }
 0x9f8   :  { %v6965_v59 = vpop.f32.mrb[212].mxu1 }
 0x9f9   :  { %v6967_v61 = vpop.f32.mrb[213].mxu1 }
 0x9fa   :  { %v6968_v37 = vpop.f32.mrb[214].mxu1 }
 0x9fb   :  { %v7008_v35 = vpack.c.bf16 %v6968_v37, %v6965_v59  ;;  %v6970_v15 = vpop.f32.mrb[215].mxu1 }
 0x9fd   :  { %8577 = vmatmul.mubr.msk.bf16.gmra.mrb[248].mxu1 %vm99_vm0, %v7008_v35  ;;  %v14992_v35 = vld [vmem:[#allocation8_spill] sm:$0xff] }
 0x9fe   :  { %8580 = vmatprep.mubr.msk.bf16.mxu1 %vm9463_vm2, %v14978_v63 }
 0xa0a   :  { %v6973_v8 = vpop.f32.mrb[216].mxu1 }
 0xa0b   :  { %v6975_v13 = vpop.f32.mrb[217].mxu1 }
 0xa0c   :  { %v6976_v20 = vpop.f32.mrb[218].mxu1 }
 0xa0d   :  { %v7009_v16 = vpack.c.bf16 %v6976_v20, %v6973_v8  ;;  %v6978_v54 = vpop.f32.mrb[219].mxu1  ;;  %v14993_v20 = vld [vmem:[#allocation9_spill] sm:$0xff] }
 0xa0f   :  { %8581 = vmatmul.mubr.msk.bf16.gmra.mrb[252].mxu1 %vm99_vm0, %v7009_v16 }
 0xa10   :  { %8584 = vmatprep.mubr.msk.bf16.mxu1 %vm9463_vm2, %v14978_v63 }
 0xa1b   :  { %v6981_v33 = vpop.f32.mrb[220].mxu1 }
 0xa1c   :  { %v6983_v62 = vpop.f32.mrb[221].mxu1 }
 0xa1d   :  { %v6984_v3 = vpop.f32.mrb[222].mxu1 }
 0xa1e   :  { %v7010_v53 = vpack.c.bf16 %v6984_v3, %v6981_v33  ;;  %v6986_v24 = vpop.f32.mrb[223].mxu1 }
 0xa20   :  { %8585 = vmatmul.mubr.msk.bf16.gmra.mrb[0].mxu1 %vm99_vm0, %v7010_v53 }
 0xa21   :  { %8588 = vmatprep.mubr.msk.bf16.mxu1 %vm9463_vm2, %v14978_v63 }
 0xa2b   :  { %v6989_v40 = vpop.f32.mrb[224].mxu1 }
 0xa2c   :  { %v6991_v19 = vpop.f32.mrb[225].mxu1 }
 0xa2d   :  { %v6992_v32 = vpop.f32.mrb[226].mxu1 }
 0xa2e   :  { %v7011_v45 = vpack.c.bf16 %v6992_v32, %v6989_v40  ;;  %v6994_v30 = vpop.f32.mrb[227].mxu1  ;;  %v14994_v40 = vld [vmem:[#allocation10_spill] sm:$0xff] }
 0xa2f   :  { %v14995_v30 = vld [vmem:[#allocation11_spill] sm:$0xff] }
 0xa30   :  { %8589 = vmatmul.mubr.msk.bf16.gmra.mrb[4].mxu1 %vm99_vm0, %v7011_v45 }
 0xa31   :  { %8592 = vmatprep.mubr.msk.bf16.mxu1 %vm9463_vm2, %v14978_v63 }
 0xa3b   :  { %v6997_v42 = vpop.f32.mrb[228].mxu1 }
 0xa3c   :  { %v6999_v21 = vpop.f32.mrb[229].mxu1 }
 0xa3d   :  { %v7000_v11 = vpop.f32.mrb[230].mxu1 }
 0xa3e   :  { %v7012_v26 = vpack.c.bf16 %v7000_v11, %v6997_v42  ;;  %v7002_v6 = vpop.f32.mrb[231].mxu1 }
 0xa40   :  { %8593 = vmatmul.mubr.msk.bf16.gmra.mrb[8].mxu1 %vm99_vm0, %v7012_v26 }
 0xa41   :  { %8600 = vmatprep.mubr.msk.bf16.mxu1 %vm9463_vm2, %v14978_v63 }
 0xa85   :  { %v7097_v18 = vpop.f32.mrb[232].mxu1 }
 0xa86   :  { %v7098_v57 = vadd.f32 %v14193_v39, %v7097_v18  ;;  %v8562_v50 = vpop.f32.mrb[233].mxu1 }
 0xa87   :  { %v7100_v17 = vpop.f32.mrb[234].mxu1  ;;  %v14996_v50 = vld [vmem:[#allocation12_spill] sm:$0xff] }
 0xa88   :  { %v14197_v47 = vadd.f32 %v7098_v57, %v14986_v36  ;;  %v7101_v0 = vadd.f32 %v14193_v39, %v7100_v17  ;;  %v8563_v34 = vpop.f32.mrb[235].mxu1 }
 0xa89   :  { %v14997_v34 = vld [vmem:[#allocation13_spill] sm:$0xff] }
 0xa8a   :  { %v14201_v23 = vadd.f32 %v7101_v0, %v14987_v51  ;;  %v7186_v14 = vsel %vm99_vm0, %v14197_v47, 0.0 }
 0xa8b   :  { %7187 = vadd.xlane.f32.xlu0 %v7186_v14 }
 0xa8c   :  { %v7189_v31 = vsel %vm99_vm0, %v14201_v23, 0.0 }
 0xa8d   :  { %7190 = vadd.xlane.f32.xlu1 %v7189_v31 }
 0xa9b   :  { %v7105_v58 = vpop.f32.mrb[236].mxu1 }
 0xa9c   :  { %v7106_v38 = vadd.f32 %v14193_v39, %v7105_v58  ;;  %v8566_v60 = vpop.f32.mrb[237].mxu1 }
 0xa9d   :  { %v7108_v25 = vpop.f32.mrb[238].mxu1 }
 0xa9e   :  { %v14209_v7 = vadd.f32 %v7106_v38, %v14988_v52  ;;  %v7109_v46 = vadd.f32 %v14193_v39, %v7108_v25  ;;  %v8567_v28 = vpop.f32.mrb[239].mxu1  ;;  %v14998_v52 = vld [vmem:[#allocation14_spill] sm:$0xff] }
 0xaa0   :  { %v14213_v43 = vadd.f32 %v7109_v46, %v14989_v12  ;;  %v7192_v49 = vsel %vm99_vm0, %v14209_v7, 0.0 }
 0xaa1   :  { %7193 = vadd.xlane.f32.xlu0 %v7192_v49  ;;  %v14999_v49 = vld [vmem:[#allocation15_spill] sm:$0xff] }
 0xaa2   :  { %v7195_v48 = vsel %vm99_vm0, %v14213_v43, 0.0 }
 0xaa3   :  { %7196 = vadd.xlane.f32.xlu1 %v7195_v48 }
 0xaad   :  { %v7113_v4 = vpop.f32.mrb[240].mxu1 }
 0xaae   :  { %v7114_v1 = vadd.f32 %v14193_v39, %v7113_v4  ;;  %v8570_v9 = vpop.f32.mrb[241].mxu1 }
 0xaaf   :  { %v7116_v2 = vpop.f32.mrb[242].mxu1 }
 0xab0   :  { %v14221_v56 = vadd.f32 %v7114_v1, %v14990_v10  ;;  %v7117_v44 = vadd.f32 %v14193_v39, %v7116_v2  ;;  %v8571_v29 = vpop.f32.mrb[243].mxu1 }
 0xab1   :  { %v15000_v29 = vld [vmem:[#allocation16_spill] sm:$0xff] }
 0xab2   :  { %v14225_v5 = vadd.f32 %v7117_v44, %v14991_v27  ;;  %v7198_v22 = vsel %vm99_vm0, %v14221_v56, 0.0 }
 0xab3   :  { %7199 = vadd.xlane.f32.xlu0 %v7198_v22 }
 0xab4   :  { %v7201_v41 = vsel %vm99_vm0, %v14225_v5, 0.0 }
 0xab5   :  { %7202 = vadd.xlane.f32.xlu1 %v7201_v41 }
 0xabf   :  { %v7121_v55 = vpop.f32.mrb[244].mxu1 }
 0xac0   :  { %v7122_v59 = vadd.f32 %v14193_v39, %v7121_v55  ;;  %v8574_v61 = vpop.f32.mrb[245].mxu1  ;;  %v15001_v55 = vld [vmem:[#allocation17_spill] sm:$0xff] }
 0xac1   :  { %v7124_v37 = vpop.f32.mrb[246].mxu1 }
 0xac2   :  { %v14233_v15 = vadd.f32 %v7122_v59, %v14992_v35  ;;  %v7125_v8 = vadd.f32 %v14193_v39, %v7124_v37  ;;  %v8575_v13 = vpop.f32.mrb[247].mxu1 }
 0xac4   :  { %v14237_v16 = vadd.f32 %v7125_v8, %v14993_v20  ;;  %v7204_v54 = vsel %vm99_vm0, %v14233_v15, 0.0 }
 0xac5   :  { %7205 = vadd.xlane.f32.xlu0 %v7204_v54  ;;  %v15002_v54 = vld [vmem:[#allocation18_spill] sm:$0xff] }
 0xac6   :  { %v7207_v33 = vsel %vm99_vm0, %v14237_v16, 0.0 }
 0xac7   :  { %7208 = vadd.xlane.f32.xlu1 %v7207_v33 }
 0xad0   :  { %v7129_v62 = vpop.f32.mrb[248].mxu1 }
 0xad1   :  { %v7130_v3 = vadd.f32 %v14193_v39, %v7129_v62  ;;  %v8578_v53 = vpop.f32.mrb[249].mxu1 }
 0xad2   :  { %v7132_v24 = vpop.f32.mrb[250].mxu1  ;;  %v15003_v53 = vld [vmem:[#allocation19_spill] sm:$0xff] }
 0xad3   :  { %v14245_v19 = vadd.f32 %v7130_v3, %v14994_v40  ;;  %v7133_v32 = vadd.f32 %v14193_v39, %v7132_v24  ;;  %v8579_v45 = vpop.f32.mrb[251].mxu1 }
 0xad5   :  { %v14249_v42 = vadd.f32 %v7133_v32, %v14995_v30  ;;  %v7210_v21 = vsel %vm99_vm0, %v14245_v19, 0.0 }
 0xad6   :  { %7211 = vadd.xlane.f32.xlu0 %v7210_v21 }
 0xad7   :  { %v7213_v11 = vsel %vm99_vm0, %v14249_v42, 0.0 }
 0xad8   :  { %7214 = vadd.xlane.f32.xlu1 %v7213_v11 }
 0xae2   :  { %v7137_v26 = vpop.f32.mrb[252].mxu1 }
 0xae3   :  { %v7138_v6 = vadd.f32 %v14193_v39, %v7137_v26  ;;  %v8582_v18 = vpop.f32.mrb[253].mxu1 }
 0xae4   :  { %v7140_v57 = vpop.f32.mrb[254].mxu1 }
 0xae5   :  { %v14257_v17 = vadd.f32 %v7138_v6, %v14996_v50  ;;  %v7141_v36 = vadd.f32 %v14193_v39, %v7140_v57  ;;  %v8583_v0 = vpop.f32.mrb[255].mxu1 }
 0xae7   :  { %v14261_v51 = vadd.f32 %v7141_v36, %v14997_v34  ;;  %v7216_v14 = vsel %vm99_vm0, %v14257_v17, 0.0 }
 0xae8   :  { %7217 = vadd.xlane.f32.xlu0 %v7216_v14 }
 0xae9   :  { %v7219_v31 = vsel %vm99_vm0, %v14261_v51, 0.0 }
 0xaea   :  { %7220 = vadd.xlane.f32.xlu1 %v7219_v31 }
 0xaf3   :  { %v7145_v58 = vpop.f32.mrb[0].mxu1 }
 0xaf4   :  { %v7146_v38 = vadd.f32 %v14193_v39, %v7145_v58  ;;  %v8586_v60 = vpop.f32.mrb[1].mxu1 }
 0xaf5   :  { %v7148_v25 = vpop.f32.mrb[2].mxu1 }
 0xaf6   :  { %v14269_v46 = vadd.f32 %v7146_v38, %v14998_v52  ;;  %v7149_v28 = vadd.f32 %v14193_v39, %v7148_v25  ;;  %v8587_v12 = vpop.f32.mrb[3].mxu1 }
 0xaf8   :  { %v14273_v48 = vadd.f32 %v7149_v28, %v14999_v49  ;;  %v7222_v4 = vsel %vm99_vm0, %v14269_v46, 0.0 }
 0xaf9   :  { %7223 = vadd.xlane.f32.xlu0 %v7222_v4 }
 0xafa   :  { %v7225_v1 = vsel %vm99_vm0, %v14273_v48, 0.0 }
 0xafb   :  { %7226 = vadd.xlane.f32.xlu1 %v7225_v1 }
 0xb03   :  { %v7153_v9 = vpop.f32.mrb[4].mxu1 }
 0xb04   :  { %v7154_v2 = vadd.f32 %v14193_v39, %v7153_v9  ;;  %v8590_v10 = vpop.f32.mrb[5].mxu1 }
 0xb05   :  { %v7156_v44 = vpop.f32.mrb[6].mxu1 }
 0xb06   :  { %v14281_v27 = vadd.f32 %v7154_v2, %v15000_v29  ;;  %v7157_v22 = vadd.f32 %v14193_v39, %v7156_v44  ;;  %v8591_v41 = vpop.f32.mrb[7].mxu1 }
 0xb08   :  { %v14285_v59 = vadd.f32 %v7157_v22, %v15001_v55  ;;  %v7228_v61 = vsel %vm99_vm0, %v14281_v27, 0.0 }
 0xb09   :  { %7229 = vadd.xlane.f32.xlu0 %v7228_v61 }
 0xb0a   :  { %v7231_v37 = vsel %vm99_vm0, %v14285_v59, 0.0 }
 0xb0b   :  { %7232 = vadd.xlane.f32.xlu1 %v7231_v37 }
 0xb13   :  { %v7161_v35 = vpop.f32.mrb[8].mxu1 }
 0xb14   :  { %v7162_v8 = vadd.f32 %v14193_v39, %v7161_v35  ;;  %v8594_v13 = vpop.f32.mrb[9].mxu1 }
 0xb15   :  { %v7164_v20 = vpop.f32.mrb[10].mxu1  ;;  %v9071_v13 = vld [vmem:[%s14705_s21] sm:$0xff]  }
 0xb16   :  { %v14293_v33 = vadd.f32 %v7162_v8, %v15002_v54  ;;  %v7165_v62 = vadd.f32 %v14193_v39, %v7164_v20  ;;  %v8595_v3 = vpop.f32.mrb[11].mxu1  ;;  %8597 = vmatpush3.bf16.msra.mxu1 %v9071_v13 }
 0xb17   :  { %8598 = vmatprep.subr.bf16.mxu1 %v14978_v63  ;;  %v9072_v3 = vld [vmem:[%s14705_s21 + $0x8] sm:$0xff]  }
 0xb18   :  { %v14297_v24 = vadd.f32 %v7165_v62, %v15003_v53  ;;  %v7234_v40 = vsel %vm99_vm0, %v14293_v33, 0.0  ;;  %v7188_v32 = vpop.xlane.xlu0 %7187 }
 0xb19   :  { %7235 = vadd.xlane.f32.xlu0 %v7234_v40  ;;  %v7240_v45 = vmul.f32 0.03125, %v7188_v32 }
 0xb1a   :  { %v7237_v30 = vsel %vm99_vm0, %v14297_v24, 0.0  ;;  %v7191_v21 = vpop.xlane.xlu1 %7190  ;;  %8599 = vmatpush3.bf16.msra.mxu1 %v9072_v3 }
 0xb1b   :  { %7238 = vadd.xlane.f32.xlu1 %v7237_v30  ;;  %v14304_v11 = vsub.f32 %v14197_v47, %v7240_v45  ;;  %v7241_v26 = vmul.f32 0.03125, %v7191_v21  ;;  %8636 = vmatprep.subr.bf16.mxu1 %v14978_v63 }
 0xb1d   :  { %v14307_v39 = vsub.f32 %v14201_v23, %v7241_v26  ;;  %v7276_v6 = vmul.f32 %v14304_v11, %v14304_v11 }
 0xb1f   :  { %v7294_v18 = vsel %vm99_vm0, %v7276_v6, 0.0  ;;  %v7277_v57 = vmul.f32 %v14307_v39, %v14307_v39 }
 0xb20   :  { %7295 = vadd.xlane.f32.xlu0 %v7294_v18 }
 0xb21   :  { %v7297_v50 = vsel %vm99_vm0, %v7277_v57, 0.0 }
 0xb22   :  { %7298 = vadd.xlane.f32.xlu1 %v7297_v50 }
 0xb2e   :  { %v7194_v36 = vpop.xlane.xlu0 %7193 }
 0xb2f   :  { %v7242_v0 = vmul.f32 0.03125, %v7194_v36 }
 0xb30   :  { %v7197_v34 = vpop.xlane.xlu1 %7196 }
 0xb31   :  { %v14316_v14 = vsub.f32 %v14209_v7, %v7242_v0  ;;  %v7243_v31 = vmul.f32 0.03125, %v7197_v34 }
 0xb33   :  { %v14319_v58 = vsub.f32 %v14213_v43, %v7243_v31  ;;  %v7278_v38 = vmul.f32 %v14316_v14, %v14316_v14 }
 0xb35   :  { %v7300_v60 = vsel %vm99_vm0, %v7278_v38, 0.0  ;;  %v7279_v25 = vmul.f32 %v14319_v58, %v14319_v58 }
 0xb36   :  { %7301 = vadd.xlane.f32.xlu0 %v7300_v60 }
 0xb37   :  { %v7303_v52 = vsel %vm99_vm0, %v7279_v25, 0.0 }
 0xb38   :  { %7304 = vadd.xlane.f32.xlu1 %v7303_v52 }
 0xb40   :  { %v7200_v28 = vpop.xlane.xlu0 %7199 }
 0xb41   :  { %v7244_v12 = vmul.f32 0.03125, %v7200_v28 }
 0xb42   :  { %v7203_v49 = vpop.xlane.xlu1 %7202 }
 0xb43   :  { %v14328_v4 = vsub.f32 %v14221_v56, %v7244_v12  ;;  %v7245_v1 = vmul.f32 0.03125, %v7203_v49 }
 0xb45   :  { %v14331_v9 = vsub.f32 %v14225_v5, %v7245_v1  ;;  %v7280_v2 = vmul.f32 %v14328_v4, %v14328_v4 }
 0xb47   :  { %v7306_v10 = vsel %vm99_vm0, %v7280_v2, 0.0  ;;  %v7281_v44 = vmul.f32 %v14331_v9, %v14331_v9 }
 0xb48   :  { %7307 = vadd.xlane.f32.xlu0 %v7306_v10 }
 0xb49   :  { %v7309_v29 = vsel %vm99_vm0, %v7281_v44, 0.0 }
 0xb4a   :  { %7310 = vadd.xlane.f32.xlu1 %v7309_v29 }
 0xb52   :  { %v7206_v22 = vpop.xlane.xlu0 %7205 }
 0xb53   :  { %v7246_v41 = vmul.f32 0.03125, %v7206_v22 }
 0xb54   :  { %v7209_v55 = vpop.xlane.xlu1 %7208 }
 0xb55   :  { %v14340_v61 = vsub.f32 %v14233_v15, %v7246_v41  ;;  %v7247_v37 = vmul.f32 0.03125, %v7209_v55 }
 0xb57   :  { %v14343_v35 = vsub.f32 %v14237_v16, %v7247_v37  ;;  %v7282_v8 = vmul.f32 %v14340_v61, %v14340_v61 }
 0xb59   :  { %v7312_v20 = vsel %vm99_vm0, %v7282_v8, 0.0  ;;  %v7283_v54 = vmul.f32 %v14343_v35, %v14343_v35 }
 0xb5a   :  { %7313 = vadd.xlane.f32.xlu0 %v7312_v20 }
 0xb5b   :  { %v7315_v62 = vsel %vm99_vm0, %v7283_v54, 0.0 }
 0xb5c   :  { %7316 = vadd.xlane.f32.xlu1 %v7315_v62 }
 0xb63   :  { %v7212_v53 = vpop.xlane.xlu0 %7211 }
 0xb64   :  { %v7248_v40 = vmul.f32 0.03125, %v7212_v53 }
 0xb65   :  { %v7215_v32 = vpop.xlane.xlu1 %7214 }
 0xb66   :  { %v14360_v45 = vsub.f32 %v14245_v19, %v7248_v40  ;;  %v7249_v30 = vmul.f32 0.03125, %v7215_v32 }
 0xb68   :  { %v14363_v21 = vsub.f32 %v14249_v42, %v7249_v30  ;;  %v7284_v26 = vmul.f32 %v14360_v45, %v14360_v45 }
 0xb6a   :  { %v7318_v6 = vsel %vm99_vm0, %v7284_v26, 0.0  ;;  %v7285_v18 = vmul.f32 %v14363_v21, %v14363_v21 }
 0xb6b   :  { %7319 = vadd.xlane.f32.xlu0 %v7318_v6 }
 0xb6c   :  { %v7321_v57 = vsel %vm99_vm0, %v7285_v18, 0.0 }
 0xb6d   :  { %7322 = vadd.xlane.f32.xlu1 %v7321_v57 }
 0xb75   :  { %v7218_v50 = vpop.xlane.xlu0 %7217 }
 0xb76   :  { %v7250_v36 = vmul.f32 0.03125, %v7218_v50 }
 0xb77   :  { %v7221_v0 = vpop.xlane.xlu1 %7220 }
 0xb78   :  { %v14372_v34 = vsub.f32 %v14257_v17, %v7250_v36  ;;  %v7251_v31 = vmul.f32 0.03125, %v7221_v0 }
 0xb7a   :  { %v14375_v38 = vsub.f32 %v14261_v51, %v7251_v31  ;;  %v7286_v60 = vmul.f32 %v14372_v34, %v14372_v34 }
 0xb7c   :  { %v7324_v25 = vsel %vm99_vm0, %v7286_v60, 0.0  ;;  %v7287_v52 = vmul.f32 %v14375_v38, %v14375_v38 }
 0xb7d   :  { %7325 = vadd.xlane.f32.xlu0 %v7324_v25 }
 0xb7e   :  { %v7327_v28 = vsel %vm99_vm0, %v7287_v52, 0.0 }
 0xb7f   :  { %7328 = vadd.xlane.f32.xlu1 %v7327_v28 }
 0xb86   :  { %v7224_v12 = vpop.xlane.xlu0 %7223 }
 0xb87   :  { %v7252_v49 = vmul.f32 0.03125, %v7224_v12 }
 0xb88   :  { %v7227_v1 = vpop.xlane.xlu1 %7226 }
 0xb89   :  { %v14384_v2 = vsub.f32 %v14269_v46, %v7252_v49  ;;  %v7253_v10 = vmul.f32 0.03125, %v7227_v1 }
 0xb8b   :  { %v14387_v44 = vsub.f32 %v14273_v48, %v7253_v10  ;;  %v7288_v29 = vmul.f32 %v14384_v2, %v14384_v2 }
 0xb8d   :  { %v7330_v22 = vsel %vm99_vm0, %v7288_v29, 0.0  ;;  %v7289_v41 = vmul.f32 %v14387_v44, %v14387_v44  ;;  %v14422_v29 = vld [vmem:[%s14706_s19] ss:$0 sm:$0xff] }
 0xb8e   :  { %7331 = vadd.xlane.f32.xlu0 %v7330_v22 }
 0xb8f   :  { %v7333_v55 = vsel %vm99_vm0, %v7289_v41, 0.0 }
 0xb90   :  { %7334 = vadd.xlane.f32.xlu1 %v7333_v55 }
 0xb96   :  { %v7230_v37 = vpop.xlane.xlu0 %7229 }
 0xb97   :  { %v7254_v8 = vmul.f32 0.03125, %v7230_v37 }
 0xb98   :  { %v7233_v13 = vpop.xlane.xlu1 %7232 }
 0xb99   :  { %v14396_v20 = vsub.f32 %v14281_v27, %v7254_v8  ;;  %v7255_v54 = vmul.f32 0.03125, %v7233_v13  ;;  %v14430_v8 = vld [vmem:[%s14707_s20] ss:$0 sm:$0xff] }
 0xb9b   :  { %v14399_v62 = vsub.f32 %v14285_v59, %v7255_v54  ;;  %v7290_v3 = vmul.f32 %v14396_v20, %v14396_v20 }
 0xb9d   :  { %v7336_v53 = vsel %vm99_vm0, %v7290_v3, 0.0  ;;  %v7291_v40 = vmul.f32 %v14399_v62, %v14399_v62 }
 0xb9e   :  { %7337 = vadd.xlane.f32.xlu0 %v7336_v53 }
 0xb9f   :  { %v7339_v32 = vsel %vm99_vm0, %v7291_v40, 0.0 }
 0xba0   :  { %7340 = vadd.xlane.f32.xlu1 %v7339_v32 }
 0xba6   :  { %v7236_v30 = vpop.xlane.xlu0 %7235 }
 0xba7   :  { %v7256_v26 = vmul.f32 0.03125, %v7236_v30 }
 0xba8   :  { %v7239_v6 = vpop.xlane.xlu1 %7238 }
 0xba9   :  { %v14408_v18 = vsub.f32 %v14293_v33, %v7256_v26  ;;  %v7257_v57 = vmul.f32 0.03125, %v7239_v6 }
 0xbab   :  { %v14411_v50 = vsub.f32 %v14297_v24, %v7257_v57  ;;  %v7292_v36 = vmul.f32 %v14408_v18, %v14408_v18 }
 0xbad   :  { %v7342_v0 = vsel %vm99_vm0, %v7292_v36, 0.0  ;;  %v7293_v31 = vmul.f32 %v14411_v50, %v14411_v50  ;;  %v7296_v60 = vpop.xlane.xlu0 %7295 }
 0xbae   :  { %7343 = vadd.xlane.f32.xlu0 %v7342_v0  ;;  %v7348_v25 = vmul.f32 0.03125, %v7296_v60 }
 0xbaf   :  { %v7345_v52 = vsel %vm99_vm0, %v7293_v31, 0.0  ;;  %v7299_v28 = vpop.xlane.xlu1 %7298 }
 0xbb0   :  { %7346 = vadd.xlane.f32.xlu1 %v7345_v52  ;;  %v7366_v12 = vadd.f32 1e-05, %v7348_v25  ;;  %v7349_v49 = vmul.f32 0.03125, %v7299_v28 }
 0xbb2   :  { %9389 = vrsqrt.f32 %v7366_v12  ;;  %v7367_v1 = vadd.f32 1e-05, %v7349_v49 }
 0xbb4   :  { %9391 = vrsqrt.f32 %v7367_v1 }
 0xbbc   :  { %v9390_v10 = vpop.eup %9389 }
 0xbbd   :  { %v7402_v22 = vmul.f32 %v9390_v10, %v14304_v11 }
 0xbbe   :  { %v9392_v41 = vpop.eup %9391 }
 0xbbf   :  { %v7427_v55 = vmul.f32 %v14422_v29, %v7402_v22  ;;  %v7403_v37 = vmul.f32 %v9392_v41, %v14307_v39 }
 0xbc1   :  { %v7428_v13 = vmul.f32 %v14422_v29, %v7403_v37  ;;  %v7452_v3 = vadd.f32 %v14430_v8, %v7427_v55 }
 0xbc3   :  { %v7302_v54 = vpop.xlane.xlu0 %7301  ;;  %v7453_v53 = vadd.f32 %v14430_v8, %v7428_v13 }
 0xbc4   :  { %v7350_v40 = vmul.f32 0.03125, %v7302_v54 }
 0xbc5   :  { %v7305_v32 = vpop.xlane.xlu1 %7304  ;;  %v7470_v11 = vpack.c.bf16 %v7453_v53, %v7452_v3 }
 0xbc6   :  { %v7368_v30 = vadd.f32 1e-05, %v7350_v40  ;;  %v7351_v26 = vmul.f32 0.03125, %v7305_v32 }
 0xbc7   :  { %8601 = vmatmul.mubr.msk.bf16.vlgmr.msra.gmra.mrb[12].mxu1 %vm99_vm0, %v7470_v11 }
 0xbc8   :  { %9393 = vrsqrt.f32 %v7368_v30  ;;  %v7369_v6 = vadd.f32 1e-05, %v7351_v26  ;;  %8604 = vmatprep.mubr.msk.bf16.mxu1 %vm9463_vm2, %v14978_v63 }
 0xbca   :  { %9395 = vrsqrt.f32 %v7369_v6 }
 0xbd2   :  { %v9394_v39 = vpop.eup %9393 }
 0xbd3   :  { %v7404_v57 = vmul.f32 %v9394_v39, %v14316_v14 }
 0xbd4   :  { %v9396_v36 = vpop.eup %9395 }
 0xbd5   :  { %v7429_v0 = vmul.f32 %v14422_v29, %v7404_v57  ;;  %v7405_v31 = vmul.f32 %v9396_v36, %v14319_v58  ;;  %v7308_v60 = vpop.xlane.xlu0 %7307 }
 0xbd6   :  { %v7352_v25 = vmul.f32 0.03125, %v7308_v60 }
 0xbd7   :  { %v7430_v52 = vmul.f32 %v14422_v29, %v7405_v31  ;;  %v7311_v28 = vpop.xlane.xlu1 %7310  ;;  %v7454_v1 = vadd.f32 %v14430_v8, %v7429_v0 }
 0xbd8   :  { %v7370_v12 = vadd.f32 1e-05, %v7352_v25  ;;  %v7353_v49 = vmul.f32 0.03125, %v7311_v28 }
 0xbd9   :  { %v7455_v10 = vadd.f32 %v14430_v8, %v7430_v52 }
 0xbda   :  { %9397 = vrsqrt.f32 %v7370_v12  ;;  %v7371_v22 = vadd.f32 1e-05, %v7353_v49 }
 0xbdb   :  { %v7471_v41 = vpack.c.bf16 %v7455_v10, %v7454_v1 }
 0xbdc   :  { %9399 = vrsqrt.f32 %v7371_v22 }
 0xbdd   :  { %8605 = vmatmul.mubr.msk.bf16.gmra.mrb[16].mxu1 %vm99_vm0, %v7471_v41 }
 0xbde   :  { %8608 = vmatprep.mubr.msk.bf16.mxu1 %vm9463_vm2, %v14978_v63 }
 0xbe4   :  { %v9398_v14 = vpop.eup %9397 }
 0xbe5   :  { %v7406_v58 = vmul.f32 %v9398_v14, %v14328_v4 }
 0xbe6   :  { %v9400_v55 = vpop.eup %9399 }
 0xbe7   :  { %v7431_v37 = vmul.f32 %v14422_v29, %v7406_v58  ;;  %v7407_v13 = vmul.f32 %v9400_v55, %v14331_v9  ;;  %v7314_v54 = vpop.xlane.xlu0 %7313 }
 0xbe8   :  { %v7354_v3 = vmul.f32 0.03125, %v7314_v54 }
 0xbe9   :  { %v7432_v53 = vmul.f32 %v14422_v29, %v7407_v13  ;;  %v7317_v40 = vpop.xlane.xlu1 %7316  ;;  %v7456_v30 = vadd.f32 %v14430_v8, %v7431_v37 }
 0xbea   :  { %v7372_v32 = vadd.f32 1e-05, %v7354_v3  ;;  %v7355_v11 = vmul.f32 0.03125, %v7317_v40 }
 0xbeb   :  { %v7457_v26 = vadd.f32 %v14430_v8, %v7432_v53 }
 0xbec   :  { %9401 = vrsqrt.f32 %v7372_v32  ;;  %v7373_v6 = vadd.f32 1e-05, %v7355_v11 }
 0xbed   :  { %v7472_v39 = vpack.c.bf16 %v7457_v26, %v7456_v30 }
 0xbee   :  { %9403 = vrsqrt.f32 %v7373_v6 }
 0xbef   :  { %8609 = vmatmul.mubr.msk.bf16.gmra.mrb[20].mxu1 %vm99_vm0, %v7472_v39 }
 0xbf0   :  { %8612 = vmatprep.mubr.msk.bf16.mxu1 %vm9463_vm2, %v14978_v63 }
 0xbf6   :  { %v9402_v4 = vpop.eup %9401 }
 0xbf7   :  { %v7408_v9 = vmul.f32 %v9402_v4, %v14340_v61 }
 0xbf8   :  { %v9404_v57 = vpop.eup %9403  ;;  %v7320_v31 = vpop.xlane.xlu0 %7319 }
 0xbf9   :  { %v7433_v36 = vmul.f32 %v14422_v29, %v7408_v9  ;;  %v7409_v0 = vmul.f32 %v9404_v57, %v14343_v35  ;;  %v7356_v25 = vmul.f32 0.03125, %v7320_v31 }
 0xbfa   :  { %v7323_v52 = vpop.xlane.xlu1 %7322 }
 0xbfb   :  { %v7434_v60 = vmul.f32 %v14422_v29, %v7409_v0  ;;  %v7458_v28 = vadd.f32 %v14430_v8, %v7433_v36  ;;  %v7374_v49 = vadd.f32 1e-05, %v7356_v25  ;;  %v7357_v1 = vmul.f32 0.03125, %v7323_v52 }
 0xbfd   :  { %v7459_v12 = vadd.f32 %v14430_v8, %v7434_v60  ;;  %9405 = vrsqrt.f32 %v7374_v49  ;;  %v7375_v22 = vadd.f32 1e-05, %v7357_v1 }
 0xbff   :  { %v7473_v10 = vpack.c.bf16 %v7459_v12, %v7458_v28  ;;  %9407 = vrsqrt.f32 %v7375_v22 }
 0xc01   :  { %8613 = vmatmul.mubr.msk.bf16.gmra.mrb[24].mxu1 %vm99_vm0, %v7473_v10 }
 0xc02   :  { %8616 = vmatprep.mubr.msk.bf16.mxu1 %vm9463_vm2, %v14978_v63 }
 0xc07   :  { %v9406_v61 = vpop.eup %9405 }
 0xc08   :  { %v7410_v35 = vmul.f32 %v9406_v61, %v14360_v45 }
 0xc09   :  { %v9408_v41 = vpop.eup %9407 }
 0xc0a   :  { %v7435_v14 = vmul.f32 %v14422_v29, %v7410_v35  ;;  %v7411_v58 = vmul.f32 %v9408_v41, %v14363_v21  ;;  %v7326_v55 = vpop.xlane.xlu0 %7325 }
 0xc0b   :  { %v7358_v37 = vmul.f32 0.03125, %v7326_v55 }
 0xc0c   :  { %v7436_v13 = vmul.f32 %v14422_v29, %v7411_v58  ;;  %v7329_v54 = vpop.xlane.xlu1 %7328  ;;  %v7460_v40 = vadd.f32 %v14430_v8, %v7435_v14 }
 0xc0d   :  { %v7376_v3 = vadd.f32 1e-05, %v7358_v37  ;;  %v7359_v53 = vmul.f32 0.03125, %v7329_v54 }
 0xc0e   :  { %v7461_v32 = vadd.f32 %v14430_v8, %v7436_v13 }
 0xc0f   :  { %9409 = vrsqrt.f32 %v7376_v3  ;;  %v7377_v11 = vadd.f32 1e-05, %v7359_v53 }
 0xc10   :  { %v7474_v30 = vpack.c.bf16 %v7461_v32, %v7460_v40 }
 0xc11   :  { %9411 = vrsqrt.f32 %v7377_v11 }
 0xc12   :  { %8617 = vmatmul.mubr.msk.bf16.gmra.mrb[28].mxu1 %vm99_vm0, %v7474_v30 }
 0xc13   :  { %8620 = vmatprep.mubr.msk.bf16.mxu1 %vm9463_vm2, %v14978_v63 }
 0xc19   :  { %v9410_v45 = vpop.eup %9409 }
 0xc1a   :  { %v7412_v21 = vmul.f32 %v9410_v45, %v14372_v34 }
 0xc1b   :  { %v7332_v26 = vpop.xlane.xlu0 %7331  ;;  %v9412_v6 = vpop.eup %9411 }
 0xc1c   :  { %v7360_v39 = vmul.f32 0.03125, %v7332_v26  ;;  %v7437_v4 = vmul.f32 %v14422_v29, %v7412_v21  ;;  %v7413_v9 = vmul.f32 %v9412_v6, %v14375_v38 }
 0xc1d   :  { %v7335_v57 = vpop.xlane.xlu1 %7334 }
 0xc1e   :  { %v7378_v36 = vadd.f32 1e-05, %v7360_v39  ;;  %v7361_v0 = vmul.f32 0.03125, %v7335_v57  ;;  %v7438_v31 = vmul.f32 %v14422_v29, %v7413_v9  ;;  %v7462_v25 = vadd.f32 %v14430_v8, %v7437_v4 }
 0xc20   :  { %9413 = vrsqrt.f32 %v7378_v36  ;;  %v7379_v60 = vadd.f32 1e-05, %v7361_v0  ;;  %v7463_v52 = vadd.f32 %v14430_v8, %v7438_v31 }
 0xc22   :  { %9415 = vrsqrt.f32 %v7379_v60  ;;  %v7475_v34 = vpack.c.bf16 %v7463_v52, %v7462_v25 }
 0xc24   :  { %8621 = vmatmul.mubr.msk.bf16.gmra.mrb[32].mxu1 %vm99_vm0, %v7475_v34 }
 0xc25   :  { %8624 = vmatprep.mubr.msk.bf16.mxu1 %vm9463_vm2, %v14978_v63 }
 0xc2a   :  { %v9414_v28 = vpop.eup %9413 }
 0xc2b   :  { %v7414_v38 = vmul.f32 %v9414_v28, %v14384_v2  ;;  %v7338_v12 = vpop.xlane.xlu0 %7337  ;;  %v9073_v2 = vld [vmem:[%s14708_s23] sm:$0xff]  }
 0xc2c   :  { %v9416_v49 = vpop.eup %9415  ;;  %v7362_v1 = vmul.f32 0.03125, %v7338_v12  ;;  %8637 = vmatpush3.bf16.msra.mxu1 %v9073_v2 }
 0xc2d   :  { %v7439_v10 = vmul.f32 %v14422_v29, %v7414_v38  ;;  %v7415_v22 = vmul.f32 %v9416_v49, %v14387_v44  ;;  %v7341_v61 = vpop.xlane.xlu1 %7340  ;;  %v9074_v44 = vld [vmem:[%s14708_s23 + $0x8] sm:$0xff]   ;;  %8638 = vmatprep.subr.bf16.mxu1 %v14978_v63 }
 0xc2e   :  { %v7380_v35 = vadd.f32 1e-05, %v7362_v1  ;;  %v7363_v41 = vmul.f32 0.03125, %v7341_v61 }
 0xc2f   :  { %v7440_v14 = vmul.f32 %v14422_v29, %v7415_v22  ;;  %v7464_v55 = vadd.f32 %v14430_v8, %v7439_v10 }
 0xc30   :  { %9417 = vrsqrt.f32 %v7380_v35  ;;  %v7381_v58 = vadd.f32 1e-05, %v7363_v41  ;;  %8639 = vmatpush3.bf16.msra.mxu1 %v9074_v44 }
 0xc31   :  { %v7465_v37 = vadd.f32 %v14430_v8, %v7440_v14  ;;  %8640 = vmatprep.subr.bf16.mxu1 %v14978_v63 }
 0xc32   :  { %9419 = vrsqrt.f32 %v7381_v58 }
 0xc33   :  { %v7476_v13 = vpack.c.bf16 %v7465_v37, %v7464_v55 }
 0xc35   :  { %8625 = vmatmul.mubr.msk.bf16.gmra.mrb[36].mxu1 %vm99_vm0, %v7476_v13 }
 0xc36   :  { %8628 = vmatprep.mubr.msk.bf16.mxu1 %vm9463_vm2, %v14978_v63 }
 0xc3a   :  { %v9418_v54 = vpop.eup %9417 }
 0xc3b   :  { %v7416_v3 = vmul.f32 %v9418_v54, %v14396_v20  ;;  %v7344_v53 = vpop.xlane.xlu0 %7343  ;;  %v9075_v20 = vld [vmem:[%s14708_s23 + $0x10] sm:$0xff]  }
 0xc3c   :  { %v9420_v40 = vpop.eup %9419  ;;  %v7364_v32 = vmul.f32 0.03125, %v7344_v53  ;;  %8641 = vmatpush3.bf16.msra.mxu1 %v9075_v20 }
 0xc3d   :  { %v7441_v11 = vmul.f32 %v14422_v29, %v7416_v3  ;;  %v7417_v30 = vmul.f32 %v9420_v40, %v14399_v62  ;;  %v7347_v45 = vpop.xlane.xlu1 %7346  ;;  %8642 = vmatprep.subr.bf16.mxu1 %v14978_v63  ;;  %v9076_v62 = vld [vmem:[%s14708_s23 + $0x18] sm:$0xff]  }
 0xc3e   :  { %v7382_v21 = vadd.f32 1e-05, %v7364_v32  ;;  %v7365_v26 = vmul.f32 0.03125, %v7347_v45 }
 0xc3f   :  { %v7442_v6 = vmul.f32 %v14422_v29, %v7417_v30  ;;  %v7466_v4 = vadd.f32 %v14430_v8, %v7441_v11 }
 0xc40   :  { %9421 = vrsqrt.f32 %v7382_v21  ;;  %v7383_v39 = vadd.f32 1e-05, %v7365_v26  ;;  %8643 = vmatpush3.bf16.msra.mxu1 %v9076_v62 }
 0xc41   :  { %v7467_v9 = vadd.f32 %v14430_v8, %v7442_v6 }
 0xc42   :  { %9423 = vrsqrt.f32 %v7383_v39 }
 0xc43   :  { %v7477_v57 = vpack.c.bf16 %v7467_v9, %v7466_v4 }
 0xc45   :  { %8629 = vmatmul.mubr.msk.bf16.gmra.mrb[40].mxu1 %vm99_vm0, %v7477_v57 }
 0xc46   :  { %8632 = vmatprep.mubr.msk.bf16.mxu1 %vm9463_vm2, %v14978_v63 }
 0xc4a   :  { %v9422_v36 = vpop.eup %9421 }
 0xc4b   :  { %v7418_v0 = vmul.f32 %v9422_v36, %v14408_v18  ;;  %v14528_v18 = vld [vmem:[%s14709_s22] ss:$0 sm:$0xff] }
 0xc4c   :  { %v9424_v31 = vpop.eup %9423 }
 0xc4d   :  { %v7443_v60 = vmul.f32 %v14422_v29, %v7418_v0  ;;  %v7419_v25 = vmul.f32 %v9424_v31, %v14411_v50 }
 0xc4f   :  { %v7444_v52 = vmul.f32 %v14422_v29, %v7419_v25  ;;  %v7468_v34 = vadd.f32 %v14430_v8, %v7443_v60 }
 0xc51   :  { %v7469_v28 = vadd.f32 %v14430_v8, %v7444_v52 }
 0xc53   :  { %v7478_v38 = vpack.c.bf16 %v7469_v28, %v7468_v34 }
 0xc55   :  { %8633 = vmatmul.mubr.msk.bf16.gmra.mrb[44].mxu1 %vm99_vm0, %v7478_v38 }
 0xc56   :  { %8644 = vmatprep.mubr.msk.bf16.mxu1 %vm9463_vm2, %v14978_v63 }
 0xc9a   :  { %v7563_v12 = vpop.f32.mrb[12].mxu1 }
 0xc9b   :  { %v7564_v50 = vadd.f32 %v14528_v18, %v7563_v12  ;;  %v8602_v49 = vpop.f32.mrb[13].mxu1 }
 0xc9c   :  { %v7566_v29 = vpop.f32.mrb[14].mxu1 }
 0xc9d   :  { %v7652_v1 = vmul.f32 0.70710677, %v7564_v50  ;;  %v7567_v10 = vadd.f32 %v14528_v18, %v7566_v29  ;;  %v8603_v8 = vpop.f32.mrb[15].mxu1  ;;  %v7634_v14 = vmul.f32 0.5, %v7564_v50 }
 0xc9f   :  { %9425 = verf.f32 %v7652_v1  ;;  %v7653_v22 = vmul.f32 0.70710677, %v7567_v10  ;;  %v7635_v58 = vmul.f32 0.5, %v7567_v10 }
 0xca1   :  { %9427 = verf.f32 %v7653_v22 }
 0xca9   :  { %v9426_v61 = vpop.eup %9425 }
 0xcaa   :  { %v7688_v35 = vadd.f32 1.0, %v9426_v61 }
 0xcab   :  { %v9428_v41 = vpop.eup %9427 }
 0xcac   :  { %v7689_v55 = vadd.f32 1.0, %v9428_v41  ;;  %v7706_v37 = vmul.f32 %v7688_v35, %v7634_v14 }
 0xcae   :  { %v7707_v2 = vmul.f32 %v7689_v55, %v7635_v58 }
 0xcb0   :  { %v7571_v44 = vpop.f32.mrb[16].mxu1  ;;  %v7724_v13 = vpack.c.bf16 %v7707_v2, %v7706_v37 }
 0xcb1   :  { %v7572_v54 = vadd.f32 %v14528_v18, %v7571_v44  ;;  %v8606_v3 = vpop.f32.mrb[17].mxu1 }
 0xcb2   :  { %v7574_v53 = vpop.f32.mrb[18].mxu1  ;;  %8645 = vmatmul.mubr.msk.bf16.vlgmr.msra.gmra.mrb[48].mxu1 %vm5041_vm3, %v7724_v13 }
 0xcb3   :  { %v7654_v40 = vmul.f32 0.70710677, %v7572_v54  ;;  %v7575_v32 = vadd.f32 %v14528_v18, %v7574_v53  ;;  %v8607_v11 = vpop.f32.mrb[19].mxu1  ;;  %8648 = vmatprep.mubr.msk.bf16.mxu1 %vm9463_vm2, %v14978_v63  ;;  %v7636_v6 = vmul.f32 0.5, %v7572_v54 }
 0xcb5   :  { %9429 = verf.f32 %v7654_v40  ;;  %v7655_v30 = vmul.f32 0.70710677, %v7575_v32  ;;  %v7637_v39 = vmul.f32 0.5, %v7575_v32 }
 0xcb7   :  { %9431 = verf.f32 %v7655_v30 }
 0xcbf   :  { %v9430_v45 = vpop.eup %9429 }
 0xcc0   :  { %v7690_v21 = vadd.f32 1.0, %v9430_v45 }
 0xcc1   :  { %v9432_v26 = vpop.eup %9431 }
 0xcc2   :  { %v7691_v4 = vadd.f32 1.0, %v9432_v26  ;;  %v7579_v9 = vpop.f32.mrb[20].mxu1  ;;  %v7708_v62 = vmul.f32 %v7690_v21, %v7636_v6 }
 0xcc3   :  { %v7580_v20 = vadd.f32 %v14528_v18, %v7579_v9  ;;  %v8610_v57 = vpop.f32.mrb[21].mxu1 }
 0xcc4   :  { %v7709_v36 = vmul.f32 %v7691_v4, %v7637_v39  ;;  %v7582_v0 = vpop.f32.mrb[22].mxu1 }
 0xcc5   :  { %v7656_v31 = vmul.f32 0.70710677, %v7580_v20  ;;  %v7583_v60 = vadd.f32 %v14528_v18, %v7582_v0  ;;  %v8611_v25 = vpop.f32.mrb[23].mxu1  ;;  %v7638_v50 = vmul.f32 0.5, %v7580_v20 }
 0xcc6   :  { %v7725_v52 = vpack.c.bf16 %v7709_v36, %v7708_v62 }
 0xcc7   :  { %9433 = verf.f32 %v7656_v31  ;;  %v7657_v34 = vmul.f32 0.70710677, %v7583_v60  ;;  %v7639_v49 = vmul.f32 0.5, %v7583_v60 }
 0xcc8   :  { %8649 = vmatmul.mubr.msk.bf16.gmra.mrb[52].mxu1 %vm5041_vm3, %v7725_v52 }
 0xcc9   :  { %9435 = verf.f32 %v7657_v34  ;;  %8652 = vmatprep.mubr.msk.bf16.mxu1 %vm9463_vm2, %v14978_v63 }
 0xcd1   :  { %v9434_v28 = vpop.eup %9433 }
 0xcd2   :  { %v7692_v38 = vadd.f32 1.0, %v9434_v28 }
 0xcd3   :  { %v9436_v12 = vpop.eup %9435 }
 0xcd4   :  { %v7693_v29 = vadd.f32 1.0, %v9436_v12  ;;  %v7587_v1 = vpop.f32.mrb[24].mxu1  ;;  %v7710_v22 = vmul.f32 %v7692_v38, %v7638_v50 }
 0xcd5   :  { %v7588_v10 = vadd.f32 %v14528_v18, %v7587_v1  ;;  %v8614_v8 = vpop.f32.mrb[25].mxu1 }
 0xcd6   :  { %v7711_v61 = vmul.f32 %v7693_v29, %v7639_v49  ;;  %v7590_v35 = vpop.f32.mrb[26].mxu1 }
 0xcd7   :  { %v7658_v41 = vmul.f32 0.70710677, %v7588_v10  ;;  %v7591_v14 = vadd.f32 %v14528_v18, %v7590_v35  ;;  %v8615_v58 = vpop.f32.mrb[27].mxu1  ;;  %v7640_v54 = vmul.f32 0.5, %v7588_v10 }
 0xcd8   :  { %v7726_v55 = vpack.c.bf16 %v7711_v61, %v7710_v22 }
 0xcd9   :  { %9437 = verf.f32 %v7658_v41  ;;  %v7659_v37 = vmul.f32 0.70710677, %v7591_v14  ;;  %v7641_v3 = vmul.f32 0.5, %v7591_v14 }
 0xcda   :  { %8653 = vmatmul.mubr.msk.bf16.gmra.mrb[56].mxu1 %vm5041_vm3, %v7726_v55 }
 0xcdb   :  { %9439 = verf.f32 %v7659_v37  ;;  %8656 = vmatprep.mubr.msk.bf16.mxu1 %vm9463_vm2, %v14978_v63 }
 0xce3   :  { %v9438_v2 = vpop.eup %9437 }
 0xce4   :  { %v7694_v44 = vadd.f32 1.0, %v9438_v2 }
 0xce5   :  { %v9440_v13 = vpop.eup %9439  ;;  %v7595_v40 = vpop.f32.mrb[28].mxu1 }
 0xce6   :  { %v7695_v53 = vadd.f32 1.0, %v9440_v13  ;;  %v7712_v32 = vmul.f32 %v7694_v44, %v7640_v54  ;;  %v7596_v30 = vadd.f32 %v14528_v18, %v7595_v40  ;;  %v8618_v45 = vpop.f32.mrb[29].mxu1 }
 0xce7   :  { %v7598_v21 = vpop.f32.mrb[30].mxu1 }
 0xce8   :  { %v7713_v11 = vmul.f32 %v7695_v53, %v7641_v3  ;;  %v7660_v6 = vmul.f32 0.70710677, %v7596_v30  ;;  %v7599_v39 = vadd.f32 %v14528_v18, %v7598_v21  ;;  %v8619_v4 = vpop.f32.mrb[31].mxu1  ;;  %v7642_v36 = vmul.f32 0.5, %v7596_v30 }
 0xcea   :  { %v7727_v26 = vpack.c.bf16 %v7713_v11, %v7712_v32  ;;  %9441 = verf.f32 %v7660_v6  ;;  %v7661_v9 = vmul.f32 0.70710677, %v7599_v39  ;;  %v7643_v0 = vmul.f32 0.5, %v7599_v39 }
 0xcec   :  { %8657 = vmatmul.mubr.msk.bf16.gmra.mrb[60].mxu1 %vm5041_vm3, %v7727_v26  ;;  %9443 = verf.f32 %v7661_v9 }
 0xced   :  { %8660 = vmatprep.mubr.msk.bf16.mxu1 %vm9463_vm2, %v14978_v63 }
 0xcf4   :  { %v9442_v20 = vpop.eup %9441 }
 0xcf5   :  { %v7696_v57 = vadd.f32 1.0, %v9442_v20 }
 0xcf6   :  { %v9444_v62 = vpop.eup %9443 }
 0xcf7   :  { %v7697_v31 = vadd.f32 1.0, %v9444_v62  ;;  %v7603_v60 = vpop.f32.mrb[32].mxu1  ;;  %v7714_v34 = vmul.f32 %v7696_v57, %v7642_v36 }
 0xcf8   :  { %v7604_v25 = vadd.f32 %v14528_v18, %v7603_v60  ;;  %v8622_v52 = vpop.f32.mrb[33].mxu1 }
 0xcf9   :  { %v7715_v28 = vmul.f32 %v7697_v31, %v7643_v0  ;;  %v7606_v38 = vpop.f32.mrb[34].mxu1 }
 0xcfa   :  { %v7662_v12 = vmul.f32 0.70710677, %v7604_v25  ;;  %v7607_v50 = vadd.f32 %v14528_v18, %v7606_v38  ;;  %v8623_v49 = vpop.f32.mrb[35].mxu1  ;;  %v7644_v14 = vmul.f32 0.5, %v7604_v25 }
 0xcfb   :  { %v7728_v29 = vpack.c.bf16 %v7715_v28, %v7714_v34 }
 0xcfc   :  { %9445 = verf.f32 %v7662_v12  ;;  %v7663_v1 = vmul.f32 0.70710677, %v7607_v50  ;;  %v7645_v58 = vmul.f32 0.5, %v7607_v50 }
 0xcfd   :  { %8661 = vmatmul.mubr.msk.bf16.gmra.mrb[64].mxu1 %vm5041_vm3, %v7728_v29 }
 0xcfe   :  { %9447 = verf.f32 %v7663_v1  ;;  %8664 = vmatprep.mubr.msk.bf16.mxu1 %vm9463_vm2, %v14978_v63 }
 0xd06   :  { %v9446_v10 = vpop.eup %9445 }
 0xd07   :  { %v7698_v8 = vadd.f32 1.0, %v9446_v10 }
 0xd08   :  { %v7611_v22 = vpop.f32.mrb[36].mxu1  ;;  %v9448_v61 = vpop.eup %9447 }
 0xd09   :  { %v7612_v35 = vadd.f32 %v14528_v18, %v7611_v22  ;;  %v8626_v41 = vpop.f32.mrb[37].mxu1  ;;  %v7699_v55 = vadd.f32 1.0, %v9448_v61  ;;  %v7716_v54 = vmul.f32 %v7698_v8, %v7644_v14 }
 0xd0a   :  { %v7614_v37 = vpop.f32.mrb[38].mxu1 }
 0xd0b   :  { %v7664_v2 = vmul.f32 0.70710677, %v7612_v35  ;;  %v7615_v44 = vadd.f32 %v14528_v18, %v7614_v37  ;;  %v8627_v13 = vpop.f32.mrb[39].mxu1  ;;  %v7717_v3 = vmul.f32 %v7699_v55, %v7645_v58  ;;  %v7646_v6 = vmul.f32 0.5, %v7612_v35 }
 0xd0d   :  { %9449 = verf.f32 %v7664_v2  ;;  %v7665_v53 = vmul.f32 0.70710677, %v7615_v44  ;;  %v7729_v40 = vpack.c.bf16 %v7717_v3, %v7716_v54  ;;  %v7647_v39 = vmul.f32 0.5, %v7615_v44 }
 0xd0f   :  { %9451 = verf.f32 %v7665_v53  ;;  %8665 = vmatmul.mubr.msk.bf16.gmra.mrb[68].mxu1 %vm5041_vm3, %v7729_v40  ;;  %v14576_v53 = vld [vmem:[%s14710_s24] ss:$0 sm:$0xff] }
 0xd10   :  { %8668 = vmatprep.mubr.msk.bf16.mxu1 %vm9463_vm2, %v14978_v63 }
 0xd17   :  { %v9450_v32 = vpop.eup %9449 }
 0xd18   :  { %v7700_v11 = vadd.f32 1.0, %v9450_v32  ;;  %v7619_v30 = vpop.f32.mrb[40].mxu1 }
 0xd19   :  { %v9452_v45 = vpop.eup %9451  ;;  %v7620_v21 = vadd.f32 %v14528_v18, %v7619_v30  ;;  %v8630_v26 = vpop.f32.mrb[41].mxu1 }
 0xd1a   :  { %v7701_v4 = vadd.f32 1.0, %v9452_v45  ;;  %v7622_v9 = vpop.f32.mrb[42].mxu1  ;;  %v7718_v36 = vmul.f32 %v7700_v11, %v7646_v6 }
 0xd1b   :  { %v7666_v20 = vmul.f32 0.70710677, %v7620_v21  ;;  %v7623_v57 = vadd.f32 %v14528_v18, %v7622_v9  ;;  %v8631_v62 = vpop.f32.mrb[43].mxu1  ;;  %v7648_v50 = vmul.f32 0.5, %v7620_v21 }
 0xd1c   :  { %v7719_v0 = vmul.f32 %v7701_v4, %v7647_v39 }
 0xd1d   :  { %9453 = verf.f32 %v7666_v20  ;;  %v7667_v31 = vmul.f32 0.70710677, %v7623_v57  ;;  %v7649_v49 = vmul.f32 0.5, %v7623_v57 }
 0xd1e   :  { %v7730_v60 = vpack.c.bf16 %v7719_v0, %v7718_v36 }
 0xd1f   :  { %9455 = verf.f32 %v7667_v31 }
 0xd20   :  { %8669 = vmatmul.mubr.msk.bf16.gmra.mrb[72].mxu1 %vm5041_vm3, %v7730_v60 }
 0xd21   :  { %8672 = vmatprep.mubr.msk.bf16.mxu1 %vm9463_vm2, %v14978_v63 }
 0xd27   :  { %v9454_v25 = vpop.eup %9453 }
 0xd28   :  { %v7702_v52 = vadd.f32 1.0, %v9454_v25  ;;  %v7627_v34 = vpop.f32.mrb[44].mxu1 }
 0xd29   :  { %v9456_v28 = vpop.eup %9455  ;;  %v7628_v38 = vadd.f32 %v14528_v18, %v7627_v34  ;;  %v8634_v12 = vpop.f32.mrb[45].mxu1 }
 0xd2a   :  { %v7703_v29 = vadd.f32 1.0, %v9456_v28  ;;  %v7630_v1 = vpop.f32.mrb[46].mxu1  ;;  %v7720_v61 = vmul.f32 %v7702_v52, %v7648_v50 }
 0xd2b   :  { %v7668_v10 = vmul.f32 0.70710677, %v7628_v38  ;;  %v7631_v8 = vadd.f32 %v14528_v18, %v7630_v1  ;;  %v8635_v22 = vpop.f32.mrb[47].mxu1  ;;  %v7650_v2 = vmul.f32 0.5, %v7628_v38 }
 0xd2c   :  { %v7721_v35 = vmul.f32 %v7703_v29, %v7649_v49 }
 0xd2d   :  { %9457 = verf.f32 %v7668_v10  ;;  %v7669_v41 = vmul.f32 0.70710677, %v7631_v8  ;;  %v7651_v44 = vmul.f32 0.5, %v7631_v8 }
 0xd2e   :  { %v7731_v14 = vpack.c.bf16 %v7721_v35, %v7720_v61 }
 0xd2f   :  { %9459 = verf.f32 %v7669_v41 }
 0xd30   :  { %8673 = vmatmul.mubr.msk.bf16.gmra.mrb[76].mxu1 %vm5041_vm3, %v7731_v14 }
 0xd31   :  { %8676 = vmatprep.mubr.msk.bf16.mxu1 %vm9463_vm2, %v14978_v63 }
 0xd37   :  { %v9458_v58 = vpop.eup %9457 }
 0xd38   :  { %v7704_v55 = vadd.f32 1.0, %v9458_v58 }
 0xd39   :  { %v9460_v37 = vpop.eup %9459 }
 0xd3a   :  { %v7705_v13 = vadd.f32 1.0, %v9460_v37  ;;  %v7722_v54 = vmul.f32 %v7704_v55, %v7650_v2 }
 0xd3c   :  { %v7723_v18 = vmul.f32 %v7705_v13, %v7651_v44 }
 0xd3e   :  { %v7732_v3 = vpack.c.bf16 %v7723_v18, %v7722_v54 }
 0xd40   :  { %8677 = vmatmul.mubr.msk.bf16.gmra.mrb[80].mxu1 %vm5041_vm3, %v7732_v3 }
 0xd85   :  { %v7833_v40 = vpop.f32.mrb[48].mxu1 }
 0xd86   :  { %v7834_v32 = vadd.f32 %v14576_v53, %v7833_v40  ;;  %v8646_v63 = vpop.f32.mrb[49].mxu1 }
 0xd87   :  { %v7836_v11 = vpop.f32.mrb[50].mxu1 }
 0xd88   :  { %v7904_v30 = vadd.f32 %v7834_v32, %v14197_v47  ;;  %v7837_v45 = vadd.f32 %v14576_v53, %v7836_v11  ;;  %v8647_v21 = vpop.f32.mrb[51].mxu1 }
 0xd8a   :  { %7922 = vst.msk [vmem:[%s14711_s25] sm:$0xff] %vm99_vm0, %v7904_v30  ;;  %v7905_v26 = vadd.f32 %v7837_v45, %v14201_v23 }
 0xd8c   :  { %7923 = vst.msk [vmem:[%s14711_s25 + $0x8] sm:$0xff] %vm99_vm0, %v7905_v26 }
 0xd9b   :  { %v7841_v6 = vpop.f32.mrb[52].mxu1 }
 0xd9c   :  { %v7842_v39 = vadd.f32 %v14576_v53, %v7841_v6  ;;  %v8650_v4 = vpop.f32.mrb[53].mxu1 }
 0xd9d   :  { %v7844_v47 = vpop.f32.mrb[54].mxu1 }
 0xd9e   :  { %v7906_v9 = vadd.f32 %v7842_v39, %v14209_v7  ;;  %v7845_v20 = vadd.f32 %v14576_v53, %v7844_v47  ;;  %v8651_v57 = vpop.f32.mrb[55].mxu1 }
 0xda0   :  { %7924 = vst.msk [vmem:[%s14711_s25 + $0x10] sm:$0xff] %vm99_vm0, %v7906_v9  ;;  %v7907_v23 = vadd.f32 %v7845_v20, %v14213_v43 }
 0xda2   :  { %7925 = vst.msk [vmem:[%s14711_s25 + $0x18] sm:$0xff] %vm99_vm0, %v7907_v23 }
 0xdad   :  { %v7849_v62 = vpop.f32.mrb[56].mxu1 }
 0xdae   :  { %v7850_v36 = vadd.f32 %v14576_v53, %v7849_v62  ;;  %v8654_v0 = vpop.f32.mrb[57].mxu1 }
 0xdaf   :  { %v7852_v7 = vpop.f32.mrb[58].mxu1 }
 0xdb0   :  { %v7908_v31 = vadd.f32 %v7850_v36, %v14221_v56  ;;  %v7853_v60 = vadd.f32 %v14576_v53, %v7852_v7  ;;  %v8655_v25 = vpop.f32.mrb[59].mxu1 }
 0xdb2   :  { %7926 = vst.msk [vmem:[%s14711_s25 + $0x20] sm:$0xff] %vm99_vm0, %v7908_v31  ;;  %v7909_v43 = vadd.f32 %v7853_v60, %v14225_v5 }
 0xdb4   :  { %7927 = vst.msk [vmem:[%s14711_s25 + $0x28] sm:$0xff] %vm99_vm0, %v7909_v43 }
 0xdbf   :  { %v7857_v52 = vpop.f32.mrb[60].mxu1 }
 0xdc0   :  { %v7858_v34 = vadd.f32 %v14576_v53, %v7857_v52  ;;  %v8658_v28 = vpop.f32.mrb[61].mxu1 }
 0xdc1   :  { %v7860_v56 = vpop.f32.mrb[62].mxu1 }
 0xdc2   :  { %v7910_v38 = vadd.f32 %v7858_v34, %v14233_v15  ;;  %v7861_v12 = vadd.f32 %v14576_v53, %v7860_v56  ;;  %v8659_v50 = vpop.f32.mrb[63].mxu1 }
 0xdc4   :  { %7928 = vst.msk [vmem:[%s14711_s25 + $0x30] sm:$0xff] %vm99_vm0, %v7910_v38  ;;  %v7911_v5 = vadd.f32 %v7861_v12, %v14237_v16 }
 0xdc6   :  { %7929 = vst.msk [vmem:[%s14711_s25 + $0x38] sm:$0xff] %vm99_vm0, %v7911_v5 }
 0xdd0   :  { %v7865_v49 = vpop.f32.mrb[64].mxu1 }
 0xdd1   :  { %v7866_v29 = vadd.f32 %v14576_v53, %v7865_v49  ;;  %v8662_v1 = vpop.f32.mrb[65].mxu1 }
 0xdd2   :  { %v7868_v15 = vpop.f32.mrb[66].mxu1 }
 0xdd3   :  { %v7912_v10 = vadd.f32 %v7866_v29, %v14245_v19  ;;  %v7869_v8 = vadd.f32 %v14576_v53, %v7868_v15  ;;  %v8663_v22 = vpop.f32.mrb[67].mxu1 }
 0xdd5   :  { %7930 = vst.msk [vmem:[%s14711_s25 + $0x40] sm:$0xff] %vm99_vm0, %v7912_v10  ;;  %v7913_v16 = vadd.f32 %v7869_v8, %v14249_v42 }
 0xdd7   :  { %7931 = vst.msk [vmem:[%s14711_s25 + $0x48] sm:$0xff] %vm99_vm0, %v7913_v16 }
 0xde2   :  { %v7873_v61 = vpop.f32.mrb[68].mxu1 }
 0xde3   :  { %v7874_v35 = vadd.f32 %v14576_v53, %v7873_v61  ;;  %v8666_v41 = vpop.f32.mrb[69].mxu1 }
 0xde4   :  { %v7876_v19 = vpop.f32.mrb[70].mxu1 }
 0xde5   :  { %v7914_v14 = vadd.f32 %v7874_v35, %v14257_v17  ;;  %v7877_v58 = vadd.f32 %v14576_v53, %v7876_v19  ;;  %v8667_v55 = vpop.f32.mrb[71].mxu1 }
 0xde7   :  { %7932 = vst.msk [vmem:[%s14711_s25 + $0x50] sm:$0xff] %vm99_vm0, %v7914_v14  ;;  %v7915_v42 = vadd.f32 %v7877_v58, %v14261_v51 }
 0xde9   :  { %7933 = vst.msk [vmem:[%s14711_s25 + $0x58] sm:$0xff] %vm99_vm0, %v7915_v42 }
 0xdf3   :  { %v7881_v37 = vpop.f32.mrb[72].mxu1 }
 0xdf4   :  { %v7882_v2 = vadd.f32 %v14576_v53, %v7881_v37  ;;  %v8670_v44 = vpop.f32.mrb[73].mxu1 }
 0xdf5   :  { %v7884_v17 = vpop.f32.mrb[74].mxu1 }
 0xdf6   :  { %v7916_v13 = vadd.f32 %v7882_v2, %v14269_v46  ;;  %v7885_v54 = vadd.f32 %v14576_v53, %v7884_v17  ;;  %v8671_v18 = vpop.f32.mrb[75].mxu1 }
 0xdf8   :  { %7934 = vst.msk [vmem:[%s14711_s25 + $0x60] sm:$0xff] %vm99_vm0, %v7916_v13  ;;  %v7917_v51 = vadd.f32 %v7885_v54, %v14273_v48 }
 0xdfa   :  { %7935 = vst.msk [vmem:[%s14711_s25 + $0x68] sm:$0xff] %vm99_vm0, %v7917_v51 }
 0xe03   :  { %v7889_v3 = vpop.f32.mrb[76].mxu1 }
 0xe04   :  { %v7890_v40 = vadd.f32 %v14576_v53, %v7889_v3  ;;  %v8674_v32 = vpop.f32.mrb[77].mxu1 }
 0xe05   :  { %v7892_v46 = vpop.f32.mrb[78].mxu1 }
 0xe06   :  { %v7918_v63 = vadd.f32 %v7890_v40, %v14281_v27  ;;  %v7893_v11 = vadd.f32 %v14576_v53, %v7892_v46  ;;  %v8675_v30 = vpop.f32.mrb[79].mxu1 }
 0xe08   :  { %7936 = vst.msk [vmem:[%s14711_s25 + $0x70] sm:$0xff] %vm99_vm0, %v7918_v63  ;;  %v7919_v48 = vadd.f32 %v7893_v11, %v14285_v59 }
 0xe0a   :  { %7937 = vst.msk [vmem:[%s14711_s25 + $0x78] sm:$0xff] %vm99_vm0, %v7919_v48 }
 0xe13   :  { %v7897_v45 = vpop.f32.mrb[80].mxu1 }
 0xe14   :  { %v7898_v21 = vadd.f32 %v14576_v53, %v7897_v45  ;;  %v8678_v26 = vpop.f32.mrb[81].mxu1 }
 0xe15   :  { %v7900_v27 = vpop.f32.mrb[82].mxu1 }
 0xe16   :  { %v7920_v6 = vadd.f32 %v7898_v21, %v14293_v33  ;;  %v7901_v39 = vadd.f32 %v14576_v53, %v7900_v27  ;;  %v8679_v4 = vpop.f32.mrb[83].mxu1 }
 0xe18   :  { %7938 = vst.msk [vmem:[%s14711_s25 + $0x80] sm:$0xff] %vm99_vm0, %v7920_v6  ;;  %v7921_v59 = vadd.f32 %v7901_v39, %v14297_v24 }
 0xe1a   :  { %7939 = vst.msk [vmem:[%s14711_s25 + $0x88] sm:$0xff] %vm99_vm0, %v7921_v59 }

</bundles_post_ra>
